<compile_context>
chip_gen: v5e
topology: v5e:2x2
jax: 0.10.0
libtpu: 0.0.40
codegen_flags: <defaults>
</compile_context>

<pallas_src>
import jax
import jax.numpy as jnp
import numpy as np
from jax.experimental import pallas as pl
from jax.experimental.pallas import tpu as pltpu

EPS = 1e-5


# ----------------------------------------------------------------------------
# Small config helpers
# ----------------------------------------------------------------------------
def _pick_batch_block(N, Hq, Wq, c_mid, budget_bytes=6 << 20):
    """Largest divisor of N whose per-step scratch (padded act + bf16 im2col
    patches + in/out blocks) stays under `budget_bytes`, so M = nb*Hq*Wq rows
    feed the MXU per step while VMEM stays well below the scoped cap."""
    per_img = ((Hq + 2) * (Wq + 2) * c_mid + Hq * Wq * 9 * c_mid) * 2 \
        + Hq * Wq * c_mid * 4 * 4
    nb = 1
    for d in range(1, N + 1):
        if N % d == 0 and d * per_img <= budget_bytes:
            nb = d
    return nb


def _mosaic_params(step_bytes):
    kw = dict(dimension_semantics=("parallel",))
    # Raise the scoped-VMEM cap only when full-image blocks are actually large
    # (v5e/v6e default scoped window is 16/32 MiB vs 128 MiB physical).
    if step_bytes > (12 << 20):
        kw["vmem_limit_bytes"] = int(min(3 * step_bytes, 100 << 20))
    return pltpu.CompilerParams(**kw)


# ----------------------------------------------------------------------------
# Shared in-kernel helpers
# ----------------------------------------------------------------------------
def _pad_im2col_matmul(act, xp_ref, pat_ref, w_ref):
    """Zero-pad `act` (nb,Hq,Wq,C) by 1 pixel in VMEM (border-only writes),
    gather the 9 conv taps onto the lane (contraction) dim, and do one fat-K
    bf16 MXU matmul with f32 accumulation."""
    nb, Hq, Wq, C = act.shape
    cd = xp_ref.dtype                                      # bf16 staging
    # border-only zeroing (no full-scratch zero pass)
    zrow = jnp.zeros((nb, 1, Wq + 2, C), cd)
    zcol = jnp.zeros((nb, Hq, 1, C), cd)
    xp_ref[:, 0:1, :, :] = zrow
    xp_ref[:, Hq + 1:Hq + 2, :, :] = zrow
    xp_ref[:, 1:Hq + 1, 0:1, :] = zcol
    xp_ref[:, 1:Hq + 1, Wq + 1:Wq + 2, :] = zcol
    xp_ref[:, 1:Hq + 1, 1:Wq + 1, :] = act.astype(cd)
    # im2col: 9 shifted taps side by side on the lane dim -> ONE matmul, K=9*C
    for kh in range(3):
        for kw in range(3):
            j = kh * 3 + kw
            pat_ref[:, :, :, j * C:(j + 1) * C] = xp_ref[:, kh:kh + Hq, kw:kw + Wq, :]
    patches = pat_ref[...].reshape(nb * Hq * Wq, 9 * C)            # bf16
    return jnp.dot(patches, w_ref[...],                            # single MXU pass
                   preferred_element_type=jnp.float32)             # (nb*Hq*Wq, Cout) f32


def _write_outputs(acc, y_ref, stats_ref):
    nb, Hq, Wq, Cout = y_ref.shape
    y_ref[...] = acc.reshape(nb, Hq, Wq, Cout).astype(y_ref.dtype)
    # per-grid-step BN partial statistics (f32), single stacked store
    s1 = jnp.sum(acc, axis=0, keepdims=True)          # (1, Cout)
    s2 = jnp.sum(acc * acc, axis=0, keepdims=True)    # (1, Cout)
    stats_ref[...] = jnp.concatenate([s1, s2], axis=0).reshape(1, 2, Cout)


# ----------------------------------------------------------------------------
# Kernel 1: fused 2x2/stride-2 maxpool + pad + conv1 + BN partial stats.
# Input block is the pool-friendly (nb, Hq, 2, Wq, 2*Cin) view.
# ----------------------------------------------------------------------------
def _pool_conv_kernel(x_ref, w_ref, y_ref, stats_ref, xp_ref, pat_ref):
    Cin = xp_ref.shape[-1]
    x = x_ref[...]                                         # (nb, Hq, 2, Wq, 2*Cin)
    a = jnp.maximum(x[:, :, 0, :, :], x[:, :, 1, :, :])    # pool the H pairs
    p = jnp.maximum(a[..., :Cin], a[..., Cin:])            # pool the W pairs
    acc = _pad_im2col_matmul(p, xp_ref, pat_ref, w_ref)
    _write_outputs(acc, y_ref, stats_ref)


def pool_conv1(xr, w_flat, nb):
    N, Hq, _, Wq, two_cin = xr.shape
    Cin = two_cin // 2
    Cout = w_flat.shape[-1]
    steps = N // nb
    est = nb * ((Hq + 2) * (Wq + 2) * Cin + Hq * Wq * 9 * Cin) * 2 \
        + 2 * nb * Hq * Wq * (4 * Cin + Cout) * 4
    return pl.pallas_call(
        _pool_conv_kernel,
        out_shape=(jax.ShapeDtypeStruct((N, Hq, Wq, Cout), jnp.float32),
                   jax.ShapeDtypeStruct((steps, 2, Cout), jnp.float32)),
        grid=(steps,),
        in_specs=[
            pl.BlockSpec((nb, Hq, 2, Wq, two_cin), lambda i: (i, 0, 0, 0, 0)),
            pl.BlockSpec((9 * Cin, Cout), lambda i: (0, 0)),   # weights stay resident
        ],
        out_specs=(
            pl.BlockSpec((nb, Hq, Wq, Cout), lambda i: (i, 0, 0, 0)),
            pl.BlockSpec((1, 2, Cout), lambda i: (i, 0, 0)),
        ),
        scratch_shapes=[
            pltpu.VMEM((nb, Hq + 2, Wq + 2, Cin), jnp.bfloat16),   # padded activation
            pltpu.VMEM((nb, Hq, Wq, 9 * Cin), jnp.bfloat16),       # im2col patches
        ],
        compiler_params=_mosaic_params(est),
    )(xr, w_flat)


# ----------------------------------------------------------------------------
# Kernel 2: fused BN1(scale/shift)+ReLU + pad + conv2 + BN partial stats.
# ----------------------------------------------------------------------------
def _bnrelu_conv_kernel(x_ref, scale_ref, shift_ref, w_ref, y_ref, stats_ref,
                        xp_ref, pat_ref):
    a = jnp.maximum(x_ref[...] * scale_ref[...] + shift_ref[...], 0.0)
    acc = _pad_im2col_matmul(a, xp_ref, pat_ref, w_ref)
    _write_outputs(acc, y_ref, stats_ref)


def bnrelu_conv2(x, scale, shift, w_flat, nb):
    N, Hq, Wq, C1 = x.shape
    C2 = w_flat.shape[-1]
    steps = N // nb
    est = nb * ((Hq + 2) * (Wq + 2) * C1 + Hq * Wq * 9 * C1) * 2 \
        + 2 * nb * Hq * Wq * (C1 + C2) * 4
    return pl.pallas_call(
        _bnrelu_conv_kernel,
        out_shape=(jax.ShapeDtypeStruct((N, Hq, Wq, C2), jnp.float32),
                   jax.ShapeDtypeStruct((steps, 2, C2), jnp.float32)),
        grid=(steps,),
        in_specs=[
            pl.BlockSpec((nb, Hq, Wq, C1), lambda i: (i, 0, 0, 0)),
            pl.BlockSpec((1, C1), lambda i: (0, 0)),
            pl.BlockSpec((1, C1), lambda i: (0, 0)),
            pl.BlockSpec((9 * C1, C2), lambda i: (0, 0)),
        ],
        out_specs=(
            pl.BlockSpec((nb, Hq, Wq, C2), lambda i: (i, 0, 0, 0)),
            pl.BlockSpec((1, 2, C2), lambda i: (i, 0, 0)),
        ),
        scratch_shapes=[
            pltpu.VMEM((nb, Hq + 2, Wq + 2, C1), jnp.bfloat16),
            pltpu.VMEM((nb, Hq, Wq, 9 * C1), jnp.bfloat16),
        ],
        compiler_params=_mosaic_params(est),
    )(x, scale, shift, w_flat)


# ----------------------------------------------------------------------------
# Kernel 3: final BatchNorm (folded scale/shift) + ReLU on a lane-dense view.
# ----------------------------------------------------------------------------
def _bn_relu_kernel(x_ref, scale_ref, shift_ref, o_ref):
    o_ref[...] = jnp.maximum(x_ref[...] * scale_ref[...] + shift_ref[...],
                             0.0).astype(o_ref.dtype)


def bn_relu_lane_dense(x2d, scale_row, shift_row):
    # single step, whole arrays resident; Hq*Wq*C lanes => unmasked vector stores
    return pl.pallas_call(
        _bn_relu_kernel,
        out_shape=jax.ShapeDtypeStruct(x2d.shape, x2d.dtype),
    )(x2d, scale_row, shift_row)


# ----------------------------------------------------------------------------
# BN folding (training-mode batch statistics, biased variance) -- f32.
# ----------------------------------------------------------------------------
def _fold_bn(stats_partials, n_elem, gamma, beta):
    s = jnp.sum(stats_partials, axis=0)                    # (2, C)
    mean = s[0] / n_elem
    var = jnp.maximum(s[1] / n_elem - mean * mean, 0.0)    # clamp: cancellation safety
    scale = gamma * jax.lax.rsqrt(var + EPS)
    shift = beta - mean * scale
    return scale, shift                                    # (C,), (C,)


# ----------------------------------------------------------------------------
# Full Down.forward
# ----------------------------------------------------------------------------
def down_forward(x_nchw, params):
    N, Cin, H, W = x_nchw.shape
    assert H % 2 == 0 and W % 2 == 0
    Hq, Wq = H // 2, W // 2
    Cout = params["w1"].shape[-1]
    n_elem = N * Hq * Wq

    # NCHW -> NHWC -> pool-friendly (N, Hq, 2, Wq, 2*Cin) view (free reshape).
    x = jnp.transpose(x_nchw, (0, 2, 3, 1)).reshape(N, Hq, 2, Wq, 2 * Cin)

    # Weights HWIO (3,3,Ci,Co) -> im2col layout (9*Ci, Co), pre-cast to bf16
    # (single-pass MXU; accumulation stays f32 via preferred_element_type).
    w1 = params["w1"].reshape(9 * Cin, Cout).astype(jnp.bfloat16)
    w2 = params["w2"].reshape(9 * Cout, Cout).astype(jnp.bfloat16)
    # NOTE: conv biases intentionally unused inside the kernels -- a constant
    # per-channel bias cancels exactly under training-mode BatchNorm; the
    # reference keeps them and must still agree.

    nb = _pick_batch_block(N, Hq, Wq, max(Cin, Cout))

    y1, st1 = pool_conv1(x, w1, nb)
    s1, t1 = _fold_bn(st1, n_elem, params["gamma1"], params["beta1"])
    y2, st2 = bnrelu_conv2(y1, s1.reshape(1, -1), t1.reshape(1, -1), w2, nb)
    s2, t2 = _fold_bn(st2, n_elem, params["gamma2"], params["beta2"])

    # Final BN+ReLU on a lane-dense 2-D view (Hq*Wq*Cout lanes per row).
    out_flat = bn_relu_lane_dense(
        y2.reshape(N, Hq * Wq * Cout),
        jnp.tile(s2, Hq * Wq).reshape(1, -1),
        jnp.tile(t2, Hq * Wq).reshape(1, -1))
    out = out_flat.reshape(N, Hq, Wq, Cout)
    return jnp.transpose(out, (0, 3, 1, 2))                # NHWC -> NCHW


# ----------------------------------------------------------------------------
# Pure-JAX reference (full PyTorch semantics: conv + bias + train-mode BN + ReLU)
# ----------------------------------------------------------------------------
def down_reference(x_nchw, params):
    x = jnp.transpose(x_nchw, (0, 2, 3, 1))
    p = jax.lax.reduce_window(x, -jnp.inf, jax.lax.max,
                              (1, 2, 2, 1), (1, 2, 2, 1), "VALID")

    def conv(inp, w, b):
        y = jax.lax.conv_general_dilated(
            inp, w, (1, 1), "SAME",
            dimension_numbers=("NHWC", "HWIO", "NHWC"),
            precision=jax.lax.Precision.HIGHEST)
        return y + b.reshape(1, 1, 1, -1)

    def bn_relu_ref(y, gamma, beta):
        mean = jnp.mean(y, axis=(0, 1, 2))
        var = jnp.mean((y - mean) ** 2, axis=(0, 1, 2))
        yh = (y - mean) * jax.lax.rsqrt(var + EPS) * gamma + beta
        return jnp.maximum(yh, 0.0)

    a1 = bn_relu_ref(conv(p, params["w1"], params["b1"]),
                     params["gamma1"], params["beta1"])
    a2 = bn_relu_ref(conv(a1, params["w2"], params["b2"]),
                     params["gamma2"], params["beta2"])
    return jnp.transpose(a2, (0, 3, 1, 2))


if __name__ == "__main__":
    N, Cin, H, W = 2, 4, 16, 16
    Cout = 8

    key = jax.random.PRNGKey(0)
    k1, k2, k3, k4, kx = jax.random.split(key, 5)
    params = {
        "w1": jax.random.normal(k1, (3, 3, Cin, Cout), jnp.float32) * 0.2,   # HWIO
        "b1": jax.random.normal(k2, (Cout,), jnp.float32) * 0.1,
        "gamma1": jnp.ones((Cout,), jnp.float32),
        "beta1": jnp.zeros((Cout,), jnp.float32),
        "w2": jax.random.normal(k3, (3, 3, Cout, Cout), jnp.float32) * 0.2,  # HWIO
        "b2": jax.random.normal(k4, (Cout,), jnp.float32) * 0.1,
        "gamma2": jnp.ones((Cout,), jnp.float32),
        "beta2": jnp.zeros((Cout,), jnp.float32),
    }
    x = jax.random.normal(kx, (N, Cin, H, W), jnp.float32)

    out = jax.block_until_ready(jax.jit(down_forward)(x, params))
    ref = jax.block_until_ready(down_reference(x, params))

    assert out.shape == (N, Cout, H // 2, W // 2), out.shape
    # Tolerance reflects the single-pass bf16 MXU path (perf review) vs the
    # f32 HIGHEST-precision reference; f32 accumulation keeps it ~1e-2.
    np.testing.assert_allclose(np.asarray(out), np.asarray(ref),
                               rtol=3e-2, atol=3e-2)

    print("KERNEL_OK")
</pallas_src>

<mosaic_0001>
module attributes {stable_mosaic.version = 11 : i64} {
  func.func @_pool_conv_kernel(%arg0: i32, %arg1: memref<2x8x2x8x8xf32, #tpu.memory_space<vmem>>, %arg2: memref<36x8xbf16, #tpu.memory_space<vmem>>, %arg3: memref<2x8x8x8xf32, #tpu.memory_space<vmem>>, %arg4: memref<1x2x8xf32, #tpu.memory_space<vmem>>, %arg5: memref<2x10x10x4xbf16, #tpu.memory_space<vmem>>, %arg6: memref<2x8x8x36xbf16, #tpu.memory_space<vmem>>) attributes {dimension_semantics = [#tpu.dimension_semantics<parallel>], iteration_bounds = array<i64: 1>, scalar_prefetch = 0 : i64, scratch_operands = 2 : i64, tpu.core_type = #tpu.core_type<tc>, window_params = [{transform_indices = @transform_0, window_bounds = array<i64: 2, 8, 2, 8, 8>}, {pipeline_mode = #tpu.pipeline_mode<synchronous>, transform_indices = @transform_1, window_bounds = array<i64: 36, 8>}, {transform_indices = @transform_2, window_bounds = array<i64: 2, 8, 8, 8>}, {transform_indices = @transform_3, window_bounds = array<i64: 1, 2, 8>}]} {
    %c0 = arith.constant 0 : index
    %c0_0 = arith.constant 0 : index
    %c0_1 = arith.constant 0 : index
    %c0_2 = arith.constant 0 : index
    %c0_3 = arith.constant 0 : index
    %0 = vector.load %arg1[%c0, %c0_0, %c0_1, %c0_2, %c0_3] : memref<2x8x2x8x8xf32, #tpu.memory_space<vmem>>, vector<2x8x2x8x8xf32>
    %1 = vector.extract_strided_slice %0 {offsets = [0, 0, 0, 0, 0], sizes = [2, 8, 1, 8, 8], strides = [1, 1, 1, 1, 1]} : vector<2x8x2x8x8xf32> to vector<2x8x1x8x8xf32>
    %2 = vector.shape_cast %1 : vector<2x8x1x8x8xf32> to vector<2x8x8x8xf32>
    %3 = vector.extract_strided_slice %0 {offsets = [0, 0, 1, 0, 0], sizes = [2, 8, 1, 8, 8], strides = [1, 1, 1, 1, 1]} : vector<2x8x2x8x8xf32> to vector<2x8x1x8x8xf32>
    %4 = vector.shape_cast %3 : vector<2x8x1x8x8xf32> to vector<2x8x8x8xf32>
    %5 = arith.maximumf %2, %4 : vector<2x8x8x8xf32>
    %6 = vector.extract_strided_slice %5 {offsets = [0, 0, 0, 0], sizes = [2, 8, 8, 4], strides = [1, 1, 1, 1]} : vector<2x8x8x8xf32> to vector<2x8x8x4xf32>
    %7 = vector.extract_strided_slice %5 {offsets = [0, 0, 0, 4], sizes = [2, 8, 8, 4], strides = [1, 1, 1, 1]} : vector<2x8x8x8xf32> to vector<2x8x8x4xf32>
    %8 = arith.maximumf %6, %7 : vector<2x8x8x4xf32>
    %cst = arith.constant 0.000000e+00 : bf16
    %9 = vector.broadcast %cst : bf16 to vector<2x1x10x4xbf16>
    %cst_4 = arith.constant 0.000000e+00 : bf16
    %10 = vector.broadcast %cst_4 : bf16 to vector<2x8x1x4xbf16>
    %c0_5 = arith.constant 0 : index
    %c0_6 = arith.constant 0 : index
    %c0_7 = arith.constant 0 : index
    %c0_8 = arith.constant 0 : index
    %11 = vector.load %arg5[%c0_5, %c0_6, %c0_7, %c0_8] : memref<2x10x10x4xbf16, #tpu.memory_space<vmem>>, vector<2x1x10x4xbf16>
    tpu.vector_store %arg5[%c0_5, %c0_6, %c0_7, %c0_8], %9 {strides = array<i32>} : memref<2x10x10x4xbf16, #tpu.memory_space<vmem>>, vector<2x1x10x4xbf16>,
    %c0_9 = arith.constant 0 : index
    %c9 = arith.constant 9 : index
    %c0_10 = arith.constant 0 : index
    %c0_11 = arith.constant 0 : index
    %12 = vector.load %arg5[%c0_9, %c9, %c0_10, %c0_11] : memref<2x10x10x4xbf16, #tpu.memory_space<vmem>>, vector<2x1x10x4xbf16>
    tpu.vector_store %arg5[%c0_9, %c9, %c0_10, %c0_11], %9 {strides = array<i32>} : memref<2x10x10x4xbf16, #tpu.memory_space<vmem>>, vector<2x1x10x4xbf16>,
    %c0_12 = arith.constant 0 : index
    %c1 = arith.constant 1 : index
    %c0_13 = arith.constant 0 : index
    %c0_14 = arith.constant 0 : index
    %13 = vector.load %arg5[%c0_12, %c1, %c0_13, %c0_14] : memref<2x10x10x4xbf16, #tpu.memory_space<vmem>>, vector<2x8x1x4xbf16>
    tpu.vector_store %arg5[%c0_12, %c1, %c0_13, %c0_14], %10 {strides = array<i32>} : memref<2x10x10x4xbf16, #tpu.memory_space<vmem>>, vector<2x8x1x4xbf16>,
    %c0_15 = arith.constant 0 : index
    %c1_16 = arith.constant 1 : index
    %c9_17 = arith.constant 9 : index
    %c0_18 = arith.constant 0 : index
    %14 = vector.load %arg5[%c0_15, %c1_16, %c9_17, %c0_18] : memref<2x10x10x4xbf16, #tpu.memory_space<vmem>>, vector<2x8x1x4xbf16>
    tpu.vector_store %arg5[%c0_15, %c1_16, %c9_17, %c0_18], %10 {strides = array<i32>} : memref<2x10x10x4xbf16, #tpu.memory_space<vmem>>, vector<2x8x1x4xbf16>,
    %15 = arith.truncf %8 : vector<2x8x8x4xf32> to vector<2x8x8x4xbf16>
    %c0_19 = arith.constant 0 : index
    %c1_20 = arith.constant 1 : index
    %c1_21 = arith.constant 1 : index
    %c0_22 = arith.constant 0 : index
    %16 = vector.load %arg5[%c0_19, %c1_20, %c1_21, %c0_22] : memref<2x10x10x4xbf16, #tpu.memory_space<vmem>>, vector<2x8x8x4xbf16>
    tpu.vector_store %arg5[%c0_19, %c1_20, %c1_21, %c0_22], %15 {strides = array<i32>} : memref<2x10x10x4xbf16, #tpu.memory_space<vmem>>, vector<2x8x8x4xbf16>,
    %c0_23 = arith.constant 0 : index
    %c0_24 = arith.constant 0 : index
    %c0_25 = arith.constant 0 : index
    %c0_26 = arith.constant 0 : index
    %17 = vector.load %arg5[%c0_23, %c0_24, %c0_25, %c0_26] : memref<2x10x10x4xbf16, #tpu.memory_space<vmem>>, vector<2x8x8x4xbf16>
    %c0_27 = arith.constant 0 : index
    %c0_28 = arith.constant 0 : index
    %c0_29 = arith.constant 0 : index
    %c0_30 = arith.constant 0 : index
    %18 = vector.load %arg6[%c0_27, %c0_28, %c0_29, %c0_30] : memref<2x8x8x36xbf16, #tpu.memory_space<vmem>>, vector<2x8x8x4xbf16>
    tpu.vector_store %arg6[%c0_27, %c0_28, %c0_29, %c0_30], %17 {strides = array<i32>} : memref<2x8x8x36xbf16, #tpu.memory_space<vmem>>, vector<2x8x8x4xbf16>,
    %c0_31 = arith.constant 0 : index
    %c0_32 = arith.constant 0 : index
    %c1_33 = arith.constant 1 : index
    %c0_34 = arith.constant 0 : index
    %19 = vector.load %arg5[%c0_31, %c0_32, %c1_33, %c0_34] : memref<2x10x10x4xbf16, #tpu.memory_space<vmem>>, vector<2x8x8x4xbf16>
    %c0_35 = arith.constant 0 : index
    %c0_36 = arith.constant 0 : index
    %c0_37 = arith.constant 0 : index
    %c4 = arith.constant 4 : index
    %20 = vector.load %arg6[%c0_35, %c0_36, %c0_37, %c4] : memref<2x8x8x36xbf16, #tpu.memory_space<vmem>>, vector<2x8x8x4xbf16>
    tpu.vector_store %arg6[%c0_35, %c0_36, %c0_37, %c4], %19 {strides = array<i32>} : memref<2x8x8x36xbf16, #tpu.memory_space<vmem>>, vector<2x8x8x4xbf16>,
    %c0_38 = arith.constant 0 : index
    %c0_39 = arith.constant 0 : index
    %c2 = arith.constant 2 : index
    %c0_40 = arith.constant 0 : index
    %21 = vector.load %arg5[%c0_38, %c0_39, %c2, %c0_40] : memref<2x10x10x4xbf16, #tpu.memory_space<vmem>>, vector<2x8x8x4xbf16>
    %c0_41 = arith.constant 0 : index
    %c0_42 = arith.constant 0 : index
    %c0_43 = arith.constant 0 : index
    %c8 = arith.constant 8 : index
    %22 = vector.load %arg6[%c0_41, %c0_42, %c0_43, %c8] : memref<2x8x8x36xbf16, #tpu.memory_space<vmem>>, vector<2x8x8x4xbf16>
    tpu.vector_store %arg6[%c0_41, %c0_42, %c0_43, %c8], %21 {strides = array<i32>} : memref<2x8x8x36xbf16, #tpu.memory_space<vmem>>, vector<2x8x8x4xbf16>,
    %c0_44 = arith.constant 0 : index
    %c1_45 = arith.constant 1 : index
    %c0_46 = arith.constant 0 : index
    %c0_47 = arith.constant 0 : index
    %23 = vector.load %arg5[%c0_44, %c1_45, %c0_46, %c0_47] : memref<2x10x10x4xbf16, #tpu.memory_space<vmem>>, vector<2x8x8x4xbf16>
    %c0_48 = arith.constant 0 : index
    %c0_49 = arith.constant 0 : index
    %c0_50 = arith.constant 0 : index
    %c12 = arith.constant 12 : index
    %24 = vector.load %arg6[%c0_48, %c0_49, %c0_50, %c12] : memref<2x8x8x36xbf16, #tpu.memory_space<vmem>>, vector<2x8x8x4xbf16>
    tpu.vector_store %arg6[%c0_48, %c0_49, %c0_50, %c12], %23 {strides = array<i32>} : memref<2x8x8x36xbf16, #tpu.memory_space<vmem>>, vector<2x8x8x4xbf16>,
    %c0_51 = arith.constant 0 : index
    %c1_52 = arith.constant 1 : index
    %c1_53 = arith.constant 1 : index
    %c0_54 = arith.constant 0 : index
    %25 = vector.load %arg5[%c0_51, %c1_52, %c1_53, %c0_54] : memref<2x10x10x4xbf16, #tpu.memory_space<vmem>>, vector<2x8x8x4xbf16>
    %c0_55 = arith.constant 0 : index
    %c0_56 = arith.constant 0 : index
    %c0_57 = arith.constant 0 : index
    %c16 = arith.constant 16 : index
    %26 = vector.load %arg6[%c0_55, %c0_56, %c0_57, %c16] : memref<2x8x8x36xbf16, #tpu.memory_space<vmem>>, vector<2x8x8x4xbf16>
    tpu.vector_store %arg6[%c0_55, %c0_56, %c0_57, %c16], %25 {strides = array<i32>} : memref<2x8x8x36xbf16, #tpu.memory_space<vmem>>, vector<2x8x8x4xbf16>,
    %c0_58 = arith.constant 0 : index
    %c1_59 = arith.constant 1 : index
    %c2_60 = arith.constant 2 : index
    %c0_61 = arith.constant 0 : index
    %27 = vector.load %arg5[%c0_58, %c1_59, %c2_60, %c0_61] : memref<2x10x10x4xbf16, #tpu.memory_space<vmem>>, vector<2x8x8x4xbf16>
    %c0_62 = arith.constant 0 : index
    %c0_63 = arith.constant 0 : index
    %c0_64 = arith.constant 0 : index
    %c20 = arith.constant 20 : index
    %28 = vector.load %arg6[%c0_62, %c0_63, %c0_64, %c20] : memref<2x8x8x36xbf16, #tpu.memory_space<vmem>>, vector<2x8x8x4xbf16>
    tpu.vector_store %arg6[%c0_62, %c0_63, %c0_64, %c20], %27 {strides = array<i32>} : memref<2x8x8x36xbf16, #tpu.memory_space<vmem>>, vector<2x8x8x4xbf16>,
    %c0_65 = arith.constant 0 : index
    %c2_66 = arith.constant 2 : index
    %c0_67 = arith.constant 0 : index
    %c0_68 = arith.constant 0 : index
    %29 = vector.load %arg5[%c0_65, %c2_66, %c0_67, %c0_68] : memref<2x10x10x4xbf16, #tpu.memory_space<vmem>>, vector<2x8x8x4xbf16>
    %c0_69 = arith.constant 0 : index
    %c0_70 = arith.constant 0 : index
    %c0_71 = arith.constant 0 : index
    %c24 = arith.constant 24 : index
    %30 = vector.load %arg6[%c0_69, %c0_70, %c0_71, %c24] : memref<2x8x8x36xbf16, #tpu.memory_space<vmem>>, vector<2x8x8x4xbf16>
    tpu.vector_store %arg6[%c0_69, %c0_70, %c0_71, %c24], %29 {strides = array<i32>} : memref<2x8x8x36xbf16, #tpu.memory_space<vmem>>, vector<2x8x8x4xbf16>,
    %c0_72 = arith.constant 0 : index
    %c2_73 = arith.constant 2 : index
    %c1_74 = arith.constant 1 : index
    %c0_75 = arith.constant 0 : index
    %31 = vector.load %arg5[%c0_72, %c2_73, %c1_74, %c0_75] : memref<2x10x10x4xbf16, #tpu.memory_space<vmem>>, vector<2x8x8x4xbf16>
    %c0_76 = arith.constant 0 : index
    %c0_77 = arith.constant 0 : index
    %c0_78 = arith.constant 0 : index
    %c28 = arith.constant 28 : index
    %32 = vector.load %arg6[%c0_76, %c0_77, %c0_78, %c28] : memref<2x8x8x36xbf16, #tpu.memory_space<vmem>>, vector<2x8x8x4xbf16>
    tpu.vector_store %arg6[%c0_76, %c0_77, %c0_78, %c28], %31 {strides = array<i32>} : memref<2x8x8x36xbf16, #tpu.memory_space<vmem>>, vector<2x8x8x4xbf16>,
    %c0_79 = arith.constant 0 : index
    %c2_80 = arith.constant 2 : index
    %c2_81 = arith.constant 2 : index
    %c0_82 = arith.constant 0 : index
    %33 = vector.load %arg5[%c0_79, %c2_80, %c2_81, %c0_82] : memref<2x10x10x4xbf16, #tpu.memory_space<vmem>>, vector<2x8x8x4xbf16>
    %c0_83 = arith.constant 0 : index
    %c0_84 = arith.constant 0 : index
    %c0_85 = arith.constant 0 : index
    %c32 = arith.constant 32 : index
    %34 = vector.load %arg6[%c0_83, %c0_84, %c0_85, %c32] : memref<2x8x8x36xbf16, #tpu.memory_space<vmem>>, vector<2x8x8x4xbf16>
    tpu.vector_store %arg6[%c0_83, %c0_84, %c0_85, %c32], %33 {strides = array<i32>} : memref<2x8x8x36xbf16, #tpu.memory_space<vmem>>, vector<2x8x8x4xbf16>,
    %c0_86 = arith.constant 0 : index
    %c0_87 = arith.constant 0 : index
    %c0_88 = arith.constant 0 : index
    %c0_89 = arith.constant 0 : index
    %35 = vector.load %arg6[%c0_86, %c0_87, %c0_88, %c0_89] : memref<2x8x8x36xbf16, #tpu.memory_space<vmem>>, vector<2x8x8x36xbf16>
    %36 = vector.shape_cast %35 : vector<2x8x8x36xbf16> to vector<128x36xbf16>
    %c0_90 = arith.constant 0 : index
    %c0_91 = arith.constant 0 : index
    %37 = vector.load %arg2[%c0_90, %c0_91] : memref<36x8xbf16, #tpu.memory_space<vmem>>, vector<36x8xbf16>
    %cst_92 = arith.constant dense<0.000000e+00> : vector<128x8xf32>
    %38 = tpu.matmul %36, %37, %cst_92 {dimension_numbers = #tpu.dot_dimension_numbers<[1], [0], [0], [1], [0, 0, 1, 1], [], []>} : vector<128x36xbf16>, vector<36x8xbf16>, vector<128x8xf32> -> vector<128x8xf32>
    %39 = vector.shape_cast %38 : vector<128x8xf32> to vector<2x8x8x8xf32>
    %c0_93 = arith.constant 0 : index
    %c0_94 = arith.constant 0 : index
    %c0_95 = arith.constant 0 : index
    %c0_96 = arith.constant 0 : index
    %40 = vector.load %arg3[%c0_93, %c0_94, %c0_95, %c0_96] : memref<2x8x8x8xf32, #tpu.memory_space<vmem>>, vector<2x8x8x8xf32>
    tpu.vector_store %arg3[%c0_93, %c0_94, %c0_95, %c0_96], %39 {strides = array<i32>} : memref<2x8x8x8xf32, #tpu.memory_space<vmem>>, vector<2x8x8x8xf32>,
    %cst_97 = arith.constant dense<0.000000e+00> : vector<8xf32>
    %41 = vector.multi_reduction <add>, %38, %cst_97 [0] : vector<128x8xf32> to vector<8xf32>
    %42 = vector.shape_cast %41 : vector<8xf32> to vector<1x8xf32>
    %43 = arith.mulf %38, %38 : vector<128x8xf32>
    %cst_98 = arith.constant dense<0.000000e+00> : vector<8xf32>
    %44 = vector.multi_reduction <add>, %43, %cst_98 [0] : vector<128x8xf32> to vector<8xf32>
    %45 = vector.shape_cast %44 : vector<8xf32> to vector<1x8xf32>
    %46 = tpu.concatenate %42, %45 in 0 : vector<1x8xf32>, vector<1x8xf32> -> vector<2x8xf32>
    %47 = vector.shape_cast %46 : vector<2x8xf32> to vector<1x2x8xf32>
    %c0_99 = arith.constant 0 : index
    %c0_100 = arith.constant 0 : index
    %c0_101 = arith.constant 0 : index
    %48 = vector.load %arg4[%c0_99, %c0_100, %c0_101] : memref<1x2x8xf32, #tpu.memory_space<vmem>>, vector<1x2x8xf32>
    tpu.vector_store %arg4[%c0_99, %c0_100, %c0_101], %47 {strides = array<i32>} : memref<1x2x8xf32, #tpu.memory_space<vmem>>, vector<1x2x8xf32>,
    return
  }
  func.func @transform_0(%arg0: i32) -> (i32, i32, i32, i32, i32) {
    %c0_i32 = arith.constant 0 : i32
    %c0_i32_0 = arith.constant 0 : i32
    %c0_i32_1 = arith.constant 0 : i32
    %c0_i32_2 = arith.constant 0 : i32
    %c0_i32_3 = arith.constant 0 : i32
    return %arg0, %c0_i32, %c0_i32_0, %c0_i32_1, %c0_i32_2 : i32, i32, i32, i32, i32
  }
  func.func @transform_1(%arg0: i32) -> (i32, i32) {
    %c0_i32 = arith.constant 0 : i32
    %c0_i32_0 = arith.constant 0 : i32
    %c0_i32_1 = arith.constant 0 : i32
    return %c0_i32, %c0_i32_0 : i32, i32
  }
  func.func @transform_2(%arg0: i32) -> (i32, i32, i32, i32) {
    %c0_i32 = arith.constant 0 : i32
    %c0_i32_0 = arith.constant 0 : i32
    %c0_i32_1 = arith.constant 0 : i32
    %c0_i32_2 = arith.constant 0 : i32
    return %arg0, %c0_i32, %c0_i32_0, %c0_i32_1 : i32, i32, i32, i32
  }
  func.func @transform_3(%arg0: i32) -> (i32, i32, i32) {
    %c0_i32 = arith.constant 0 : i32
    %c0_i32_0 = arith.constant 0 : i32
    %c0_i32_1 = arith.constant 0 : i32
    return %arg0, %c0_i32, %c0_i32_0 : i32, i32, i32
  }
}

module attributes {stable_mosaic.version = 11 : i64} {
  func.func @_bnrelu_conv_kernel(%arg0: i32, %arg1: memref<2x8x8x8xf32, #tpu.memory_space<vmem>>, %arg2: memref<1x8xf32, #tpu.memory_space<vmem>>, %arg3: memref<1x8xf32, #tpu.memory_space<vmem>>, %arg4: memref<72x8xbf16, #tpu.memory_space<vmem>>, %arg5: memref<2x8x8x8xf32, #tpu.memory_space<vmem>>, %arg6: memref<1x2x8xf32, #tpu.memory_space<vmem>>, %arg7: memref<2x10x10x8xbf16, #tpu.memory_space<vmem>>, %arg8: memref<2x8x8x72xbf16, #tpu.memory_space<vmem>>) attributes {dimension_semantics = [#tpu.dimension_semantics<parallel>], iteration_bounds = array<i64: 1>, scalar_prefetch = 0 : i64, scratch_operands = 2 : i64, tpu.core_type = #tpu.core_type<tc>, window_params = [{transform_indices = @transform_0, window_bounds = array<i64: 2, 8, 8, 8>}, {pipeline_mode = #tpu.pipeline_mode<synchronous>, transform_indices = @transform_1, window_bounds = array<i64: 1, 8>}, {pipeline_mode = #tpu.pipeline_mode<synchronous>, transform_indices = @transform_2, window_bounds = array<i64: 1, 8>}, {pipeline_mode = #tpu.pipeline_mode<synchronous>, transform_indices = @transform_3, window_bounds = array<i64: 72, 8>}, {transform_indices = @transform_4, window_bounds = array<i64: 2, 8, 8, 8>}, {transform_indices = @transform_5, window_bounds = array<i64: 1, 2, 8>}]} {
    %c0 = arith.constant 0 : index
    %c0_0 = arith.constant 0 : index
    %c0_1 = arith.constant 0 : index
    %c0_2 = arith.constant 0 : index
    %0 = vector.load %arg1[%c0, %c0_0, %c0_1, %c0_2] : memref<2x8x8x8xf32, #tpu.memory_space<vmem>>, vector<2x8x8x8xf32>
    %c0_3 = arith.constant 0 : index
    %c0_4 = arith.constant 0 : index
    %1 = vector.load %arg2[%c0_3, %c0_4] : memref<1x8xf32, #tpu.memory_space<vmem>>, vector<1x8xf32>
    %2 = vector.shape_cast %1 : vector<1x8xf32> to vector<1x1x1x8xf32>
    %3 = vector.broadcast %2 : vector<1x1x1x8xf32> to vector<2x8x8x8xf32>
    %4 = arith.mulf %0, %3 : vector<2x8x8x8xf32>
    %c0_5 = arith.constant 0 : index
    %c0_6 = arith.constant 0 : index
    %5 = vector.load %arg3[%c0_5, %c0_6] : memref<1x8xf32, #tpu.memory_space<vmem>>, vector<1x8xf32>
    %6 = vector.shape_cast %5 : vector<1x8xf32> to vector<1x1x1x8xf32>
    %7 = vector.broadcast %6 : vector<1x1x1x8xf32> to vector<2x8x8x8xf32>
    %8 = arith.addf %4, %7 : vector<2x8x8x8xf32>
    %cst = arith.constant 0.000000e+00 : f32
    %9 = vector.broadcast %cst : f32 to vector<2x8x8x8xf32>
    %10 = arith.maximumf %8, %9 : vector<2x8x8x8xf32>
    %cst_7 = arith.constant 0.000000e+00 : bf16
    %11 = vector.broadcast %cst_7 : bf16 to vector<2x1x10x8xbf16>
    %cst_8 = arith.constant 0.000000e+00 : bf16
    %12 = vector.broadcast %cst_8 : bf16 to vector<2x8x1x8xbf16>
    %c0_9 = arith.constant 0 : index
    %c0_10 = arith.constant 0 : index
    %c0_11 = arith.constant 0 : index
    %c0_12 = arith.constant 0 : index
    %13 = vector.load %arg7[%c0_9, %c0_10, %c0_11, %c0_12] : memref<2x10x10x8xbf16, #tpu.memory_space<vmem>>, vector<2x1x10x8xbf16>
    tpu.vector_store %arg7[%c0_9, %c0_10, %c0_11, %c0_12], %11 {strides = array<i32>} : memref<2x10x10x8xbf16, #tpu.memory_space<vmem>>, vector<2x1x10x8xbf16>,
    %c0_13 = arith.constant 0 : index
    %c9 = arith.constant 9 : index
    %c0_14 = arith.constant 0 : index
    %c0_15 = arith.constant 0 : index
    %14 = vector.load %arg7[%c0_13, %c9, %c0_14, %c0_15] : memref<2x10x10x8xbf16, #tpu.memory_space<vmem>>, vector<2x1x10x8xbf16>
    tpu.vector_store %arg7[%c0_13, %c9, %c0_14, %c0_15], %11 {strides = array<i32>} : memref<2x10x10x8xbf16, #tpu.memory_space<vmem>>, vector<2x1x10x8xbf16>,
    %c0_16 = arith.constant 0 : index
    %c1 = arith.constant 1 : index
    %c0_17 = arith.constant 0 : index
    %c0_18 = arith.constant 0 : index
    %15 = vector.load %arg7[%c0_16, %c1, %c0_17, %c0_18] : memref<2x10x10x8xbf16, #tpu.memory_space<vmem>>, vector<2x8x1x8xbf16>
    tpu.vector_store %arg7[%c0_16, %c1, %c0_17, %c0_18], %12 {strides = array<i32>} : memref<2x10x10x8xbf16, #tpu.memory_space<vmem>>, vector<2x8x1x8xbf16>,
    %c0_19 = arith.constant 0 : index
    %c1_20 = arith.constant 1 : index
    %c9_21 = arith.constant 9 : index
    %c0_22 = arith.constant 0 : index
    %16 = vector.load %arg7[%c0_19, %c1_20, %c9_21, %c0_22] : memref<2x10x10x8xbf16, #tpu.memory_space<vmem>>, vector<2x8x1x8xbf16>
    tpu.vector_store %arg7[%c0_19, %c1_20, %c9_21, %c0_22], %12 {strides = array<i32>} : memref<2x10x10x8xbf16, #tpu.memory_space<vmem>>, vector<2x8x1x8xbf16>,
    %17 = arith.truncf %10 : vector<2x8x8x8xf32> to vector<2x8x8x8xbf16>
    %c0_23 = arith.constant 0 : index
    %c1_24 = arith.constant 1 : index
    %c1_25 = arith.constant 1 : index
    %c0_26 = arith.constant 0 : index
    %18 = vector.load %arg7[%c0_23, %c1_24, %c1_25, %c0_26] : memref<2x10x10x8xbf16, #tpu.memory_space<vmem>>, vector<2x8x8x8xbf16>
    tpu.vector_store %arg7[%c0_23, %c1_24, %c1_25, %c0_26], %17 {strides = array<i32>} : memref<2x10x10x8xbf16, #tpu.memory_space<vmem>>, vector<2x8x8x8xbf16>,
    %c0_27 = arith.constant 0 : index
    %c0_28 = arith.constant 0 : index
    %c0_29 = arith.constant 0 : index
    %c0_30 = arith.constant 0 : index
    %19 = vector.load %arg7[%c0_27, %c0_28, %c0_29, %c0_30] : memref<2x10x10x8xbf16, #tpu.memory_space<vmem>>, vector<2x8x8x8xbf16>
    %c0_31 = arith.constant 0 : index
    %c0_32 = arith.constant 0 : index
    %c0_33 = arith.constant 0 : index
    %c0_34 = arith.constant 0 : index
    %20 = vector.load %arg8[%c0_31, %c0_32, %c0_33, %c0_34] : memref<2x8x8x72xbf16, #tpu.memory_space<vmem>>, vector<2x8x8x8xbf16>
    tpu.vector_store %arg8[%c0_31, %c0_32, %c0_33, %c0_34], %19 {strides = array<i32>} : memref<2x8x8x72xbf16, #tpu.memory_space<vmem>>, vector<2x8x8x8xbf16>,
    %c0_35 = arith.constant 0 : index
    %c0_36 = arith.constant 0 : index
    %c1_37 = arith.constant 1 : index
    %c0_38 = arith.constant 0 : index
    %21 = vector.load %arg7[%c0_35, %c0_36, %c1_37, %c0_38] : memref<2x10x10x8xbf16, #tpu.memory_space<vmem>>, vector<2x8x8x8xbf16>
    %c0_39 = arith.constant 0 : index
    %c0_40 = arith.constant 0 : index
    %c0_41 = arith.constant 0 : index
    %c8 = arith.constant 8 : index
    %22 = vector.load %arg8[%c0_39, %c0_40, %c0_41, %c8] : memref<2x8x8x72xbf16, #tpu.memory_space<vmem>>, vector<2x8x8x8xbf16>
    tpu.vector_store %arg8[%c0_39, %c0_40, %c0_41, %c8], %21 {strides = array<i32>} : memref<2x8x8x72xbf16, #tpu.memory_space<vmem>>, vector<2x8x8x8xbf16>,
    %c0_42 = arith.constant 0 : index
    %c0_43 = arith.constant 0 : index
    %c2 = arith.constant 2 : index
    %c0_44 = arith.constant 0 : index
    %23 = vector.load %arg7[%c0_42, %c0_43, %c2, %c0_44] : memref<2x10x10x8xbf16, #tpu.memory_space<vmem>>, vector<2x8x8x8xbf16>
    %c0_45 = arith.constant 0 : index
    %c0_46 = arith.constant 0 : index
    %c0_47 = arith.constant 0 : index
    %c16 = arith.constant 16 : index
    %24 = vector.load %arg8[%c0_45, %c0_46, %c0_47, %c16] : memref<2x8x8x72xbf16, #tpu.memory_space<vmem>>, vector<2x8x8x8xbf16>
    tpu.vector_store %arg8[%c0_45, %c0_46, %c0_47, %c16], %23 {strides = array<i32>} : memref<2x8x8x72xbf16, #tpu.memory_space<vmem>>, vector<2x8x8x8xbf16>,
    %c0_48 = arith.constant 0 : index
    %c1_49 = arith.constant 1 : index
    %c0_50 = arith.constant 0 : index
    %c0_51 = arith.constant 0 : index
    %25 = vector.load %arg7[%c0_48, %c1_49, %c0_50, %c0_51] : memref<2x10x10x8xbf16, #tpu.memory_space<vmem>>, vector<2x8x8x8xbf16>
    %c0_52 = arith.constant 0 : index
    %c0_53 = arith.constant 0 : index
    %c0_54 = arith.constant 0 : index
    %c24 = arith.constant 24 : index
    %26 = vector.load %arg8[%c0_52, %c0_53, %c0_54, %c24] : memref<2x8x8x72xbf16, #tpu.memory_space<vmem>>, vector<2x8x8x8xbf16>
    tpu.vector_store %arg8[%c0_52, %c0_53, %c0_54, %c24], %25 {strides = array<i32>} : memref<2x8x8x72xbf16, #tpu.memory_space<vmem>>, vector<2x8x8x8xbf16>,
    %c0_55 = arith.constant 0 : index
    %c1_56 = arith.constant 1 : index
    %c1_57 = arith.constant 1 : index
    %c0_58 = arith.constant 0 : index
    %27 = vector.load %arg7[%c0_55, %c1_56, %c1_57, %c0_58] : memref<2x10x10x8xbf16, #tpu.memory_space<vmem>>, vector<2x8x8x8xbf16>
    %c0_59 = arith.constant 0 : index
    %c0_60 = arith.constant 0 : index
    %c0_61 = arith.constant 0 : index
    %c32 = arith.constant 32 : index
    %28 = vector.load %arg8[%c0_59, %c0_60, %c0_61, %c32] : memref<2x8x8x72xbf16, #tpu.memory_space<vmem>>, vector<2x8x8x8xbf16>
    tpu.vector_store %arg8[%c0_59, %c0_60, %c0_61, %c32], %27 {strides = array<i32>} : memref<2x8x8x72xbf16, #tpu.memory_space<vmem>>, vector<2x8x8x8xbf16>,
    %c0_62 = arith.constant 0 : index
    %c1_63 = arith.constant 1 : index
    %c2_64 = arith.constant 2 : index
    %c0_65 = arith.constant 0 : index
    %29 = vector.load %arg7[%c0_62, %c1_63, %c2_64, %c0_65] : memref<2x10x10x8xbf16, #tpu.memory_space<vmem>>, vector<2x8x8x8xbf16>
    %c0_66 = arith.constant 0 : index
    %c0_67 = arith.constant 0 : index
    %c0_68 = arith.constant 0 : index
    %c40 = arith.constant 40 : index
    %30 = vector.load %arg8[%c0_66, %c0_67, %c0_68, %c40] : memref<2x8x8x72xbf16, #tpu.memory_space<vmem>>, vector<2x8x8x8xbf16>
    tpu.vector_store %arg8[%c0_66, %c0_67, %c0_68, %c40], %29 {strides = array<i32>} : memref<2x8x8x72xbf16, #tpu.memory_space<vmem>>, vector<2x8x8x8xbf16>,
    %c0_69 = arith.constant 0 : index
    %c2_70 = arith.constant 2 : index
    %c0_71 = arith.constant 0 : index
    %c0_72 = arith.constant 0 : index
    %31 = vector.load %arg7[%c0_69, %c2_70, %c0_71, %c0_72] : memref<2x10x10x8xbf16, #tpu.memory_space<vmem>>, vector<2x8x8x8xbf16>
    %c0_73 = arith.constant 0 : index
    %c0_74 = arith.constant 0 : index
    %c0_75 = arith.constant 0 : index
    %c48 = arith.constant 48 : index
    %32 = vector.load %arg8[%c0_73, %c0_74, %c0_75, %c48] : memref<2x8x8x72xbf16, #tpu.memory_space<vmem>>, vector<2x8x8x8xbf16>
    tpu.vector_store %arg8[%c0_73, %c0_74, %c0_75, %c48], %31 {strides = array<i32>} : memref<2x8x8x72xbf16, #tpu.memory_space<vmem>>, vector<2x8x8x8xbf16>,
    %c0_76 = arith.constant 0 : index
    %c2_77 = arith.constant 2 : index
    %c1_78 = arith.constant 1 : index
    %c0_79 = arith.constant 0 : index
    %33 = vector.load %arg7[%c0_76, %c2_77, %c1_78, %c0_79] : memref<2x10x10x8xbf16, #tpu.memory_space<vmem>>, vector<2x8x8x8xbf16>
    %c0_80 = arith.constant 0 : index
    %c0_81 = arith.constant 0 : index
    %c0_82 = arith.constant 0 : index
    %c56 = arith.constant 56 : index
    %34 = vector.load %arg8[%c0_80, %c0_81, %c0_82, %c56] : memref<2x8x8x72xbf16, #tpu.memory_space<vmem>>, vector<2x8x8x8xbf16>
    tpu.vector_store %arg8[%c0_80, %c0_81, %c0_82, %c56], %33 {strides = array<i32>} : memref<2x8x8x72xbf16, #tpu.memory_space<vmem>>, vector<2x8x8x8xbf16>,
    %c0_83 = arith.constant 0 : index
    %c2_84 = arith.constant 2 : index
    %c2_85 = arith.constant 2 : index
    %c0_86 = arith.constant 0 : index
    %35 = vector.load %arg7[%c0_83, %c2_84, %c2_85, %c0_86] : memref<2x10x10x8xbf16, #tpu.memory_space<vmem>>, vector<2x8x8x8xbf16>
    %c0_87 = arith.constant 0 : index
    %c0_88 = arith.constant 0 : index
    %c0_89 = arith.constant 0 : index
    %c64 = arith.constant 64 : index
    %36 = vector.load %arg8[%c0_87, %c0_88, %c0_89, %c64] : memref<2x8x8x72xbf16, #tpu.memory_space<vmem>>, vector<2x8x8x8xbf16>
    tpu.vector_store %arg8[%c0_87, %c0_88, %c0_89, %c64], %35 {strides = array<i32>} : memref<2x8x8x72xbf16, #tpu.memory_space<vmem>>, vector<2x8x8x8xbf16>,
    %c0_90 = arith.constant 0 : index
    %c0_91 = arith.constant 0 : index
    %c0_92 = arith.constant 0 : index
    %c0_93 = arith.constant 0 : index
    %37 = vector.load %arg8[%c0_90, %c0_91, %c0_92, %c0_93] : memref<2x8x8x72xbf16, #tpu.memory_space<vmem>>, vector<2x8x8x72xbf16>
    %38 = vector.shape_cast %37 : vector<2x8x8x72xbf16> to vector<128x72xbf16>
    %c0_94 = arith.constant 0 : index
    %c0_95 = arith.constant 0 : index
    %39 = vector.load %arg4[%c0_94, %c0_95] : memref<72x8xbf16, #tpu.memory_space<vmem>>, vector<72x8xbf16>
    %cst_96 = arith.constant dense<0.000000e+00> : vector<128x8xf32>
    %40 = tpu.matmul %38, %39, %cst_96 {dimension_numbers = #tpu.dot_dimension_numbers<[1], [0], [0], [1], [0, 0, 1, 1], [], []>} : vector<128x72xbf16>, vector<72x8xbf16>, vector<128x8xf32> -> vector<128x8xf32>
    %41 = vector.shape_cast %40 : vector<128x8xf32> to vector<2x8x8x8xf32>
    %c0_97 = arith.constant 0 : index
    %c0_98 = arith.constant 0 : index
    %c0_99 = arith.constant 0 : index
    %c0_100 = arith.constant 0 : index
    %42 = vector.load %arg5[%c0_97, %c0_98, %c0_99, %c0_100] : memref<2x8x8x8xf32, #tpu.memory_space<vmem>>, vector<2x8x8x8xf32>
    tpu.vector_store %arg5[%c0_97, %c0_98, %c0_99, %c0_100], %41 {strides = array<i32>} : memref<2x8x8x8xf32, #tpu.memory_space<vmem>>, vector<2x8x8x8xf32>,
    %cst_101 = arith.constant dense<0.000000e+00> : vector<8xf32>
    %43 = vector.multi_reduction <add>, %40, %cst_101 [0] : vector<128x8xf32> to vector<8xf32>
    %44 = vector.shape_cast %43 : vector<8xf32> to vector<1x8xf32>
    %45 = arith.mulf %40, %40 : vector<128x8xf32>
    %cst_102 = arith.constant dense<0.000000e+00> : vector<8xf32>
    %46 = vector.multi_reduction <add>, %45, %cst_102 [0] : vector<128x8xf32> to vector<8xf32>
    %47 = vector.shape_cast %46 : vector<8xf32> to vector<1x8xf32>
    %48 = tpu.concatenate %44, %47 in 0 : vector<1x8xf32>, vector<1x8xf32> -> vector<2x8xf32>
    %49 = vector.shape_cast %48 : vector<2x8xf32> to vector<1x2x8xf32>
    %c0_103 = arith.constant 0 : index
    %c0_104 = arith.constant 0 : index
    %c0_105 = arith.constant 0 : index
    %50 = vector.load %arg6[%c0_103, %c0_104, %c0_105] : memref<1x2x8xf32, #tpu.memory_space<vmem>>, vector<1x2x8xf32>
    tpu.vector_store %arg6[%c0_103, %c0_104, %c0_105], %49 {strides = array<i32>} : memref<1x2x8xf32, #tpu.memory_space<vmem>>, vector<1x2x8xf32>,
    return
  }
  func.func @transform_0(%arg0: i32) -> (i32, i32, i32, i32) {
    %c0_i32 = arith.constant 0 : i32
    %c0_i32_0 = arith.constant 0 : i32
    %c0_i32_1 = arith.constant 0 : i32
    %c0_i32_2 = arith.constant 0 : i32
    return %arg0, %c0_i32, %c0_i32_0, %c0_i32_1 : i32, i32, i32, i32
  }
  func.func @transform_1(%arg0: i32) -> (i32, i32) {
    %c0_i32 = arith.constant 0 : i32
    %c0_i32_0 = arith.constant 0 : i32
    %c0_i32_1 = arith.constant 0 : i32
    return %c0_i32, %c0_i32_0 : i32, i32
  }
  func.func @transform_2(%arg0: i32) -> (i32, i32) {
    %c0_i32 = arith.constant 0 : i32
    %c0_i32_0 = arith.constant 0 : i32
    %c0_i32_1 = arith.constant 0 : i32
    return %c0_i32, %c0_i32_0 : i32, i32
  }
  func.func @transform_3(%arg0: i32) -> (i32, i32) {
    %c0_i32 = arith.constant 0 : i32
    %c0_i32_0 = arith.constant 0 : i32
    %c0_i32_1 = arith.constant 0 : i32
    return %c0_i32, %c0_i32_0 : i32, i32
  }
  func.func @transform_4(%arg0: i32) -> (i32, i32, i32, i32) {
    %c0_i32 = arith.constant 0 : i32
    %c0_i32_0 = arith.constant 0 : i32
    %c0_i32_1 = arith.constant 0 : i32
    %c0_i32_2 = arith.constant 0 : i32
    return %arg0, %c0_i32, %c0_i32_0, %c0_i32_1 : i32, i32, i32, i32
  }
  func.func @transform_5(%arg0: i32) -> (i32, i32, i32) {
    %c0_i32 = arith.constant 0 : i32
    %c0_i32_0 = arith.constant 0 : i32
    %c0_i32_1 = arith.constant 0 : i32
    return %arg0, %c0_i32, %c0_i32_0 : i32, i32, i32
  }
}

module attributes {stable_mosaic.version = 11 : i64} {
  func.func @_bn_relu_kernel(%arg0: memref<2x512xf32, #tpu.memory_space<vmem>>, %arg1: memref<1x512xf32, #tpu.memory_space<vmem>>, %arg2: memref<1x512xf32, #tpu.memory_space<vmem>>, %arg3: memref<2x512xf32, #tpu.memory_space<vmem>>) attributes {dimension_semantics = [], scalar_prefetch = 0 : i64, scratch_operands = 0 : i64, tpu.core_type = #tpu.core_type<tc>} {
    %c0 = arith.constant 0 : index
    %c0_0 = arith.constant 0 : index
    %0 = vector.load %arg0[%c0, %c0_0] : memref<2x512xf32, #tpu.memory_space<vmem>>, vector<2x512xf32>
    %c0_1 = arith.constant 0 : index
    %c0_2 = arith.constant 0 : index
    %1 = vector.load %arg1[%c0_1, %c0_2] : memref<1x512xf32, #tpu.memory_space<vmem>>, vector<1x512xf32>
    %2 = vector.broadcast %1 : vector<1x512xf32> to vector<2x512xf32>
    %3 = arith.mulf %0, %2 : vector<2x512xf32>
    %c0_3 = arith.constant 0 : index
    %c0_4 = arith.constant 0 : index
    %4 = vector.load %arg2[%c0_3, %c0_4] : memref<1x512xf32, #tpu.memory_space<vmem>>, vector<1x512xf32>
    %5 = vector.broadcast %4 : vector<1x512xf32> to vector<2x512xf32>
    %6 = arith.addf %3, %5 : vector<2x512xf32>
    %cst = arith.constant 0.000000e+00 : f32
    %7 = vector.broadcast %cst : f32 to vector<2x512xf32>
    %8 = arith.maximumf %6, %7 : vector<2x512xf32>
    %c0_5 = arith.constant 0 : index
    %c0_6 = arith.constant 0 : index
    %9 = vector.load %arg3[%c0_5, %c0_6] : memref<2x512xf32, #tpu.memory_space<vmem>>, vector<2x512xf32>
    tpu.vector_store %arg3[%c0_5, %c0_6], %8 {strides = array<i32>} : memref<2x512xf32, #tpu.memory_space<vmem>>, vector<2x512xf32>,
    return
  }
}

</mosaic_0001>

<bundles_post_ra>
// kernel: tile.13
= control target key start
LH: loop header
LB: loop body
LE: loop exit
PB: predicated region body
PF: predicated region fallthrough
CT: control target
= control target key end

     0   :  { %s64_s0 = inlined_call_operand.vmem [shape: f32[8], index: 0, kind: input, shape index: {}]   ;;  %s65_s1 = inlined_call_operand.vmem [shape: f32[64,8], index: 1, kind: output, shape index: {}]  }
   0x1   :  { %v4_v0 = vld [vmem:[%s64_s0] ss:$0 sm:$0xff] }
   0x2   :  { %5 = vst [vmem:[%s65_s1] sm:$0xff] %v4_v0 }
   0x3   :  { %20 = vst [vmem:[%s65_s1 + $0x8] sm:$0xff] %v4_v0 }
   0x4   :  { %21 = vst [vmem:[%s65_s1 + $0x10] sm:$0xff] %v4_v0 }
   0x5   :  { %22 = vst [vmem:[%s65_s1 + $0x18] sm:$0xff] %v4_v0 }
   0x6   :  { %23 = vst [vmem:[%s65_s1 + $0x20] sm:$0xff] %v4_v0 }
   0x7   :  { %24 = vst [vmem:[%s65_s1 + $0x28] sm:$0xff] %v4_v0 }
   0x8   :  { %25 = vst [vmem:[%s65_s1 + $0x30] sm:$0xff] %v4_v0 }
   0x9   :  { %26 = vst [vmem:[%s65_s1 + $0x38] sm:$0xff] %v4_v0 }

// kernel: tile.14
= control target key start
LH: loop header
LB: loop body
LE: loop exit
PB: predicated region body
PF: predicated region fallthrough
CT: control target
= control target key end

     0   :  { %vm6_vm0 = vcmask 1043458   ;;  %s11_s6 = smov 3  ;;  %s14_s7 = smov 12  ;;  %vm8_vm1 = vcmask 64512   ;;  %vm20_vm2 = vcmask 1048512   ;;  %vm32_vm3 = vcmask 982912   ;;  %s411_s0 = inlined_call_operand.vmem [shape: f32[64,8], index: 0, kind: input, shape index: {}]   ;;  %s412_s1 = inlined_call_operand.vmem [shape: f32[1,512], index: 1, kind: output, shape index: {}]  }
   0x1   :  { %v214_v0 = vld [vmem:[%s411_s0 + $0xf] ss:$16 sm:%s11_s6]   ;;  %s35_s12 = smov 3  ;;  %s38_s15 = smov 12  ;;  %vm44_vm4 = vcmask 917312   ;;  %vm56_vm5 = vcmask 851712  }
   0x2   :  { %v215_v1 = vld [vmem:[%s411_s0 + $0xf] ss:$16 sm:%s14_s7]   ;;  %v218_v3 = vld [vmem:[%s411_s0 + $0xd] ss:$16 sm:%s35_s12]   ;;  %s262_s16 = smov 120   ;;  %s23_s19 = smov 3 }
   0x3   :  { %v17_v2 = vsel %vm6_vm0, %v215_v1, %v214_v0  ;;  %v219_v4 = vld [vmem:[%s411_s0 + $0xd] ss:$16 sm:%s38_s15]   ;;  %s26_s20 = smov 12  ;;  %v216_v6 = vld [vmem:[%s411_s0 + $0xe] ss:$16 sm:%s23_s19]   ;;  %s47_s23 = smov 3 }
   0x4   :  { %18 = vrot.lane.b32.xlu0 %v17_v2, %s262_s16  ;;  %v41_v5 = vsel %vm6_vm0, %v219_v4, %v218_v3  ;;  %s263_s24 = smov 104   ;;  %v217_v7 = vld [vmem:[%s411_s0 + $0xe] ss:$16 sm:%s26_s20]   ;;  %s50_s27 = smov 12  ;;  %vm68_vm6 = vcmask 786112   ;;  %vm80_vm7 = vcmask 720512  }
   0x5   :  { %42 = vrot.lane.b32.xlu1 %v41_v5, %s263_s24  ;;  %v220_v8 = vld [vmem:[%s411_s0 + $0xc] ss:$16 sm:%s47_s23]   ;;  %v29_v10 = vsel %vm6_vm0, %v217_v7, %v216_v6  ;;  %s83_s3 = smov 3  ;;  %s86_s4 = smov 12  ;;  %vm92_vm8 = vcmask 654912   ;;  %vm104_vm9 = vcmask 589312  }
   0x6   :  { %v221_v9 = vld [vmem:[%s411_s0 + $0xc] ss:$16 sm:%s50_s27]   ;;  %s264_s5 = smov 112   ;;  %s95_s6 = smov 3  ;;  %v226_v12 = vld [vmem:[%s411_s0 + $0x9] ss:$16 sm:%s83_s3]  }
   0x7   :  { %v53_v11 = vsel %vm6_vm0, %v221_v9, %v220_v8  ;;  %s98_s7 = smov 12  ;;  %v227_v13 = vld [vmem:[%s411_s0 + $0x9] ss:$16 sm:%s86_s4]   ;;  %s59_s12 = smov 3  ;;  %v228_v16 = vld [vmem:[%s411_s0 + $0x8] ss:$16 sm:%s95_s6]  }
   0x8   :  { %s62_s13 = smov 12  ;;  %s265_s14 = smov 96   ;;  %v222_v14 = vld [vmem:[%s411_s0 + $0xb] ss:$16 sm:%s59_s12]   ;;  %v229_v17 = vld [vmem:[%s411_s0 + $0x8] ss:$16 sm:%s98_s7]   ;;  %v89_v19 = vsel %vm6_vm0, %v227_v13, %v226_v12 }
   0x9   :  { %v223_v15 = vld [vmem:[%s411_s0 + $0xb] ss:$16 sm:%s62_s13]   ;;  %s266_s23 = smov 88   ;;  %s71_s24 = smov 3  ;;  %v101_v20 = vsel %vm6_vm0, %v229_v17, %v228_v16  ;;  %vm116_vm10 = vcmask 523712   ;;  %vm128_vm11 = vcmask 458112  }
   0xa   :  { %v65_v18 = vsel %vm6_vm0, %v223_v15, %v222_v14  ;;  %s119_s25 = smov 3  ;;  %s74_s26 = smov 12  ;;  %v224_v21 = vld [vmem:[%s411_s0 + $0xa] ss:$16 sm:%s71_s24]   ;;  %vm140_vm12 = vcmask 392512   ;;  %vm152_vm13 = vcmask 326912  }
   0xb   :  { %66 = vrot.lane.b32.xlu2 %v65_v18, %s266_s23  ;;  %s122_s27 = smov 12  ;;  %v225_v22 = vld [vmem:[%s411_s0 + $0xa] ss:$16 sm:%s74_s26]   ;;  %s267_s3 = smov 72   ;;  %vm164_vm14 = vcmask 261312   ;;  %vm176_vm15 = vcmask 195712  }
   0xc   :  { %30 = vrot.lane.b32.xlu0 %v29_v10, %s264_s5  ;;  %v232_v23 = vld [vmem:[%s411_s0 + $0x6] ss:$16 sm:%s119_s25]   ;;  %s131_s6 = smov 3  ;;  %s134_s7 = smov 12  ;;  %v77_v25 = vsel %vm6_vm0, %v225_v22, %v224_v21 }
   0xd   :  { %54 = vrot.lane.b32.xlu1 %v53_v11, %s265_s14  ;;  %s268_s8 = smov 64   ;;  %v233_v24 = vld [vmem:[%s411_s0 + $0x6] ss:$16 sm:%s122_s27]   ;;  %s107_s15 = smov 3 }
   0xe   :  { %v234_v26 = vld [vmem:[%s411_s0 + $0x5] ss:$16 sm:%s131_s6]   ;;  %s110_s16 = smov 12  ;;  %v125_v28 = vsel %vm6_vm0, %v233_v24, %v232_v23  ;;  %s269_s17 = smov 80   ;;  %v230_v30 = vld [vmem:[%s411_s0 + $0x7] ss:$16 sm:%s107_s15]  }
   0xf   :  { %v235_v27 = vld [vmem:[%s411_s0 + $0x5] ss:$16 sm:%s134_s7]   ;;  %s155_s18 = smov 3  ;;  %s158_s19 = smov 12  ;;  %v231_v31 = vld [vmem:[%s411_s0 + $0x7] ss:$16 sm:%s110_s16]  }
  0x10   :  { %v137_v29 = vsel %vm6_vm0, %v235_v27, %v234_v26  ;;  %s270_s24 = smov 48   ;;  %v238_v32 = vld [vmem:[%s411_s0 + $0x3] ss:$16 sm:%s155_s18]   ;;  %s167_s27 = smov 3  ;;  %v113_v34 = vsel %vm6_vm0, %v231_v31, %v230_v30 }
  0x11   :  { %s170_s28 = smov 12  ;;  %s271_s29 = smov 40   ;;  %v239_v33 = vld [vmem:[%s411_s0 + $0x3] ss:$16 sm:%s158_s19]   ;;  %v240_v35 = vld [vmem:[%s411_s0 + $0x2] ss:$16 sm:%s167_s27]  }
  0x12   :  { %v241_v36 = vld [vmem:[%s411_s0 + $0x2] ss:$16 sm:%s170_s28]   ;;  %s143_s7 = smov 3  ;;  %v161_v37 = vsel %vm6_vm0, %v239_v33, %v238_v32  ;;  %s272_s9 = smov 56  }
  0x13   :  { %78 = vrot.lane.b32.xlu2 %v77_v25, %s269_s17  ;;  %v173_v38 = vsel %vm6_vm0, %v241_v36, %v240_v35  ;;  %v236_v39 = vld [vmem:[%s411_s0 + $0x4] ss:$16 sm:%s143_s7]   ;;  %s273_s14 = smov 24   ;;  %s274_s15 = smov 16  }
  0x14   :  { %90 = vrot.lane.b32.xlu0 %v89_v19, %s267_s3  ;;  %s179_s16 = smov 3  ;;  %s182_s17 = smov 12 }
  0x15   :  { %102 = vrot.lane.b32.xlu1 %v101_v20, %s268_s8  ;;  %s146_s8 = smov 12  ;;  %s275_s18 = smov 32   ;;  %v242_v42 = vld [vmem:[%s411_s0 + $0x1] ss:$16 sm:%s179_s16]  }
  0x16   :  { %v237_v40 = vld [vmem:[%s411_s0 + $0x4] ss:$16 sm:%s146_s8]   ;;  %v243_v43 = vld [vmem:[%s411_s0 + $0x1] ss:$16 sm:%s182_s17]   ;;  %s276_s23 = smov 8   ;;  %s4_s25 = smov 12 }
  0x17   :  { %v149_v41 = vsel %vm6_vm0, %v237_v40, %v236_v39  ;;  %v185_v44 = vsel %vm6_vm0, %v243_v43, %v242_v42  ;;  %v5_v46 = vld [vmem:[%s411_s0] ss:$16 sm:%s4_s25]  }
  0x1b   :  { %114 = vrot.lane.b32.xlu2 %v113_v34, %s272_s9 }
  0x1c   :  { %126 = vrot.lane.b32.xlu0 %v125_v28, %s270_s24  ;;  %s2_s24 = smov 3 }
  0x1d   :  { %138 = vrot.lane.b32.xlu1 %v137_v29, %s271_s29  ;;  %v3_v45 = vld [vmem:[%s411_s0] ss:$16 sm:%s2_s24]  }
  0x1e   :  { %v7_v47 = vsel %vm6_vm0, %v5_v46, %v3_v45  ;;  %vm188_vm0 = vcmask 130112  }
  0x1f   :  { %9 = vst.msk [vmem:[#allocation0] ss:$8 sm:$0xf] %vm8_vm1, %v7_v47  }
  0x23   :  { %150 = vrot.lane.b32.xlu2 %v149_v41, %s275_s18 }
  0x24   :  { %162 = vrot.lane.b32.xlu0 %v161_v37, %s273_s14 }
  0x25   :  { %174 = vrot.lane.b32.xlu1 %v173_v38, %s274_s15 }
  0x2b   :  { %186 = vrot.lane.b32.xlu2 %v185_v44, %s276_s23 }
  0x65   :  { %v67_v48 = vpop.permute.xlu2 %66  }
  0x6d   :  { %v79_v49 = vpop.permute.xlu2 %78  }
  0x75   :  { %v115_v52 = vpop.permute.xlu2 %114  }
  0x76   :  { %v19_v50 = vpop.permute.xlu0 %18  }
  0x77   :  { %21 = vst.msk [vmem:[#allocation0] ss:$8 sm:$0xf] %vm20_vm2, %v19_v50   ;;  %v43_v51 = vpop.permute.xlu1 %42  }
  0x7d   :  { %v151_v55 = vpop.permute.xlu2 %150  }
  0x7e   :  { %v31_v53 = vpop.permute.xlu0 %30  }
  0x7f   :  { %33 = vst.msk [vmem:[#allocation0] ss:$8 sm:$0xf] %vm32_vm3, %v31_v53   ;;  %v55_v54 = vpop.permute.xlu1 %54  }
  0x80   :  { %45 = vst.msk [vmem:[#allocation0] ss:$8 sm:$0xf] %vm44_vm4, %v43_v51  }
  0x81   :  { %57 = vst.msk [vmem:[#allocation0] ss:$8 sm:$0xf] %vm56_vm5, %v55_v54  }
  0x82   :  { %69 = vst.msk [vmem:[#allocation0] ss:$8 sm:$0xf] %vm68_vm6, %v67_v48  }
  0x83   :  { %81 = vst.msk [vmem:[#allocation0] ss:$8 sm:$0xf] %vm80_vm7, %v79_v49  }
  0x85   :  { %v187_v58 = vpop.permute.xlu2 %186  }
  0x86   :  { %v91_v56 = vpop.permute.xlu0 %90  }
  0x87   :  { %93 = vst.msk [vmem:[#allocation0] ss:$8 sm:$0xf] %vm92_vm8, %v91_v56   ;;  %v103_v57 = vpop.permute.xlu1 %102  }
  0x88   :  { %105 = vst.msk [vmem:[#allocation0] ss:$8 sm:$0xf] %vm104_vm9, %v103_v57  }
  0x89   :  { %117 = vst.msk [vmem:[#allocation0] ss:$8 sm:$0xf] %vm116_vm10, %v115_v52  }
  0x8e   :  { %v127_v59 = vpop.permute.xlu0 %126  }
  0x8f   :  { %129 = vst.msk [vmem:[#allocation0] ss:$8 sm:$0xf] %vm128_vm11, %v127_v59   ;;  %v139_v60 = vpop.permute.xlu1 %138  }
  0x90   :  { %141 = vst.msk [vmem:[#allocation0] ss:$8 sm:$0xf] %vm140_vm12, %v139_v60  }
  0x91   :  { %153 = vst.msk [vmem:[#allocation0] ss:$8 sm:$0xf] %vm152_vm13, %v151_v55  }
  0x96   :  { %v163_v61 = vpop.permute.xlu0 %162  }
  0x97   :  { %165 = vst.msk [vmem:[#allocation0] ss:$8 sm:$0xf] %vm164_vm14, %v163_v61   ;;  %v175_v62 = vpop.permute.xlu1 %174  }
  0x98   :  { %177 = vst.msk [vmem:[#allocation0] ss:$8 sm:$0xf] %vm176_vm15, %v175_v62  }
  0x99   :  { %189 = vst.msk [vmem:[#allocation0] ss:$8 sm:$0xf] %vm188_vm0, %v187_v58  }
  0xa0   :  { %v192_v63 = vld [vmem:[#allocation0] sm:$0x1]  ;;  %v197_v0 = vld [vmem:[#allocation0 + $0x8] sm:$0x1]  ;;  %v203_v1 = vld [vmem:[#allocation0 + $0x10] sm:$0x1] }
  0xa1   :  { %195 = vst [vmem:[%s412_s1] sm:$0x1] %v192_v63  ;;  %v209_v2 = vld [vmem:[#allocation0 + $0x18] sm:$0x1] }
  0xa2   :  { %244 = vst [vmem:[%s412_s1 + $0x1] sm:$0x1] %v197_v0 }
  0xa3   :  { %245 = vst [vmem:[%s412_s1 + $0x2] sm:$0x1] %v203_v1 }
  0xa4   :  { %246 = vst [vmem:[%s412_s1 + $0x3] sm:$0x1] %v209_v2 }

// kernel: down_forward.5
= control target key start
LH: loop header
LB: loop body
LE: loop exit
PB: predicated region body
PF: predicated region fallthrough
CT: control target
= control target key end

     0   :  { %vm24_vm0 = vcmask 1041408   ;;  %vm26_vm1 = vcmask 1045508   ;;  %vm28_vm2 = vcmask 1043456   ;;  %s88_s1 = inlined_call_operand.vmem [shape: f32[1,512], index: 1, kind: input, shape index: {}]   ;;  %s89_s2 = inlined_call_operand.vmem [shape: f32[1,512], index: 2, kind: input, shape index: {}]   ;;  %s90_s0 = inlined_call_operand.vmem [shape: f32[2,512], index: 0, kind: input, shape index: {}]   ;;  %s91_s3 = inlined_call_operand.vmem [shape: f32[2,512], index: 3, kind: output, shape index: {}]  }
   0x1   :  { %v15_v0 = vld [vmem:[%s88_s1] sm:$0xf] }
   0x2   :  { %v32_v1 = vld [vmem:[%s89_s2] sm:$0xf]  ;;  %v17_v2 = vperm.slane %v15_v0, 0  ;;  %v18_v3 = vperm.slane %v15_v0, 1  ;;  %v19_v4 = vperm.slane %v15_v0, 2  ;;  %v20_v5 = vperm.slane %v15_v0, 3 }
   0x3   :  { %v34_v6 = vperm.slane %v32_v1, 0  ;;  %v35_v7 = vperm.slane %v32_v1, 1  ;;  %v36_v8 = vperm.slane %v32_v1, 2  ;;  %v37_v9 = vperm.slane %v32_v1, 3  ;;  %v14_v13 = vld [vmem:[%s90_s0] sm:$0xff] }
   0x4   :  { %v21_v10 = vrot.slane %v18_v3, 6  ;;  %v22_v11 = vrot.slane %v19_v4, 4  ;;  %v23_v12 = vrot.slane %v20_v5, 2 }
   0x5   :  { %v38_v14 = vrot.slane %v35_v7, 6  ;;  %v39_v15 = vrot.slane %v36_v8, 4  ;;  %v40_v16 = vrot.slane %v37_v9, 2 }
   0x6   :  { %v25_v17 = vsel %vm24_vm0, %v17_v2, %v21_v10  ;;  %v27_v18 = vsel %vm26_vm1, %v22_v11, %v23_v12 }
   0x7   :  { %v29_v19 = vsel %vm28_vm2, %v25_v17, %v27_v18  ;;  %v41_v20 = vsel %vm24_vm0, %v34_v6, %v38_v14  ;;  %v42_v21 = vsel %vm26_vm1, %v39_v15, %v40_v16 }
   0x8   :  { %v31_v22 = vmul.f32 %v29_v19, %v14_v13  ;;  %v43_v23 = vsel %vm28_vm2, %v41_v20, %v42_v21 }
   0xa   :  { %v45_v24 = vadd.f32 %v43_v23, %v31_v22 }
   0xc   :  { %v46_v25 = vmax.f32 %v45_v24, 0.0 }
   0xe   :  { %47 = vst [vmem:[%s91_s3] sm:$0xff] %v46_v25 }

// kernel: down_forward.3
= control target key start
LH: loop header
LB: loop body
LE: loop exit
PB: predicated region body
PF: predicated region fallthrough
CT: control target
= control target key end

     0   :  { %s2742_s17 = smov 124   ;;  %vm155_vm0 = vsmask.f32 256  ;;  %vm205_vm1 = vsmask.f32 7938  ;;  %vm144_vm2 = vcmask 24576   ;;  %s3802_s0 = inlined_call_operand.vmem [shape: f32[2,8,2,8,8], index: 0, kind: input, shape index: {}]   ;;  %s3803_s1 = inlined_call_operand.vmem [shape: bf16[36,8], index: 1, kind: input, shape index: {}]   ;;  %s3804_s2 = inlined_call_operand.vmem [shape: f32[2,8,8,8], index: 2, kind: output, shape index: {0}]   ;;  %s3805_s3 = inlined_call_operand.vmem [shape: f32[1,2,8], index: 3, kind: output, shape index: {1}]  }
   0x1   :  { %v14_v0 = vld [vmem:[%s3802_s0] sm:$0xff]  ;;  %v15_v1 = vld [vmem:[%s3802_s0 + $0x8] sm:$0xff]  ;;  %v16_v2 = vld [vmem:[%s3802_s0 + $0x10] sm:$0xff]  ;;  %vm142_vm5 = vcmask 27648   ;;  %vm593_vm6 = vsmask.f32 3328 }
   0x2   :  { %v17_v3 = vld [vmem:[%s3802_s0 + $0x18] sm:$0xff]  ;;  %v2784_v4 = vmax.f32 %v14_v0, %v15_v1  ;;  %v22_v5 = vld [vmem:[%s3802_s0 + $0x40] sm:$0xff]  ;;  %v23_v6 = vld [vmem:[%s3802_s0 + $0x48] sm:$0xff]  ;;  %vm594_vm7 = vsmask.f32 7440  ;;  %vm949_vm9 = vcmask 1042432  }
   0x3   :  { %v2792_v7 = vmax.f32 %v16_v2, %v17_v3  ;;  %v24_v8 = vld [vmem:[%s3802_s0 + $0x50] sm:$0xff]  ;;  %v25_v9 = vld [vmem:[%s3802_s0 + $0x58] sm:$0xff]  ;;  %v2800_v10 = vmax.f32 %v22_v5, %v23_v6  ;;  %v18_v11 = vld [vmem:[%s3802_s0 + $0x20] sm:$0xff]  ;;  %v2743_v2 = vmov 0   ;;  %vm950_vm10 = vcmask 1046532   ;;  %s2746_s24 = smov 12  }
   0x4   :  { %v2805_v12 = vmax.f32 %v24_v8, %v25_v9  ;;  %v19_v13 = vld [vmem:[%s3802_s0 + $0x28] sm:$0xff]  ;;  %v20_v14 = vld [vmem:[%s3802_s0 + $0x30] sm:$0xff]  ;;  %v21_v15 = vld [vmem:[%s3802_s0 + $0x38] sm:$0xff]  ;;  %143 = vst.msk [vmem:[#allocation2] sm:$0xf] %vm142_vm5, %v2743_v2  ;;  %vm868_vm13 = vcmask 60448  }
   0x5   :  { %v2702_v16 = vpack.i.bf16 %v2792_v7, %v2784_v4  ;;  %v26_v17 = vld [vmem:[%s3802_s0 + $0x60] sm:$0xff]  ;;  %v27_v18 = vld [vmem:[%s3802_s0 + $0x68] sm:$0xff]  ;;  %v28_v19 = vld [vmem:[%s3802_s0 + $0x70] sm:$0xff]  ;;  %v2833_v22 = vmax.f32 %v18_v11, %v19_v13  ;;  %v2835_v23 = vmax.f32 %v20_v14, %v21_v15  ;;  %145 = vst.msk [vmem:[#allocation2 + $0x4] sm:$0x1] %vm144_vm2, %v2743_v2  ;;  %vm1064_vm14 = vcmask 93248  }
   0x6   :  { %v2712_v20 = vpack.i.bf16 %v2805_v12, %v2800_v10  ;;  %v29_v21 = vld [vmem:[%s3802_s0 + $0x78] sm:$0xff]  ;;  %v2838_v24 = vmax.f32 %v26_v17, %v27_v18  ;;  %v38_v26 = vld [vmem:[%s3802_s0 + $0xc0] sm:$0xff]  ;;  %v39_v27 = vld [vmem:[%s3802_s0 + $0xc8] sm:$0xff]  ;;  %146 = vst.msk [vmem:[#allocation2 + $0x50] sm:$0xf] %vm142_vm5, %v2743_v2  ;;  %s2747_s25 = smov 16  }
   0x7   :  { %2703 = vrot.lane.b32.xlu0 %v2702_v16, %s2742_s17  ;;  %v2840_v25 = vmax.f32 %v28_v19, %v29_v21  ;;  %v30_v28 = vld [vmem:[%s3802_s0 + $0x80] sm:$0xff]  ;;  %v31_v29 = vld [vmem:[%s3802_s0 + $0x88] sm:$0xff]  ;;  %v32_v30 = vld [vmem:[%s3802_s0 + $0x90] sm:$0xff]  ;;  %v2707_v37 = vpack.i.bf16 %v2835_v23, %v2833_v22  ;;  %v2916_v55 = vmax.f32 %v38_v26, %v39_v27  ;;  %147 = vst.msk [vmem:[#allocation2 + $0x54] sm:$0x1] %vm144_vm2, %v2743_v2  ;;  %vm1161_vm15 = vcmask 126048  }
   0x8   :  { %2713 = vrot.lane.b32.xlu1 %v2712_v20, %s2742_s17  ;;  %v40_v31 = vld [vmem:[%s3802_s0 + $0xd0] sm:$0xff]  ;;  %v41_v32 = vld [vmem:[%s3802_s0 + $0xd8] sm:$0xff]  ;;  %v2866_v34 = vmax.f32 %v30_v28, %v31_v29  ;;  %v34_v35 = vld [vmem:[%s3802_s0 + $0xa0] sm:$0xff]  ;;  %149 = vst.msk [vmem:[#allocation2 + $0x48] sm:$0xf] %vm142_vm5, %v2743_v2  ;;  %s2748_s26 = smov 24  }
   0x9   :  { %v33_v33 = vld [vmem:[%s3802_s0 + $0x98] sm:$0xff]  ;;  %v35_v36 = vld [vmem:[%s3802_s0 + $0xa8] sm:$0xff]  ;;  %v42_v38 = vld [vmem:[%s3802_s0 + $0xe0] sm:$0xff]  ;;  %v2717_v46 = vpack.i.bf16 %v2840_v25, %v2838_v24  ;;  %v2923_v58 = vmax.f32 %v40_v31, %v41_v32  ;;  %150 = vst.msk [vmem:[#allocation2 + $0x4c] sm:$0x1] %vm144_vm2, %v2743_v2  ;;  %s2749_s27 = smov 20  }
   0xa   :  { %v43_v39 = vld [vmem:[%s3802_s0 + $0xe8] sm:$0xff]  ;;  %v44_v40 = vld [vmem:[%s3802_s0 + $0xf0] sm:$0xff]  ;;  %v45_v41 = vld [vmem:[%s3802_s0 + $0xf8] sm:$0xff]  ;;  %v2888_v42 = vmax.f32 %v32_v30, %v33_v33  ;;  %v2926_v59 = vmax.f32 %v34_v35, %v35_v36  ;;  %151 = vst.msk [vmem:[#allocation2 + $0x98] sm:$0xf] %vm142_vm5, %v2743_v2  ;;  %s2750_s28 = smov 28  }
   0xb   :  { %v36_v43 = vld [vmem:[%s3802_s0 + $0xb0] sm:$0xff]  ;;  %v37_v44 = vld [vmem:[%s3802_s0 + $0xb8] sm:$0xff]  ;;  %vm2898_vm3 = vmand %vm144_vm2, %vm155_vm0  ;;  %v2931_v61 = vmax.f32 %v42_v38, %v43_v39  ;;  %v2933_v62 = vmax.f32 %v44_v40, %v45_v41  ;;  %v2732_v63 = vpack.i.bf16 %v2923_v58, %v2916_v55  ;;  %152 = vst.msk [vmem:[#allocation2 + $0x9c] sm:$0x1] %vm144_vm2, %v2743_v2  ;;  %s2744_s0 = smov 4   ;;  %s2751_s29 = smov 32  }
   0xc   :  { %v157_v47 = vld [vmem:[#allocation2 + $0x8] sm:$0x1]  ;;  %v160_v48 = vld [vmem:[#allocation2 + $0x10] sm:$0x1]  ;;  %vm2906_vm4 = vmand %vm144_vm2, %vm205_vm1  ;;  %v2722_v50 = vpack.i.bf16 %v2888_v42, %v2866_v34  ;;  %v2928_v60 = vmax.f32 %v36_v43, %v37_v44  ;;  %vm1482_vm0 = vcmask 158848   ;;  %vm1675_vm2 = vcmask 191648  }
   0xd   :  { %v158_v51 = vsel %vm2898_vm3, 0, %v157_v47  ;;  %v161_v52 = vsel %vm2898_vm3, 0, %v160_v48  ;;  %v207_v53 = vld [vmem:[#allocation2 + $0xc] sm:$0x1]  ;;  %v210_v54 = vld [vmem:[#allocation2 + $0x14] sm:$0x1]  ;;  %v2737_v1 = vpack.i.bf16 %v2933_v62, %v2931_v61  ;;  %vm2952_vm8 = vmor %vm593_vm6, %vm594_vm7 }
   0xe   :  { %159 = vst [vmem:[#allocation2 + $0x8] sm:$0x1] %v158_v51  ;;  %v208_v56 = vsel %vm2906_vm4, 0, %v207_v53  ;;  %v211_v57 = vsel %vm2906_vm4, 0, %v210_v54  ;;  %2723 = vrot.lane.b32.xlu2 %v2722_v50, %s2742_s17  ;;  %v2727_v0 = vpack.i.bf16 %v2928_v60, %v2926_v59  ;;  %v561_v3 = vld [vmem:[#allocation2] sm:$0xf]  ;;  %vm2975_vm11 = vmor %vm949_vm9, %vm950_vm10 }
   0xf   :  { %2708 = vrot.lane.b32.xlu0 %v2707_v37, %s2742_s17  ;;  %162 = vst [vmem:[#allocation2 + $0x10] sm:$0x1] %v161_v52  ;;  %v597_v5 = vshrl.u32 %v561_v3, 16  ;;  %v600_v6 = vshll.u32 %v561_v3, 16  ;;  %v562_v11 = vld [vmem:[#allocation2 + $0x4] sm:$0x1]  ;;  %vm3020_vm12 = vmand %vm142_vm5, %vm205_vm1 }
  0x10   :  { %2718 = vrot.lane.b32.xlu1 %v2717_v46, %s2742_s17  ;;  %209 = vst [vmem:[#allocation2 + $0xc] sm:$0x1] %v208_v56  ;;  %v606_v14 = vshll.u32 %v562_v11, 16  ;;  %v577_v19 = vld [vmem:[#allocation2 + $0x50] sm:$0xf]  ;;  %vm2405_vm1 = vcmask 1041408  }
  0x11   :  { %212 = vst [vmem:[#allocation2 + $0x14] sm:$0x1] %v211_v57  ;;  %v599_v8 = vrot.slane %v597_v5, 4  ;;  %v602_v9 = vrot.slane %v600_v6, 5  ;;  %v709_v20 = vshrl.u32 %v577_v19, 16  ;;  %v712_v21 = vshll.u32 %v577_v19, 16 }
  0x12   :  { %v608_v16 = vrot.slane %v606_v14, 5  ;;  %v169_v26 = vld [vmem:[#allocation2 + $0x28] sm:$0x1]  ;;  %v163_v27 = vld [vmem:[#allocation2 + $0x18] sm:$0x1]  ;;  %vm2380_vm6 = vcmask 293888  }
  0x13   :  { %v603_v13 = vor.u32 %v602_v9, %v599_v8  ;;  %v166_v28 = vld [vmem:[#allocation2 + $0x20] sm:$0x1]  ;;  %v170_v29 = vsel %vm2898_vm3, 0, %v169_v26  ;;  %v164_v30 = vsel %vm2898_vm3, 0, %v163_v27  ;;  %v213_v31 = vld [vmem:[#allocation2 + $0x1c] sm:$0x1] }
  0x14   :  { %v711_v32 = vrot.slane %v709_v20, 4  ;;  %171 = vst [vmem:[#allocation2 + $0x28] sm:$0x1] %v170_v29  ;;  %v167_v33 = vsel %vm2898_vm3, 0, %v166_v28  ;;  %v216_v35 = vld [vmem:[#allocation2 + $0x24] sm:$0x1] }
  0x15   :  { %v604_v15 = vrot.slane %v603_v13, 4  ;;  %v714_v36 = vrot.slane %v712_v21, 5  ;;  %v172_v37 = vld [vmem:[#allocation2 + $0x30] sm:$0x1]  ;;  %v219_v38 = vld [vmem:[#allocation2 + $0x2c] sm:$0x1] }
  0x16   :  { %2728 = vrot.lane.b32.xlu2 %v2727_v0, %s2742_s17  ;;  %v222_v39 = vld [vmem:[#allocation2 + $0x34] sm:$0x1]  ;;  %v173_v40 = vsel %vm2898_vm3, 0, %v172_v37  ;;  %v220_v41 = vsel %vm2906_vm4, 0, %v219_v38  ;;  %165 = vst [vmem:[#allocation2 + $0x18] sm:$0x1] %v164_v30 }
  0x17   :  { %2733 = vrot.lane.b32.xlu0 %v2732_v63, %s2742_s17  ;;  %v609_v18 = vsel %vm2952_vm8, %v604_v15, %v608_v16  ;;  %v223_v43 = vsel %vm2906_vm4, 0, %v222_v39  ;;  %v214_v44 = vsel %vm2906_vm4, 0, %v213_v31  ;;  %174 = vst [vmem:[#allocation2 + $0x30] sm:$0x1] %v173_v40  ;;  %v901_v46 = vld [vmem:[#allocation2 + $0x50] sm:$0xe]  ;;  %v715_v48 = vor.u32 %v714_v36, %v711_v32 }
  0x18   :  { %2738 = vrot.lane.b32.xlu1 %v2737_v1, %s2742_s17  ;;  %v902_v47 = vld [vmem:[#allocation2 + $0x54] sm:$0x1]  ;;  %221 = vst [vmem:[#allocation2 + $0x2c] sm:$0x1] %v220_v41  ;;  %v2585_v50 = vrot.slane %v901_v46, 9  ;;  %v217_v52 = vsel %vm2906_vm4, 0, %v216_v35 }
  0x19   :  { %v986_v51 = vrot.slane %v902_v47, 5  ;;  %224 = vst [vmem:[#allocation2 + $0x34] sm:$0x1] %v223_v43  ;;  %v578_v54 = vld [vmem:[#allocation2 + $0x54] sm:$0x1]  ;;  %v716_v57 = vrot.slane %v715_v48, 4 }
  0x1a   :  { %168 = vst [vmem:[#allocation2 + $0x20] sm:$0x1] %v167_v33  ;;  %v718_v63 = vshll.u32 %v578_v54, 16  ;;  %s2745_s17 = smov 8   ;;  %v885_v1 = vld [vmem:[#allocation2] sm:$0xe] }
  0x1b   :  { %v987_v56 = vsel %vm2975_vm11, %v2585_v50, %v986_v51  ;;  %215 = vst [vmem:[#allocation2 + $0x1c] sm:$0x1] %v214_v44  ;;  %v886_v2 = vld [vmem:[#allocation2 + $0x4] sm:$0x1]  ;;  %v2577_v3 = vrot.slane %v885_v1, 9  ;;  %vm2458_vm7 = vcmask 64512  }
  0x1c   :  { %218 = vst [vmem:[#allocation2 + $0x24] sm:$0x1] %v217_v52  ;;  %v720_v0 = vrot.slane %v718_v63, 5  ;;  %v175_v6 = vld [vmem:[#allocation2 + $0x38] sm:$0x1]  ;;  %v954_v11 = vrot.slane %v886_v2, 5 }
  0x1d   :  { %v176_v9 = vsel %vm2898_vm3, 0, %v175_v6  ;;  %v178_v15 = vld [vmem:[#allocation2 + $0x40] sm:$0x1]  ;;  %v181_v16 = vld [vmem:[#allocation2 + $0x58] sm:$0x1]  ;;  %vm2567_vm9 = vcmask 58368  }
  0x1e   :  { %820 = vrot.lane.b32.xlu2 %v609_v18, %s2744_s0  ;;  %v721_v5 = vsel %vm2952_vm8, %v716_v57, %v720_v0  ;;  %177 = vst [vmem:[#allocation2 + $0x38] sm:$0x1] %v176_v9  ;;  %v184_v18 = vld [vmem:[#allocation2 + $0x60] sm:$0x1]  ;;  %v955_v19 = vsel %vm2975_vm11, %v2577_v3, %v954_v11  ;;  %v182_v20 = vsel %vm2898_vm3, 0, %v181_v16  ;;  %v179_v30 = vsel %vm2898_vm3, 0, %v178_v15 }
  0x1f   :  { %v185_v21 = vsel %vm2898_vm3, 0, %v184_v18  ;;  %v231_v26 = vld [vmem:[#allocation2 + $0x5c] sm:$0x1]  ;;  %1016 = vrot.lane.b32.xlu0 %v955_v19, %s2745_s17  ;;  %183 = vst [vmem:[#allocation2 + $0x58] sm:$0x1] %v182_v20 }
  0x20   :  { %836 = vrot.lane.b32.xlu1 %v721_v5, %s2744_s0  ;;  %v232_v29 = vsel %vm2906_vm4, 0, %v231_v26  ;;  %186 = vst [vmem:[#allocation2 + $0x60] sm:$0x1] %v185_v21  ;;  %v234_v32 = vld [vmem:[#allocation2 + $0x64] sm:$0x1] }
  0x21   :  { %v225_v36 = vld [vmem:[#allocation2 + $0x3c] sm:$0x1]  ;;  %233 = vst [vmem:[#allocation2 + $0x5c] sm:$0x1] %v232_v29  ;;  %v228_v40 = vld [vmem:[#allocation2 + $0x44] sm:$0x1] }
  0x22   :  { %v226_v39 = vsel %vm2906_vm4, 0, %v225_v36  ;;  %v187_v47 = vld [vmem:[#allocation2 + $0x68] sm:$0x1]  ;;  %180 = vst [vmem:[#allocation2 + $0x40] sm:$0x1] %v179_v30  ;;  %v229_v63 = vsel %vm2906_vm4, 0, %v228_v40 }
  0x23   :  { %227 = vst [vmem:[#allocation2 + $0x3c] sm:$0x1] %v226_v39  ;;  %v436_v26 = vld [vmem:[#allocation2 + $0xc] sm:$0x1]  ;;  %v463_v36 = vld [vmem:[#allocation2 + $0x30] sm:$0xf] }
  0x24   :  { %230 = vst [vmem:[#allocation2 + $0x44] sm:$0x1] %v229_v63  ;;  %v460_v63 = vld [vmem:[#allocation2 + $0x2c] sm:$0x1] }
  0x26   :  { %1032 = vrot.lane.b32.xlu2 %v987_v56, %s2745_s17 }
  0x27   :  { %v487_v11 = vld [vmem:[#allocation2 + $0x60] sm:$0xf] }
  0x68   :  { %v2724_v8 = vpop.permute.xlu2 %2723 }
  0x69   :  { %v2726_v13 = vunpack.i.h.bf16 %v2724_v8  ;;  %v2725_v14 = vunpack.i.l.bf16 %v2724_v8 }
  0x6b   :  { %v135_v27 = vmax.f32 %v2888_v42, %v2726_v13  ;;  %v134_v28 = vmax.f32 %v2866_v34, %v2725_v14  ;;  %v235_v34 = vsel %vm2906_vm4, 0, %v234_v32  ;;  %v433_v13 = vld [vmem:[#allocation2 + $0x8] sm:$0xf]  ;;  %v439_v14 = vld [vmem:[#allocation2 + $0x10] sm:$0xf] }
  0x6c   :  { %236 = vst [vmem:[#allocation2 + $0x64] sm:$0x1] %v235_v34 }
  0x6d   :  { %v264_v33 = vpack.c.bf16 %v135_v27, %v135_v27  ;;  %v3000_v35 = vpack.c.bf16 %v134_v28, %v134_v28  ;;  %v442_v27 = vld [vmem:[#allocation2 + $0x14] sm:$0x1] }
  0x6f   :  { %v344_v44 = vshrl.u32 %v264_v33, 16  ;;  %v347_v46 = vshll.u32 %v264_v33, 16  ;;  %v336_v51 = vshrl.u32 %v3000_v35, 16  ;;  %v339_v52 = vshll.u32 %v3000_v35, 16  ;;  %v457_v33 = vld [vmem:[#allocation2 + $0x28] sm:$0xf] }
  0x70   :  { %v2729_v39 = vpop.permute.xlu2 %2728 }
  0x71   :  { %v346_v57 = vrot.slane %v344_v44, 7  ;;  %v3014_v2 = vrot.slane %v336_v51, 7 }
  0x73   :  { %v349_v5 = vor.u32 %v347_v46, %v346_v57  ;;  %v350_v6 = vrot.slane %v346_v57, 4  ;;  %v490_v32 = vld [vmem:[#allocation2 + $0x64] sm:$0x1]  ;;  %v466_v46 = vld [vmem:[#allocation2 + $0x34] sm:$0x1] }
  0x75   :  { %v491_v34 = vsel %vm2898_vm3, %v350_v6, %v490_v32 }
  0x76   :  { %492 = vst [vmem:[#allocation2 + $0x64] sm:$0x1] %v491_v34 }
  0x79   :  { %v2704_v31 = vpop.permute.xlu0 %2703 }
  0x7a   :  { %v2706_v37 = vunpack.i.h.bf16 %v2704_v31  ;;  %v2705_v42 = vunpack.i.l.bf16 %v2704_v31  ;;  %v2714_v38 = vpop.permute.xlu1 %2713 }
  0x7b   :  { %v2716_v41 = vunpack.i.h.bf16 %v2714_v38  ;;  %v2715_v43 = vunpack.i.l.bf16 %v2714_v38  ;;  %v488_v38 = vsel %vm3020_vm12, %v349_v5, %v487_v11  ;;  %v484_v11 = vld [vmem:[#allocation2 + $0x5c] sm:$0x1] }
  0x7c   :  { %v127_v48 = vmax.f32 %v2792_v7, %v2706_v37  ;;  %v126_v50 = vmax.f32 %v2784_v4, %v2705_v42  ;;  %v188_v4 = vsel %vm2898_vm3, 0, %v187_v47  ;;  %489 = vst [vmem:[#allocation2 + $0x60] sm:$0xf] %v488_v38 }
  0x7d   :  { %v131_v54 = vmax.f32 %v2805_v12, %v2716_v41  ;;  %v130_v56 = vmax.f32 %v2800_v10, %v2715_v43  ;;  %189 = vst [vmem:[#allocation2 + $0x68] sm:$0x1] %v188_v4  ;;  %v2730_v4 = vunpack.i.l.bf16 %v2729_v39 }
  0x7e   :  { %v256_v0 = vpack.c.bf16 %v127_v48, %v127_v48  ;;  %v255_v1 = vpack.c.bf16 %v126_v50, %v126_v50 }
  0x7f   :  { %v260_v7 = vpack.c.bf16 %v131_v54, %v131_v54  ;;  %v259_v3 = vpack.c.bf16 %v130_v56, %v130_v56 }
  0x80   :  { %v280_v12 = vshrl.u32 %v256_v0, 16  ;;  %v283_v10 = vshll.u32 %v256_v0, 16  ;;  %v272_v8 = vshrl.u32 %v255_v1, 16  ;;  %v275_v9 = vshll.u32 %v255_v1, 16  ;;  %v3034_v1 = vld [vmem:[#allocation2 + $0x70] sm:$0x1] }
  0x81   :  { %v312_v15 = vshrl.u32 %v260_v7, 16  ;;  %v315_v16 = vshll.u32 %v260_v7, 16  ;;  %v304_v18 = vshrl.u32 %v259_v3, 16  ;;  %v307_v19 = vshll.u32 %v259_v3, 16  ;;  %v2709_v20 = vpop.permute.xlu0 %2708 }
  0x82   :  { %v282_v28 = vrot.slane %v280_v12, 7  ;;  %v274_v29 = vrot.slane %v272_v8, 7  ;;  %v2711_v30 = vunpack.i.h.bf16 %v2709_v20  ;;  %v2710_v31 = vunpack.i.l.bf16 %v2709_v20  ;;  %v2719_v0 = vpop.permute.xlu1 %2718  ;;  %v481_v12 = vld [vmem:[#allocation2 + $0x58] sm:$0xf] }
  0x83   :  { %v314_v37 = vrot.slane %v312_v15, 7  ;;  %v306_v42 = vrot.slane %v304_v18, 7  ;;  %v2720_v18 = vunpack.i.l.bf16 %v2719_v0 }
  0x84   :  { %v285_v40 = vor.u32 %v283_v10, %v282_v28  ;;  %v286_v41 = vrot.slane %v282_v28, 4  ;;  %v277_v43 = vor.u32 %v275_v9, %v274_v29  ;;  %v278_v44 = vrot.slane %v274_v29, 4  ;;  %v3044_v10 = vld [vmem:[#allocation2 + $0x6c] sm:$0x1] }
  0x85   :  { %v317_v47 = vor.u32 %v315_v16, %v314_v37  ;;  %v318_v48 = vrot.slane %v314_v37, 4  ;;  %v309_v50 = vor.u32 %v307_v19, %v306_v42  ;;  %v310_v51 = vrot.slane %v306_v42, 4  ;;  %v451_v37 = vld [vmem:[#allocation2 + $0x20] sm:$0xf]  ;;  %v454_v42 = vld [vmem:[#allocation2 + $0x24] sm:$0x1] }
  0x86   :  { %v440_v54 = vsel %vm3020_vm12, %v285_v40, %v439_v14  ;;  %v443_v56 = vsel %vm2898_vm3, %v286_v41, %v442_v27  ;;  %v434_v57 = vsel %vm3020_vm12, %v277_v43, %v433_v13  ;;  %v437_v7 = vsel %vm2898_vm3, %v278_v44, %v436_v26 }
  0x87   :  { %441 = vst [vmem:[#allocation2 + $0x10] sm:$0xf] %v440_v54  ;;  %v464_v3 = vsel %vm3020_vm12, %v317_v47, %v463_v36  ;;  %v467_v5 = vsel %vm2898_vm3, %v318_v48, %v466_v46  ;;  %v458_v6 = vsel %vm3020_vm12, %v309_v50, %v457_v33  ;;  %v129_v8 = vmax.f32 %v2835_v23, %v2711_v30  ;;  %v445_v33 = vld [vmem:[#allocation2 + $0x18] sm:$0xf]  ;;  %v448_v36 = vld [vmem:[#allocation2 + $0x1c] sm:$0x1] }
  0x88   :  { %444 = vst [vmem:[#allocation2 + $0x14] sm:$0x1] %v443_v56  ;;  %v128_v9 = vmax.f32 %v2833_v22, %v2710_v31  ;;  %v341_v13 = vor.u32 %v339_v52, %v3014_v2  ;;  %v342_v14 = vrot.slane %v3014_v2, 4  ;;  %v461_v15 = vsel %vm2898_vm3, %v310_v51, %v460_v63 }
  0x89   :  { %435 = vst [vmem:[#allocation2 + $0x8] sm:$0xf] %v434_v57  ;;  %v2721_v16 = vunpack.i.h.bf16 %v2719_v0  ;;  %v191_v19 = vsel %vm2898_vm3, 0, %v3034_v1  ;;  %v258_v23 = vpack.c.bf16 %v129_v8, %v129_v8  ;;  %v238_v35 = vsel %vm2906_vm4, 0, %v3044_v10  ;;  %v3066_v28 = vpop.permute.xlu0 %2733  ;;  %v469_v57 = vld [vmem:[#allocation2 + $0x38] sm:$0xf] }
  0x8a   :  { %438 = vst [vmem:[#allocation2 + $0xc] sm:$0x1] %v437_v7  ;;  %v257_v22 = vpack.c.bf16 %v128_v9, %v128_v9  ;;  %v482_v20 = vsel %vm3020_vm12, %v341_v13, %v481_v12  ;;  %v485_v52 = vsel %vm2898_vm3, %v342_v14, %v484_v11  ;;  %v132_v26 = vmax.f32 %v2838_v24, %v2720_v18  ;;  %v475_v12 = vld [vmem:[#allocation2 + $0x40] sm:$0xf]  ;;  %v478_v10 = vld [vmem:[#allocation2 + $0x44] sm:$0x1] }
  0x8b   :  { %465 = vst [vmem:[#allocation2 + $0x30] sm:$0xf] %v464_v3  ;;  %v133_v2 = vmax.f32 %v2840_v25, %v2721_v16  ;;  %v2731_v27 = vunpack.i.h.bf16 %v2729_v39  ;;  %v296_v29 = vshrl.u32 %v258_v23, 16  ;;  %v299_v30 = vshll.u32 %v258_v23, 16  ;;  %v472_v8 = vld [vmem:[#allocation2 + $0x3c] sm:$0x1] }
  0x8c   :  { %468 = vst [vmem:[#allocation2 + $0x34] sm:$0x1] %v467_v5  ;;  %v288_v31 = vshrl.u32 %v257_v22, 16  ;;  %v291_v32 = vshll.u32 %v257_v22, 16  ;;  %v261_v34 = vpack.c.bf16 %v132_v26, %v132_v26  ;;  %v136_v25 = vmax.f32 %v2926_v59, %v2730_v4 }
  0x8d   :  { %459 = vst [vmem:[#allocation2 + $0x28] sm:$0xf] %v458_v6  ;;  %v262_v38 = vpack.c.bf16 %v133_v2, %v133_v2  ;;  %v137_v40 = vmax.f32 %v2928_v60, %v2731_v27  ;;  %v298_v24 = vrot.slane %v296_v29, 7  ;;  %v2736_v43 = vunpack.i.h.bf16 %v3066_v28  ;;  %v193_v29 = vld [vmem:[#allocation2 + $0x78] sm:$0x1] }
  0x8e   :  { %462 = vst [vmem:[#allocation2 + $0x2c] sm:$0x1] %v461_v15  ;;  %v290_v39 = vrot.slane %v288_v31, 7  ;;  %v1082_v41 = vld [vmem:[#allocation2 + $0x10] sm:$0xf]  ;;  %v2735_v44 = vunpack.i.l.bf16 %v3066_v28  ;;  %v320_v48 = vshrl.u32 %v261_v34, 16  ;;  %v265_v4 = vpack.c.bf16 %v136_v25, %v136_v25 }
  0x8f   :  { %483 = vst [vmem:[#allocation2 + $0x58] sm:$0xf] %v482_v20  ;;  %v328_v46 = vshrl.u32 %v262_v38, 16  ;;  %v331_v47 = vshll.u32 %v262_v38, 16  ;;  %v323_v50 = vshll.u32 %v261_v34, 16  ;;  %1115 = vrot.lane.b32.xlu2 %v1082_v41, %s2746_s24  ;;  %v301_v51 = vor.u32 %v299_v30, %v298_v24 }
  0x90   :  { %v302_v60 = vrot.slane %v298_v24, 4  ;;  %v293_v54 = vor.u32 %v291_v32, %v290_v39  ;;  %v294_v59 = vrot.slane %v290_v39, 4  ;;  %486 = vst [vmem:[#allocation2 + $0x5c] sm:$0x1] %v485_v52  ;;  %v1081_v56 = vld [vmem:[#allocation2 + $0x8] sm:$0xf]  ;;  %v266_v1 = vpack.c.bf16 %v137_v40, %v137_v40  ;;  %v2739_v39 = vpop.permute.xlu1 %2738 }
  0x91   :  { %v330_v63 = vrot.slane %v328_v46, 7  ;;  %v322_v0 = vrot.slane %v320_v48, 7  ;;  %1113 = vrot.lane.b32.xlu1 %v1081_v56, %s2746_s24  ;;  %192 = vst [vmem:[#allocation2 + $0x70] sm:$0x1] %v191_v19  ;;  %v452_v7 = vsel %vm3020_vm12, %v301_v51, %v451_v37  ;;  %v352_v18 = vshrl.u32 %v265_v4, 16 }
  0x92   :  { %v455_v3 = vsel %vm2898_vm3, %v302_v60, %v454_v42  ;;  %v446_v5 = vsel %vm3020_vm12, %v293_v54, %v445_v33  ;;  %v449_v6 = vsel %vm2898_vm3, %v294_v59, %v448_v36  ;;  %239 = vst [vmem:[#allocation2 + $0x6c] sm:$0x1] %v238_v35  ;;  %v360_v15 = vshrl.u32 %v266_v1, 16  ;;  %v240_v20 = vld [vmem:[#allocation2 + $0x74] sm:$0x1] }
  0x93   :  { %453 = vst [vmem:[#allocation2 + $0x20] sm:$0xf] %v452_v7  ;;  %v333_v9 = vor.u32 %v331_v47, %v330_v63  ;;  %v334_v11 = vrot.slane %v330_v63, 4  ;;  %v325_v13 = vor.u32 %v323_v50, %v322_v0  ;;  %v326_v14 = vrot.slane %v322_v0, 4  ;;  %v493_v28 = vld [vmem:[#allocation2 + $0x68] sm:$0xf] }
  0x94   :  { %456 = vst [vmem:[#allocation2 + $0x24] sm:$0x1] %v455_v3  ;;  %v363_v16 = vshll.u32 %v266_v1, 16  ;;  %v355_v19 = vshll.u32 %v265_v4, 16  ;;  %v1085_v35 = vld [vmem:[#allocation2 + $0x28] sm:$0xf]  ;;  %v139_v30 = vmax.f32 %v2923_v58, %v2736_v43  ;;  %v138_v31 = vmax.f32 %v2916_v55, %v2735_v44 }
  0x95   :  { %447 = vst [vmem:[#allocation2 + $0x18] sm:$0xf] %v446_v5  ;;  %v476_v23 = vsel %vm3020_vm12, %v333_v9, %v475_v12  ;;  %v479_v22 = vsel %vm2898_vm3, %v334_v11, %v478_v10  ;;  %v470_v52 = vsel %vm3020_vm12, %v325_v13, %v469_v57  ;;  %v3088_v2 = vrot.slane %v360_v15, 7  ;;  %v196_v38 = vld [vmem:[#allocation2 + $0x80] sm:$0x1] }
  0x96   :  { %450 = vst [vmem:[#allocation2 + $0x1c] sm:$0x1] %v449_v6  ;;  %v354_v26 = vrot.slane %v352_v18, 7  ;;  %v473_v27 = vsel %vm2898_vm3, %v326_v14, %v472_v8  ;;  %v241_v32 = vsel %vm2906_vm4, 0, %v240_v20  ;;  %v243_v40 = vld [vmem:[#allocation2 + $0x7c] sm:$0x1]  ;;  %v268_v25 = vpack.c.bf16 %v139_v30, %v139_v30 }
  0x97   :  { %477 = vst [vmem:[#allocation2 + $0x40] sm:$0xf] %v476_v23  ;;  %1121 = vrot.lane.b32.xlu2 %v1085_v35, %s2746_s24  ;;  %v365_v36 = vor.u32 %v363_v16, %v3088_v2  ;;  %v267_v24 = vpack.c.bf16 %v138_v31, %v138_v31  ;;  %v246_v43 = vld [vmem:[#allocation2 + $0x84] sm:$0x1]  ;;  %v199_v47 = vld [vmem:[#allocation2 + $0x88] sm:$0x1]  ;;  %v2741_v54 = vunpack.i.h.bf16 %v2739_v39  ;;  %v2740_v59 = vunpack.i.l.bf16 %v2739_v39 }
  0x98   :  { %480 = vst [vmem:[#allocation2 + $0x44] sm:$0x1] %v479_v22  ;;  %v499_v33 = vld [vmem:[#allocation2 + $0x70] sm:$0xf]  ;;  %v357_v37 = vor.u32 %v355_v19, %v354_v26  ;;  %v358_v42 = vrot.slane %v354_v26, 4  ;;  %v194_v50 = vsel %vm2898_vm3, 0, %v193_v29 }
  0x99   :  { %471 = vst [vmem:[#allocation2 + $0x38] sm:$0xf] %v470_v52  ;;  %v496_v34 = vld [vmem:[#allocation2 + $0x6c] sm:$0x1]  ;;  %v500_v55 = vsel %vm3020_vm12, %v365_v36, %v499_v33  ;;  %v368_v46 = vshrl.u32 %v267_v24, 16  ;;  %v376_v51 = vshrl.u32 %v268_v25, 16  ;;  %v141_v1 = vmax.f32 %v2933_v62, %v2741_v54 }
  0x9a   :  { %474 = vst [vmem:[#allocation2 + $0x3c] sm:$0x1] %v473_v27  ;;  %v494_v58 = vsel %vm3020_vm12, %v357_v37, %v493_v28  ;;  %v1084_v41 = vld [vmem:[#allocation2 + $0x20] sm:$0xf]  ;;  %v497_v44 = vsel %vm2898_vm3, %v358_v42, %v496_v34  ;;  %v202_v60 = vld [vmem:[#allocation2 + $0x90] sm:$0x1]  ;;  %v140_v4 = vmax.f32 %v2931_v61, %v2740_v59 }
  0x9b   :  { %242 = vst [vmem:[#allocation2 + $0x74] sm:$0x1] %v241_v32  ;;  %1119 = vrot.lane.b32.xlu1 %v1084_v41, %s2746_s24  ;;  %v197_v56 = vsel %vm2898_vm3, 0, %v196_v38  ;;  %v249_v57 = vld [vmem:[#allocation2 + $0x8c] sm:$0x1]  ;;  %v244_v63 = vsel %vm2906_vm4, 0, %v243_v40  ;;  %v270_v9 = vpack.c.bf16 %v141_v1, %v141_v1 }
  0x9c   :  { %501 = vst [vmem:[#allocation2 + $0x70] sm:$0xf] %v500_v55  ;;  %v1083_v48 = vld [vmem:[#allocation2 + $0x18] sm:$0xf]  ;;  %v247_v0 = vsel %vm2906_vm4, 0, %v246_v43  ;;  %v366_v3 = vrot.slane %v3088_v2, 4  ;;  %v269_v11 = vpack.c.bf16 %v140_v4, %v140_v4 }
  0x9d   :  { %495 = vst [vmem:[#allocation2 + $0x68] sm:$0xf] %v494_v58  ;;  %1117 = vrot.lane.b32.xlu0 %v1083_v48, %s2746_s24  ;;  %v370_v5 = vrot.slane %v368_v46, 7  ;;  %v371_v6 = vshll.u32 %v267_v24, 16  ;;  %v200_v12 = vsel %vm2898_vm3, 0, %v199_v47  ;;  %v378_v10 = vrot.slane %v376_v51, 7 }
  0x9e   :  { %498 = vst [vmem:[#allocation2 + $0x6c] sm:$0x1] %v497_v44  ;;  %v1088_v7 = vld [vmem:[#allocation2 + $0x40] sm:$0xf]  ;;  %v379_v8 = vshll.u32 %v268_v25, 16  ;;  %v203_v61 = vsel %vm2898_vm3, 0, %v202_v60 }
  0x9f   :  { %195 = vst [vmem:[#allocation2 + $0x78] sm:$0x1] %v194_v50  ;;  %1127 = vrot.lane.b32.xlu2 %v1088_v7, %s2746_s24  ;;  %v252_v62 = vld [vmem:[#allocation2 + $0x94] sm:$0x1]  ;;  %v250_v15 = vsel %vm2906_vm4, 0, %v249_v57  ;;  %v392_v16 = vshrl.u32 %v270_v9, 16  ;;  %v373_v19 = vor.u32 %v371_v6, %v370_v5 }
  0xa0   :  { %198 = vst [vmem:[#allocation2 + $0x80] sm:$0x1] %v197_v56  ;;  %v1087_v13 = vld [vmem:[#allocation2 + $0x38] sm:$0xf]  ;;  %v384_v23 = vshrl.u32 %v269_v11, 16  ;;  %v387_v22 = vshll.u32 %v269_v11, 16  ;;  %v381_v35 = vor.u32 %v379_v8, %v378_v10 }
  0xa1   :  { %245 = vst [vmem:[#allocation2 + $0x7c] sm:$0x1] %v244_v63  ;;  %v1086_v20 = vld [vmem:[#allocation2 + $0x30] sm:$0xf]  ;;  %v253_v52 = vsel %vm2906_vm4, 0, %v252_v62  ;;  %v374_v26 = vrot.slane %v370_v5, 4 }
  0xa2   :  { %v502_v14 = vld [vmem:[#allocation2 + $0x74] sm:$0x1]  ;;  %248 = vst [vmem:[#allocation2 + $0x84] sm:$0x1] %v247_v0  ;;  %v394_v27 = vrot.slane %v392_v16, 7  ;;  %v395_v28 = vshll.u32 %v270_v9, 16 }
  0xa3   :  { %v503_v18 = vsel %vm2898_vm3, %v366_v3, %v502_v14  ;;  %201 = vst [vmem:[#allocation2 + $0x88] sm:$0x1] %v200_v12  ;;  %1125 = vrot.lane.b32.xlu1 %v1087_v13, %s2746_s24  ;;  %v386_v29 = vrot.slane %v384_v23, 7  ;;  %v382_v31 = vrot.slane %v378_v10, 4  ;;  %v1090_v40 = vld [vmem:[#allocation2 + $0x60] sm:$0xf] }
  0xa4   :  { %504 = vst [vmem:[#allocation2 + $0x74] sm:$0x1] %v503_v18  ;;  %v1091_v2 = vld [vmem:[#allocation2 + $0x68] sm:$0xf]  ;;  %v397_v34 = vor.u32 %v395_v28, %v394_v27  ;;  %v398_v55 = vrot.slane %v394_v27, 4  ;;  %vm2094_vm4 = vcmask 257248  }
  0xa5   :  { %204 = vst [vmem:[#allocation2 + $0x90] sm:$0x1] %v203_v61  ;;  %1123 = vrot.lane.b32.xlu0 %v1086_v20, %s2746_s24  ;;  %v389_v36 = vor.u32 %v387_v22, %v386_v29  ;;  %v390_v39 = vrot.slane %v386_v29, 4  ;;  %v1089_v43 = vld [vmem:[#allocation2 + $0x58] sm:$0xf] }
  0xa6   :  { %v505_v30 = vld [vmem:[#allocation2 + $0x78] sm:$0xf]  ;;  %251 = vst [vmem:[#allocation2 + $0x8c] sm:$0x1] %v250_v15  ;;  %v889_v54 = vld [vmem:[#allocation2 + $0x10] sm:$0xe]  ;;  %v821_v15 = vpop.permute.xlu2 %820 }
  0xa7   :  { %v511_v32 = vld [vmem:[#allocation2 + $0x80] sm:$0xf]  ;;  %v506_v33 = vsel %vm3020_vm12, %v373_v19, %v505_v30  ;;  %254 = vst [vmem:[#allocation2 + $0x94] sm:$0x1] %v253_v52  ;;  %1133 = vrot.lane.b32.xlu2 %v1091_v2, %s2746_s24  ;;  %v890_v59 = vld [vmem:[#allocation2 + $0x14] sm:$0x1] }
  0xa8   :  { %v508_v49 = vld [vmem:[#allocation2 + $0x7c] sm:$0x1]  ;;  %v512_v37 = vsel %vm3020_vm12, %v381_v35, %v511_v32  ;;  %507 = vst [vmem:[#allocation2 + $0x78] sm:$0xf] %v506_v33  ;;  %v887_v21 = vld [vmem:[#allocation2 + $0x8] sm:$0xe] }
  0xa9   :  { %v514_v42 = vld [vmem:[#allocation2 + $0x84] sm:$0x1]  ;;  %513 = vst [vmem:[#allocation2 + $0x80] sm:$0xf] %v512_v37  ;;  %v509_v38 = vsel %vm2898_vm3, %v374_v26, %v508_v49  ;;  %v888_v56 = vld [vmem:[#allocation2 + $0xc] sm:$0x1] }
  0xaa   :  { %v515_v25 = vsel %vm2898_vm3, %v382_v31, %v514_v42  ;;  %510 = vst [vmem:[#allocation2 + $0x7c] sm:$0x1] %v509_v38  ;;  %v517_v24 = vld [vmem:[#allocation2 + $0x88] sm:$0xf]  ;;  %v1092_v57 = vld [vmem:[#allocation2 + $0x70] sm:$0xf] }
  0xab   :  { %516 = vst [vmem:[#allocation2 + $0x84] sm:$0x1] %v515_v25  ;;  %v518_v58 = vsel %vm3020_vm12, %v389_v36, %v517_v24  ;;  %1131 = vrot.lane.b32.xlu1 %v1090_v40, %s2746_s24  ;;  %v2579_v63 = vrot.slane %v889_v54, 9  ;;  %v962_v0 = vrot.slane %v890_v59, 5  ;;  %v2578_v1 = vrot.slane %v887_v21, 9 }
  0xac   :  { %v523_v41 = vld [vmem:[#allocation2 + $0x90] sm:$0xf]  ;;  %519 = vst [vmem:[#allocation2 + $0x88] sm:$0xf] %v518_v58  ;;  %v958_v45 = vrot.slane %v888_v56, 5 }
  0xad   :  { %v520_v44 = vld [vmem:[#allocation2 + $0x8c] sm:$0x1]  ;;  %v524_v46 = vsel %vm3020_vm12, %v397_v34, %v523_v41  ;;  %1129 = vrot.lane.b32.xlu0 %v1089_v43, %s2746_s24  ;;  %v963_v4 = vsel %vm2975_vm11, %v2579_v63, %v962_v0  ;;  %v895_v7 = vld [vmem:[#allocation2 + $0x28] sm:$0xe]  ;;  %v893_v6 = vld [vmem:[#allocation2 + $0x20] sm:$0xe] }
  0xae   :  { %v526_v47 = vld [vmem:[#allocation2 + $0x94] sm:$0x1]  ;;  %525 = vst [vmem:[#allocation2 + $0x90] sm:$0xf] %v524_v46  ;;  %v521_v48 = vsel %vm2898_vm3, %v390_v39, %v520_v44  ;;  %v896_v3 = vld [vmem:[#allocation2 + $0x2c] sm:$0x1]  ;;  %v959_v5 = vsel %vm2975_vm11, %v2578_v1, %v958_v45 }
  0xaf   :  { %v527_v50 = vsel %vm2898_vm3, %v398_v55, %v526_v47  ;;  %522 = vst [vmem:[#allocation2 + $0x8c] sm:$0x1] %v521_v48  ;;  %v1093_v60 = vld [vmem:[#allocation2 + $0x78] sm:$0xf]  ;;  %v894_v12 = vld [vmem:[#allocation2 + $0x24] sm:$0x1] }
  0xb0   :  { %528 = vst [vmem:[#allocation2 + $0x94] sm:$0x1] %v527_v50  ;;  %v1094_v51 = vld [vmem:[#allocation2 + $0x80] sm:$0xf]  ;;  %v891_v8 = vld [vmem:[#allocation2 + $0x18] sm:$0xe] }
  0xb1   :  { %1139 = vrot.lane.b32.xlu2 %v1094_v51, %s2746_s24  ;;  %v2582_v9 = vrot.slane %v895_v7, 9  ;;  %v974_v11 = vrot.slane %v896_v3, 5  ;;  %v892_v13 = vld [vmem:[#allocation2 + $0x1c] sm:$0x1]  ;;  %v529_v61 = vld [vmem:[#allocation2] sm:$0xf] }
  0xb2   :  { %v2581_v62 = vrot.slane %v893_v6, 9  ;;  %v970_v14 = vrot.slane %v894_v12, 5  ;;  %545 = vst.msk [vmem:[#allocation3] sm:$0xf] %vm142_vm5, %v529_v61  ;;  %v2580_v16 = vrot.slane %v891_v8, 9  ;;  %v966_v18 = vrot.slane %v892_v13, 5 }
  0xb3   :  { %1137 = vrot.lane.b32.xlu1 %v1093_v60, %s2746_s24  ;;  %v1095_v10 = vld [vmem:[#allocation2 + $0x88] sm:$0xf]  ;;  %869 = vst.msk [vmem:[#allocation3] sm:$0xf] %vm868_vm13, %v821_v15  ;;  %v975_v19 = vsel %vm2975_vm11, %v2582_v9, %v974_v11  ;;  %v908_v22 = vld [vmem:[#allocation2 + $0x6c] sm:$0x1] }
  0xb4   :  { %v907_v23 = vld [vmem:[#allocation2 + $0x68] sm:$0xe]  ;;  %v971_v20 = vsel %vm2975_vm11, %v2581_v62, %v970_v14  ;;  %v899_v35 = vld [vmem:[#allocation2 + $0x38] sm:$0xe]  ;;  %v900_v52 = vld [vmem:[#allocation2 + $0x3c] sm:$0x1]  ;;  %v967_v2 = vsel %vm2975_vm11, %v2580_v16, %v966_v18 }
  0xb5   :  { %1135 = vrot.lane.b32.xlu0 %v1092_v57, %s2746_s24  ;;  %v897_v26 = vld [vmem:[#allocation2 + $0x30] sm:$0xe]  ;;  %v898_v27 = vld [vmem:[#allocation2 + $0x34] sm:$0x1]  ;;  %v2588_v28 = vrot.slane %v907_v23, 9  ;;  %v998_v29 = vrot.slane %v908_v22, 5 }
  0xb6   :  { %v567_v30 = vld [vmem:[#allocation2 + $0x18] sm:$0xf]  ;;  %v2584_v31 = vrot.slane %v899_v35, 9  ;;  %v982_v32 = vrot.slane %v900_v52, 5  ;;  %v2583_v33 = vrot.slane %v897_v26, 9  ;;  %v978_v36 = vrot.slane %v898_v27, 5 }
  0xb7   :  { %v999_v49 = vsel %vm2975_vm11, %v2588_v28, %v998_v29  ;;  %v639_v37 = vshrl.u32 %v567_v30, 16  ;;  %v642_v42 = vshll.u32 %v567_v30, 16  ;;  %v913_v38 = vld [vmem:[#allocation2 + $0x80] sm:$0xe]  ;;  %v914_v34 = vld [vmem:[#allocation2 + $0x84] sm:$0x1] }
  0xb8   :  { %v983_v40 = vsel %vm2975_vm11, %v2584_v31, %v982_v32  ;;  %v979_v25 = vsel %vm2975_vm11, %v2583_v33, %v978_v36  ;;  %v903_v24 = vld [vmem:[#allocation2 + $0x58] sm:$0xe]  ;;  %v905_v39 = vld [vmem:[#allocation2 + $0x60] sm:$0xe]  ;;  %v906_v55 = vld [vmem:[#allocation2 + $0x64] sm:$0x1] }
  0xb9   :  { %1020 = vrot.lane.b32.xlu2 %v963_v4, %s2745_s17  ;;  %v904_v58 = vld [vmem:[#allocation2 + $0x5c] sm:$0x1]  ;;  %v2591_v41 = vrot.slane %v913_v38, 9  ;;  %v1010_v43 = vrot.slane %v914_v34, 5  ;;  %v641_v44 = vrot.slane %v639_v37, 4  ;;  %v644_v46 = vrot.slane %v642_v42, 5 }
  0xba   :  { %v573_v47 = vld [vmem:[#allocation2 + $0x30] sm:$0xf]  ;;  %v2587_v48 = vrot.slane %v905_v39, 9  ;;  %v994_v50 = vrot.slane %v906_v55, 5  ;;  %v2586_v60 = vrot.slane %v903_v24, 9  ;;  %v990_v54 = vrot.slane %v904_v58, 5 }
  0xbb   :  { %1018 = vrot.lane.b32.xlu1 %v959_v5, %s2745_s17  ;;  %v565_v51 = vld [vmem:[#allocation2 + $0x10] sm:$0xf]  ;;  %v568_v59 = vld [vmem:[#allocation2 + $0x1c] sm:$0x1]  ;;  %v1011_v21 = vsel %vm2975_vm11, %v2591_v41, %v1010_v43  ;;  %v645_v56 = vor.u32 %v644_v46, %v641_v44  ;;  %v681_v57 = vshrl.u32 %v573_v47, 16  ;;  %v684_v63 = vshll.u32 %v573_v47, 16 }
  0xbc   :  { %v625_v0 = vshrl.u32 %v565_v51, 16  ;;  %v628_v1 = vshll.u32 %v565_v51, 16  ;;  %v995_v45 = vsel %vm2975_vm11, %v2587_v48, %v994_v50  ;;  %v648_v4 = vshll.u32 %v568_v59, 16  ;;  %v911_v7 = vld [vmem:[#allocation2 + $0x78] sm:$0xe]  ;;  %v1033_v50 = vpop.permute.xlu2 %1032 }
  0xbd   :  { %1141 = vrot.lane.b32.xlu0 %v1095_v10, %s2746_s24  ;;  %v912_v3 = vld [vmem:[#allocation2 + $0x7c] sm:$0x1]  ;;  %v909_v5 = vld [vmem:[#allocation2 + $0x70] sm:$0xe]  ;;  %v579_v6 = vld [vmem:[#allocation2 + $0x58] sm:$0xf]  ;;  %v991_v12 = vsel %vm2975_vm11, %v2586_v60, %v990_v54 }
  0xbe   :  { %v910_v10 = vld [vmem:[#allocation2 + $0x74] sm:$0x1]  ;;  %v646_v8 = vrot.slane %v645_v56, 4  ;;  %v683_v9 = vrot.slane %v681_v57, 4  ;;  %v686_v11 = vrot.slane %v684_v63, 5  ;;  %v2590_v13 = vrot.slane %v911_v7, 9 }
  0xbf   :  { %v1006_v61 = vrot.slane %v912_v3, 5  ;;  %v574_v62 = vld [vmem:[#allocation2 + $0x34] sm:$0x1]  ;;  %v627_v14 = vrot.slane %v625_v0, 4  ;;  %v630_v15 = vrot.slane %v628_v1, 5  ;;  %v650_v16 = vrot.slane %v648_v4, 5 }
  0xc0   :  { %v723_v18 = vshrl.u32 %v579_v6, 16  ;;  %v2589_v23 = vrot.slane %v909_v5, 9  ;;  %v571_v22 = vld [vmem:[#allocation2 + $0x28] sm:$0xf]  ;;  %v687_v52 = vor.u32 %v686_v11, %v683_v9  ;;  %v566_v28 = vld [vmem:[#allocation2 + $0x14] sm:$0x1] }
  0xc1   :  { %1026 = vrot.lane.b32.xlu2 %v975_v19, %s2745_s17  ;;  %v726_v19 = vshll.u32 %v579_v6, 16  ;;  %v651_v35 = vsel %vm2952_vm8, %v646_v8, %v650_v16  ;;  %v563_v26 = vld [vmem:[#allocation2 + $0x8] sm:$0xf]  ;;  %v1007_v27 = vsel %vm2975_vm11, %v2590_v13, %v1006_v61  ;;  %v631_v29 = vor.u32 %v630_v15, %v627_v14  ;;  %v580_v30 = vld [vmem:[#allocation2 + $0x5c] sm:$0x1] }
  0xc2   :  { %v725_v31 = vrot.slane %v723_v18, 4  ;;  %v667_v33 = vshrl.u32 %v571_v22, 16  ;;  %v670_v36 = vshll.u32 %v571_v22, 16  ;;  %v916_v37 = vld [vmem:[#allocation2 + $0x8c] sm:$0x1]  ;;  %v611_v42 = vshrl.u32 %v563_v26, 16 }
  0xc3   :  { %1024 = vrot.lane.b32.xlu1 %v971_v20, %s2745_s17  ;;  %v1002_v20 = vrot.slane %v910_v10, 5  ;;  %v728_v32 = vrot.slane %v726_v19, 5  ;;  %v614_v38 = vshll.u32 %v563_v26, 16  ;;  %v634_v24 = vshll.u32 %v566_v28, 16  ;;  %v585_v39 = vld [vmem:[#allocation2 + $0x70] sm:$0xf] }
  0xc4   :  { %v632_v55 = vrot.slane %v631_v29, 4  ;;  %v732_v58 = vshll.u32 %v580_v30, 16  ;;  %v572_v41 = vld [vmem:[#allocation2 + $0x2c] sm:$0x1]  ;;  %v537_v43 = vld [vmem:[#allocation2 + $0x50] sm:$0xf] }
  0xc5   :  { %1022 = vrot.lane.b32.xlu0 %v967_v2, %s2745_s17  ;;  %v690_v2 = vshll.u32 %v574_v62, 16  ;;  %v1003_v34 = vsel %vm2975_vm11, %v2589_v23, %v1002_v20  ;;  %v729_v44 = vor.u32 %v728_v32, %v725_v31  ;;  %v669_v46 = vrot.slane %v667_v33, 4  ;;  %v583_v48 = vld [vmem:[#allocation2 + $0x68] sm:$0xf]  ;;  %553 = vst.msk [vmem:[#allocation3 + $0x20] sm:$0xf] %vm142_vm5, %v537_v43 }
  0xc6   :  { %v672_v47 = vrot.slane %v670_v36, 5  ;;  %v613_v51 = vrot.slane %v611_v42, 4  ;;  %v616_v60 = vrot.slane %v614_v38, 5  ;;  %v765_v54 = vshrl.u32 %v585_v39, 16  ;;  %v569_v4 = vld [vmem:[#allocation2 + $0x20] sm:$0xf]  ;;  %v1017_v38 = vpop.permute.xlu0 %1016 }
  0xc7   :  { %v768_v59 = vshll.u32 %v585_v39, 16  ;;  %v1014_v56 = vrot.slane %v916_v37, 5  ;;  %v636_v63 = vrot.slane %v634_v24, 5  ;;  %v676_v0 = vshll.u32 %v572_v41, 16  ;;  %v564_v6 = vld [vmem:[#allocation2 + $0xc] sm:$0x1] }
  0xc8   :  { %v751_v1 = vshrl.u32 %v583_v48, 16  ;;  %v734_v3 = vrot.slane %v732_v58, 5  ;;  %v673_v5 = vor.u32 %v672_v47, %v669_v46  ;;  %v617_v10 = vor.u32 %v616_v60, %v613_v51  ;;  %v586_v8 = vld [vmem:[#allocation2 + $0x74] sm:$0x1]  ;;  %v591_v19 = vld [vmem:[#allocation2 + $0x88] sm:$0xf] }
  0xc9   :  { %1038 = vrot.lane.b32.xlu2 %v999_v49, %s2745_s17  ;;  %v915_v49 = vld [vmem:[#allocation2 + $0x88] sm:$0xe]  ;;  %v637_v7 = vsel %vm2952_vm8, %v632_v55, %v636_v63  ;;  %v767_v9 = vrot.slane %v765_v54, 4  ;;  %v770_v11 = vrot.slane %v768_v59, 5  ;;  %v653_v61 = vshrl.u32 %v569_v4, 16 }
  0xca   :  { %v656_v62 = vshll.u32 %v569_v4, 16  ;;  %v678_v14 = vrot.slane %v676_v0, 5  ;;  %v620_v15 = vshll.u32 %v564_v6, 16  ;;  %v753_v16 = vrot.slane %v751_v1, 4  ;;  %v584_v20 = vld [vmem:[#allocation2 + $0x6c] sm:$0x1] }
  0xcb   :  { %1030 = vrot.lane.b32.xlu1 %v983_v40, %s2745_s17  ;;  %v688_v40 = vrot.slane %v687_v52, 4  ;;  %v674_v23 = vrot.slane %v673_v5, 4  ;;  %v774_v22 = vshll.u32 %v586_v8, 16  ;;  %v837_v52 = vpop.permute.xlu1 %836  ;;  %v618_v26 = vrot.slane %v617_v10, 4  ;;  %v589_v28 = vld [vmem:[#allocation2 + $0x80] sm:$0xf] }
  0xcc   :  { %877 = vst.msk [vmem:[#allocation3 + $0x20] sm:$0xf] %vm868_vm13, %v837_v52  ;;  %v655_v29 = vrot.slane %v653_v61, 4  ;;  %v658_v30 = vrot.slane %v656_v62, 5  ;;  %v807_v31 = vshrl.u32 %v591_v19, 16  ;;  %v810_v32 = vshll.u32 %v591_v19, 16 }
  0xcd   :  { %1028 = vrot.lane.b32.xlu0 %v979_v25, %s2745_s17  ;;  %v692_v25 = vrot.slane %v690_v2, 5  ;;  %1073 = vst.msk [vmem:[#allocation3 + $0x20] sm:$0xf] %vm1064_vm14, %v1033_v50  ;;  %v622_v33 = vrot.slane %v620_v15, 5  ;;  %v760_v37 = vshll.u32 %v584_v20, 16  ;;  %v796_v24 = vshll.u32 %v589_v28, 16 }
  0xce   :  { %v570_v42 = vld [vmem:[#allocation2 + $0x24] sm:$0x1]  ;;  %1065 = vst.msk [vmem:[#allocation3] sm:$0xf] %vm1064_vm14, %v1017_v38  ;;  %v776_v55 = vrot.slane %v774_v22, 5  ;;  %v809_v46 = vrot.slane %v807_v31, 4 }
  0xcf   :  { %v693_v57 = vsel %vm2952_vm8, %v688_v40, %v692_v25  ;;  %v592_v40 = vld [vmem:[#allocation2 + $0x8c] sm:$0x1]  ;;  %v793_v25 = vshrl.u32 %v589_v28, 16  ;;  %v623_v39 = vsel %vm2952_vm8, %v618_v26, %v622_v33  ;;  %v812_v47 = vrot.slane %v810_v32, 5  ;;  %v590_v59 = vld [vmem:[#allocation2 + $0x84] sm:$0x1] }
  0xd0   :  { %v762_v51 = vrot.slane %v760_v37, 5  ;;  %v662_v60 = vshll.u32 %v570_v42, 16  ;;  %v816_v54 = vshll.u32 %v592_v40, 16  ;;  %v532_v4 = vld [vmem:[#allocation2 + $0x18] sm:$0xf]  ;;  %v802_v61 = vshll.u32 %v590_v59, 16 }
  0xd1   :  { %1044 = vrot.lane.b32.xlu2 %v1011_v21, %s2745_s17  ;;  %v2592_v21 = vrot.slane %v915_v49, 9  ;;  %v813_v5 = vor.u32 %v812_v47, %v809_v46  ;;  %v576_v6 = vld [vmem:[#allocation2 + $0x3c] sm:$0x1]  ;;  %548 = vst.msk [vmem:[#allocation3 + $0xc] sm:$0xf] %vm142_vm5, %v532_v4  ;;  %vm1773_vm3 = vcmask 224448  }
  0xd2   :  { %v664_v10 = vrot.slane %v662_v60, 5  ;;  %v804_v26 = vrot.slane %v802_v61, 5  ;;  %v538_v33 = vld [vmem:[#allocation2 + $0x58] sm:$0xf]  ;;  %v1179_v37 = vld [vmem:[#allocation2 + $0xc] sm:$0x1] }
  0xd3   :  { %1036 = vrot.lane.b32.xlu1 %v995_v45, %s2745_s17  ;;  %v754_v45 = vshll.u32 %v583_v48, 16  ;;  %v1015_v13 = vsel %vm2975_vm11, %v2592_v21, %v1014_v56  ;;  %v1180_v48 = vld [vmem:[#allocation2 + $0x10] sm:$0xf]  ;;  %v795_v21 = vrot.slane %v793_v25, 4  ;;  %v798_v56 = vrot.slane %v796_v24, 5 }
  0xd4   :  { %v1225_v1 = vshrl.u32 %v1180_v48, 16  ;;  %v814_v20 = vrot.slane %v813_v5, 4  ;;  %554 = vst.msk [vmem:[#allocation3 + $0x24] sm:$0xf] %vm142_vm5, %v538_v33  ;;  %v582_v25 = vld [vmem:[#allocation2 + $0x64] sm:$0x1] }
  0xd5   :  { %1034 = vrot.lane.b32.xlu0 %v991_v12, %s2745_s17  ;;  %v730_v12 = vrot.slane %v729_v44, 4  ;;  %v756_v18 = vrot.slane %v754_v45, 5  ;;  %v659_v44 = vor.u32 %v658_v30, %v655_v29  ;;  %v1228_v45 = vshll.u32 %v1180_v48, 16  ;;  %v587_v24 = vld [vmem:[#allocation2 + $0x78] sm:$0xf] }
  0xd6   :  { %v746_v47 = vshll.u32 %v582_v25, 16  ;;  %v779_v48 = vshrl.u32 %v587_v24, 16  ;;  %v530_v33 = vld [vmem:[#allocation2 + $0x8] sm:$0xf] }
  0xd7   :  { %v735_v2 = vsel %vm2952_vm8, %v730_v12, %v734_v3  ;;  %v757_v49 = vor.u32 %v756_v18, %v753_v16  ;;  %v660_v3 = vrot.slane %v659_v44, 4  ;;  %v704_v16 = vshll.u32 %v576_v6, 16  ;;  %v1792_v44 = vld [vmem:[#allocation2 + $0x18] sm:$0xf]  ;;  %v1501_v6 = vld [vmem:[#allocation2 + $0x10] sm:$0xe] }
  0xd8   :  { %v1227_v18 = vrot.slane %v1225_v1, 4  ;;  %v1230_v19 = vrot.slane %v1228_v45, 5  ;;  %v748_v1 = vrot.slane %v746_v47, 5  ;;  %v781_v45 = vrot.slane %v779_v48, 4  ;;  %546 = vst.msk [vmem:[#allocation3 + $0x4] sm:$0xf] %vm142_vm5, %v530_v33 }
  0xd9   :  { %826 = vrot.lane.b32.xlu2 %v651_v35, %s2744_s0  ;;  %v575_v35 = vld [vmem:[#allocation2 + $0x38] sm:$0xf]  ;;  %v758_v50 = vrot.slane %v757_v49, 4  ;;  %v665_v22 = vsel %vm2952_vm8, %v660_v3, %v664_v10  ;;  %v706_v31 = vrot.slane %v704_v16, 5  ;;  %v588_v3 = vld [vmem:[#allocation2 + $0x7c] sm:$0x1] }
  0xda   :  { %v695_v58 = vshrl.u32 %v575_v35, 16  ;;  %v698_v41 = vshll.u32 %v575_v35, 16  ;;  %v1231_v32 = vor.u32 %v1230_v19, %v1227_v18  ;;  %v788_v16 = vshll.u32 %v588_v3, 16  ;;  %v1186_v18 = vld [vmem:[#allocation2 + $0x28] sm:$0xf] }
  0xdb   :  { %1042 = vrot.lane.b32.xlu1 %v1007_v27, %s2745_s17  ;;  %v771_v27 = vor.u32 %v770_v11, %v767_v9  ;;  %v763_v12 = vsel %vm2952_vm8, %v758_v50, %v762_v51  ;;  %v818_v9 = vrot.slane %v816_v54, 5  ;;  %v581_v11 = vld [vmem:[#allocation2 + $0x60] sm:$0xf]  ;;  %v782_v50 = vshll.u32 %v587_v24, 16  ;;  %v541_v51 = vld [vmem:[#allocation2 + $0x70] sm:$0xf] }
  0xdc   :  { %v697_v63 = vrot.slane %v695_v58, 4  ;;  %v700_v0 = vrot.slane %v698_v41, 5  ;;  %v737_v35 = vshrl.u32 %v581_v11, 16  ;;  %v740_v52 = vshll.u32 %v581_v11, 16  ;;  %557 = vst.msk [vmem:[#allocation3 + $0x30] sm:$0xf] %vm142_vm5, %v541_v51 }
  0xdd   :  { %1040 = vrot.lane.b32.xlu0 %v1003_v34, %s2745_s17  ;;  %v679_v34 = vsel %vm2952_vm8, %v674_v23, %v678_v14  ;;  %v772_v43 = vrot.slane %v771_v27, 4  ;;  %v535_v23 = vld [vmem:[#allocation2 + $0x30] sm:$0xf]  ;;  %v1181_v27 = vld [vmem:[#allocation2 + $0x14] sm:$0x1]  ;;  %v819_v49 = vsel %vm2952_vm8, %v814_v20, %v818_v9  ;;  %v1232_v41 = vrot.slane %v1231_v32, 4 }
  0xde   :  { %v701_v15 = vor.u32 %v700_v0, %v697_v63  ;;  %551 = vst.msk [vmem:[#allocation3 + $0x18] sm:$0xf] %vm142_vm5, %v535_v23  ;;  %v739_v42 = vrot.slane %v737_v35, 4  ;;  %v742_v38 = vrot.slane %v740_v52, 5  ;;  %v1234_v40 = vshll.u32 %v1181_v27, 16 }
  0xdf   :  { %v1790_v63 = vld [vmem:[#allocation2 + $0x10] sm:$0xf]  ;;  %v784_v4 = vrot.slane %v782_v50, 5  ;;  %v544_v9 = vld [vmem:[#allocation2 + $0x88] sm:$0xf]  ;;  %v2594_v23 = vrot.slane %v1501_v6, 9 }
  0xe0   :  { %v702_v30 = vrot.slane %v701_v15, 4  ;;  %v743_v46 = vor.u32 %v742_v38, %v739_v42  ;;  %v1236_v60 = vrot.slane %v1234_v40, 5  ;;  %v1826_v10 = vshll.u32 %v1790_v63, 16  ;;  %560 = vst.msk [vmem:[#allocation3 + $0x3c] sm:$0xf] %vm142_vm5, %v544_v9 }
  0xe1   :  { %832 = vrot.lane.b32.xlu2 %v693_v57, %s2744_s0  ;;  %v1178_v57 = vld [vmem:[#allocation2 + $0x8] sm:$0xf]  ;;  %v785_v15 = vor.u32 %v784_v4, %v781_v45  ;;  %v531_v19 = vld [vmem:[#allocation2 + $0x10] sm:$0xf]  ;;  %v1791_v27 = vld [vmem:[#allocation2 + $0x14] sm:$0x1] }
  0xe2   :  { %v1211_v62 = vshrl.u32 %v1178_v57, 16  ;;  %v1214_v14 = vshll.u32 %v1178_v57, 16  ;;  %v707_v58 = vsel %vm2952_vm8, %v702_v30, %v706_v31  ;;  %v1237_v59 = vsel %vm2952_vm8, %v1232_v41, %v1236_v60  ;;  %547 = vst.msk [vmem:[#allocation3 + $0x8] sm:$0xf] %vm142_vm5, %v531_v19  ;;  %v1693_v52 = vld [vmem:[#allocation2 + $0x10] sm:$0xf] }
  0xe3   :  { %824 = vrot.lane.b32.xlu1 %v637_v7, %s2744_s0  ;;  %v777_v7 = vsel %vm2952_vm8, %v772_v43, %v776_v55  ;;  %v1220_v43 = vshll.u32 %v1179_v37, 16  ;;  %v1840_v57 = vshll.u32 %v1792_v44, 16  ;;  %v744_v0 = vrot.slane %v743_v46, 4  ;;  %v534_v32 = vld [vmem:[#allocation2 + $0x28] sm:$0xf] }
  0xe4   :  { %v1213_v28 = vrot.slane %v1211_v62, 4  ;;  %v1216_v29 = vrot.slane %v1214_v14, 5  ;;  %v1828_v35 = vrot.slane %v1826_v10, 5  ;;  %v1267_v30 = vshrl.u32 %v1186_v18, 16  ;;  %550 = vst.msk [vmem:[#allocation3 + $0x14] sm:$0xf] %vm142_vm5, %v534_v32 }
  0xe5   :  { %1046 = vrot.lane.b32.xlu0 %v1015_v13, %s2745_s17  ;;  %v799_v13 = vor.u32 %v798_v56, %v795_v21  ;;  %v1222_v21 = vrot.slane %v1220_v43, 5  ;;  %v1837_v56 = vshrl.u32 %v1792_v44, 16  ;;  %v1842_v62 = vrot.slane %v1840_v57, 5  ;;  %v1499_v38 = vld [vmem:[#allocation2 + $0x8] sm:$0xe] }
  0xe6   :  { %v1217_v55 = vor.u32 %v1216_v29, %v1213_v28  ;;  %v749_v14 = vsel %vm2952_vm8, %v744_v0, %v748_v1  ;;  %v786_v28 = vrot.slane %v785_v15, 4  ;;  %v790_v29 = vrot.slane %v788_v16, 5  ;;  %v533_v44 = vld [vmem:[#allocation2 + $0x20] sm:$0xf]  ;;  %v1187_v47 = vld [vmem:[#allocation2 + $0x2c] sm:$0x1] }
  0xe7   :  { %v1839_v61 = vrot.slane %v1837_v56, 4  ;;  %v1270_v31 = vshll.u32 %v1186_v18, 16  ;;  %v1832_v24 = vshll.u32 %v1791_v27, 16  ;;  %v1269_v41 = vrot.slane %v1267_v30, 4  ;;  %549 = vst.msk [vmem:[#allocation3 + $0x10] sm:$0xf] %vm142_vm5, %v533_v44 }
  0xe8   :  { %v1218_v54 = vrot.slane %v1217_v55, 4  ;;  %v540_v55 = vld [vmem:[#allocation2 + $0x68] sm:$0xf]  ;;  %v536_v51 = vld [vmem:[#allocation2 + $0x38] sm:$0xf]  ;;  %v1276_v0 = vshll.u32 %v1187_v47, 16 }
  0xe9   :  { %838 = vrot.lane.b32.xlu2 %v735_v2, %s2744_s0  ;;  %v3212_v36 = vpop.permute.xlu2 %1115  ;;  %v800_v2 = vrot.slane %v799_v13, 4  ;;  %v1502_v13 = vld [vmem:[#allocation2 + $0x14] sm:$0x1]  ;;  %v1272_v43 = vrot.slane %v1270_v31, 5  ;;  %556 = vst.msk [vmem:[#allocation3 + $0x2c] sm:$0xf] %vm142_vm5, %v540_v55 }
  0xea   :  { %v1223_v5 = vsel %vm2952_vm8, %v1218_v54, %v1222_v21  ;;  %v2593_v54 = vrot.slane %v1499_v38, 9  ;;  %552 = vst.msk [vmem:[#allocation3 + $0x1c] sm:$0xf] %vm142_vm5, %v536_v51  ;;  %v539_v21 = vld [vmem:[#allocation2 + $0x60] sm:$0xf]  ;;  %v1834_v57 = vrot.slane %v1832_v24, 5 }
  0xeb   :  { %830 = vrot.lane.b32.xlu1 %v679_v34, %s2744_s0  ;;  %555 = vst.msk [vmem:[#allocation3 + $0x28] sm:$0xf] %vm142_vm5, %v539_v21  ;;  %v2113_v4 = vld [vmem:[#allocation2 + $0x18] sm:$0xe]  ;;  %v2114_v3 = vld [vmem:[#allocation2 + $0x1c] sm:$0x1] }
  0xec   :  { %v2610_v9 = vrot.slane %v2113_v4, 9  ;;  %v1509_v15 = vld [vmem:[#allocation2 + $0x30] sm:$0xe]  ;;  %v1510_v16 = vld [vmem:[#allocation2 + $0x34] sm:$0x1] }
  0xed   :  { %822 = vrot.lane.b32.xlu0 %v623_v39, %s2744_s0  ;;  %v805_v39 = vsel %vm2952_vm8, %v800_v2, %v804_v26  ;;  %v1793_v2 = vld [vmem:[#allocation2 + $0x1c] sm:$0x1]  ;;  %v1843_v26 = vor.u32 %v1842_v62, %v1839_v61  ;;  %v1196_v62 = vld [vmem:[#allocation2 + $0x60] sm:$0xf]  ;;  %v1188_v18 = vld [vmem:[#allocation2 + $0x30] sm:$0xf] }
  0xee   :  { %v1846_v37 = vshll.u32 %v1793_v2, 16  ;;  %v1585_v27 = vrot.slane %v1510_v16, 5  ;;  %v2112_v30 = vld [vmem:[#allocation2 + $0x14] sm:$0x1]  ;;  %v1281_v31 = vshrl.u32 %v1188_v18, 16  ;;  %v1284_v32 = vshll.u32 %v1188_v18, 16 }
  0xef   :  { %v1844_v25 = vrot.slane %v1843_v26, 4  ;;  %v2598_v26 = vrot.slane %v1509_v15, 9  ;;  %v1197_v55 = vld [vmem:[#allocation2 + $0x64] sm:$0x1]  ;;  %v1189_v44 = vld [vmem:[#allocation2 + $0x34] sm:$0x1] }
  0xf0   :  { %v1848_v48 = vrot.slane %v1846_v37, 5  ;;  %v1194_v47 = vld [vmem:[#allocation2 + $0x58] sm:$0xf]  ;;  %v1346_v51 = vshll.u32 %v1197_v55, 16  ;;  %v1195_v15 = vld [vmem:[#allocation2 + $0x5c] sm:$0x1] }
  0xf1   :  { %844 = vrot.lane.b32.xlu2 %v777_v7, %s2744_s0  ;;  %v3227_v8 = vpop.permute.xlu2 %1121 }
  0xf2   :  { %v1849_v56 = vsel %vm2952_vm8, %v1844_v25, %v1848_v48  ;;  %v1348_v4 = vrot.slane %v1346_v51, 5 }
  0xf3   :  { %842 = vrot.lane.b32.xlu1 %v763_v12, %s2744_s0  ;;  %v1823_v12 = vshrl.u32 %v1790_v63, 16  ;;  %v1273_v63 = vor.u32 %v1272_v43, %v1269_v41  ;;  %v1283_v41 = vrot.slane %v1281_v31, 4  ;;  %v1286_v43 = vrot.slane %v1284_v32, 5 }
  0xf5   :  { %828 = vrot.lane.b32.xlu0 %v665_v22, %s2744_s0  ;;  %v1569_v22 = vrot.slane %v1502_v13, 5  ;;  %v1825_v20 = vrot.slane %v1823_v12, 4  ;;  %v1274_v6 = vrot.slane %v1273_v63, 4  ;;  %v1278_v12 = vrot.slane %v1276_v0, 5  ;;  %v543_v13 = vld [vmem:[#allocation2 + $0x80] sm:$0xf] }
  0xf6   :  { %559 = vst.msk [vmem:[#allocation3 + $0x38] sm:$0xf] %vm142_vm5, %v543_v13  ;;  %v1287_v21 = vor.u32 %v1286_v43, %v1283_v41  ;;  %v1326_v63 = vshll.u32 %v1194_v47, 16 }
  0xf7   :  { %v1829_v42 = vor.u32 %v1828_v35, %v1825_v20  ;;  %v1508_v20 = vld [vmem:[#allocation2 + $0x2c] sm:$0x1]  ;;  %v1337_v35 = vshrl.u32 %v1196_v62, 16 }
  0xf8   :  { %v1581_v37 = vrot.slane %v1508_v20, 5  ;;  %v1515_v20 = vld [vmem:[#allocation2 + $0x58] sm:$0xe] }
  0xf9   :  { %850 = vrot.lane.b32.xlu2 %v819_v49, %s2744_s0  ;;  %v3238_v34 = vpop.permute.xlu2 %1127  ;;  %v1570_v49 = vsel %vm2975_vm11, %v2594_v23, %v1569_v22  ;;  %v1830_v50 = vrot.slane %v1829_v42, 4  ;;  %v1694_v23 = vld [vmem:[#allocation2 + $0x18] sm:$0xf]  ;;  %v1507_v22 = vld [vmem:[#allocation2 + $0x28] sm:$0xe]  ;;  %v1339_v42 = vrot.slane %v1337_v35, 4 }
  0xfa   :  { %v1516_v35 = vld [vmem:[#allocation2 + $0x5c] sm:$0x1] }
  0xfb   :  { %848 = vrot.lane.b32.xlu1 %v805_v39, %s2744_s0  ;;  %v1500_v39 = vld [vmem:[#allocation2 + $0xc] sm:$0x1]  ;;  %v1835_v1 = vsel %vm2952_vm8, %v1830_v50, %v1834_v57  ;;  %v1323_v57 = vshrl.u32 %v1194_v47, 16  ;;  %v1597_v31 = vrot.slane %v1516_v35, 5 }
  0xfd   :  { %834 = vrot.lane.b32.xlu0 %v707_v58, %s2744_s0  ;;  %v791_v58 = vsel %vm2952_vm8, %v786_v28, %v790_v29  ;;  %v2111_v28 = vld [vmem:[#allocation2 + $0x10] sm:$0xe]  ;;  %v542_v29 = vld [vmem:[#allocation2 + $0x78] sm:$0xf]  ;;  %v1325_v13 = vrot.slane %v1323_v57, 4 }
  0xfe   :  { %558 = vst.msk [vmem:[#allocation3 + $0x34] sm:$0xf] %vm142_vm5, %v542_v29  ;;  %v2609_v24 = vrot.slane %v2111_v28, 9  ;;  %v1332_v28 = vshll.u32 %v1195_v15, 16  ;;  %v1808_v57 = vld [vmem:[#allocation2 + $0x68] sm:$0xf] }
  0xff   :  { %vm2287_vm5 = vcmask 290048  }
 0x101   :  { %1436 = vrot.lane.b32.xlu2 %v1237_v59, %s2747_s25  ;;  %v3250_v7 = vpop.permute.xlu2 %1133  ;;  %v1565_v59 = vrot.slane %v1500_v39, 5  ;;  %v2177_v39 = vrot.slane %v2112_v30, 5  ;;  %v2601_v30 = vrot.slane %v1515_v20, 9 }
 0x103   :  { %1434 = vrot.lane.b32.xlu1 %v1223_v5, %s2747_s25  ;;  %v1114_v11 = vpop.permute.xlu1 %1113  ;;  %v1566_v5 = vsel %vm2975_vm11, %v2593_v54, %v1565_v59  ;;  %v2178_v54 = vsel %vm2975_vm11, %v2609_v24, %v2177_v39  ;;  %v1334_v24 = vrot.slane %v1332_v28, 5  ;;  %v1798_v39 = vld [vmem:[#allocation2 + $0x30] sm:$0xf]  ;;  %v1598_v55 = vsel %vm2975_vm11, %v2601_v30, %v1597_v31  ;;  %v1809_v31 = vld [vmem:[#allocation2 + $0x6c] sm:$0x1] }
 0x104   :  { %1162 = vst.msk [vmem:[#allocation3] sm:$0xf] %vm1161_vm15, %v1114_v11  ;;  %v2181_v11 = vrot.slane %v2114_v3, 5  ;;  %v1879_v47 = vshrl.u32 %v1798_v39, 16 }
 0x105   :  { %840 = vrot.lane.b32.xlu0 %v749_v14, %s2744_s0  ;;  %v1279_v14 = vsel %vm2952_vm8, %v1274_v6, %v1278_v12  ;;  %v1800_v6 = vld [vmem:[#allocation2 + $0x38] sm:$0xf]  ;;  %v1288_v12 = vrot.slane %v1287_v21, 4 }
 0x106   :  { %v2182_v19 = vsel %vm2975_vm11, %v2610_v9, %v2181_v11  ;;  %v1517_v11 = vld [vmem:[#allocation2 + $0x60] sm:$0xe]  ;;  %v1893_v18 = vshrl.u32 %v1800_v6, 16 }
 0x108   :  { %v1895_v32 = vrot.slane %v1893_v18, 4 }
 0x109   :  { %1725 = vrot.lane.b32.xlu2 %v1693_v52, %s2748_s26  ;;  %v1340_v52 = vshll.u32 %v1196_v62, 16  ;;  %v1328_v62 = vrot.slane %v1326_v63, 5  ;;  %v2121_v63 = vld [vmem:[#allocation2 + $0x38] sm:$0xe] }
 0x10b   :  { %1629 = vrot.lane.b32.xlu1 %v1570_v49, %s2749_s27  ;;  %v3267_v40 = vpop.permute.xlu2 %1139  ;;  %v2597_v49 = vrot.slane %v1507_v22, 9  ;;  %v1342_v38 = vrot.slane %v1340_v52, 5  ;;  %v2602_v22 = vrot.slane %v1517_v11, 9  ;;  %v2120_v11 = vld [vmem:[#allocation2 + $0x34] sm:$0x1] }
 0x10d   :  { %846 = vrot.lane.b32.xlu0 %v791_v58, %s2744_s0  ;;  %v3273_v46 = vpop.permute.xlu1 %1119  ;;  %v1586_v58 = vsel %vm2975_vm11, %v2598_v26, %v1585_v27  ;;  %v1582_v48 = vsel %vm2975_vm11, %v2597_v49, %v1581_v37  ;;  %v1343_v50 = vor.u32 %v1342_v38, %v1339_v42  ;;  %v1329_v27 = vor.u32 %v1328_v62, %v1325_v13  ;;  %v1801_v42 = vld [vmem:[#allocation2 + $0x3c] sm:$0x1] }
 0x10e   :  { %v1902_v41 = vshll.u32 %v1801_v42, 16  ;;  %v1949_v13 = vshrl.u32 %v1808_v57, 16  ;;  %v1952_v62 = vshll.u32 %v1808_v57, 16  ;;  %v1182_v42 = vld [vmem:[#allocation2 + $0x18] sm:$0xf] }
 0x10f   :  { %v3276_v60 = vpop.permute.xlu0 %1117 }
 0x110   :  { %v1954_v28 = vrot.slane %v1952_v62, 5  ;;  %v1185_v62 = vld [vmem:[#allocation2 + $0x24] sm:$0x1] }
 0x111   :  { %2048 = vrot.lane.b32.xlu2 %v1849_v56, %s2750_s28  ;;  %v1290_v56 = vshll.u32 %v1189_v44, 16 }
 0x113   :  { %2046 = vrot.lane.b32.xlu1 %v1835_v1, %s2750_s28  ;;  %v3286_v45 = vpop.permute.xlu2 %1020  ;;  %v1344_v1 = vrot.slane %v1343_v50, 4  ;;  %v1292_v9 = vrot.slane %v1290_v56, 5  ;;  %v1701_v56 = vld [vmem:[#allocation2 + $0x60] sm:$0xf] }
 0x115   :  { %1627 = vrot.lane.b32.xlu0 %v1566_v5, %s2749_s27  ;;  %v3291_v10 = vpop.permute.xlu1 %1125  ;;  %v1697_v5 = vld [vmem:[#allocation2 + $0x30] sm:$0xf]  ;;  %v1349_v16 = vsel %vm2952_vm8, %v1344_v1, %v1348_v4  ;;  %v1293_v52 = vsel %vm2952_vm8, %v1288_v12, %v1292_v9  ;;  %v1881_v1 = vrot.slane %v1879_v47, 4  ;;  %v1242_v47 = vshll.u32 %v1182_v42, 16 }
 0x116   :  { %v2119_v9 = vld [vmem:[#allocation2 + $0x30] sm:$0xe] }
 0x117   :  { %v3293_v61 = vpop.permute.xlu0 %1123  ;;  %v2613_v35 = vrot.slane %v2119_v9, 9  ;;  %v1244_v9 = vrot.slane %v1242_v47, 5 }
 0x119   :  { %1442 = vrot.lane.b32.xlu2 %v1279_v14, %s2747_s25  ;;  %v1518_v14 = vld [vmem:[#allocation2 + $0x64] sm:$0x1] }
 0x11a   :  { %v1601_v26 = vrot.slane %v1518_v14, 5  ;;  %v1698_v14 = vld [vmem:[#allocation2 + $0x38] sm:$0xf] }
 0x11b   :  { %2241 = vrot.lane.b32.xlu1 %v2182_v19, %s2751_s29  ;;  %v3302_v2 = vpop.permute.xlu2 %1026  ;;  %v1896_v19 = vshll.u32 %v1800_v6, 16  ;;  %v1799_v6 = vld [vmem:[#allocation2 + $0x34] sm:$0x1] }
 0x11c   :  { %v1602_v38 = vsel %vm2975_vm11, %v2602_v22, %v1601_v26  ;;  %v1184_v22 = vld [vmem:[#allocation2 + $0x20] sm:$0xf] }
 0x11d   :  { %1727 = vrot.lane.b32.xlu0 %v1694_v23, %s2748_s26  ;;  %v3306_v33 = vpop.permute.xlu1 %1131  ;;  %v1898_v49 = vrot.slane %v1896_v19, 5  ;;  %v1888_v19 = vshll.u32 %v1799_v6, 16  ;;  %v2127_v26 = vld [vmem:[#allocation2 + $0x60] sm:$0xe] }
 0x11f   :  { %v1130_v25 = vpop.permute.xlu0 %1129 }
 0x120   :  { %1170 = vst.msk [vmem:[#allocation3 + $0x20] sm:$0xf] %vm1161_vm15, %v1130_v25  ;;  %v1330_v25 = vrot.slane %v1329_v27, 4  ;;  %v1951_v27 = vrot.slane %v1949_v13, 4 }
 0x121   :  { %1637 = vrot.lane.b32.xlu2 %v1586_v58, %s2749_s27  ;;  %v1899_v58 = vor.u32 %v1898_v49, %v1895_v32  ;;  %v1253_v32 = vshrl.u32 %v1184_v22, 16  ;;  %v1256_v49 = vshll.u32 %v1184_v22, 16 }
 0x122   :  { %v1335_v44 = vsel %vm2952_vm8, %v1330_v25, %v1334_v24  ;;  %v1890_v24 = vrot.slane %v1888_v19, 5 }
 0x123   :  { %1635 = vrot.lane.b32.xlu1 %v1582_v48, %s2749_s27  ;;  %v3317_v59 = vpop.permute.xlu2 %1038  ;;  %v1882_v48 = vshll.u32 %v1798_v39, 16  ;;  %v1900_v51 = vrot.slane %v1899_v58, 4  ;;  %v2128_v39 = vld [vmem:[#allocation2 + $0x64] sm:$0x1]  ;;  %v1806_v58 = vld [vmem:[#allocation2 + $0x60] sm:$0xf] }
 0x124   :  { %v1935_v57 = vshrl.u32 %v1806_v58, 16 }
 0x125   :  { %2239 = vrot.lane.b32.xlu0 %v2178_v54, %s2751_s29  ;;  %v3320_v0 = vpop.permute.xlu1 %1137  ;;  %v1904_v54 = vrot.slane %v1902_v41, 5  ;;  %v1884_v4 = vrot.slane %v1882_v48, 5  ;;  %v1955_v41 = vor.u32 %v1954_v28, %v1951_v27  ;;  %v1702_v27 = vld [vmem:[#allocation2 + $0x68] sm:$0xf] }
 0x127   :  { %v3322_v3 = vpop.permute.xlu0 %1135  ;;  %v1905_v12 = vsel %vm2952_vm8, %v1900_v51, %v1904_v54  ;;  %v2617_v51 = vrot.slane %v2127_v26, 9  ;;  %v2209_v54 = vrot.slane %v2128_v39, 5 }
 0x129   :  { %1733 = vrot.lane.b32.xlu2 %v1697_v5, %s2748_s26  ;;  %v2122_v5 = vld [vmem:[#allocation2 + $0x3c] sm:$0x1]  ;;  %v2210_v13 = vsel %vm2975_vm11, %v2617_v51, %v2209_v54 }
 0x12a   :  { %v2197_v18 = vrot.slane %v2122_v5, 5  ;;  %v1956_v5 = vrot.slane %v1955_v41, 4 }
 0x12b   :  { %1452 = vrot.lane.b32.xlu1 %v1349_v16, %s2747_s25  ;;  %v3328_v23 = vpop.permute.xlu2 %1044  ;;  %v2614_v16 = vrot.slane %v2121_v63, 9  ;;  %v1938_v63 = vshll.u32 %v1806_v58, 16 }
 0x12d   :  { %1444 = vrot.lane.b32.xlu0 %v1293_v52, %s2747_s25  ;;  %v3333_v29 = vpop.permute.xlu1 %1018  ;;  %v2193_v52 = vrot.slane %v2120_v11, 5 }
 0x12f   :  { %v3335_v37 = vpop.permute.xlu0 %1141 }
 0x131   :  { %1645 = vrot.lane.b32.xlu2 %v1602_v38, %s2749_s27  ;;  %v2198_v38 = vsel %vm2975_vm11, %v2614_v16, %v2197_v18  ;;  %v1807_v16 = vld [vmem:[#allocation2 + $0x64] sm:$0x1]  ;;  %v1937_v18 = vrot.slane %v1935_v57, 4 }
 0x133   :  { %1643 = vrot.lane.b32.xlu1 %v1598_v55, %s2749_s27  ;;  %v827_v43 = vpop.permute.xlu2 %826  ;;  %v2194_v55 = vsel %vm2975_vm11, %v2613_v35, %v2193_v52  ;;  %v1262_v52 = vshll.u32 %v1185_v62, 16 }
 0x134   :  { %872 = vst.msk [vmem:[#allocation3 + $0xc] sm:$0xf] %vm868_vm13, %v827_v43  ;;  %v1958_v43 = vshll.u32 %v1809_v31, 16  ;;  %v1944_v31 = vshll.u32 %v1807_v16, 16 }
 0x135   :  { %1450 = vrot.lane.b32.xlu0 %v1335_v44, %s2747_s25  ;;  %v3347_v50 = vpop.permute.xlu1 %1024  ;;  %v1239_v44 = vshrl.u32 %v1182_v42, 16 }
 0x136   :  { %v1960_v6 = vrot.slane %v1958_v43, 5  ;;  %v1946_v41 = vrot.slane %v1944_v31, 5 }
 0x137   :  { %v1023_v21 = vpop.permute.xlu0 %1022 }
 0x138   :  { %1068 = vst.msk [vmem:[#allocation3 + $0xc] sm:$0xf] %vm1064_vm14, %v1023_v21  ;;  %v1255_v21 = vrot.slane %v1253_v32, 4  ;;  %v1961_v35 = vsel %vm2952_vm8, %v1956_v5, %v1960_v6  ;;  %v2129_v5 = vld [vmem:[#allocation2 + $0x68] sm:$0xe] }
 0x139   :  { %1165 = vst.msk [vmem:[#allocation3 + $0xc] sm:$0xf] %vm1161_vm15, %v3273_v46  ;;  %1741 = vrot.lane.b32.xlu2 %v1701_v56, %s2748_s26  ;;  %v1885_v46 = vor.u32 %v1884_v4, %v1881_v1  ;;  %v1258_v56 = vrot.slane %v1256_v49, 5  ;;  %v1202_v4 = vld [vmem:[#allocation2 + $0x78] sm:$0xf] }
 0x13a   :  { %v1379_v19 = vshrl.u32 %v1202_v4, 16  ;;  %v1382_v22 = vshll.u32 %v1202_v4, 16  ;;  %v2130_v6 = vld [vmem:[#allocation2 + $0x6c] sm:$0x1] }
 0x13b   :  { %2056 = vrot.lane.b32.xlu1 %v1905_v12, %s2750_s28  ;;  %v833_v15 = vpop.permute.xlu2 %832  ;;  %v1886_v25 = vrot.slane %v1885_v46, 4  ;;  %v1241_v12 = vrot.slane %v1239_v44, 4  ;;  %v1940_v46 = vrot.slane %v1938_v63, 5  ;;  %v2213_v16 = vrot.slane %v2130_v6, 5 }
 0x13c   :  { %875 = vst.msk [vmem:[#allocation3 + $0x18] sm:$0xf] %vm868_vm13, %v833_v15  ;;  %v1183_v15 = vld [vmem:[#allocation2 + $0x1c] sm:$0x1]  ;;  %v1381_v42 = vrot.slane %v1379_v19, 4 }
 0x13d   :  { %1735 = vrot.lane.b32.xlu0 %v1698_v14, %s2748_s26  ;;  %v3358_v20 = vpop.permute.xlu1 %1030  ;;  %v1259_v14 = vor.u32 %v1258_v56, %v1255_v21  ;;  %v1245_v26 = vor.u32 %v1244_v9, %v1241_v12  ;;  %v1941_v49 = vor.u32 %v1940_v46, %v1937_v18  ;;  %v1505_v21 = vld [vmem:[#allocation2 + $0x20] sm:$0xe]  ;;  %v1506_v56 = vld [vmem:[#allocation2 + $0x24] sm:$0x1] }
 0x13e   :  { %v2596_v12 = vrot.slane %v1505_v21, 9  ;;  %v1577_v9 = vrot.slane %v1506_v56, 5  ;;  %v1204_v18 = vld [vmem:[#allocation2 + $0x80] sm:$0xf] }
 0x13f   :  { %v1029_v30 = vpop.permute.xlu0 %1028  ;;  %v1260_v32 = vrot.slane %v1259_v14, 4  ;;  %v1246_v39 = vrot.slane %v1245_v26, 4  ;;  %v1942_v44 = vrot.slane %v1941_v49, 4  ;;  %v1396_v26 = vshll.u32 %v1204_v18, 16  ;;  %v1696_v49 = vld [vmem:[#allocation2 + $0x28] sm:$0xf] }
 0x140   :  { %1071 = vst.msk [vmem:[#allocation3 + $0x18] sm:$0xf] %vm1064_vm14, %v1029_v30  ;;  %v1248_v30 = vshll.u32 %v1183_v15, 16  ;;  %v2618_v15 = vrot.slane %v2129_v5, 9  ;;  %v1578_v46 = vsel %vm2975_vm11, %v2596_v12, %v1577_v9 }
 0x141   :  { %1168 = vst.msk [vmem:[#allocation3 + $0x18] sm:$0xf] %vm1161_vm15, %v3291_v10  ;;  %2249 = vrot.lane.b32.xlu2 %v2198_v38, %s2751_s29  ;;  %v1891_v10 = vsel %vm2952_vm8, %v1886_v25, %v1890_v24  ;;  %v1384_v38 = vrot.slane %v1382_v22, 5  ;;  %v1203_v25 = vld [vmem:[#allocation2 + $0x7c] sm:$0x1]  ;;  %v1264_v24 = vrot.slane %v1262_v52, 5  ;;  %v1947_v57 = vsel %vm2952_vm8, %v1942_v44, %v1946_v41 }
 0x142   :  { %v1250_v58 = vrot.slane %v1248_v30, 5  ;;  %v1393_v52 = vshrl.u32 %v1204_v18, 16  ;;  %v1795_v30 = vld [vmem:[#allocation2 + $0x24] sm:$0x1]  ;;  %v1525_v41 = vld [vmem:[#allocation2 + $0x80] sm:$0xe] }
 0x143   :  { %2247 = vrot.lane.b32.xlu1 %v2194_v55, %s2751_s29  ;;  %v839_v48 = vpop.permute.xlu2 %838  ;;  %v1265_v43 = vsel %vm2952_vm8, %v1260_v32, %v1264_v24  ;;  %v1385_v47 = vor.u32 %v1384_v38, %v1381_v42  ;;  %v1398_v24 = vrot.slane %v1396_v26, 5 }
 0x144   :  { %878 = vst.msk [vmem:[#allocation3 + $0x24] sm:$0xf] %vm868_vm13, %v839_v48  ;;  %v1388_v48 = vshll.u32 %v1203_v25, 16  ;;  %v1251_v51 = vsel %vm2952_vm8, %v1246_v39, %v1250_v58  ;;  %v1395_v25 = vrot.slane %v1393_v52, 4  ;;  %v1860_v39 = vshll.u32 %v1795_v30, 16 }
 0x145   :  { %2054 = vrot.lane.b32.xlu0 %v1891_v10, %s2750_s28  ;;  %v3373_v1 = vpop.permute.xlu1 %1036  ;;  %v1794_v10 = vld [vmem:[#allocation2 + $0x20] sm:$0xf]  ;;  %v1386_v63 = vrot.slane %v1385_v47, 4  ;;  %v1797_v52 = vld [vmem:[#allocation2 + $0x2c] sm:$0x1] }
 0x146   :  { %v1390_v4 = vrot.slane %v1388_v48, 5  ;;  %v1399_v47 = vor.u32 %v1398_v24, %v1395_v25  ;;  %v2137_v24 = vld [vmem:[#allocation2 + $0x88] sm:$0xe] }
 0x147   :  { %v1035_v11 = vpop.permute.xlu0 %1034 }
 0x148   :  { %1074 = vst.msk [vmem:[#allocation3 + $0x24] sm:$0xf] %vm1064_vm14, %v1035_v11  ;;  %v1851_v11 = vshrl.u32 %v1794_v10, 16  ;;  %v1391_v14 = vsel %vm2952_vm8, %v1386_v63, %v1390_v4  ;;  %v1400_v63 = vrot.slane %v1399_v47, 4 }
 0x149   :  { %1171 = vst.msk [vmem:[#allocation3 + $0x24] sm:$0xf] %vm1161_vm15, %v3306_v33  ;;  %2255 = vrot.lane.b32.xlu2 %v2210_v13, %s2751_s29  ;;  %v1854_v13 = vshll.u32 %v1794_v10, 16 }
 0x14a   :  { %v1853_v19 = vrot.slane %v1851_v11, 4  ;;  %v1523_v11 = vld [vmem:[#allocation2 + $0x78] sm:$0xe] }
 0x14b   :  { %2064 = vrot.lane.b32.xlu1 %v1961_v35, %s2750_s28  ;;  %v845_v28 = vpop.permute.xlu2 %844  ;;  %v1856_v22 = vrot.slane %v1854_v13, 5  ;;  %v2214_v35 = vsel %vm2975_vm11, %v2618_v15, %v2213_v16  ;;  %v1524_v13 = vld [vmem:[#allocation2 + $0x7c] sm:$0x1]  ;;  %v1815_v15 = vld [vmem:[#allocation2 + $0x84] sm:$0x1]  ;;  %v2605_v18 = vrot.slane %v1523_v11, 9 }
 0x14c   :  { %881 = vst.msk [vmem:[#allocation3 + $0x30] sm:$0xf] %vm868_vm13, %v845_v28  ;;  %v1504_v28 = vld [vmem:[#allocation2 + $0x1c] sm:$0x1]  ;;  %v1706_v16 = vld [vmem:[#allocation2 + $0x88] sm:$0xf] }
 0x14d   :  { %1743 = vrot.lane.b32.xlu0 %v1702_v27, %s2748_s26  ;;  %v3386_v33 = vpop.permute.xlu1 %1042  ;;  %v1857_v31 = vor.u32 %v1856_v22, %v1853_v19  ;;  %v1573_v38 = vrot.slane %v1504_v28, 5  ;;  %v2000_v22 = vshll.u32 %v1815_v15, 16  ;;  %v1200_v11 = vld [vmem:[#allocation2 + $0x70] sm:$0xf] }
 0x14f   :  { %v1041_v55 = vpop.permute.xlu0 %1040  ;;  %v1858_v58 = vrot.slane %v1857_v31, 4  ;;  %v2002_v30 = vrot.slane %v2000_v22, 5 }
 0x150   :  { %1077 = vst.msk [vmem:[#allocation3 + $0x30] sm:$0xf] %vm1064_vm14, %v1041_v55  ;;  %v1205_v55 = vld [vmem:[#allocation2 + $0x84] sm:$0x1] }
 0x151   :  { %1174 = vst.msk [vmem:[#allocation3 + $0x30] sm:$0xf] %vm1161_vm15, %v3320_v0  ;;  %1440 = vrot.lane.b32.xlu2 %v1265_v43, %s2747_s25  ;;  %v1526_v43 = vld [vmem:[#allocation2 + $0x84] sm:$0x1]  ;;  %v1402_v48 = vshll.u32 %v1205_v55, 16 }
 0x152   :  { %v1617_v21 = vrot.slane %v1526_v43, 5  ;;  %v2135_v55 = vld [vmem:[#allocation2 + $0x80] sm:$0xe] }
 0x153   :  { %1438 = vrot.lane.b32.xlu1 %v1251_v51, %s2747_s25  ;;  %v851_v54 = vpop.permute.xlu2 %850  ;;  %v1862_v51 = vrot.slane %v1860_v39, 5  ;;  %v1404_v4 = vrot.slane %v1402_v48, 5  ;;  %v2138_v39 = vld [vmem:[#allocation2 + $0x8c] sm:$0x1]  ;;  %v2136_v48 = vld [vmem:[#allocation2 + $0x84] sm:$0x1] }
 0x154   :  { %884 = vst.msk [vmem:[#allocation3 + $0x3c] sm:$0xf] %vm868_vm13, %v851_v54  ;;  %v1814_v54 = vld [vmem:[#allocation2 + $0x80] sm:$0xf] }
 0x155   :  { %2062 = vrot.lane.b32.xlu0 %v1947_v57, %s2750_s28  ;;  %v825_v0 = vpop.permute.xlu1 %824  ;;  %v1863_v10 = vsel %vm2952_vm8, %v1858_v58, %v1862_v51  ;;  %v1796_v57 = vld [vmem:[#allocation2 + $0x28] sm:$0xf]  ;;  %v1994_v5 = vshll.u32 %v1814_v54, 16  ;;  %v1405_v9 = vsel %vm2952_vm8, %v1400_v63, %v1404_v4  ;;  %v2622_v63 = vrot.slane %v2137_v24, 9 }
 0x156   :  { %871 = vst.msk [vmem:[#allocation3 + $0x8] sm:$0xf] %vm868_vm13, %v825_v0  ;;  %v1991_v0 = vshrl.u32 %v1814_v54, 16  ;;  %v1865_v6 = vshrl.u32 %v1796_v57, 16  ;;  %v1868_v12 = vshll.u32 %v1796_v57, 16  ;;  %v2682_v57 = vld [vmem:[%s3803_s1 + $0x8] sm:$0xff] }
 0x157   :  { %v1047_v62 = vpop.permute.xlu0 %1046  ;;  %1067 = vst.msk [vmem:[#allocation3 + $0x8] sm:$0xf] %vm1064_vm14, %v3286_v45  ;;  %v2229_v4 = vrot.slane %v2138_v39, 5 }
 0x158   :  { %1080 = vst.msk [vmem:[#allocation3 + $0x3c] sm:$0xf] %vm1064_vm14, %v1047_v62  ;;  %v1993_v62 = vrot.slane %v1991_v0, 4  ;;  %v2621_v0 = vrot.slane %v2135_v55, 9 }
 0x159   :  { %1164 = vst.msk [vmem:[#allocation3 + $0x8] sm:$0xf] %vm1161_vm15, %v3276_v60  ;;  %1458 = vrot.lane.b32.xlu2 %v1391_v14, %s2747_s25  ;;  %v1503_v60 = vld [vmem:[#allocation2 + $0x18] sm:$0xe]  ;;  %v1996_v14 = vrot.slane %v1994_v5, 5  ;;  %v2230_v22 = vsel %vm2975_vm11, %v2622_v63, %v2229_v4 }
 0x15a   :  { %v2595_v42 = vrot.slane %v1503_v60, 9  ;;  %v2118_v60 = vld [vmem:[#allocation2 + $0x2c] sm:$0x1]  ;;  %v2116_v5 = vld [vmem:[#allocation2 + $0x24] sm:$0x1] }
 0x15b   :  { %1633 = vrot.lane.b32.xlu1 %v1578_v46, %s2749_s27  ;;  %v1437_v45 = vpop.permute.xlu2 %1436  ;;  %v1613_v46 = vrot.slane %v1524_v13, 5  ;;  %v1997_v19 = vor.u32 %v1996_v14, %v1993_v62  ;;  %v1512_v13 = vld [vmem:[#allocation2 + $0x3c] sm:$0x1]  ;;  %v1193_v62 = vld [vmem:[#allocation2 + $0x44] sm:$0x1] }
 0x15c   :  { %v1574_v44 = vsel %vm2975_vm11, %v2595_v42, %v1573_v38  ;;  %v2189_v42 = vrot.slane %v2118_v60, 5  ;;  %v1804_v4 = vld [vmem:[#allocation2 + $0x48] sm:$0xf] }
 0x15d   :  { %2257 = vrot.lane.b32.xlu0 %v2214_v35, %s2751_s29  ;;  %v831_v27 = vpop.permute.xlu1 %830  ;;  %v1870_v35 = vrot.slane %v1868_v12, 5  ;;  %v1998_v28 = vrot.slane %v1997_v19, 4  ;;  %v2681_v19 = vld [vmem:[%s3803_s1] sm:$0xff] }
 0x15e   :  { %874 = vst.msk [vmem:[#allocation3 + $0x14] sm:$0xf] %vm868_vm13, %v831_v27  ;;  %v2117_v27 = vld [vmem:[#allocation2 + $0x28] sm:$0xe] }
 0x15f   :  { %1070 = vst.msk [vmem:[#allocation3 + $0x14] sm:$0xf] %vm1064_vm14, %v3302_v2  ;;  %v823_v32 = vpop.permute.xlu0 %822  ;;  %v1695_v2 = vld [vmem:[#allocation2 + $0x20] sm:$0xf]  ;;  %v2003_v58 = vsel %vm2952_vm8, %v1998_v28, %v2002_v30 }
 0x160   :  { %1167 = vst.msk [vmem:[#allocation3 + $0x14] sm:$0xf] %vm1161_vm15, %v3293_v61 }
 0x161   :  { %870 = vst.msk [vmem:[#allocation3 + $0x4] sm:$0xf] %vm868_vm13, %v823_v32  ;;  %1731 = vrot.lane.b32.xlu2 %v1696_v49, %s2748_s26  ;;  %v1874_v32 = vshll.u32 %v1797_v52, 16  ;;  %v2612_v49 = vrot.slane %v2117_v27, 9  ;;  %v1368_v52 = vshll.u32 %v1200_v11, 16 }
 0x162   :  { %1066 = vst.msk [vmem:[#allocation3 + $0x4] sm:$0xf] %vm1064_vm14, %v3333_v29 }
 0x163   :  { %1163 = vst.msk [vmem:[#allocation3 + $0x4] sm:$0xf] %vm1161_vm15, %v3212_v36  ;;  %1729 = vrot.lane.b32.xlu1 %v1695_v2, %s2748_s26  ;;  %v3428_v61 = vpop.permute.xlu2 %1725  ;;  %v2606_v36 = vrot.slane %v1525_v41, 9  ;;  %v1192_v2 = vld [vmem:[#allocation2 + $0x40] sm:$0xf]  ;;  %v1876_v43 = vrot.slane %v1874_v32, 5  ;;  %v2190_v51 = vsel %vm2975_vm11, %v2612_v49, %v2189_v42 }
 0x164   :  { %1484 = vst.msk [vmem:[#allocation3 + $0x4] sm:$0xf] %vm1482_vm0, %v1437_v45  ;;  %v1867_v45 = vrot.slane %v1865_v6, 4  ;;  %v1309_v54 = vshrl.u32 %v1192_v2, 16  ;;  %v2225_v6 = vrot.slane %v2136_v48, 5  ;;  %v1589_v32 = vrot.slane %v1512_v13, 5 }
 0x165   :  { %1631 = vrot.lane.b32.xlu0 %v1574_v44, %s2749_s27  ;;  %v843_v29 = vpop.permute.xlu1 %842  ;;  %v1816_v44 = vld [vmem:[#allocation2 + $0x88] sm:$0xf]  ;;  %v1201_v49 = vld [vmem:[#allocation2 + $0x74] sm:$0x1]  ;;  %v1199_v48 = vld [vmem:[#allocation2 + $0x6c] sm:$0x1] }
 0x166   :  { %880 = vst.msk [vmem:[#allocation3 + $0x2c] sm:$0xf] %vm868_vm13, %v843_v29  ;;  %v1871_v31 = vor.u32 %v1870_v35, %v1867_v45  ;;  %v2115_v29 = vld [vmem:[#allocation2 + $0x20] sm:$0xe]  ;;  %v1311_v14 = vrot.slane %v1309_v54, 4  ;;  %v1365_v35 = vshrl.u32 %v1200_v11, 16 }
 0x167   :  { %1076 = vst.msk [vmem:[#allocation3 + $0x2c] sm:$0xf] %vm1064_vm14, %v3317_v59  ;;  %v829_v56 = vpop.permute.xlu0 %828  ;;  %v1618_v59 = vsel %vm2975_vm11, %v2606_v36, %v1617_v21  ;;  %v1312_v36 = vshll.u32 %v1192_v2, 16  ;;  %v2611_v12 = vrot.slane %v2115_v29, 9  ;;  %v1817_v45 = vld [vmem:[#allocation2 + $0x8c] sm:$0x1] }
 0x168   :  { %1173 = vst.msk [vmem:[#allocation3 + $0x2c] sm:$0xf] %vm1161_vm15, %v3322_v3  ;;  %v1872_v41 = vrot.slane %v1871_v31, 4  ;;  %v1367_v42 = vrot.slane %v1365_v35, 4  ;;  %v1921_v11 = vshrl.u32 %v1804_v4, 16  ;;  %v1924_v13 = vshll.u32 %v1804_v4, 16 }
 0x169   :  { %873 = vst.msk [vmem:[#allocation3 + $0x10] sm:$0xf] %vm868_vm13, %v829_v56  ;;  %2050 = vrot.lane.b32.xlu2 %v1863_v10, %s2750_s28  ;;  %v2005_v10 = vshrl.u32 %v1816_v44, 16  ;;  %v1699_v4 = vld [vmem:[#allocation2 + $0x40] sm:$0xf] }
 0x16a   :  { %1069 = vst.msk [vmem:[#allocation3 + $0x10] sm:$0xf] %vm1064_vm14, %v3347_v50 }
 0x16b   :  { %1166 = vst.msk [vmem:[#allocation3 + $0x10] sm:$0xf] %vm1161_vm15, %v3227_v8  ;;  %1653 = vrot.lane.b32.xlu1 %v1618_v59, %s2749_s27  ;;  %v3450_v3 = vpop.permute.xlu2 %2048 }
 0x16d   :  { %1460 = vrot.lane.b32.xlu0 %v1405_v9, %s2747_s25  ;;  %v849_v50 = vpop.permute.xlu1 %848  ;;  %v1511_v9 = vld [vmem:[#allocation2 + $0x38] sm:$0xe] }
 0x16e   :  { %883 = vst.msk [vmem:[#allocation3 + $0x38] sm:$0xf] %vm868_vm13, %v849_v50  ;;  %v1314_v50 = vrot.slane %v1312_v36, 5  ;;  %v2599_v27 = vrot.slane %v1511_v9, 9 }
 0x16f   :  { %1079 = vst.msk [vmem:[#allocation3 + $0x38] sm:$0xf] %vm1064_vm14, %v3328_v23  ;;  %v835_v8 = vpop.permute.xlu0 %834  ;;  %v1705_v23 = vld [vmem:[#allocation2 + $0x80] sm:$0xf] }
 0x170   :  { %1176 = vst.msk [vmem:[#allocation3 + $0x38] sm:$0xf] %vm1161_vm15, %v3335_v37  ;;  %v1614_v37 = vsel %vm2975_vm11, %v2605_v18, %v1613_v46  ;;  %v1198_v46 = vld [vmem:[#allocation2 + $0x68] sm:$0xf]  ;;  %v1315_v60 = vor.u32 %v1314_v50, %v1311_v14 }
 0x171   :  { %876 = vst.msk [vmem:[#allocation3 + $0x1c] sm:$0xf] %vm868_vm13, %v835_v8  ;;  %1751 = vrot.lane.b32.xlu2 %v1706_v16, %s2748_s26  ;;  %v2185_v8 = vrot.slane %v2116_v5, 5  ;;  %v2007_v16 = vrot.slane %v2005_v10, 4  ;;  %v1351_v28 = vshrl.u32 %v1198_v46, 16  ;;  %v1354_v30 = vshll.u32 %v1198_v46, 16 }
 0x172   :  { %1072 = vst.msk [vmem:[#allocation3 + $0x1c] sm:$0xf] %vm1064_vm14, %v3358_v20  ;;  %v1316_v55 = vrot.slane %v1315_v60, 4  ;;  %v1513_v60 = vld [vmem:[#allocation2 + $0x40] sm:$0xe] }
 0x173   :  { %1169 = vst.msk [vmem:[#allocation3 + $0x1c] sm:$0xf] %vm1161_vm15, %v3238_v34  ;;  %1749 = vrot.lane.b32.xlu1 %v1705_v23, %s2748_s26  ;;  %v1443_v26 = vpop.permute.xlu2 %1442  ;;  %v2324_v34 = vld [vmem:[%s3803_s1 + $0x10] sm:$0x3]  ;;  %v2226_v23 = vsel %vm2975_vm11, %v2621_v0, %v2225_v6  ;;  %v1353_v2 = vrot.slane %v1351_v28, 4 }
 0x174   :  { %1487 = vst.msk [vmem:[#allocation3 + $0x10] sm:$0xf] %vm1482_vm0, %v1443_v26  ;;  %v2374_v38 = vunpack.c.l.b16 %v2324_v34  ;;  %v1190_v26 = vld [vmem:[#allocation2 + $0x38] sm:$0xf]  ;;  %v2014_v34 = vshll.u32 %v1817_v45, 16  ;;  %v1926_v45 = vrot.slane %v1924_v13, 5 }
 0x175   :  { %1651 = vrot.lane.b32.xlu0 %v1614_v37, %s2749_s27  ;;  %v1435_v20 = vpop.permute.xlu1 %1434  ;;  %v1318_v37 = vshll.u32 %v1193_v62, 16  ;;  %v1802_v62 = vld [vmem:[#allocation2 + $0x40] sm:$0xf]  ;;  %v1514_v28 = vld [vmem:[#allocation2 + $0x44] sm:$0x1] }
 0x176   :  { %1483 = vst.msk [vmem:[#allocation3] sm:$0xf] %vm1482_vm0, %v1435_v20  ;;  %v2377_v47 = vpack.c.b16 %v2374_v38, %v2374_v38  ;;  %v1370_v38 = vrot.slane %v1368_v52, 5  ;;  %v1907_v46 = vshrl.u32 %v1802_v62, 16  ;;  %v1910_v35 = vshll.u32 %v1802_v62, 16 }
 0x177   :  { %v841_v25 = vpop.permute.xlu0 %840  ;;  %v1320_v39 = vrot.slane %v1318_v37, 5 }
 0x178   :  { %879 = vst.msk [vmem:[#allocation3 + $0x28] sm:$0xf] %vm868_vm13, %v841_v25  ;;  %v2407_v21 = vsel %vm2405_vm1, %v2377_v47, 0  ;;  %v1295_v25 = vshrl.u32 %v1190_v26, 16  ;;  %v1374_v47 = vshll.u32 %v1201_v49, 16 }
 0x179   :  { %1075 = vst.msk [vmem:[#allocation3 + $0x28] sm:$0xf] %vm1064_vm14, %v3373_v1  ;;  %2070 = vrot.lane.b32.xlu2 %v2003_v58, %s2750_s28  ;;  %v2008_v1 = vshll.u32 %v1816_v44, 16  ;;  %2414 = vmatpush.bf16.msra.mxu0 %v2407_v21  ;;  %v1356_v58 = vrot.slane %v1354_v30, 5  ;;  %v2016_v44 = vrot.slane %v2014_v34, 5  ;;  %v1321_v10 = vsel %vm2952_vm8, %v1316_v55, %v1320_v39 }
 0x17a   :  { %1172 = vst.msk [vmem:[#allocation3 + $0x28] sm:$0xf] %vm1161_vm15, %v3250_v7  ;;  %v1877_v7 = vsel %vm2952_vm8, %v1872_v41, %v1876_v43  ;;  %2683 = vmatpush.bf16.msra.mxu1 %v2407_v21  ;;  %2684 = vmatpush.bf16.msra.mxu2 %v2407_v21  ;;  %v1590_v43 = vsel %vm2975_vm11, %v2599_v27, %v1589_v32  ;;  %v1297_v54 = vrot.slane %v1295_v25, 4  ;;  %v1376_v63 = vrot.slane %v1374_v47, 5  ;;  %v1803_v49 = vld [vmem:[#allocation2 + $0x44] sm:$0x1] }
 0x17b   :  { %2245 = vrot.lane.b32.xlu1 %v2190_v51, %s2751_s29  ;;  %v3486_v56 = vpop.permute.xlu2 %1637  ;;  %2685 = vmatpush.bf16.msra.mxu3 %v2407_v21  ;;  %v2010_v18 = vrot.slane %v2008_v1, 5  ;;  %v1371_v51 = vor.u32 %v1370_v38, %v1367_v42  ;;  %v1191_v21 = vld [vmem:[#allocation2 + $0x3c] sm:$0x1]  ;;  %v1357_v1 = vor.u32 %v1356_v58, %v1353_v2  ;;  %v1909_v32 = vrot.slane %v1907_v46, 4  ;;  %v1700_v38 = vld [vmem:[#allocation2 + $0x48] sm:$0xf] }
 0x17c   :  { %v2600_v25 = vrot.slane %v1513_v60, 9  ;;  %v1916_v2 = vshll.u32 %v1803_v49, 16 }
 0x17d   :  { %2052 = vrot.lane.b32.xlu0 %v1877_v7, %s2750_s28  ;;  %v1630_v59 = vpop.permute.xlu1 %1629  ;;  %2415 = vmatpush.bf16.msra.mxu0 %v2682_v57  ;;  %v2011_v20 = vor.u32 %v2010_v18, %v2007_v16  ;;  %v1519_v16 = vld [vmem:[#allocation2 + $0x68] sm:$0xe]  ;;  %v1520_v18 = vld [vmem:[#allocation2 + $0x6c] sm:$0x1] }
 0x17e   :  { %1677 = vst.msk [vmem:[#allocation3 + $0x4] sm:$0xf] %vm1675_vm2, %v1630_v59  ;;  %2686 = vmatpush.bf16.msra.mxu1 %v2682_v57  ;;  %2687 = vmatpush.bf16.msra.mxu2 %v2682_v57  ;;  %v1304_v59 = vshll.u32 %v1191_v21, 16  ;;  %v2603_v37 = vrot.slane %v1519_v16, 9 }
 0x17f   :  { %v847_v15 = vpop.permute.xlu0 %846  ;;  %2688 = vmatpush.bf16.msra.mxu3 %v2682_v57  ;;  %v2012_v29 = vrot.slane %v2011_v20, 4  ;;  %v1360_v57 = vshll.u32 %v1199_v48, 16  ;;  %v1912_v20 = vrot.slane %v1910_v35, 5  ;;  %v1918_v48 = vrot.slane %v1916_v2, 5 }
 0x180   :  { %882 = vst.msk [vmem:[#allocation3 + $0x34] sm:$0xf] %vm868_vm13, %v847_v15 }
 0x181   :  { %1078 = vst.msk [vmem:[#allocation3 + $0x34] sm:$0xf] %vm1064_vm14, %v3386_v33  ;;  %2265 = vrot.lane.b32.xlu2 %v2230_v22, %s2751_s29  ;;  %v2186_v33 = vsel %vm2975_vm11, %v2611_v12, %v2185_v8  ;;  %2416 = vmatpush.bf16.msra.mxu0 %v2681_v19  ;;  %v2017_v0 = vsel %vm2952_vm8, %v2012_v29, %v2016_v44  ;;  %v1358_v12 = vrot.slane %v1357_v1, 4  ;;  %v1362_v9 = vrot.slane %v1360_v57, 5  ;;  %v2124_v1 = vld [vmem:[#allocation2 + $0x44] sm:$0x1] }
 0x182   :  { %1175 = vst.msk [vmem:[#allocation3 + $0x34] sm:$0xf] %vm1161_vm15, %v3267_v40  ;;  %v1298_v40 = vshll.u32 %v1190_v26, 16  ;;  %2689 = vmatpush.bf16.msra.mxu1 %v2681_v19  ;;  %2690 = vmatpush.bf16.msra.mxu2 %v2681_v19  ;;  %v1306_v8 = vrot.slane %v1304_v59, 5  ;;  %v1923_v22 = vrot.slane %v1921_v11, 4  ;;  %v1605_v26 = vrot.slane %v1520_v18, 5 }
 0x183   :  { %2263 = vrot.lane.b32.xlu1 %v2226_v23, %s2751_s29  ;;  %v3511_v31 = vpop.permute.xlu2 %1733  ;;  %2691 = vmatpush.bf16.msra.mxu3 %v2681_v19  ;;  %v1363_v19 = vsel %vm2952_vm8, %v1358_v12, %v1362_v9  ;;  %v1805_v23 = vld [vmem:[#allocation2 + $0x4c] sm:$0x1]  ;;  %v1913_v55 = vor.u32 %v1912_v20, %v1909_v32  ;;  %v1521_v59 = vld [vmem:[#allocation2 + $0x70] sm:$0xe]  ;;  %v1522_v9 = vld [vmem:[#allocation2 + $0x74] sm:$0x1] }
 0x184   :  { %v1300_v36 = vrot.slane %v1298_v40, 5  ;;  %v1927_v30 = vor.u32 %v1926_v45, %v1923_v22  ;;  %v1606_v42 = vsel %vm2975_vm11, %v2603_v37, %v1605_v26  ;;  %v1593_v40 = vrot.slane %v1514_v28, 5  ;;  %v1813_v11 = vld [vmem:[#allocation2 + $0x7c] sm:$0x1] }
 0x185   :  { %2243 = vrot.lane.b32.xlu0 %v2186_v33, %s2751_s29  ;;  %v2047_v24 = vpop.permute.xlu1 %2046  ;;  %v1930_v33 = vshll.u32 %v1805_v23, 16  ;;  %v1914_v47 = vrot.slane %v1913_v55, 4  ;;  %v1609_v16 = vrot.slane %v1522_v9, 5  ;;  %v1986_v46 = vshll.u32 %v1813_v11, 16  ;;  %v2134_v20 = vld [vmem:[#allocation2 + $0x7c] sm:$0x1] }
 0x186   :  { %v1301_v5 = vor.u32 %v1300_v36, %v1297_v54  ;;  %v1810_v54 = vld [vmem:[#allocation2 + $0x70] sm:$0xf]  ;;  %v2221_v55 = vrot.slane %v2134_v20, 5  ;;  %v1207_v11 = vld [vmem:[#allocation2 + $0x8c] sm:$0x1] }
 0x187   :  { %v1628_v41 = vpop.permute.xlu0 %1627  ;;  %v1932_v39 = vrot.slane %v1930_v33, 5  ;;  %v1919_v57 = vsel %vm2952_vm8, %v1914_v47, %v1918_v48  ;;  %v1988_v37 = vrot.slane %v1986_v46, 5  ;;  %v2133_v33 = vld [vmem:[#allocation2 + $0x78] sm:$0xe]  ;;  %v1096_v47 = vld [vmem:[#allocation2 + $0x90] sm:$0xf] }
 0x188   :  { %1676 = vst.msk [vmem:[#allocation3] sm:$0xf] %vm1675_vm2, %v1628_v41  ;;  %v1302_v15 = vrot.slane %v1301_v5, 4  ;;  %v2201_v5 = vrot.slane %v2124_v1, 5  ;;  %v1527_v48 = vld [vmem:[#allocation2 + $0x88] sm:$0xe] }
 0x189   :  { %1774 = vst.msk [vmem:[#allocation3] sm:$0xf] %vm1773_vm3, %v3428_v61  ;;  %1639 = vrot.lane.b32.xlu2 %v1590_v43, %s2749_s27  ;;  %v1372_v61 = vrot.slane %v1371_v51, 4  ;;  %v1812_v43 = vld [vmem:[#allocation2 + $0x78] sm:$0xf]  ;;  %v1416_v46 = vshll.u32 %v1207_v11, 16 }
 0x18a   :  { %2095 = vst.msk [vmem:[#allocation3] sm:$0xf] %vm2094_vm4, %v2047_v24  ;;  %v1928_v24 = vrot.slane %v1927_v30, 4  ;;  %v1977_v36 = vshrl.u32 %v1812_v43, 16  ;;  %v1980_v21 = vshll.u32 %v1812_v43, 16 }
 0x18b   :  { %1448 = vrot.lane.b32.xlu1 %v1321_v10, %s2747_s25  ;;  %v3524_v7 = vpop.permute.xlu2 %1645  ;;  %v1377_v50 = vsel %vm2952_vm8, %v1372_v61, %v1376_v63  ;;  %v2123_v10 = vld [vmem:[#allocation2 + $0x40] sm:$0xe]  ;;  %v1966_v63 = vshll.u32 %v1810_v54, 16 }
 0x18c   :  { %v1933_v44 = vsel %vm2952_vm8, %v1928_v24, %v1932_v39  ;;  %v2615_v61 = vrot.slane %v2123_v10, 9  ;;  %v2620_v39 = vrot.slane %v2133_v33, 9 }
 0x18d   :  { %2072 = vrot.lane.b32.xlu0 %v2017_v0, %s2750_s28  ;;  %v2242_v6 = vpop.permute.xlu1 %2241  ;;  %v1968_v62 = vrot.slane %v1966_v63, 5  ;;  %v2131_v63 = vld [vmem:[#allocation2 + $0x70] sm:$0xe] }
 0x18e   :  { %v2619_v9 = vrot.slane %v2131_v63, 9 }
 0x18f   :  { %v1728_v14 = vpop.permute.xlu0 %1727 }
 0x190   :  { %1775 = vst.msk [vmem:[#allocation3 + $0x4] sm:$0xf] %vm1773_vm3, %v1728_v14 }
 0x191   :  { %2096 = vst.msk [vmem:[#allocation3 + $0x4] sm:$0xf] %vm2094_vm4, %v3450_v3  ;;  %1456 = vrot.lane.b32.xlu2 %v1377_v50, %s2747_s25  ;;  %v1307_v3 = vsel %vm2952_vm8, %v1302_v15, %v1306_v8  ;;  %v2604_v50 = vrot.slane %v1521_v59, 9  ;;  %v1811_v15 = vld [vmem:[#allocation2 + $0x74] sm:$0x1]  ;;  %v2202_v8 = vsel %vm2975_vm11, %v2615_v61, %v2201_v5 }
 0x192   :  { %2289 = vst.msk [vmem:[#allocation3 + $0x4] sm:$0xf] %vm2287_vm5, %v2242_v6  ;;  %v1982_v6 = vrot.slane %v1980_v21, 5  ;;  %v1972_v45 = vshll.u32 %v1811_v15, 16  ;;  %v2132_v59 = vld [vmem:[#allocation2 + $0x74] sm:$0x1] }
 0x193   :  { %1454 = vrot.lane.b32.xlu1 %v1363_v19, %s2747_s25  ;;  %v3539_v52 = vpop.permute.xlu2 %1741  ;;  %v1704_v19 = vld [vmem:[#allocation2 + $0x78] sm:$0xf]  ;;  %v1610_v23 = vsel %vm2975_vm11, %v2604_v50, %v1609_v16 }
 0x194   :  { %v1974_v60 = vrot.slane %v1972_v45, 5  ;;  %v1820_v16 = vld [vmem:[#allocation2 + $0x98] sm:$0xf] }
 0x195   :  { %1446 = vrot.lane.b32.xlu0 %v1307_v3, %s2747_s25  ;;  %v1636_v27 = vpop.permute.xlu1 %1635 }
 0x196   :  { %1680 = vst.msk [vmem:[#allocation3 + $0x10] sm:$0xf] %vm1675_vm2, %v1636_v27 }
 0x197   :  { %1778 = vst.msk [vmem:[#allocation3 + $0x10] sm:$0xf] %vm1773_vm3, %v3511_v31  ;;  %v2240_v34 = vpop.permute.xlu0 %2239  ;;  %v1594_v31 = vsel %vm2975_vm11, %v2600_v25, %v1593_v40  ;;  %v2126_v25 = vld [vmem:[#allocation2 + $0x4c] sm:$0x1]  ;;  %v1703_v40 = vld [vmem:[#allocation2 + $0x70] sm:$0xf] }
 0x198   :  { %2288 = vst.msk [vmem:[#allocation3] sm:$0xf] %vm2287_vm5, %v2240_v34 }
 0x199   :  { %1647 = vrot.lane.b32.xlu2 %v1606_v42, %s2749_s27 }
 0x19b   :  { %1739 = vrot.lane.b32.xlu1 %v1700_v38, %s2748_s26  ;;  %v3552_v58 = vpop.permute.xlu2 %2249  ;;  %v2125_v38 = vld [vmem:[#allocation2 + $0x48] sm:$0xe] }
 0x19c   :  { %v2616_v2 = vrot.slane %v2125_v38, 9 }
 0x19d   :  { %1641 = vrot.lane.b32.xlu0 %v1594_v31, %s2749_s27  ;;  %v1453_v41 = vpop.permute.xlu1 %1452 }
 0x19e   :  { %1492 = vst.msk [vmem:[#allocation3 + $0x24] sm:$0xf] %vm1482_vm0, %v1453_v41 }
 0x19f   :  { %1685 = vst.msk [vmem:[#allocation3 + $0x24] sm:$0xf] %vm1675_vm2, %v3524_v7  ;;  %v1445_v29 = vpop.permute.xlu0 %1444  ;;  %v2673_v51 = vld [vmem:[#allocation3] sm:$0xff]  ;;  %v1963_v7 = vshrl.u32 %v1810_v54, 16  ;;  %v2222_v54 = vsel %vm2975_vm11, %v2620_v39, %v2221_v55  ;;  %v1530_v55 = vld [vmem:[#allocation2 + $0x94] sm:$0x1] }
 0x1a0   :  { %1488 = vst.msk [vmem:[#allocation3 + $0x14] sm:$0xf] %vm1482_vm0, %v1445_v29  ;;  %2665 = vmatmul.msk.bf16.vlgmr.msra.gmra.mxu0 %vm2380_vm6, %v2673_v51  ;;  %v1528_v29 = vld [vmem:[#allocation2 + $0x8c] sm:$0x1]  ;;  %v1206_v51 = vld [vmem:[#allocation2 + $0x88] sm:$0xf] }
 0x1a1   :  { %1681 = vst.msk [vmem:[#allocation3 + $0x14] sm:$0xf] %vm1675_vm2, %v3486_v56  ;;  %2060 = vrot.lane.b32.xlu2 %v1933_v44, %s2750_s28  ;;  %v1979_v56 = vrot.slane %v1977_v36, 4  ;;  %v1965_v13 = vrot.slane %v1963_v7, 4  ;;  %v1209_v44 = vld [vmem:[#allocation2 + $0x94] sm:$0x1] }
 0x1a2   :  { %v1430_v10 = vshll.u32 %v1209_v44, 16  ;;  %v1621_v7 = vrot.slane %v1528_v29, 5  ;;  %v1410_v61 = vshll.u32 %v1206_v51, 16  ;;  %v1625_v44 = vrot.slane %v1530_v55, 5 }
 0x1a3   :  { %2058 = vrot.lane.b32.xlu1 %v1919_v57, %s2750_s28  ;;  %v3570_v0 = vpop.permute.xlu2 %2255  ;;  %v1983_v18 = vor.u32 %v1982_v6, %v1979_v56  ;;  %v1969_v22 = vor.u32 %v1968_v62, %v1965_v13  ;;  %v2607_v57 = vrot.slane %v1527_v48, 9 }
 0x1a4   :  { %v1432_v6 = vrot.slane %v1430_v10, 5  ;;  %v1412_v15 = vrot.slane %v1410_v61, 5 }
 0x1a5   :  { %1737 = vrot.lane.b32.xlu0 %v1699_v4, %s2748_s26  ;;  %v1644_v12 = vpop.permute.xlu1 %1643  ;;  %v1984_v3 = vrot.slane %v1983_v18, 4  ;;  %v1970_v27 = vrot.slane %v1969_v22, 4  ;;  %v1407_v4 = vshrl.u32 %v1206_v51, 16  ;;  %v1622_v62 = vsel %vm2975_vm11, %v2607_v57, %v1621_v7 }
 0x1a6   :  { %v2036_v22 = vshll.u32 %v1820_v16, 16 }
 0x1a7   :  { %v1451_v14 = vpop.permute.xlu0 %1450  ;;  %v1989_v30 = vsel %vm2952_vm8, %v1984_v3, %v1988_v37  ;;  %v1975_v32 = vsel %vm2952_vm8, %v1970_v27, %v1974_v60  ;;  %v1409_v50 = vrot.slane %v1407_v4, 4  ;;  %v1821_v3 = vld [vmem:[#allocation2 + $0x9c] sm:$0x1]  ;;  %v1708_v27 = vld [vmem:[#allocation2 + $0x98] sm:$0xf] }
 0x1a8   :  { %1491 = vst.msk [vmem:[#allocation3 + $0x20] sm:$0xf] %vm1482_vm0, %v1451_v14  ;;  %v2217_v14 = vrot.slane %v2132_v59, 5  ;;  %v2141_v59 = vld [vmem:[#allocation2 + $0x98] sm:$0xe] }
 0x1a9   :  { %1684 = vst.msk [vmem:[#allocation3 + $0x20] sm:$0xf] %vm1675_vm2, %v1644_v12  ;;  %2251 = vrot.lane.b32.xlu2 %v2202_v8, %s2751_s29 }
 0x1aa   :  { %1782 = vst.msk [vmem:[#allocation3 + $0x20] sm:$0xf] %vm1773_vm3, %v3539_v52  ;;  %v1208_v52 = vld [vmem:[#allocation2 + $0x90] sm:$0xf]  ;;  %v2218_v45 = vsel %vm2975_vm11, %v2619_v9, %v2217_v14  ;;  %v2624_v9 = vrot.slane %v2141_v59, 9 }
 0x1ab   :  { %1747 = vrot.lane.b32.xlu1 %v1704_v19, %s2748_s26  ;;  %v1441_v35 = vpop.permute.xlu2 %1440  ;;  %v1421_v34 = vshrl.u32 %v1208_v52, 16  ;;  %v1424_v49 = vshll.u32 %v1208_v52, 16  ;;  %v2033_v19 = vshrl.u32 %v1820_v16, 16  ;;  %v2139_v52 = vld [vmem:[#allocation2 + $0x90] sm:$0xe] }
 0x1ac   :  { %1486 = vst.msk [vmem:[#allocation3 + $0xc] sm:$0xf] %vm1482_vm0, %v1441_v35  ;;  %v1413_v35 = vor.u32 %v1412_v15, %v1409_v50  ;;  %v2623_v38 = vrot.slane %v2139_v52, 9 }
 0x1ad   :  { %1649 = vrot.lane.b32.xlu0 %v1610_v23, %s2749_s27  ;;  %v2057_v26 = vpop.permute.xlu1 %2056  ;;  %v1423_v31 = vrot.slane %v1421_v34, 4  ;;  %v1426_v41 = vrot.slane %v1424_v49, 5  ;;  %v2035_v37 = vrot.slane %v2033_v19, 4  ;;  %v2042_v34 = vshll.u32 %v1821_v3, 16  ;;  %v1707_v49 = vld [vmem:[#allocation2 + $0x90] sm:$0xf] }
 0x1ae   :  { %v1414_v33 = vrot.slane %v1413_v35, 4 }
 0x1af   :  { %v1736_v28 = vpop.permute.xlu0 %1735  ;;  %v1427_v21 = vor.u32 %v1426_v41, %v1423_v31  ;;  %v2044_v31 = vrot.slane %v2042_v34, 5 }
 0x1b0   :  { %1779 = vst.msk [vmem:[#allocation3 + $0x14] sm:$0xf] %vm1773_vm3, %v1736_v28  ;;  %v1418_v28 = vrot.slane %v1416_v46, 5 }
 0x1b1   :  { %2100 = vst.msk [vmem:[#allocation3 + $0x14] sm:$0xf] %vm2094_vm4, %v2057_v26  ;;  %2068 = vrot.lane.b32.xlu2 %v1989_v30, %s2750_s28  ;;  %v1428_v56 = vrot.slane %v1427_v21, 4  ;;  %v2038_v26 = vrot.slane %v2036_v22, 5  ;;  %v2140_v30 = vld [vmem:[#allocation2 + $0x94] sm:$0x1] }
 0x1b2   :  { %2293 = vst.msk [vmem:[#allocation3 + $0x14] sm:$0xf] %vm2287_vm5, %v3552_v58  ;;  %v2205_v58 = vrot.slane %v2126_v25, 5  ;;  %v2233_v25 = vrot.slane %v2140_v30, 5  ;;  %v1419_v39 = vsel %vm2952_vm8, %v1414_v33, %v1418_v28 }
 0x1b3   :  { %2066 = vrot.lane.b32.xlu1 %v1975_v32, %s2750_s28  ;;  %v1459_v42 = vpop.permute.xlu2 %1458  ;;  %v1433_v8 = vsel %vm2952_vm8, %v1428_v56, %v1432_v6  ;;  %v1818_v32 = vld [vmem:[#allocation2 + $0x90] sm:$0xf]  ;;  %v2039_v20 = vor.u32 %v2038_v26, %v2035_v37  ;;  %v2142_v56 = vld [vmem:[#allocation2 + $0x9c] sm:$0x1] }
 0x1b4   :  { %1495 = vst.msk [vmem:[#allocation3 + $0x30] sm:$0xf] %vm1482_vm0, %v1459_v42  ;;  %v2206_v36 = vsel %vm2975_vm11, %v2616_v2, %v2205_v58  ;;  %v2022_v2 = vshll.u32 %v1818_v32, 16  ;;  %v2237_v11 = vrot.slane %v2142_v56, 5 }
 0x1b5   :  { %1745 = vrot.lane.b32.xlu0 %v1703_v40, %s2748_s26  ;;  %v2248_v24 = vpop.permute.xlu1 %2247  ;;  %v1529_v40 = vld [vmem:[#allocation2 + $0x90] sm:$0xe]  ;;  %v2040_v58 = vrot.slane %v2039_v20, 4 }
 0x1b6   :  { %v2024_v29 = vrot.slane %v2022_v2, 5 }
 0x1b7   :  { %v2055_v43 = vpop.permute.xlu0 %2054  ;;  %v2045_v51 = vsel %vm2952_vm8, %v2040_v58, %v2044_v31 }
 0x1b8   :  { %2099 = vst.msk [vmem:[#allocation3 + $0x10] sm:$0xf] %vm2094_vm4, %v2055_v43  ;;  %v2608_v43 = vrot.slane %v1529_v40, 9 }
 0x1b9   :  { %2292 = vst.msk [vmem:[#allocation3 + $0x10] sm:$0xf] %vm2287_vm5, %v2248_v24  ;;  %1143 = vrot.lane.b32.xlu2 %v1096_v47, %s2746_s24  ;;  %v2019_v24 = vshrl.u32 %v1818_v32, 16  ;;  %v2234_v47 = vsel %vm2975_vm11, %v2623_v38, %v2233_v25 }
 0x1ba   :  { %v1626_v21 = vsel %vm2975_vm11, %v2608_v43, %v1625_v44 }
 0x1bb   :  { %2261 = vrot.lane.b32.xlu1 %v2222_v54, %s2751_s29  ;;  %v3605_v1 = vpop.permute.xlu2 %1731  ;;  %v2021_v48 = vrot.slane %v2019_v24, 4  ;;  %v1819_v54 = vld [vmem:[#allocation2 + $0x94] sm:$0x1] }
 0x1bd   :  { %2253 = vrot.lane.b32.xlu0 %v2206_v36, %s2751_s29  ;;  %v2065_v5 = vpop.permute.xlu1 %2064  ;;  %v2025_v10 = vor.u32 %v2024_v29, %v2021_v48 }
 0x1bf   :  { %v1744_v12 = vpop.permute.xlu0 %1743  ;;  %v2026_v4 = vrot.slane %v2025_v10, 4 }
 0x1c0   :  { %1783 = vst.msk [vmem:[#allocation3 + $0x24] sm:$0xf] %vm1773_vm3, %v1744_v12  ;;  %v2675_v13 = vld [vmem:[#allocation3 + $0x10] sm:$0xff] }
 0x1c1   :  { %2104 = vst.msk [vmem:[#allocation3 + $0x24] sm:$0xf] %vm2094_vm4, %v2065_v5  ;;  %1655 = vrot.lane.b32.xlu2 %v1622_v62, %s2749_s27  ;;  %2667 = vmatmul.msk.bf16.vlgmr.msra.gmra.mxu1 %vm2380_vm6, %v2675_v13  ;;  %v2238_v62 = vsel %vm2975_vm11, %v2624_v9, %v2237_v11 }
 0x1c3   :  { %1464 = vrot.lane.b32.xlu1 %v1433_v8, %s2747_s25  ;;  %v3617_v18 = vpop.permute.xlu2 %2050 }
 0x1c5   :  { %2259 = vrot.lane.b32.xlu0 %v2218_v45, %s2751_s29  ;;  %v1439_v23 = vpop.permute.xlu1 %1438 }
 0x1c6   :  { %1485 = vst.msk [vmem:[#allocation3 + $0x8] sm:$0xf] %vm1482_vm0, %v1439_v23 }
 0x1c7   :  { %v2063_v60 = vpop.permute.xlu0 %2062 }
 0x1c8   :  { %2103 = vst.msk [vmem:[#allocation3 + $0x20] sm:$0xf] %vm2094_vm4, %v2063_v60 }
 0x1c9   :  { %2296 = vst.msk [vmem:[#allocation3 + $0x20] sm:$0xf] %vm2287_vm5, %v3570_v0  ;;  %1755 = vrot.lane.b32.xlu2 %v1708_v27, %s2748_s26 }
 0x1cb   :  { %1753 = vrot.lane.b32.xlu1 %v1707_v49, %s2748_s26  ;;  %v1752_v42 = vpop.permute.xlu2 %1751 }
 0x1cd   :  { %1462 = vrot.lane.b32.xlu0 %v1419_v39, %s2747_s25  ;;  %v1634_v0 = vpop.permute.xlu1 %1633 }
 0x1ce   :  { %1679 = vst.msk [vmem:[#allocation3 + $0xc] sm:$0xf] %vm1675_vm2, %v1634_v0 }
 0x1cf   :  { %1777 = vst.msk [vmem:[#allocation3 + $0xc] sm:$0xf] %vm1773_vm3, %v3605_v1  ;;  %v2258_v41 = vpop.permute.xlu0 %2257  ;;  %v2028_v1 = vshll.u32 %v1819_v54, 16 }
 0x1d0   :  { %2297 = vst.msk [vmem:[#allocation3 + $0x24] sm:$0xf] %vm2287_vm5, %v2258_v41 }
 0x1d1   :  { %2267 = vrot.lane.b32.xlu2 %v2234_v47, %s2751_s29  ;;  %v2030_v61 = vrot.slane %v2028_v1, 5 }
 0x1d3   :  { %v2071_v36 = vpop.permute.xlu2 %2070  ;;  %2076 = vrot.lane.b32.xlu1 %v2045_v51, %s2750_s28  ;;  %v2031_v6 = vsel %vm2952_vm8, %v2026_v4, %v2030_v61  ;;  %vm2565_vm8 = vcmask 1040384  }
 0x1d5   :  { %1657 = vrot.lane.b32.xlu0 %v1626_v21, %s2749_s27  ;;  %v1730_v57 = vpop.permute.xlu1 %1729 }
 0x1d7   :  { %v1632_v7 = vpop.permute.xlu0 %1631  ;;  %v2677_v63 = vld [vmem:[#allocation3 + $0x20] sm:$0xff] }
 0x1d8   :  { %1678 = vst.msk [vmem:[#allocation3 + $0x8] sm:$0xf] %vm1675_vm2, %v1632_v7  ;;  %2669 = vmatmul.msk.bf16.vlgmr.msra.gmra.mxu2 %vm2380_vm6, %v2677_v63 }
 0x1d9   :  { %1776 = vst.msk [vmem:[#allocation3 + $0x8] sm:$0xf] %vm1773_vm3, %v1730_v57 }
 0x1da   :  { %2097 = vst.msk [vmem:[#allocation3 + $0x8] sm:$0xf] %vm2094_vm4, %v3617_v18 }
 0x1db   :  { %v2266_v5 = vpop.permute.xlu2 %2265 }
 0x1dd   :  { %2074 = vrot.lane.b32.xlu0 %v2031_v6, %s2750_s28  ;;  %v1654_v12 = vpop.permute.xlu1 %1653 }
 0x1df   :  { %v1461_v13 = vpop.permute.xlu0 %1460 }
 0x1e0   :  { %1496 = vst.msk [vmem:[#allocation3 + $0x34] sm:$0xf] %vm1482_vm0, %v1461_v13 }
 0x1e1   :  { %1689 = vst.msk [vmem:[#allocation3 + $0x34] sm:$0xf] %vm1675_vm2, %v1654_v12 }
 0x1e2   :  { %1787 = vst.msk [vmem:[#allocation3 + $0x34] sm:$0xf] %vm1773_vm3, %v1752_v42 }
 0x1e3   :  { %v1640_v14 = vpop.permute.xlu2 %1639 }
 0x1e5   :  { %2269 = vrot.lane.b32.xlu0 %v2238_v62, %s2751_s29  ;;  %v1750_v17 = vpop.permute.xlu1 %1749 }
 0x1e7   :  { %v1652_v50 = vpop.permute.xlu0 %1651 }
 0x1e8   :  { %1688 = vst.msk [vmem:[#allocation3 + $0x30] sm:$0xf] %vm1675_vm2, %v1652_v50 }
 0x1e9   :  { %1786 = vst.msk [vmem:[#allocation3 + $0x30] sm:$0xf] %vm1773_vm3, %v1750_v17 }
 0x1ea   :  { %2107 = vst.msk [vmem:[#allocation3 + $0x30] sm:$0xf] %vm2094_vm4, %v2071_v36 }
 0x1eb   :  { %v1457_v15 = vpop.permute.xlu2 %1456 }
 0x1ec   :  { %1494 = vst.msk [vmem:[#allocation3 + $0x2c] sm:$0xf] %vm1482_vm0, %v1457_v15 }
 0x1ed   :  { %v2246_v8 = vpop.permute.xlu1 %2245 }
 0x1ef   :  { %v2053_v16 = vpop.permute.xlu0 %2052 }
 0x1f0   :  { %2098 = vst.msk [vmem:[#allocation3 + $0xc] sm:$0xf] %vm2094_vm4, %v2053_v16 }
 0x1f1   :  { %2291 = vst.msk [vmem:[#allocation3 + $0xc] sm:$0xf] %vm2287_vm5, %v2246_v8 }
 0x1f3   :  { %v1648_v53 = vpop.permute.xlu2 %1647 }
 0x1f5   :  { %v2264_v18 = vpop.permute.xlu1 %2263 }
 0x1f6   :  { %2300 = vst.msk [vmem:[#allocation3 + $0x30] sm:$0xf] %vm2287_vm5, %v2264_v18 }
 0x1f7   :  { %v2244_v46 = vpop.permute.xlu0 %2243 }
 0x1f8   :  { %2290 = vst.msk [vmem:[#allocation3 + $0x8] sm:$0xf] %vm2287_vm5, %v2244_v46 }
 0x1fb   :  { %v2061_v19 = vpop.permute.xlu2 %2060 }
 0x1fd   :  { %v1449_v22 = vpop.permute.xlu1 %1448 }
 0x1fe   :  { %1490 = vst.msk [vmem:[#allocation3 + $0x1c] sm:$0xf] %vm1482_vm0, %v1449_v22 }
 0x1ff   :  { %v2073_v45 = vpop.permute.xlu0 %2072  ;;  %v2674_v35 = vld [vmem:[#allocation3 + $0x8] sm:$0xff] }
 0x200   :  { %2108 = vst.msk [vmem:[#allocation3 + $0x34] sm:$0xf] %vm2094_vm4, %v2073_v45  ;;  %2666 = vmatmul.msk.bf16.gmra.mxu0 %vm2380_vm6, %v2674_v35 }
 0x201   :  { %2301 = vst.msk [vmem:[#allocation3 + $0x34] sm:$0xf] %vm2287_vm5, %v2266_v5 }
 0x203   :  { %v2252_v23 = vpop.permute.xlu2 %2251 }
 0x205   :  { %v1455_v3 = vpop.permute.xlu1 %1454 }
 0x206   :  { %1493 = vst.msk [vmem:[#allocation3 + $0x28] sm:$0xf] %vm1482_vm0, %v1455_v3 }
 0x207   :  { %1686 = vst.msk [vmem:[#allocation3 + $0x28] sm:$0xf] %vm1675_vm2, %v1648_v53  ;;  %v1447_v37 = vpop.permute.xlu0 %1446 }
 0x208   :  { %1489 = vst.msk [vmem:[#allocation3 + $0x18] sm:$0xf] %vm1482_vm0, %v1447_v37  ;;  %v2679_v26 = vld [vmem:[#allocation3 + $0x30] sm:$0xff] }
 0x209   :  { %1682 = vst.msk [vmem:[#allocation3 + $0x18] sm:$0xf] %vm1675_vm2, %v1640_v14  ;;  %2671 = vmatmul.msk.bf16.vlgmr.msra.gmra.mxu3 %vm2380_vm6, %v2679_v26 }
 0x20b   :  { %v2069_v27 = vpop.permute.xlu2 %2068 }
 0x20d   :  { %v1740_v60 = vpop.permute.xlu1 %1739 }
 0x20f   :  { %v1642_v28 = vpop.permute.xlu0 %1641 }
 0x210   :  { %1683 = vst.msk [vmem:[#allocation3 + $0x1c] sm:$0xf] %vm1675_vm2, %v1642_v28 }
 0x211   :  { %1781 = vst.msk [vmem:[#allocation3 + $0x1c] sm:$0xf] %vm1773_vm3, %v1740_v60 }
 0x212   :  { %2102 = vst.msk [vmem:[#allocation3 + $0x1c] sm:$0xf] %vm2094_vm4, %v2061_v19 }
 0x213   :  { %v1144_v52 = vpop.permute.xlu2 %1143 }
 0x214   :  { %1177 = vst.msk [vmem:[#allocation3 + $0x3c] sm:$0xf] %vm1161_vm15, %v1144_v52 }
 0x215   :  { %v2059_v30 = vpop.permute.xlu1 %2058 }
 0x217   :  { %v1738_v33 = vpop.permute.xlu0 %1737 }
 0x218   :  { %1780 = vst.msk [vmem:[#allocation3 + $0x18] sm:$0xf] %vm1773_vm3, %v1738_v33 }
 0x219   :  { %2101 = vst.msk [vmem:[#allocation3 + $0x18] sm:$0xf] %vm2094_vm4, %v2059_v30 }
 0x21a   :  { %2294 = vst.msk [vmem:[#allocation3 + $0x18] sm:$0xf] %vm2287_vm5, %v2252_v23 }
 0x21b   :  { %v1656_v2 = vpop.permute.xlu2 %1655 }
 0x21d   :  { %v1748_v32 = vpop.permute.xlu1 %1747  ;;  %v2418_v20 = vpop.f32.mrf.mxu0 }
 0x21e   :  { %2459 = vst.msk [vmem:[%s3804_s2] sm:$0xff] %vm2458_vm7, %v2418_v20  ;;  %v2512_v57 = vmul.f32 %v2418_v20, %v2418_v20  ;;  %v2475_v63 = vsel %vm2458_vm7, %v2418_v20, 0.0 }
 0x21f   :  { %v1650_v34 = vpop.permute.xlu0 %1649 }
 0x220   :  { %1687 = vst.msk [vmem:[#allocation3 + $0x2c] sm:$0xf] %vm1675_vm2, %v1650_v34  ;;  %v2528_v59 = vsel %vm2458_vm7, %v2512_v57, 0.0 }
 0x221   :  { %1785 = vst.msk [vmem:[#allocation3 + $0x2c] sm:$0xf] %vm1773_vm3, %v1748_v32 }
 0x222   :  { %2106 = vst.msk [vmem:[#allocation3 + $0x2c] sm:$0xf] %vm2094_vm4, %v2069_v27 }
 0x223   :  { %v1756_v43 = vpop.permute.xlu2 %1755 }
 0x225   :  { %v2067_v49 = vpop.permute.xlu1 %2066  ;;  %v2420_v42 = vpop.f32.mrf.mxu0 }
 0x226   :  { %2460 = vst.msk [vmem:[%s3804_s2 + $0x8] sm:$0xff] %vm2458_vm7, %v2420_v42  ;;  %v2513_v1 = vmul.f32 %v2420_v42, %v2420_v42  ;;  %v2476_v7 = vsel %vm2458_vm7, %v2420_v42, 0.0 }
 0x227   :  { %v1746_v38 = vpop.permute.xlu0 %1745  ;;  %v2477_v61 = vadd.f32 %v2476_v7, %v2475_v63 }
 0x228   :  { %1784 = vst.msk [vmem:[#allocation3 + $0x28] sm:$0xf] %vm1773_vm3, %v1746_v38  ;;  %v2529_v4 = vsel %vm2458_vm7, %v2513_v1, 0.0 }
 0x229   :  { %2105 = vst.msk [vmem:[#allocation3 + $0x28] sm:$0xf] %vm2094_vm4, %v2067_v49  ;;  %v2530_v12 = vadd.f32 %v2529_v4, %v2528_v59 }
 0x22b   :  { %v2268_v51 = vpop.permute.xlu2 %2267 }
 0x22d   :  { %v2262_v25 = vpop.permute.xlu1 %2261 }
 0x22e   :  { %2299 = vst.msk [vmem:[#allocation3 + $0x2c] sm:$0xf] %vm2287_vm5, %v2262_v25 }
 0x22f   :  { %v2254_v40 = vpop.permute.xlu0 %2253 }
 0x230   :  { %2295 = vst.msk [vmem:[#allocation3 + $0x1c] sm:$0xf] %vm2287_vm5, %v2254_v40 }
 0x235   :  { %v1465_v24 = vpop.permute.xlu1 %1464 }
 0x236   :  { %1498 = vst.msk [vmem:[#allocation3 + $0x3c] sm:$0xf] %vm1482_vm0, %v1465_v24 }
 0x237   :  { %v2260_v39 = vpop.permute.xlu0 %2259  ;;  %v2676_v55 = vld [vmem:[#allocation3 + $0x18] sm:$0xff] }
 0x238   :  { %2298 = vst.msk [vmem:[#allocation3 + $0x28] sm:$0xf] %vm2287_vm5, %v2260_v39  ;;  %2668 = vmatmul.msk.bf16.gmra.mxu1 %vm2380_vm6, %v2676_v55 }
 0x23d   :  { %v1754_v41 = vpop.permute.xlu1 %1753 }
 0x23e   :  { %v2428_v31 = vpop.f32.mrf.mxu1 }
 0x23f   :  { %v1463_v58 = vpop.permute.xlu0 %1462  ;;  %v2678_v0 = vld [vmem:[#allocation3 + $0x28] sm:$0xff]  ;;  %2463 = vst.msk [vmem:[%s3804_s2 + $0x20] sm:$0xff] %vm2458_vm7, %v2428_v31  ;;  %v2516_v14 = vmul.f32 %v2428_v31, %v2428_v31  ;;  %v2482_v8 = vsel %vm2458_vm7, %v2428_v31, 0.0 }
 0x240   :  { %1497 = vst.msk [vmem:[#allocation3 + $0x38] sm:$0xf] %vm1482_vm0, %v1463_v58  ;;  %2670 = vmatmul.msk.bf16.gmra.mxu2 %vm2380_vm6, %v2678_v0 }
 0x241   :  { %1690 = vst.msk [vmem:[#allocation3 + $0x38] sm:$0xf] %vm1675_vm2, %v1656_v2  ;;  %v2535_v46 = vsel %vm2458_vm7, %v2516_v14, 0.0 }
 0x242   :  { %1788 = vst.msk [vmem:[#allocation3 + $0x38] sm:$0xf] %vm1773_vm3, %v1754_v41 }
 0x245   :  { %v2077_v48 = vpop.permute.xlu1 %2076 }
 0x246   :  { %v2430_v47 = vpop.f32.mrf.mxu1 }
 0x247   :  { %v1658_v44 = vpop.permute.xlu0 %1657  ;;  %2464 = vst.msk [vmem:[%s3804_s2 + $0x28] sm:$0xff] %vm2458_vm7, %v2430_v47  ;;  %v2517_v23 = vmul.f32 %v2430_v47, %v2430_v47  ;;  %v2484_v37 = vsel %vm2458_vm7, %v2430_v47, 0.0 }
 0x248   :  { %1691 = vst.msk [vmem:[#allocation3 + $0x3c] sm:$0xf] %vm1675_vm2, %v1658_v44 }
 0x249   :  { %1789 = vst.msk [vmem:[#allocation3 + $0x3c] sm:$0xf] %vm1773_vm3, %v1756_v43  ;;  %v2537_v60 = vsel %vm2458_vm7, %v2517_v23, 0.0 }
 0x24a   :  { %2110 = vst.msk [vmem:[#allocation3 + $0x3c] sm:$0xf] %vm2094_vm4, %v2077_v48 }
 0x24f   :  { %v2075_v29 = vpop.permute.xlu0 %2074 }
 0x250   :  { %2109 = vst.msk [vmem:[#allocation3 + $0x38] sm:$0xf] %vm2094_vm4, %v2075_v29 }
 0x251   :  { %2302 = vst.msk [vmem:[#allocation3 + $0x38] sm:$0xf] %vm2287_vm5, %v2268_v51 }
 0x257   :  { %v2270_v54 = vpop.permute.xlu0 %2269 }
 0x258   :  { %2303 = vst.msk [vmem:[#allocation3 + $0x3c] sm:$0xf] %vm2287_vm5, %v2270_v54 }
 0x25b   :  { %v2438_v36 = vpop.f32.mrf.mxu2 }
 0x25c   :  { %2467 = vst.msk [vmem:[%s3804_s2 + $0x40] sm:$0xff] %vm2458_vm7, %v2438_v36  ;;  %v2520_v32 = vmul.f32 %v2438_v36, %v2438_v36  ;;  %v2490_v38 = vsel %vm2458_vm7, %v2438_v36, 0.0 }
 0x25e   :  { %v2543_v39 = vsel %vm2458_vm7, %v2520_v32, 0.0 }
 0x25f   :  { %v2680_v21 = vld [vmem:[#allocation3 + $0x38] sm:$0xff] }
 0x260   :  { %2672 = vmatmul.msk.bf16.gmra.mxu3 %vm2380_vm6, %v2680_v21 }
 0x263   :  { %v2440_v10 = vpop.f32.mrf.mxu2 }
 0x264   :  { %2468 = vst.msk [vmem:[%s3804_s2 + $0x48] sm:$0xff] %vm2458_vm7, %v2440_v10  ;;  %v2521_v58 = vmul.f32 %v2440_v10, %v2440_v10  ;;  %v2492_v31 = vsel %vm2458_vm7, %v2440_v10, 0.0 }
 0x266   :  { %v2545_v43 = vsel %vm2458_vm7, %v2521_v58, 0.0 }
 0x27d   :  { %v2423_v5 = vpop.f32.mrf.mxu0 }
 0x27e   :  { %2461 = vst.msk [vmem:[%s3804_s2 + $0x10] sm:$0xff] %vm2458_vm7, %v2423_v5  ;;  %v2478_v56 = vsel %vm2458_vm7, %v2423_v5, 0.0  ;;  %v2514_v6 = vmul.f32 %v2423_v5, %v2423_v5 }
 0x27f   :  { %v2479_v9 = vadd.f32 %v2478_v56, %v2477_v61 }
 0x280   :  { %v2531_v11 = vsel %vm2458_vm7, %v2514_v6, 0.0 }
 0x281   :  { %v2532_v13 = vadd.f32 %v2531_v11, %v2530_v12 }
 0x285   :  { %v2425_v62 = vpop.f32.mrf.mxu0 }
 0x286   :  { %2462 = vst.msk [vmem:[%s3804_s2 + $0x18] sm:$0xff] %vm2458_vm7, %v2425_v62  ;;  %v2480_v17 = vsel %vm2458_vm7, %v2425_v62, 0.0  ;;  %v2515_v50 = vmul.f32 %v2425_v62, %v2425_v62 }
 0x287   :  { %v2481_v15 = vadd.f32 %v2480_v17, %v2479_v9 }
 0x288   :  { %v2533_v16 = vsel %vm2458_vm7, %v2515_v50, 0.0 }
 0x289   :  { %v2483_v53 = vadd.f32 %v2482_v8, %v2481_v15  ;;  %v2534_v18 = vadd.f32 %v2533_v16, %v2532_v13 }
 0x28b   :  { %v2536_v19 = vadd.f32 %v2535_v46, %v2534_v18  ;;  %v2485_v27 = vadd.f32 %v2484_v37, %v2483_v53 }
 0x28c   :  { %v2448_v22 = vpop.f32.mrf.mxu3 }
 0x28d   :  { %2471 = vst.msk [vmem:[%s3804_s2 + $0x60] sm:$0xff] %vm2458_vm7, %v2448_v22  ;;  %v2538_v30 = vadd.f32 %v2537_v60, %v2536_v19  ;;  %v2524_v54 = vmul.f32 %v2448_v22, %v2448_v22  ;;  %v2498_v57 = vsel %vm2458_vm7, %v2448_v22, 0.0 }
 0x28f   :  { %v2551_v61 = vsel %vm2458_vm7, %v2524_v54, 0.0 }
 0x294   :  { %v2450_v45 = vpop.f32.mrf.mxu3 }
 0x295   :  { %2472 = vst.msk [vmem:[%s3804_s2 + $0x68] sm:$0xff] %vm2458_vm7, %v2450_v45  ;;  %v2525_v56 = vmul.f32 %v2450_v45, %v2450_v45  ;;  %v2500_v12 = vsel %vm2458_vm7, %v2450_v45, 0.0 }
 0x297   :  { %v2553_v13 = vsel %vm2458_vm7, %v2525_v56, 0.0 }
 0x2b5   :  { %v2433_v35 = vpop.f32.mrf.mxu1 }
 0x2b6   :  { %2465 = vst.msk [vmem:[%s3804_s2 + $0x30] sm:$0xff] %vm2458_vm7, %v2433_v35  ;;  %v2518_v3 = vmul.f32 %v2433_v35, %v2433_v35  ;;  %v2486_v26 = vsel %vm2458_vm7, %v2433_v35, 0.0 }
 0x2b7   :  { %v2487_v52 = vadd.f32 %v2486_v26, %v2485_v27 }
 0x2b8   :  { %v2539_v28 = vsel %vm2458_vm7, %v2518_v3, 0.0 }
 0x2b9   :  { %v2540_v49 = vadd.f32 %v2539_v28, %v2538_v30 }
 0x2bd   :  { %v2435_v33 = vpop.f32.mrf.mxu1 }
 0x2be   :  { %2466 = vst.msk [vmem:[%s3804_s2 + $0x38] sm:$0xff] %vm2458_vm7, %v2435_v33  ;;  %v2488_v20 = vsel %vm2458_vm7, %v2435_v33, 0.0  ;;  %v2519_v34 = vmul.f32 %v2435_v33, %v2435_v33 }
 0x2bf   :  { %v2489_v42 = vadd.f32 %v2488_v20, %v2487_v52 }
 0x2c0   :  { %v2541_v25 = vsel %vm2458_vm7, %v2519_v34, 0.0 }
 0x2c1   :  { %v2491_v40 = vadd.f32 %v2490_v38, %v2489_v42  ;;  %v2542_v24 = vadd.f32 %v2541_v25, %v2540_v49 }
 0x2c3   :  { %v2544_v55 = vadd.f32 %v2543_v39, %v2542_v24  ;;  %v2443_v2 = vpop.f32.mrf.mxu2  ;;  %v2493_v41 = vadd.f32 %v2492_v31, %v2491_v40 }
 0x2c4   :  { %2469 = vst.msk [vmem:[%s3804_s2 + $0x50] sm:$0xff] %vm2458_vm7, %v2443_v2  ;;  %v2522_v0 = vmul.f32 %v2443_v2, %v2443_v2  ;;  %v2494_v44 = vsel %vm2458_vm7, %v2443_v2, 0.0 }
 0x2c5   :  { %v2546_v47 = vadd.f32 %v2545_v43, %v2544_v55  ;;  %v2495_v29 = vadd.f32 %v2494_v44, %v2493_v41 }
 0x2c6   :  { %v2547_v48 = vsel %vm2458_vm7, %v2522_v0, 0.0 }
 0x2c7   :  { %v2548_v10 = vadd.f32 %v2547_v48, %v2546_v47 }
 0x2cb   :  { %v2445_v51 = vpop.f32.mrf.mxu2 }
 0x2cc   :  { %2470 = vst.msk [vmem:[%s3804_s2 + $0x58] sm:$0xff] %vm2458_vm7, %v2445_v51  ;;  %v2496_v36 = vsel %vm2458_vm7, %v2445_v51, 0.0  ;;  %v2523_v21 = vmul.f32 %v2445_v51, %v2445_v51 }
 0x2cd   :  { %v2497_v1 = vadd.f32 %v2496_v36, %v2495_v29 }
 0x2ce   :  { %v2549_v7 = vsel %vm2458_vm7, %v2523_v21, 0.0 }
 0x2cf   :  { %v2499_v63 = vadd.f32 %v2498_v57, %v2497_v1  ;;  %v2550_v4 = vadd.f32 %v2549_v7, %v2548_v10 }
 0x2d1   :  { %v2552_v5 = vadd.f32 %v2551_v61, %v2550_v4  ;;  %v2501_v11 = vadd.f32 %v2500_v12, %v2499_v63 }
 0x2d3   :  { %v2554_v17 = vadd.f32 %v2553_v13, %v2552_v5 }
 0x2e3   :  { %v2453_v59 = vpop.f32.mrf.mxu3 }
 0x2e4   :  { %2473 = vst.msk [vmem:[%s3804_s2 + $0x70] sm:$0xff] %vm2458_vm7, %v2453_v59  ;;  %v2526_v6 = vmul.f32 %v2453_v59, %v2453_v59  ;;  %v2502_v9 = vsel %vm2458_vm7, %v2453_v59, 0.0 }
 0x2e5   :  { %v2503_v14 = vadd.f32 %v2502_v9, %v2501_v11 }
 0x2e6   :  { %v2555_v62 = vsel %vm2458_vm7, %v2526_v6, 0.0 }
 0x2e7   :  { %v2556_v16 = vadd.f32 %v2555_v62, %v2554_v17 }
 0x2eb   :  { %v2455_v50 = vpop.f32.mrf.mxu3 }
 0x2ec   :  { %2474 = vst.msk [vmem:[%s3804_s2 + $0x78] sm:$0xff] %vm2458_vm7, %v2455_v50  ;;  %v2504_v15 = vsel %vm2458_vm7, %v2455_v50, 0.0  ;;  %v2527_v8 = vmul.f32 %v2455_v50, %v2455_v50 }
 0x2ed   :  { %v2505_v53 = vadd.f32 %v2504_v15, %v2503_v14 }
 0x2ee   :  { %v2557_v18 = vsel %vm2458_vm7, %v2527_v8, 0.0 }
 0x2ef   :  { %v2506_v46 = vrot.slane %v2505_v53, 4  ;;  %v2558_v19 = vadd.f32 %v2557_v18, %v2556_v16 }
 0x2f1   :  { %v2507_v22 = vadd.f32 %v2506_v46, %v2505_v53  ;;  %v2559_v45 = vrot.slane %v2558_v19, 4 }
 0x2f3   :  { %v2508_v35 = vrot.slane %v2507_v22, 2  ;;  %v2560_v23 = vadd.f32 %v2559_v45, %v2558_v19 }
 0x2f5   :  { %v2509_v3 = vadd.f32 %v2508_v35, %v2507_v22  ;;  %v2561_v37 = vrot.slane %v2560_v23, 2 }
 0x2f7   :  { %v2510_v26 = vrot.slane %v2509_v3, 1  ;;  %v2562_v27 = vadd.f32 %v2561_v37, %v2560_v23 }
 0x2f9   :  { %v2563_v60 = vrot.slane %v2562_v27, 1  ;;  %v2511_v28 = vadd.f32 %v2510_v26, %v2509_v3 }
 0x2fb   :  { %v2564_v52 = vadd.f32 %v2563_v60, %v2562_v27 }
 0x2fd   :  { %v2566_v30 = vsel %vm2565_vm8, %v2511_v28, %v2564_v52 }
 0x2fe   :  { %2568 = vst.msk [vmem:[%s3805_s3] sm:$0x3] %vm2567_vm9, %v2566_v30 }

// kernel: down_forward.4
= control target key start
LH: loop header
LB: loop body
LE: loop exit
PB: predicated region body
PF: predicated region fallthrough
CT: control target
= control target key end

     0   :  { %vm92_vm0 = vcmask 60416   ;;  %vm94_vm1 = vcmask 57344   ;;  %vm105_vm2 = vsmask.f32 256  ;;  %v2689_v0 = vmov 0   ;;  %s2690_s9 = smov 8   ;;  %s3604_s0 = inlined_call_operand.vmem [shape: f32[2,8,8,8], index: 0, kind: input, shape index: {}]   ;;  %s3605_s1 = inlined_call_operand.vmem [shape: f32[1,8], index: 1, kind: input, shape index: {}]   ;;  %s3606_s2 = inlined_call_operand.vmem [shape: f32[1,8], index: 2, kind: input, shape index: {}]   ;;  %s3607_s3 = inlined_call_operand.vmem [shape: bf16[72,8], index: 3, kind: input, shape index: {}]   ;;  %s3608_s4 = inlined_call_operand.vmem [shape: f32[2,8,8,8], index: 4, kind: output, shape index: {0}]   ;;  %s3609_s5 = inlined_call_operand.vmem [shape: f32[1,2,8], index: 5, kind: output, shape index: {1}]  }
   0x1   :  { %93 = vst.msk [vmem:[#allocation2] sm:$0xf] %vm92_vm0, %v2689_v0  ;;  %vm155_vm3 = vsmask.f32 7938  ;;  %vm2731_vm4 = vmand %vm94_vm1, %vm105_vm2  ;;  %v21_v2 = vld [vmem:[%s3604_s0 + $0x8] sm:$0xff]  ;;  %v20_v3 = vld [vmem:[%s3604_s0] sm:$0xff] }
   0x2   :  { %95 = vst.msk [vmem:[#allocation2 + $0x4] sm:$0x1] %vm94_vm1, %v2689_v0  ;;  %vm2743_vm5 = vmand %vm94_vm1, %vm155_vm3  ;;  %vm543_vm6 = vsmask.f32 3328  ;;  %vm544_vm7 = vsmask.f32 7440 }
   0x3   :  { %96 = vst.msk [vmem:[#allocation2 + $0x50] sm:$0xf] %vm92_vm0, %v2689_v0  ;;  %v2751_v5 = vld [vmem:[%s3605_s1] ss:$0 sm:$0xff]  ;;  %v110_v8 = vld [vmem:[#allocation2 + $0x10] sm:$0x1]  ;;  %vm2793_vm8 = vmor %vm543_vm6, %vm544_vm7 }
   0x4   :  { %97 = vst.msk [vmem:[#allocation2 + $0x54] sm:$0x1] %vm94_vm1, %v2689_v0  ;;  %v2757_v6 = vld [vmem:[%s3606_s2] ss:$0 sm:$0xff]  ;;  %v41_v7 = vmul.f32 %v2751_v5, %v21_v2  ;;  %v160_v9 = vld [vmem:[#allocation2 + $0x14] sm:$0x1]  ;;  %v40_v10 = vmul.f32 %v2751_v5, %v20_v3  ;;  %vm2803_vm9 = vmand %vm92_vm0, %vm155_vm3 }
   0x5   :  { %99 = vst.msk [vmem:[#allocation2 + $0x48] sm:$0xf] %vm92_vm0, %v2689_v0  ;;  %v111_v11 = vsel %vm2731_vm4, 0, %v110_v8  ;;  %v161_v12 = vsel %vm2743_vm5, 0, %v160_v9  ;;  %v107_v13 = vld [vmem:[#allocation2 + $0x8] sm:$0x1] }
   0x6   :  { %100 = vst.msk [vmem:[#allocation2 + $0x4c] sm:$0x1] %vm94_vm1, %v2689_v0  ;;  %v61_v14 = vadd.f32 %v2757_v6, %v41_v7  ;;  %v60_v15 = vadd.f32 %v2757_v6, %v40_v10  ;;  %v108_v16 = vsel %vm2731_vm4, 0, %v107_v13  ;;  %v157_v17 = vld [vmem:[#allocation2 + $0xc] sm:$0x1]  ;;  %v22_v18 = vld [vmem:[%s3604_s0 + $0x10] sm:$0xff] }
   0x7   :  { %101 = vst.msk [vmem:[#allocation2 + $0x98] sm:$0xf] %vm92_vm0, %v2689_v0  ;;  %v158_v20 = vsel %vm2743_vm5, 0, %v157_v17  ;;  %v42_v21 = vmul.f32 %v2751_v5, %v22_v18  ;;  %v25_v22 = vld [vmem:[%s3604_s0 + $0x28] sm:$0xff]  ;;  %v113_v30 = vld [vmem:[#allocation2 + $0x18] sm:$0x1] }
   0x8   :  { %v511_v19 = vld [vmem:[#allocation2] sm:$0xf]  ;;  %102 = vst.msk [vmem:[#allocation2 + $0x9c] sm:$0x1] %vm94_vm1, %v2689_v0  ;;  %v77_v26 = vmax.f32 %v61_v14, 0.0  ;;  %v76_v27 = vmax.f32 %v60_v15, 0.0  ;;  %v45_v31 = vmul.f32 %v2751_v5, %v25_v22 }
   0x9   :  { %v512_v23 = vld [vmem:[#allocation2 + $0x4] sm:$0x1]  ;;  %v547_v24 = vshrl.u32 %v511_v19, 16  ;;  %v550_v25 = vshll.u32 %v511_v19, 16  ;;  %112 = vst [vmem:[#allocation2 + $0x10] sm:$0x1] %v111_v11  ;;  %v62_v29 = vadd.f32 %v2757_v6, %v42_v21 }
   0xa   :  { %v556_v28 = vshll.u32 %v512_v23, 16  ;;  %v26_v32 = vld [vmem:[%s3604_s0 + $0x30] sm:$0xff]  ;;  %162 = vst [vmem:[#allocation2 + $0x14] sm:$0x1] %v161_v12  ;;  %v206_v35 = vpack.c.bf16 %v77_v26, %v77_v26  ;;  %v205_v36 = vpack.c.bf16 %v76_v27, %v76_v27  ;;  %v163_v37 = vld [vmem:[#allocation2 + $0x1c] sm:$0x1]  ;;  %v65_v49 = vadd.f32 %v2757_v6, %v45_v31 }
   0xb   :  { %v549_v33 = vrot.slane %v547_v24, 4  ;;  %v552_v34 = vrot.slane %v550_v25, 5  ;;  %109 = vst [vmem:[#allocation2 + $0x8] sm:$0x1] %v108_v16  ;;  %v78_v39 = vmax.f32 %v62_v29, 0.0  ;;  %v114_v40 = vsel %vm2731_vm4, 0, %v113_v30 }
   0xc   :  { %v558_v38 = vrot.slane %v556_v28, 5  ;;  %v164_v41 = vsel %vm2743_vm5, 0, %v163_v37  ;;  %v230_v43 = vshrl.u32 %v206_v35, 16  ;;  %v233_v44 = vshll.u32 %v206_v35, 16  ;;  %159 = vst [vmem:[#allocation2 + $0xc] sm:$0x1] %v158_v20 }
   0xd   :  { %v553_v42 = vor.u32 %v552_v34, %v549_v33  ;;  %v222_v45 = vshrl.u32 %v205_v36, 16  ;;  %v225_v47 = vshll.u32 %v205_v36, 16  ;;  %115 = vst [vmem:[#allocation2 + $0x18] sm:$0x1] %v114_v40  ;;  %v207_v48 = vpack.c.bf16 %v78_v39, %v78_v39  ;;  %v122_v50 = vld [vmem:[#allocation2 + $0x30] sm:$0x1] }
   0xe   :  { %v46_v51 = vmul.f32 %v2751_v5, %v26_v32  ;;  %v232_v53 = vrot.slane %v230_v43, 7  ;;  %165 = vst [vmem:[#allocation2 + $0x1c] sm:$0x1] %v164_v41  ;;  %v123_v55 = vsel %vm2731_vm4, 0, %v122_v50  ;;  %v81_v59 = vmax.f32 %v65_v49, 0.0  ;;  %v28_v61 = vld [vmem:[%s3604_s0 + $0x40] sm:$0xff] }
   0xf   :  { %v554_v52 = vrot.slane %v553_v42, 4  ;;  %v224_v54 = vrot.slane %v222_v45, 7  ;;  %v238_v57 = vshrl.u32 %v207_v48, 16  ;;  %v241_v58 = vshll.u32 %v207_v48, 16  ;;  %124 = vst [vmem:[#allocation2 + $0x30] sm:$0x1] %v123_v55 }
  0x10   :  { %v66_v60 = vadd.f32 %v2757_v6, %v46_v51  ;;  %v235_v63 = vor.u32 %v233_v44, %v232_v53  ;;  %v236_v0 = vrot.slane %v232_v53, 4  ;;  %v389_v2 = vld [vmem:[#allocation2 + $0x10] sm:$0xf]  ;;  %v172_v7 = vld [vmem:[#allocation2 + $0x34] sm:$0x1]  ;;  %v210_v12 = vpack.c.bf16 %v81_v59, %v81_v59  ;;  %v29_v34 = vld [vmem:[%s3604_s0 + $0x48] sm:$0xff] }
  0x11   :  { %v559_v62 = vsel %vm2793_vm8, %v554_v52, %v558_v38  ;;  %v227_v3 = vor.u32 %v225_v47, %v224_v54  ;;  %v392_v8 = vld [vmem:[#allocation2 + $0x14] sm:$0x1]  ;;  %v228_v9 = vrot.slane %v224_v54, 4  ;;  %v240_v10 = vrot.slane %v238_v57, 7  ;;  %v125_v33 = vld [vmem:[#allocation2 + $0x38] sm:$0x1] }
  0x12   :  { %770 = vrot.lane.b32.xlu0 %v559_v62, %s2690_s9  ;;  %v173_v11 = vsel %vm2743_vm5, 0, %v172_v7  ;;  %v390_v13 = vsel %vm2803_vm9, %v235_v63, %v389_v2  ;;  %v393_v14 = vsel %vm2731_vm4, %v236_v0, %v392_v8  ;;  %v383_v15 = vld [vmem:[#allocation2 + $0x8] sm:$0xf]  ;;  %v82_v16 = vmax.f32 %v66_v60, 0.0  ;;  %v31_v35 = vld [vmem:[%s3604_s0 + $0x58] sm:$0xff]  ;;  %v32_v49 = vld [vmem:[%s3604_s0 + $0x60] sm:$0xff] }
  0x13   :  { %174 = vst [vmem:[#allocation2 + $0x34] sm:$0x1] %v173_v11  ;;  %v48_v17 = vmul.f32 %v2751_v5, %v28_v61  ;;  %v384_v18 = vsel %vm2803_vm9, %v227_v3, %v383_v15  ;;  %v386_v19 = vld [vmem:[#allocation2 + $0xc] sm:$0x1]  ;;  %v243_v20 = vor.u32 %v241_v58, %v240_v10  ;;  %v244_v21 = vrot.slane %v240_v10, 4  ;;  %v23_v48 = vld [vmem:[%s3604_s0 + $0x18] sm:$0xff] }
  0x14   :  { %391 = vst [vmem:[#allocation2 + $0x10] sm:$0xf] %v390_v13  ;;  %v262_v22 = vshrl.u32 %v210_v12, 16  ;;  %v387_v23 = vsel %vm2731_vm4, %v228_v9, %v386_v19  ;;  %v395_v24 = vld [vmem:[#allocation2 + $0x18] sm:$0xf]  ;;  %v265_v25 = vshll.u32 %v210_v12, 16  ;;  %v211_v26 = vpack.c.bf16 %v82_v16, %v82_v16 }
  0x15   :  { %394 = vst [vmem:[#allocation2 + $0x14] sm:$0x1] %v393_v14  ;;  %v68_v27 = vadd.f32 %v2757_v6, %v48_v17  ;;  %v396_v28 = vsel %vm2803_vm9, %v243_v20, %v395_v24  ;;  %v398_v29 = vld [vmem:[#allocation2 + $0x1c] sm:$0x1]  ;;  %v126_v38 = vsel %vm2731_vm4, 0, %v125_v33  ;;  %v49_v58 = vmul.f32 %v2751_v5, %v29_v34  ;;  %s2691_s26 = smov 16  }
  0x16   :  { %385 = vst [vmem:[#allocation2 + $0x8] sm:$0xf] %v384_v18  ;;  %v264_v30 = vrot.slane %v262_v22, 7  ;;  %v399_v31 = vsel %vm2731_vm4, %v244_v21, %v398_v29  ;;  %v413_v32 = vld [vmem:[#allocation2 + $0x30] sm:$0xf]  ;;  %v270_v41 = vshrl.u32 %v211_v26, 16  ;;  %v2854_v59 = vmul.f32 %v2751_v5, %v31_v35 }
  0x17   :  { %388 = vst [vmem:[#allocation2 + $0xc] sm:$0x1] %v387_v23  ;;  %v175_v39 = vld [vmem:[#allocation2 + $0x3c] sm:$0x1]  ;;  %v273_v42 = vshll.u32 %v211_v26, 16  ;;  %v84_v43 = vmax.f32 %v68_v27, 0.0  ;;  %v2859_v13 = vmul.f32 %v2751_v5, %v23_v48  ;;  %v2862_v14 = vmul.f32 %v2751_v5, %v32_v49 }
  0x18   :  { %397 = vst [vmem:[#allocation2 + $0x18] sm:$0xf] %v396_v28  ;;  %v267_v36 = vor.u32 %v265_v25, %v264_v30  ;;  %v268_v37 = vrot.slane %v264_v30, 4  ;;  %v176_v40 = vsel %vm2743_vm5, 0, %v175_v39  ;;  %v131_v47 = vld [vmem:[#allocation2 + $0x58] sm:$0x1] }
  0x19   :  { %400 = vst [vmem:[#allocation2 + $0x1c] sm:$0x1] %v399_v31  ;;  %v272_v52 = vrot.slane %v270_v41, 7  ;;  %v132_v53 = vsel %vm2731_vm4, 0, %v131_v47  ;;  %v2856_v0 = vpack.c.bf16 %v84_v43, %v84_v43  ;;  %v181_v30 = vld [vmem:[#allocation2 + $0x5c] sm:$0x1] }
  0x1a   :  { %v414_v44 = vsel %vm2803_vm9, %v267_v36, %v413_v32  ;;  %v416_v45 = vld [vmem:[#allocation2 + $0x34] sm:$0x1]  ;;  %127 = vst [vmem:[#allocation2 + $0x38] sm:$0x1] %v126_v38  ;;  %vm899_vm10 = vcmask 1042432   ;;  %vm900_vm11 = vcmask 1046532  }
  0x1b   :  { %v515_v50 = vld [vmem:[#allocation2 + $0x10] sm:$0xf]  ;;  %415 = vst [vmem:[#allocation2 + $0x30] sm:$0xf] %v414_v44  ;;  %v417_v51 = vsel %vm2731_vm4, %v268_v37, %v416_v45  ;;  %v275_v62 = vor.u32 %v273_v42, %v272_v52  ;;  %v276_v63 = vrot.slane %v272_v52, 4  ;;  %v286_v24 = vshrl.u32 %v2856_v0, 16  ;;  %vm2996_vm12 = vmor %vm899_vm10, %vm900_vm11 }
  0x1c   :  { %v516_v54 = vld [vmem:[#allocation2 + $0x14] sm:$0x1]  ;;  %v575_v55 = vshrl.u32 %v515_v50, 16  ;;  %v578_v57 = vshll.u32 %v515_v50, 16  ;;  %418 = vst [vmem:[#allocation2 + $0x34] sm:$0x1] %v417_v51 }
  0x1d   :  { %v584_v60 = vshll.u32 %v516_v54, 16  ;;  %v513_v61 = vld [vmem:[#allocation2 + $0x8] sm:$0xf]  ;;  %177 = vst [vmem:[#allocation2 + $0x3c] sm:$0x1] %v176_v40  ;;  %v69_v40 = vadd.f32 %v2757_v6, %v49_v58  ;;  %v182_v50 = vsel %vm2743_vm5, 0, %v181_v30 }
  0x1e   :  { %v577_v2 = vrot.slane %v575_v55, 4  ;;  %v580_v3 = vrot.slane %v578_v57, 5  ;;  %v514_v7 = vld [vmem:[#allocation2 + $0xc] sm:$0x1]  ;;  %v561_v8 = vshrl.u32 %v513_v61, 16  ;;  %v564_v9 = vshll.u32 %v513_v61, 16 }
  0x1f   :  { %v586_v10 = vrot.slane %v584_v60, 5  ;;  %v570_v11 = vshll.u32 %v514_v7, 16  ;;  %v517_v12 = vld [vmem:[#allocation2 + $0x18] sm:$0xf]  ;;  %133 = vst [vmem:[#allocation2 + $0x58] sm:$0x1] %v132_v53  ;;  %v71_v57 = vadd.f32 %v2757_v6, %v2854_v59 }
  0x20   :  { %v581_v15 = vor.u32 %v580_v3, %v577_v2  ;;  %v563_v16 = vrot.slane %v561_v8, 4  ;;  %v566_v17 = vrot.slane %v564_v9, 5  ;;  %v518_v18 = vld [vmem:[#allocation2 + $0x1c] sm:$0x1]  ;;  %v589_v19 = vshrl.u32 %v517_v12, 16  ;;  %s2692_s8 = smov 24  }
  0x21   :  { %v572_v20 = vrot.slane %v570_v11, 5  ;;  %v592_v21 = vshll.u32 %v517_v12, 16  ;;  %v598_v22 = vshll.u32 %v518_v18, 16  ;;  %v419_v23 = vld [vmem:[#allocation2 + $0x38] sm:$0xf]  ;;  %v288_v51 = vrot.slane %v286_v24, 7 }
  0x22   :  { %v582_v25 = vrot.slane %v581_v15, 4  ;;  %v567_v26 = vor.u32 %v566_v17, %v563_v16  ;;  %v591_v27 = vrot.slane %v589_v19, 4  ;;  %v523_v28 = vld [vmem:[#allocation2 + $0x30] sm:$0xf]  ;;  %v420_v29 = vsel %vm2803_vm9, %v275_v62, %v419_v23  ;;  %v528_v47 = vld [vmem:[#allocation2 + $0x54] sm:$0x1] }
  0x23   :  { %v594_v31 = vrot.slane %v592_v21, 5  ;;  %v600_v32 = vrot.slane %v598_v22, 5  ;;  %v524_v33 = vld [vmem:[#allocation2 + $0x34] sm:$0x1]  ;;  %v631_v34 = vshrl.u32 %v523_v28, 16  ;;  %v634_v35 = vshll.u32 %v523_v28, 16 }
  0x24   :  { %v587_v36 = vsel %vm2793_vm8, %v582_v25, %v586_v10  ;;  %v568_v37 = vrot.slane %v567_v26, 4  ;;  %v640_v38 = vshll.u32 %v524_v33, 16  ;;  %421 = vst [vmem:[#allocation2 + $0x38] sm:$0xf] %v420_v29  ;;  %v422_v39 = vld [vmem:[#allocation2 + $0x3c] sm:$0x1]  ;;  %v63_v29 = vadd.f32 %v2757_v6, %v2859_v13 }
  0x25   :  { %774 = vrot.lane.b32.xlu1 %v587_v36, %s2690_s9  ;;  %v595_v41 = vor.u32 %v594_v31, %v591_v27  ;;  %v633_v42 = vrot.slane %v631_v34, 4  ;;  %v636_v43 = vrot.slane %v634_v35, 5  ;;  %v423_v44 = vsel %vm2731_vm4, %v276_v63, %v422_v39  ;;  %v527_v45 = vld [vmem:[#allocation2 + $0x50] sm:$0xf]  ;;  %183 = vst [vmem:[#allocation2 + $0x5c] sm:$0x1] %v182_v50 }
  0x26   :  { %v573_v48 = vsel %vm2793_vm8, %v568_v37, %v572_v20  ;;  %v642_v49 = vrot.slane %v640_v38, 5  ;;  %424 = vst [vmem:[#allocation2 + $0x3c] sm:$0x1] %v423_v44  ;;  %v289_v54 = vshll.u32 %v2856_v0, 16  ;;  %v431_v55 = vld [vmem:[#allocation2 + $0x58] sm:$0xf] }
  0x27   :  { %772 = vrot.lane.b32.xlu0 %v573_v48, %s2690_s9  ;;  %v596_v52 = vrot.slane %v595_v41, 4  ;;  %v637_v53 = vor.u32 %v636_v43, %v633_v42  ;;  %v292_v58 = vrot.slane %v288_v51, 4  ;;  %v659_v60 = vshrl.u32 %v527_v45, 16  ;;  %v134_v63 = vld [vmem:[#allocation2 + $0x60] sm:$0x1]  ;;  %v34_v0 = vld [vmem:[%s3604_s0 + $0x70] sm:$0xff] }
  0x28   :  { %v662_v61 = vshll.u32 %v527_v45, 16  ;;  %v668_v62 = vshll.u32 %v528_v47, 16  ;;  %v291_v7 = vor.u32 %v289_v54, %v288_v51  ;;  %v85_v8 = vmax.f32 %v69_v40, 0.0  ;;  %v184_v9 = vld [vmem:[#allocation2 + $0x64] sm:$0x1]  ;;  %s2694_s10 = smov 40  }
  0x29   :  { %v601_v2 = vsel %vm2793_vm8, %v596_v52, %v600_v32  ;;  %v638_v3 = vrot.slane %v637_v53, 4  ;;  %v661_v10 = vrot.slane %v659_v60, 4  ;;  %v135_v59 = vsel %vm2731_vm4, 0, %v134_v63  ;;  %v140_v15 = vld [vmem:[#allocation2 + $0x70] sm:$0x1]  ;;  %s2695_s11 = smov 48  }
  0x2a   :  { %v664_v11 = vrot.slane %v662_v61, 5  ;;  %v670_v12 = vrot.slane %v668_v62, 5  ;;  %v190_v16 = vld [vmem:[#allocation2 + $0x74] sm:$0x1]  ;;  %v432_v19 = vsel %vm2803_vm9, %v291_v7, %v431_v55  ;;  %136 = vst [vmem:[#allocation2 + $0x60] sm:$0x1] %v135_v59  ;;  %v214_v21 = vpack.c.bf16 %v85_v8, %v85_v8 }
  0x2b   :  { %v643_v17 = vsel %vm2793_vm8, %v638_v3, %v642_v49  ;;  %v525_v18 = vld [vmem:[#allocation2 + $0x38] sm:$0xf]  ;;  %v185_v20 = vsel %vm2743_vm5, 0, %v184_v9  ;;  %433 = vst [vmem:[#allocation2 + $0x58] sm:$0xf] %v432_v19  ;;  %v87_v25 = vmax.f32 %v71_v57, 0.0  ;;  %v54_v30 = vmul.f32 %v2751_v5, %v34_v0 }
  0x2c   :  { %v645_v22 = vshrl.u32 %v525_v18, 16  ;;  %v648_v23 = vshll.u32 %v525_v18, 16  ;;  %v665_v24 = vor.u32 %v664_v11, %v661_v10  ;;  %186 = vst [vmem:[#allocation2 + $0x64] sm:$0x1] %v185_v20  ;;  %v294_v27 = vshrl.u32 %v214_v21, 16  ;;  %v24_v55 = vld [vmem:[%s3604_s0 + $0x20] sm:$0xff] }
  0x2d   :  { %776 = vrot.lane.b32.xlu1 %v601_v2, %s2690_s9  ;;  %v526_v26 = vld [vmem:[#allocation2 + $0x3c] sm:$0x1]  ;;  %v297_v28 = vshll.u32 %v214_v21, 16  ;;  %v141_v38 = vsel %vm2731_vm4, 0, %v140_v15  ;;  %v191_v39 = vsel %vm2743_vm5, 0, %v190_v16  ;;  %v216_v43 = vpack.c.bf16 %v87_v25, %v87_v25  ;;  %s2696_s12 = smov 56  }
  0x2e   :  { %v647_v31 = vrot.slane %v645_v22, 4  ;;  %v650_v32 = vrot.slane %v648_v23, 5  ;;  %v654_v33 = vshll.u32 %v526_v26, 16  ;;  %v434_v34 = vld [vmem:[#allocation2 + $0x5c] sm:$0x1]  ;;  %v666_v35 = vrot.slane %v665_v24, 4 }
  0x2f   :  { %782 = vrot.lane.b32.xlu0 %v643_v17, %s2690_s9  ;;  %v435_v36 = vsel %vm2731_vm4, %v292_v58, %v434_v34  ;;  %v296_v37 = vrot.slane %v294_v27, 7  ;;  %v116_v13 = vld [vmem:[#allocation2 + $0x20] sm:$0x1]  ;;  %v166_v44 = vld [vmem:[#allocation2 + $0x24] sm:$0x1]  ;;  %v79_v48 = vmax.f32 %v63_v29, 0.0  ;;  %v72_v53 = vadd.f32 %v2757_v6, %v2862_v14 }
  0x30   :  { %v651_v40 = vor.u32 %v650_v32, %v647_v31  ;;  %v656_v41 = vrot.slane %v654_v33, 5  ;;  %436 = vst [vmem:[#allocation2 + $0x5c] sm:$0x1] %v435_v36  ;;  %v671_v42 = vsel %vm2793_vm8, %v666_v35, %v670_v12  ;;  %v117_v49 = vsel %vm2731_vm4, 0, %v116_v13  ;;  %v143_v19 = vld [vmem:[#allocation2 + $0x78] sm:$0x1] }
  0x31   :  { %786 = vrot.lane.b32.xlu2 %v671_v42, %s2690_s9  ;;  %v299_v45 = vor.u32 %v297_v28, %v296_v37  ;;  %v300_v47 = vrot.slane %v296_v37, 4  ;;  %142 = vst [vmem:[#allocation2 + $0x70] sm:$0x1] %v141_v38  ;;  %v437_v51 = vld [vmem:[#allocation2 + $0x60] sm:$0xf]  ;;  %v310_v52 = vshrl.u32 %v216_v43, 16  ;;  %v74_v54 = vadd.f32 %v2757_v6, %v54_v30 }
  0x32   :  { %v652_v50 = vrot.slane %v651_v40, 4  ;;  %192 = vst [vmem:[#allocation2 + $0x74] sm:$0x1] %v191_v39  ;;  %v529_v57 = vld [vmem:[#allocation2 + $0x58] sm:$0xf]  ;;  %v313_v60 = vshll.u32 %v216_v43, 16  ;;  %v208_v62 = vpack.c.bf16 %v79_v48, %v79_v48  ;;  %v44_v20 = vmul.f32 %v2751_v5, %v24_v55 }
  0x33   :  { %v438_v58 = vsel %vm2803_vm9, %v299_v45, %v437_v51  ;;  %118 = vst [vmem:[#allocation2 + $0x20] sm:$0x1] %v117_v49  ;;  %v167_v61 = vsel %vm2743_vm5, 0, %v166_v44  ;;  %v673_v14 = vshrl.u32 %v529_v57, 16  ;;  %v676_v2 = vshll.u32 %v529_v57, 16  ;;  %s2697_s13 = smov 64  }
  0x34   :  { %v657_v63 = vsel %vm2793_vm8, %v652_v50, %v656_v41  ;;  %439 = vst [vmem:[#allocation2 + $0x60] sm:$0xf] %v438_v58  ;;  %v440_v3 = vld [vmem:[#allocation2 + $0x64] sm:$0x1]  ;;  %v312_v8 = vrot.slane %v310_v52, 7  ;;  %v246_v9 = vshrl.u32 %v208_v62, 16  ;;  %v64_v49 = vadd.f32 %v2757_v6, %v44_v20 }
  0x35   :  { %784 = vrot.lane.b32.xlu1 %v657_v63, %s2690_s9  ;;  %v441_v7 = vsel %vm2731_vm4, %v300_v47, %v440_v3  ;;  %168 = vst [vmem:[#allocation2 + $0x24] sm:$0x1] %v167_v61  ;;  %v249_v0 = vshll.u32 %v208_v62, 16  ;;  %v675_v10 = vrot.slane %v673_v14, 4  ;;  %v678_v11 = vrot.slane %v676_v2, 5  ;;  %v30_v14 = vld [vmem:[%s3604_s0 + $0x50] sm:$0xff] }
  0x36   :  { %442 = vst [vmem:[#allocation2 + $0x64] sm:$0x1] %v441_v7  ;;  %v88_v12 = vmax.f32 %v72_v53, 0.0  ;;  %v90_v59 = vmax.f32 %v74_v54, 0.0  ;;  %v315_v16 = vor.u32 %v313_v60, %v312_v8  ;;  %v316_v17 = vrot.slane %v312_v8, 4 }
  0x37   :  { %v530_v15 = vld [vmem:[#allocation2 + $0x5c] sm:$0x1]  ;;  %v248_v18 = vrot.slane %v246_v9, 7  ;;  %v679_v21 = vor.u32 %v678_v11, %v675_v10  ;;  %v144_v24 = vsel %vm2731_vm4, 0, %v143_v19  ;;  %v149_v54 = vld [vmem:[#allocation2 + $0x88] sm:$0x1] }
  0x38   :  { %v682_v22 = vshll.u32 %v530_v15, 16  ;;  %v449_v23 = vld [vmem:[#allocation2 + $0x70] sm:$0xf]  ;;  %v193_v25 = vld [vmem:[#allocation2 + $0x7c] sm:$0x1]  ;;  %v217_v26 = vpack.c.bf16 %v88_v12, %v88_v12  ;;  %v219_v36 = vpack.c.bf16 %v90_v59, %v90_v59  ;;  %v150_v63 = vsel %vm2731_vm4, 0, %v149_v54 }
  0x39   :  { %v450_v27 = vsel %vm2803_vm9, %v315_v16, %v449_v23  ;;  %v452_v28 = vld [vmem:[#allocation2 + $0x74] sm:$0x1]  ;;  %v251_v29 = vor.u32 %v249_v0, %v248_v18  ;;  %v252_v30 = vrot.slane %v248_v18, 4  ;;  %145 = vst [vmem:[#allocation2 + $0x78] sm:$0x1] %v144_v24  ;;  %v194_v31 = vsel %vm2743_vm5, 0, %v193_v25 }
  0x3a   :  { %v680_v32 = vrot.slane %v679_v21, 4  ;;  %v684_v33 = vrot.slane %v682_v22, 5  ;;  %451 = vst [vmem:[#allocation2 + $0x70] sm:$0xf] %v450_v27  ;;  %v453_v34 = vsel %vm2731_vm4, %v316_v17, %v452_v28  ;;  %v401_v35 = vld [vmem:[#allocation2 + $0x20] sm:$0xf]  ;;  %v50_v18 = vmul.f32 %v2751_v5, %v30_v14 }
  0x3b   :  { %v531_v37 = vld [vmem:[#allocation2 + $0x60] sm:$0xf]  ;;  %454 = vst [vmem:[#allocation2 + $0x74] sm:$0x1] %v453_v34  ;;  %v402_v38 = vsel %vm2803_vm9, %v251_v29, %v401_v35  ;;  %v318_v39 = vshrl.u32 %v217_v26, 16  ;;  %v321_v13 = vshll.u32 %v217_v26, 16 }
  0x3c   :  { %v685_v40 = vsel %vm2793_vm8, %v680_v32, %v684_v33  ;;  %v687_v41 = vshrl.u32 %v531_v37, 16  ;;  %v690_v42 = vshll.u32 %v531_v37, 16  ;;  %403 = vst [vmem:[#allocation2 + $0x20] sm:$0xf] %v402_v38  ;;  %v404_v43 = vld [vmem:[#allocation2 + $0x24] sm:$0x1] }
  0x3d   :  { %788 = vrot.lane.b32.xlu0 %v685_v40, %s2690_s9  ;;  %v532_v44 = vld [vmem:[#allocation2 + $0x64] sm:$0x1]  ;;  %v405_v45 = vsel %vm2731_vm4, %v252_v30, %v404_v43  ;;  %195 = vst [vmem:[#allocation2 + $0x7c] sm:$0x1] %v194_v31  ;;  %v320_v47 = vrot.slane %v318_v39, 7  ;;  %v334_v48 = vshrl.u32 %v219_v36, 16  ;;  %v70_v40 = vadd.f32 %v2757_v6, %v50_v18 }
  0x3e   :  { %v689_v50 = vrot.slane %v687_v41, 4  ;;  %v692_v51 = vrot.slane %v690_v42, 5  ;;  %v696_v52 = vshll.u32 %v532_v44, 16  ;;  %406 = vst [vmem:[#allocation2 + $0x24] sm:$0x1] %v405_v45  ;;  %v337_v57 = vshll.u32 %v219_v36, 16 }
  0x3f   :  { %v323_v53 = vor.u32 %v321_v13, %v320_v47  ;;  %v199_v55 = vld [vmem:[#allocation2 + $0x8c] sm:$0x1]  ;;  %v324_v61 = vrot.slane %v320_v47, 4  ;;  %151 = vst [vmem:[#allocation2 + $0x88] sm:$0x1] %v150_v63  ;;  %v2949_v7 = vrot.slane %v334_v48, 7 }
  0x40   :  { %v693_v58 = vor.u32 %v692_v51, %v689_v50  ;;  %v698_v60 = vrot.slane %v696_v52, 5  ;;  %v455_v62 = vld [vmem:[#allocation2 + $0x78] sm:$0xf]  ;;  %v80_v8 = vmax.f32 %v64_v49, 0.0  ;;  %v200_v12 = vsel %vm2743_vm5, 0, %v199_v55  ;;  %v33_v45 = vld [vmem:[%s3604_s0 + $0x68] sm:$0xff] }
  0x41   :  { %v535_v2 = vld [vmem:[#allocation2 + $0x70] sm:$0xf]  ;;  %v456_v3 = vsel %vm2803_vm9, %v323_v53, %v455_v62  ;;  %v340_v16 = vrot.slane %v2949_v7, 4  ;;  %201 = vst [vmem:[#allocation2 + $0x8c] sm:$0x1] %v200_v12  ;;  %v339_v28 = vor.u32 %v337_v57, %v2949_v7  ;;  %v86_v54 = vmax.f32 %v70_v40, 0.0 }
  0x42   :  { %v694_v9 = vrot.slane %v693_v58, 4  ;;  %v536_v0 = vld [vmem:[#allocation2 + $0x74] sm:$0x1]  ;;  %v715_v10 = vshrl.u32 %v535_v2, 16  ;;  %v718_v11 = vshll.u32 %v535_v2, 16  ;;  %v209_v17 = vpack.c.bf16 %v80_v8, %v80_v8 }
  0x43   :  { %v724_v59 = vshll.u32 %v536_v0, 16  ;;  %v519_v15 = vld [vmem:[#allocation2 + $0x20] sm:$0xf]  ;;  %457 = vst [vmem:[#allocation2 + $0x78] sm:$0xf] %v456_v3  ;;  %v53_v55 = vmul.f32 %v2751_v5, %v33_v45  ;;  %v215_v8 = vpack.c.bf16 %v86_v54, %v86_v54  ;;  %vm818_vm13 = vcmask 126016  }
  0x44   :  { %v699_v19 = vsel %vm2793_vm8, %v694_v9, %v698_v60  ;;  %v717_v20 = vrot.slane %v715_v10, 4  ;;  %v720_v21 = vrot.slane %v718_v11, 5  ;;  %v603_v22 = vshrl.u32 %v519_v15, 16  ;;  %v458_v23 = vld [vmem:[#allocation2 + $0x7c] sm:$0x1] }
  0x45   :  { %790 = vrot.lane.b32.xlu1 %v699_v19, %s2690_s9  ;;  %v726_v24 = vrot.slane %v724_v59, 5  ;;  %v520_v25 = vld [vmem:[#allocation2 + $0x24] sm:$0x1]  ;;  %v606_v26 = vshll.u32 %v519_v15, 16  ;;  %v459_v27 = vsel %vm2731_vm4, %v324_v61, %v458_v23  ;;  %v119_v32 = vld [vmem:[#allocation2 + $0x28] sm:$0x1] }
  0x46   :  { %v721_v29 = vor.u32 %v720_v21, %v717_v20  ;;  %v605_v30 = vrot.slane %v603_v22, 4  ;;  %v612_v31 = vshll.u32 %v520_v25, 16  ;;  %460 = vst [vmem:[#allocation2 + $0x7c] sm:$0x1] %v459_v27  ;;  %v120_v34 = vsel %vm2731_vm4, 0, %v119_v32 }
  0x47   :  { %v608_v33 = vrot.slane %v606_v26, 5  ;;  %v169_v35 = vld [vmem:[#allocation2 + $0x2c] sm:$0x1]  ;;  %v254_v36 = vshrl.u32 %v209_v17, 16  ;;  %v257_v37 = vshll.u32 %v209_v17, 16  ;;  %v73_v17 = vadd.f32 %v2757_v6, %v53_v55 }
  0x48   :  { %v722_v38 = vrot.slane %v721_v29, 4  ;;  %v614_v39 = vrot.slane %v612_v31, 5  ;;  %v467_v13 = vld [vmem:[#allocation2 + $0x88] sm:$0xf]  ;;  %121 = vst [vmem:[#allocation2 + $0x28] sm:$0x1] %v120_v34 }
  0x49   :  { %v609_v41 = vor.u32 %v608_v33, %v605_v30  ;;  %v468_v42 = vsel %vm2803_vm9, %v339_v28, %v467_v13  ;;  %v170_v43 = vsel %vm2743_vm5, 0, %v169_v35  ;;  %v256_v44 = vrot.slane %v254_v36, 7  ;;  %v470_v52 = vld [vmem:[#allocation2 + $0x8c] sm:$0x1]  ;;  %v137_v7 = vld [vmem:[#allocation2 + $0x68] sm:$0x1] }
  0x4a   :  { %v727_v47 = vsel %vm2793_vm8, %v722_v38, %v726_v24  ;;  %v537_v48 = vld [vmem:[#allocation2 + $0x78] sm:$0xf]  ;;  %469 = vst [vmem:[#allocation2 + $0x88] sm:$0xf] %v468_v42  ;;  %v471_v62 = vsel %vm2731_vm4, %v340_v16, %v470_v52  ;;  %v187_v5 = vld [vmem:[#allocation2 + $0x6c] sm:$0x1] }
  0x4b   :  { %794 = vrot.lane.b32.xlu0 %v727_v47, %s2690_s9  ;;  %v610_v49 = vrot.slane %v609_v41, 4  ;;  %v729_v50 = vshrl.u32 %v537_v48, 16  ;;  %v732_v51 = vshll.u32 %v537_v48, 16  ;;  %171 = vst [vmem:[#allocation2 + $0x2c] sm:$0x1] %v170_v43  ;;  %v259_v53 = vor.u32 %v257_v37, %v256_v44 }
  0x4c   :  { %472 = vst [vmem:[#allocation2 + $0x8c] sm:$0x1] %v471_v62  ;;  %v260_v14 = vrot.slane %v256_v44, 4  ;;  %v835_v10 = vld [vmem:[#allocation2] sm:$0xe]  ;;  %v138_v12 = vsel %vm2731_vm4, 0, %v137_v7 }
  0x4d   :  { %v615_v57 = vsel %vm2793_vm8, %v610_v49, %v614_v39  ;;  %v538_v58 = vld [vmem:[#allocation2 + $0x7c] sm:$0x1]  ;;  %v731_v60 = vrot.slane %v729_v50, 4  ;;  %v734_v61 = vrot.slane %v732_v51, 5  ;;  %v836_v11 = vld [vmem:[#allocation2 + $0x4] sm:$0x1] }
  0x4e   :  { %778 = vrot.lane.b32.xlu2 %v615_v57, %s2690_s9  ;;  %v738_v63 = vshll.u32 %v538_v58, 16  ;;  %v188_v16 = vsel %vm2743_vm5, 0, %v187_v5  ;;  %139 = vst [vmem:[#allocation2 + $0x68] sm:$0x1] %v138_v12  ;;  %v302_v23 = vshrl.u32 %v215_v8, 16  ;;  %v305_v24 = vshll.u32 %v215_v8, 16 }
  0x4f   :  { %v735_v2 = vor.u32 %v734_v61, %v731_v60  ;;  %v407_v3 = vld [vmem:[#allocation2 + $0x28] sm:$0xf]  ;;  %189 = vst [vmem:[#allocation2 + $0x6c] sm:$0x1] %v188_v16  ;;  %v146_v25 = vld [vmem:[#allocation2 + $0x80] sm:$0x1] }
  0x50   :  { %v740_v9 = vrot.slane %v738_v63, 5  ;;  %v408_v0 = vsel %vm2803_vm9, %v259_v53, %v407_v3  ;;  %v2543_v6 = vrot.slane %v835_v10, 9  ;;  %v904_v29 = vrot.slane %v836_v11, 5  ;;  %v196_v36 = vld [vmem:[#allocation2 + $0x84] sm:$0x1] }
  0x51   :  { %v736_v59 = vrot.slane %v735_v2, 4  ;;  %v541_v15 = vld [vmem:[#allocation2 + $0x88] sm:$0xf]  ;;  %409 = vst [vmem:[#allocation2 + $0x28] sm:$0xf] %v408_v0  ;;  %v304_v30 = vrot.slane %v302_v23, 7 }
  0x52   :  { %v757_v18 = vshrl.u32 %v541_v15, 16  ;;  %v760_v19 = vshll.u32 %v541_v15, 16  ;;  %v410_v20 = vld [vmem:[#allocation2 + $0x2c] sm:$0x1]  ;;  %v89_v31 = vmax.f32 %v73_v17, 0.0  ;;  %v147_v32 = vsel %vm2731_vm4, 0, %v146_v25 }
  0x53   :  { %v741_v21 = vsel %vm2793_vm8, %v736_v59, %v740_v9  ;;  %v411_v22 = vsel %vm2731_vm4, %v260_v14, %v410_v20  ;;  %v542_v28 = vld [vmem:[#allocation2 + $0x8c] sm:$0x1]  ;;  %148 = vst [vmem:[#allocation2 + $0x80] sm:$0x1] %v147_v32  ;;  %v839_v37 = vld [vmem:[#allocation2 + $0x10] sm:$0xe]  ;;  %v307_v39 = vor.u32 %v305_v24, %v304_v30  ;;  %v905_v50 = vsel %vm2996_vm12, %v2543_v6, %v904_v29 }
  0x54   :  { %796 = vrot.lane.b32.xlu1 %v741_v21, %s2690_s9  ;;  %v759_v26 = vrot.slane %v757_v18, 4  ;;  %v762_v27 = vrot.slane %v760_v19, 5  ;;  %412 = vst [vmem:[#allocation2 + $0x2c] sm:$0x1] %v411_v22  ;;  %v766_v34 = vshll.u32 %v542_v28, 16  ;;  %v308_v13 = vrot.slane %v304_v30, 4 }
  0x55   :  { %v840_v38 = vld [vmem:[#allocation2 + $0x14] sm:$0x1]  ;;  %v197_v40 = vsel %vm2743_vm5, 0, %v196_v36  ;;  %v218_v41 = vpack.c.bf16 %v89_v31, %v89_v31  ;;  %v841_v45 = vld [vmem:[#allocation2 + $0x18] sm:$0xe]  ;;  %v2545_v14 = vrot.slane %v839_v37, 9 }
  0x56   :  { %v763_v33 = vor.u32 %v762_v27, %v759_v26  ;;  %v768_v43 = vrot.slane %v766_v34, 5  ;;  %v842_v47 = vld [vmem:[#allocation2 + $0x1c] sm:$0x1]  ;;  %v443_v51 = vld [vmem:[#allocation2 + $0x68] sm:$0xf]  ;;  %v912_v2 = vrot.slane %v840_v38, 5 }
  0x57   :  { %v326_v52 = vshrl.u32 %v218_v41, 16  ;;  %v444_v54 = vsel %vm2803_vm9, %v307_v39, %v443_v51  ;;  %v446_v55 = vld [vmem:[#allocation2 + $0x6c] sm:$0x1]  ;;  %198 = vst [vmem:[#allocation2 + $0x84] sm:$0x1] %v197_v40  ;;  %v329_v57 = vshll.u32 %v218_v41, 16 }
  0x58   :  { %v764_v42 = vrot.slane %v763_v33, 4  ;;  %v521_v44 = vld [vmem:[#allocation2 + $0x28] sm:$0xf]  ;;  %445 = vst [vmem:[#allocation2 + $0x68] sm:$0xf] %v444_v54  ;;  %v447_v62 = vsel %vm2731_vm4, %v308_v13, %v446_v55  ;;  %v2546_v5 = vrot.slane %v841_v45, 9  ;;  %v913_v59 = vsel %vm2996_vm12, %v2545_v14, %v912_v2 }
  0x59   :  { %v617_v48 = vshrl.u32 %v521_v44, 16  ;;  %v620_v49 = vshll.u32 %v521_v44, 16  ;;  %448 = vst [vmem:[#allocation2 + $0x6c] sm:$0x1] %v447_v62  ;;  %v328_v3 = vrot.slane %v326_v52, 7  ;;  %v916_v8 = vrot.slane %v842_v47, 5 }
  0x5a   :  { %v769_v53 = vsel %vm2793_vm8, %v764_v42, %v768_v43  ;;  %v461_v9 = vld [vmem:[#allocation2 + $0x80] sm:$0xf]  ;;  %v845_v15 = vld [vmem:[#allocation2 + $0x28] sm:$0xe]  ;;  %v847_v23 = vld [vmem:[#allocation2 + $0x30] sm:$0xe] }
  0x5b   :  { %800 = vrot.lane.b32.xlu0 %v769_v53, %s2690_s9  ;;  %v522_v58 = vld [vmem:[#allocation2 + $0x2c] sm:$0x1]  ;;  %v619_v60 = vrot.slane %v617_v48, 4  ;;  %v622_v61 = vrot.slane %v620_v49, 5  ;;  %v331_v10 = vor.u32 %v329_v57, %v328_v3  ;;  %v332_v11 = vrot.slane %v328_v3, 4  ;;  %v27_v34 = vld [vmem:[%s3604_s0 + $0x38] sm:$0xff] }
  0x5c   :  { %v626_v63 = vshll.u32 %v522_v58, 16  ;;  %966 = vrot.lane.b32.xlu1 %v905_v50, %s2691_s26  ;;  %v917_v18 = vsel %vm2996_vm12, %v2546_v5, %v916_v8  ;;  %v846_v19 = vld [vmem:[#allocation2 + $0x2c] sm:$0x1]  ;;  %v848_v24 = vld [vmem:[#allocation2 + $0x34] sm:$0x1]  ;;  %v2548_v28 = vrot.slane %v845_v15, 9 }
  0x5d   :  { %v623_v7 = vor.u32 %v622_v61, %v619_v60  ;;  %v462_v16 = vsel %vm2803_vm9, %v331_v10, %v461_v9  ;;  %v924_v29 = vrot.slane %v846_v19, 5  ;;  %v2549_v32 = vrot.slane %v847_v23, 9  ;;  %v2685_v38 = vld [vmem:[%s3605_s1] ss:$0 sm:$0xff]  ;;  %v851_v41 = vld [vmem:[#allocation2 + $0x50] sm:$0xe] }
  0x5e   :  { %v628_v0 = vrot.slane %v626_v63, 5  ;;  %463 = vst [vmem:[#allocation2 + $0x80] sm:$0xf] %v462_v16  ;;  %v464_v20 = vld [vmem:[#allocation2 + $0x84] sm:$0x1]  ;;  %v928_v33 = vrot.slane %v848_v24, 5  ;;  %v47_v39 = vmul.f32 %v2685_v38, %v27_v34 }
  0x5f   :  { %v624_v12 = vrot.slane %v623_v7, 4  ;;  %v533_v21 = vld [vmem:[#allocation2 + $0x68] sm:$0xf]  ;;  %v465_v22 = vsel %vm2731_vm4, %v332_v11, %v464_v20  ;;  %v925_v13 = vsel %vm2996_vm12, %v2548_v28, %v924_v29  ;;  %v852_v42 = vld [vmem:[#allocation2 + $0x54] sm:$0x1]  ;;  %v2551_v58 = vrot.slane %v851_v41, 9 }
  0x60   :  { %v534_v25 = vld [vmem:[#allocation2 + $0x6c] sm:$0x1]  ;;  %v701_v26 = vshrl.u32 %v533_v21, 16  ;;  %v704_v27 = vshll.u32 %v533_v21, 16  ;;  %466 = vst [vmem:[#allocation2 + $0x84] sm:$0x1] %v465_v22  ;;  %v929_v47 = vsel %vm2996_vm12, %v2549_v32, %v928_v33 }
  0x61   :  { %v629_v17 = vsel %vm2793_vm8, %v624_v12, %v628_v0  ;;  %v710_v6 = vshll.u32 %v534_v25, 16  ;;  %v853_v48 = vld [vmem:[#allocation2 + $0x58] sm:$0xe]  ;;  %v854_v50 = vld [vmem:[#allocation2 + $0x5c] sm:$0x1]  ;;  %v936_v60 = vrot.slane %v852_v42, 5 }
  0x62   :  { %780 = vrot.lane.b32.xlu2 %v629_v17, %s2690_s9  ;;  %v703_v30 = vrot.slane %v701_v26, 4  ;;  %v706_v31 = vrot.slane %v704_v27, 5  ;;  %v2686_v51 = vld [vmem:[%s3606_s2] ss:$0 sm:$0xff]  ;;  %v2552_v61 = vrot.slane %v853_v48, 9  ;;  %v940_v14 = vrot.slane %v854_v50, 5 }
  0x63   :  { %970 = vrot.lane.b32.xlu0 %v913_v59, %s2691_s26  ;;  %v712_v37 = vrot.slane %v710_v6, 5  ;;  %v67_v52 = vadd.f32 %v2686_v51, %v47_v39  ;;  %v128_v3 = vld [vmem:[#allocation2 + $0x40] sm:$0x1]  ;;  %v937_v9 = vsel %vm2996_vm12, %v2551_v58, %v936_v60  ;;  %v837_v0 = vld [vmem:[#allocation2 + $0x8] sm:$0xe]  ;;  %vm1014_vm14 = vcmask 191616  }
  0x64   :  { %972 = vrot.lane.b32.xlu1 %v917_v18, %s2691_s26  ;;  %v707_v36 = vor.u32 %v706_v31, %v703_v30  ;;  %v129_v5 = vsel %vm2731_vm4, 0, %v128_v3  ;;  %v941_v11 = vsel %vm2996_vm12, %v2552_v61, %v940_v14  ;;  %v857_v12 = vld [vmem:[#allocation2 + $0x68] sm:$0xe]  ;;  %v858_v59 = vld [vmem:[#allocation2 + $0x6c] sm:$0x1]  ;;  %v2544_v21 = vrot.slane %v837_v0, 9 }
  0x65   :  { %v539_v40 = vld [vmem:[#allocation2 + $0x80] sm:$0xf]  ;;  %v83_v2 = vmax.f32 %v67_v52, 0.0  ;;  %130 = vst [vmem:[#allocation2 + $0x40] sm:$0x1] %v129_v5  ;;  %v2554_v22 = vrot.slane %v857_v12, 9 }
  0x66   :  { %v708_v43 = vrot.slane %v707_v36, 4  ;;  %v743_v44 = vshrl.u32 %v539_v40, 16  ;;  %v746_v45 = vshll.u32 %v539_v40, 16  ;;  %v838_v17 = vld [vmem:[#allocation2 + $0xc] sm:$0x1]  ;;  %v948_v23 = vrot.slane %v858_v59, 5 }
  0x67   :  { %v540_v49 = vld [vmem:[#allocation2 + $0x84] sm:$0x1]  ;;  %v212_v8 = vpack.c.bf16 %v83_v2, %v83_v2  ;;  %v859_v18 = vld [vmem:[#allocation2 + $0x70] sm:$0xe]  ;;  %v860_v19 = vld [vmem:[#allocation2 + $0x74] sm:$0x1] }
  0x68   :  { %v713_v53 = vsel %vm2793_vm8, %v708_v43, %v712_v37  ;;  %v745_v54 = vrot.slane %v743_v44, 4  ;;  %v748_v55 = vrot.slane %v746_v45, 5  ;;  %v752_v57 = vshll.u32 %v540_v49, 16  ;;  %v843_v29 = vld [vmem:[#allocation2 + $0x20] sm:$0xe] }
  0x69   :  { %v278_v15 = vshrl.u32 %v212_v8, 16  ;;  %v281_v16 = vshll.u32 %v212_v8, 16  ;;  %v908_v24 = vrot.slane %v838_v17, 5  ;;  %v2555_v25 = vrot.slane %v859_v18, 9  ;;  %v863_v33 = vld [vmem:[#allocation2 + $0x80] sm:$0xe] }
  0x6a   :  { %792 = vrot.lane.b32.xlu2 %v713_v53, %s2690_s9  ;;  %v749_v62 = vor.u32 %v748_v55, %v745_v54  ;;  %v754_v63 = vrot.slane %v752_v57, 5  ;;  %v952_v26 = vrot.slane %v860_v19, 5  ;;  %v949_v28 = vsel %vm2996_vm12, %v2554_v22, %v948_v23  ;;  %v864_v34 = vld [vmem:[#allocation2 + $0x84] sm:$0x1]  ;;  %v865_v37 = vld [vmem:[#allocation2 + $0x88] sm:$0xe] }
  0x6b   :  { %976 = vrot.lane.b32.xlu0 %v925_v13, %s2691_s26  ;;  %v3052_v20 = vrot.slane %v278_v15, 7  ;;  %v909_v31 = vsel %vm2996_vm12, %v2544_v21, %v908_v24  ;;  %v844_v36 = vld [vmem:[#allocation2 + $0x24] sm:$0x1]  ;;  %v866_v38 = vld [vmem:[#allocation2 + $0x8c] sm:$0x1]  ;;  %v2557_v39 = vrot.slane %v863_v33, 9 }
  0x6c   :  { %978 = vrot.lane.b32.xlu1 %v929_v47, %s2691_s26  ;;  %v750_v7 = vrot.slane %v749_v62, 4  ;;  %v425_v6 = vld [vmem:[#allocation2 + $0x40] sm:$0xf]  ;;  %v953_v32 = vsel %vm2996_vm12, %v2555_v25, %v952_v26  ;;  %v960_v13 = vrot.slane %v864_v34, 5  ;;  %v2547_v40 = vrot.slane %v843_v29, 9 }
  0x6d   :  { %v283_v27 = vor.u32 %v281_v16, %v3052_v20  ;;  %v920_v41 = vrot.slane %v844_v36, 5  ;;  %v2558_v42 = vrot.slane %v865_v37, 9  ;;  %v964_v43 = vrot.slane %v866_v38, 5  ;;  %v849_v48 = vld [vmem:[#allocation2 + $0x38] sm:$0xe] }
  0x6e   :  { %v755_v10 = vsel %vm2793_vm8, %v750_v7, %v754_v63  ;;  %v961_v44 = vsel %vm2996_vm12, %v2557_v39, %v960_v13  ;;  %v850_v49 = vld [vmem:[#allocation2 + $0x3c] sm:$0x1]  ;;  %v479_v50 = vld [vmem:[#allocation2] sm:$0xf]  ;;  %v2550_v51 = vrot.slane %v849_v48, 9  ;;  %vm1111_vm15 = vcmask 257216  }
  0x6f   :  { %v426_v30 = vsel %vm2803_vm9, %v283_v27, %v425_v6  ;;  %v921_v45 = vsel %vm2996_vm12, %v2547_v40, %v920_v41  ;;  %v965_v47 = vsel %vm2996_vm12, %v2558_v42, %v964_v43  ;;  %v932_v52 = vrot.slane %v850_v49, 5  ;;  %495 = vst.msk [vmem:[#allocation3] sm:$0xf] %vm92_vm0, %v479_v50  ;;  %v1032_v54 = vld [vmem:[#allocation2 + $0x10] sm:$0xf] }
  0x70   :  { %427 = vst [vmem:[#allocation2 + $0x40] sm:$0xf] %v426_v30  ;;  %v1033_v57 = vld [vmem:[#allocation2 + $0x18] sm:$0xf]  ;;  %v855_v58 = vld [vmem:[#allocation2 + $0x60] sm:$0xe] }
  0x71   :  { %v933_v55 = vsel %vm2996_vm12, %v2550_v51, %v932_v52  ;;  %v856_v60 = vld [vmem:[#allocation2 + $0x64] sm:$0x1]  ;;  %v487_v61 = vld [vmem:[#allocation2 + $0x50] sm:$0xf]  ;;  %v2553_v63 = vrot.slane %v855_v58, 9  ;;  %vm1432_vm1 = vcmask 322816  }
  0x72   :  { %798 = vrot.lane.b32.xlu2 %v755_v10, %s2690_s9  ;;  %v481_v62 = vld [vmem:[#allocation2 + $0x10] sm:$0xf]  ;;  %v944_v14 = vrot.slane %v856_v60, 5  ;;  %503 = vst.msk [vmem:[#allocation3 + $0x20] sm:$0xf] %vm92_vm0, %v487_v61  ;;  %s2693_s9 = smov 32  }
  0x73   :  { %982 = vrot.lane.b32.xlu0 %v937_v9, %s2691_s26  ;;  %v480_v3 = vld [vmem:[#allocation2 + $0x8] sm:$0xf]  ;;  %497 = vst.msk [vmem:[#allocation3 + $0x8] sm:$0xf] %vm92_vm0, %v481_v62  ;;  %v1036_v8 = vld [vmem:[#allocation2 + $0x30] sm:$0xf] }
  0x74   :  { %984 = vrot.lane.b32.xlu1 %v941_v11, %s2691_s26  ;;  %v1035_v7 = vld [vmem:[#allocation2 + $0x28] sm:$0xf]  ;;  %496 = vst.msk [vmem:[#allocation3 + $0x4] sm:$0xf] %vm92_vm0, %v480_v3  ;;  %v945_v5 = vsel %vm2996_vm12, %v2553_v63, %v944_v14  ;;  %v861_v9 = vld [vmem:[#allocation2 + $0x78] sm:$0xe] }
  0x75   :  { %v862_v0 = vld [vmem:[#allocation2 + $0x7c] sm:$0x1]  ;;  %v483_v10 = vld [vmem:[#allocation2 + $0x20] sm:$0xf]  ;;  %v482_v11 = vld [vmem:[#allocation2 + $0x18] sm:$0xf] }
  0x76   :  { %v485_v12 = vld [vmem:[#allocation2 + $0x30] sm:$0xf]  ;;  %v2556_v59 = vrot.slane %v861_v9, 9  ;;  %v956_v15 = vrot.slane %v862_v0, 5  ;;  %499 = vst.msk [vmem:[#allocation3 + $0x10] sm:$0xf] %vm92_vm0, %v483_v10 }
  0x77   :  { %498 = vst.msk [vmem:[#allocation3 + $0xc] sm:$0xf] %vm92_vm0, %v482_v11  ;;  %v1038_v17 = vld [vmem:[#allocation2 + $0x40] sm:$0xf]  ;;  %v1039_v19 = vld [vmem:[#allocation2 + $0x58] sm:$0xf] }
  0x78   :  { %501 = vst.msk [vmem:[#allocation3 + $0x18] sm:$0xf] %vm92_vm0, %v485_v12  ;;  %v957_v18 = vsel %vm2996_vm12, %v2556_v59, %v956_v15  ;;  %v1130_v22 = vld [vmem:[#allocation2 + $0x10] sm:$0xf]  ;;  %v484_v23 = vld [vmem:[#allocation2 + $0x28] sm:$0xf] }
  0x79   :  { %500 = vst.msk [vmem:[#allocation3 + $0x14] sm:$0xf] %vm92_vm0, %v484_v23  ;;  %v486_v24 = vld [vmem:[#allocation2 + $0x38] sm:$0xf]  ;;  %v1041_v27 = vld [vmem:[#allocation2 + $0x68] sm:$0xf] }
  0x7a   :  { %968 = vrot.lane.b32.xlu2 %v909_v31, %s2691_s26  ;;  %v488_v25 = vld [vmem:[#allocation2 + $0x58] sm:$0xf]  ;;  %502 = vst.msk [vmem:[#allocation3 + $0x1c] sm:$0xf] %vm92_vm0, %v486_v24  ;;  %v1175_v6 = vshrl.u32 %v1130_v22, 16  ;;  %vm1625_vm2 = vcmask 388416  }
  0x7b   :  { %988 = vrot.lane.b32.xlu0 %v949_v28, %s2691_s26  ;;  %504 = vst.msk [vmem:[#allocation3 + $0x24] sm:$0xf] %vm92_vm0, %v488_v25  ;;  %v1178_v28 = vshll.u32 %v1130_v22, 16  ;;  %v1031_v29 = vld [vmem:[#allocation2 + $0x8] sm:$0xf]  ;;  %vm1723_vm3 = vcmask 454016  }
  0x7c   :  { %990 = vrot.lane.b32.xlu1 %v953_v32, %s2691_s26  ;;  %v1042_v30 = vld [vmem:[#allocation2 + $0x70] sm:$0xf]  ;;  %v1177_v32 = vrot.slane %v1175_v6, 4  ;;  %v490_v34 = vld [vmem:[#allocation2 + $0x68] sm:$0xf]  ;;  %vm2044_vm6 = vcmask 519616  }
  0x7d   :  { %v1180_v33 = vrot.slane %v1178_v28, 5  ;;  %v1131_v36 = vld [vmem:[#allocation2 + $0x14] sm:$0x1]  ;;  %506 = vst.msk [vmem:[#allocation3 + $0x2c] sm:$0xf] %vm92_vm0, %v490_v34  ;;  %vm2237_vm7 = vcmask 585216  }
  0x7e   :  { %v489_v37 = vld [vmem:[#allocation2 + $0x60] sm:$0xf]  ;;  %v491_v39 = vld [vmem:[#allocation2 + $0x70] sm:$0xf]  ;;  %v1184_v41 = vshll.u32 %v1131_v36, 16  ;;  %vm2346_vm10 = vcmask 588800  }
  0x7f   :  { %505 = vst.msk [vmem:[#allocation3 + $0x28] sm:$0xf] %vm92_vm0, %v489_v37  ;;  %v1044_v13 = vld [vmem:[#allocation2 + $0x80] sm:$0xf]  ;;  %v1181_v40 = vor.u32 %v1180_v33, %v1177_v32  ;;  %v1742_v50 = vld [vmem:[#allocation2 + $0x18] sm:$0xf] }
  0x80   :  { %v1034_v43 = vld [vmem:[#allocation2 + $0x20] sm:$0xf]  ;;  %507 = vst.msk [vmem:[#allocation3 + $0x30] sm:$0xf] %vm92_vm0, %v491_v39  ;;  %v1186_v49 = vrot.slane %v1184_v41, 5  ;;  %v1790_v58 = vshll.u32 %v1742_v50, 16 }
  0x81   :  { %v1182_v48 = vrot.slane %v1181_v40, 4  ;;  %v493_v51 = vld [vmem:[#allocation2 + $0x80] sm:$0xf]  ;;  %v494_v60 = vld [vmem:[#allocation2 + $0x88] sm:$0xf] }
  0x82   :  { %974 = vrot.lane.b32.xlu2 %v921_v45, %s2691_s26  ;;  %v1449_v45 = vld [vmem:[#allocation2 + $0x8] sm:$0xe]  ;;  %509 = vst.msk [vmem:[#allocation3 + $0x38] sm:$0xf] %vm92_vm0, %v493_v51  ;;  %v1037_v62 = vld [vmem:[#allocation2 + $0x38] sm:$0xf] }
  0x83   :  { %994 = vrot.lane.b32.xlu0 %v961_v44, %s2691_s26  ;;  %v1045_v44 = vld [vmem:[#allocation2 + $0x88] sm:$0xf]  ;;  %v2559_v52 = vrot.slane %v1449_v45, 9  ;;  %v1187_v61 = vsel %vm2793_vm8, %v1182_v48, %v1186_v49  ;;  %510 = vst.msk [vmem:[#allocation3 + $0x3c] sm:$0xf] %vm92_vm0, %v494_v60 }
  0x84   :  { %996 = vrot.lane.b32.xlu1 %v965_v47, %s2691_s26  ;;  %v771_v53 = vpop.permute.xlu0 %770  ;;  %v1450_v47 = vld [vmem:[#allocation2 + $0xc] sm:$0x1]  ;;  %v1743_v3 = vld [vmem:[#allocation2 + $0x1c] sm:$0x1]  ;;  %v1643_v9 = vld [vmem:[#allocation2 + $0x10] sm:$0xf] }
  0x85   :  { %819 = vst.msk [vmem:[#allocation3] sm:$0xf] %vm818_vm13, %v771_v53  ;;  %v1515_v53 = vrot.slane %v1450_v47, 5  ;;  %v1796_v10 = vshll.u32 %v1743_v3, 16  ;;  %v2061_v22 = vld [vmem:[#allocation2 + $0x10] sm:$0xe] }
  0x86   :  { %v2062_v23 = vld [vmem:[#allocation2 + $0x14] sm:$0x1]  ;;  %v2575_v36 = vrot.slane %v2061_v22, 9  ;;  %v1144_v39 = vld [vmem:[#allocation2 + $0x58] sm:$0xf] }
  0x87   :  { %v1516_v63 = vsel %vm2996_vm12, %v2559_v52, %v1515_v53  ;;  %v1798_v25 = vrot.slane %v1796_v10, 5  ;;  %v2127_v37 = vrot.slane %v2062_v23, 5  ;;  %v1043_v47 = vld [vmem:[#allocation2 + $0x78] sm:$0xf]  ;;  %v1273_v49 = vshrl.u32 %v1144_v39, 16 }
  0x89   :  { %v2128_v48 = vsel %vm2996_vm12, %v2575_v36, %v2127_v37 }
  0x8a   :  { %980 = vrot.lane.b32.xlu2 %v933_v55, %s2691_s26 }
  0x8b   :  { %1065 = vrot.lane.b32.xlu0 %v1032_v54, %s2692_s8  ;;  %v787_v2 = vpop.permute.xlu2 %786  ;;  %v492_v54 = vld [vmem:[#allocation2 + $0x78] sm:$0xf] }
  0x8c   :  { %1067 = vrot.lane.b32.xlu1 %v1033_v57, %s2692_s8  ;;  %827 = vst.msk [vmem:[#allocation3 + $0x20] sm:$0xf] %vm818_vm13, %v787_v2  ;;  %v1787_v57 = vshrl.u32 %v1742_v50, 16  ;;  %v1792_v2 = vrot.slane %v1790_v58, 5  ;;  %v1276_v50 = vshll.u32 %v1144_v39, 16  ;;  %v1275_v58 = vrot.slane %v1273_v49, 4 }
  0x8d   :  { %508 = vst.msk [vmem:[#allocation3 + $0x34] sm:$0xf] %vm92_vm0, %v492_v54  ;;  %vm2371_vm0 = vcmask 1043456  }
  0x8e   :  { %v1789_v14 = vrot.slane %v1787_v57, 4  ;;  %v1278_v60 = vrot.slane %v1276_v50, 5  ;;  %v1648_v50 = vld [vmem:[#allocation2 + $0x38] sm:$0xf] }
  0x90   :  { %v1793_v0 = vor.u32 %v1792_v2, %v1789_v14  ;;  %v1740_v14 = vld [vmem:[#allocation2 + $0x10] sm:$0xf]  ;;  %v1279_v10 = vor.u32 %v1278_v60, %v1275_v58 }
  0x91   :  { %v1451_v2 = vld [vmem:[#allocation2 + $0x10] sm:$0xe] }
  0x92   :  { %986 = vrot.lane.b32.xlu2 %v945_v5, %s2691_s26  ;;  %v1136_v5 = vld [vmem:[#allocation2 + $0x28] sm:$0xf]  ;;  %v1794_v24 = vrot.slane %v1793_v0, 4  ;;  %v1460_v0 = vld [vmem:[#allocation2 + $0x34] sm:$0x1] }
  0x93   :  { %1071 = vrot.lane.b32.xlu0 %v1035_v7, %s2692_s8  ;;  %v1128_v7 = vld [vmem:[#allocation2 + $0x8] sm:$0xf]  ;;  %v1217_v15 = vshrl.u32 %v1136_v5, 16 }
  0x94   :  { %1073 = vrot.lane.b32.xlu1 %v1036_v8, %s2692_s8  ;;  %v1138_v8 = vld [vmem:[#allocation2 + $0x30] sm:$0xf]  ;;  %v1161_v12 = vshrl.u32 %v1128_v7, 16  ;;  %v1164_v59 = vshll.u32 %v1128_v7, 16 }
  0x96   :  { %v1166_v6 = vrot.slane %v1164_v59, 5  ;;  %v1776_v59 = vshll.u32 %v1740_v14, 16 }
  0x97   :  { %v775_v16 = vpop.permute.xlu1 %774 }
  0x98   :  { %821 = vst.msk [vmem:[#allocation3 + $0x8] sm:$0xf] %vm818_vm13, %v775_v16  ;;  %v1220_v16 = vshll.u32 %v1136_v5, 16 }
  0x99   :  { %v773_v21 = vpop.permute.xlu0 %772 }
  0x9a   :  { %820 = vst.msk [vmem:[#allocation3 + $0x4] sm:$0xf] %vm818_vm13, %v773_v21  ;;  %992 = vrot.lane.b32.xlu2 %v957_v18, %s2691_s26  ;;  %v1234_v18 = vshll.u32 %v1138_v8, 16  ;;  %v1644_v21 = vld [vmem:[#allocation2 + $0x18] sm:$0xf] }
  0x9b   :  { %1077 = vrot.lane.b32.xlu0 %v1038_v17, %s2692_s8  ;;  %v1231_v17 = vshrl.u32 %v1138_v8, 16  ;;  %v1452_v8 = vld [vmem:[#allocation2 + $0x14] sm:$0x1] }
  0x9c   :  { %1079 = vrot.lane.b32.xlu1 %v1039_v19, %s2692_s8  ;;  %v1040_v19 = vld [vmem:[#allocation2 + $0x60] sm:$0xf]  ;;  %v1236_v33 = vrot.slane %v1234_v18, 5  ;;  %v1535_v18 = vrot.slane %v1460_v0, 5 }
  0x9d   :  { %v1233_v32 = vrot.slane %v1231_v17, 4 }
  0x9f   :  { %v777_v26 = vpop.permute.xlu1 %776 }
  0xa0   :  { %822 = vst.msk [vmem:[#allocation3 + $0xc] sm:$0xf] %vm818_vm13, %v777_v26  ;;  %v1129_v26 = vld [vmem:[#allocation2 + $0xc] sm:$0x1] }
  0xa1   :  { %v783_v31 = vpop.permute.xlu0 %782  ;;  %v1170_v41 = vshll.u32 %v1129_v26, 16 }
  0xa2   :  { %825 = vst.msk [vmem:[#allocation3 + $0x18] sm:$0xf] %vm818_vm13, %v783_v31  ;;  %1063 = vrot.lane.b32.xlu2 %v1031_v29, %s2692_s8  ;;  %v1137_v29 = vld [vmem:[#allocation2 + $0x2c] sm:$0x1]  ;;  %v1222_v31 = vrot.slane %v1220_v16, 5  ;;  %v1519_v16 = vrot.slane %v1452_v8, 5 }
  0xa3   :  { %1083 = vrot.lane.b32.xlu0 %v1041_v27, %s2692_s8  ;;  %v1163_v27 = vrot.slane %v1161_v12, 4  ;;  %v1172_v52 = vrot.slane %v1170_v41, 5  ;;  %v1773_v12 = vshrl.u32 %v1740_v14, 16  ;;  %v1146_v14 = vld [vmem:[#allocation2 + $0x60] sm:$0xf] }
  0xa4   :  { %1085 = vrot.lane.b32.xlu1 %v1042_v30, %s2692_s8  ;;  %v1219_v30 = vrot.slane %v1217_v15, 4  ;;  %v2560_v15 = vrot.slane %v1451_v2, 9  ;;  %v1756_v2 = vld [vmem:[#allocation2 + $0x60] sm:$0xf]  ;;  %v1457_v8 = vld [vmem:[#allocation2 + $0x28] sm:$0xe] }
  0xa5   :  { %v1167_v40 = vor.u32 %v1166_v6, %v1163_v27  ;;  %v1775_v23 = vrot.slane %v1773_v12, 4  ;;  %v1741_v6 = vld [vmem:[#allocation2 + $0x14] sm:$0x1]  ;;  %v1287_v0 = vshrl.u32 %v1146_v14, 16  ;;  %v1888_v12 = vshll.u32 %v1756_v2, 16 }
  0xa7   :  { %v785_v38 = vpop.permute.xlu1 %784  ;;  %v1168_v51 = vrot.slane %v1167_v40, 4  ;;  %v1749_v40 = vld [vmem:[#allocation2 + $0x34] sm:$0x1] }
  0xa8   :  { %v779_v42 = vpop.permute.xlu2 %778  ;;  %826 = vst.msk [vmem:[#allocation3 + $0x1c] sm:$0xf] %vm818_vm13, %v785_v38  ;;  %v1139_v38 = vld [vmem:[#allocation2 + $0x34] sm:$0x1] }
  0xa9   :  { %823 = vst.msk [vmem:[#allocation3 + $0x10] sm:$0xf] %vm818_vm13, %v779_v42  ;;  %v1223_v42 = vor.u32 %v1222_v31, %v1219_v30  ;;  %v1240_v45 = vshll.u32 %v1139_v38, 16  ;;  %v1173_v3 = vsel %vm2793_vm8, %v1168_v51, %v1172_v52  ;;  %v1520_v31 = vsel %vm2996_vm12, %v2560_v15, %v1519_v16  ;;  %v1467_v51 = vld [vmem:[#allocation2 + $0x60] sm:$0xe] }
  0xaa   :  { %1069 = vrot.lane.b32.xlu2 %v1034_v43, %s2692_s8  ;;  %v1226_v43 = vshll.u32 %v1137_v29, 16  ;;  %v1468_v52 = vld [vmem:[#allocation2 + $0x64] sm:$0x1] }
  0xab   :  { %1089 = vrot.lane.b32.xlu0 %v1044_v13, %s2692_s8  ;;  %v1799_v13 = vsel %vm2793_vm8, %v1794_v24, %v1798_v25  ;;  %v1224_v53 = vrot.slane %v1223_v42, 4  ;;  %v1242_v57 = vrot.slane %v1240_v45, 5  ;;  %v1778_v24 = vrot.slane %v1776_v59, 5  ;;  %v1748_v25 = vld [vmem:[#allocation2 + $0x30] sm:$0xf] }
  0xac   :  { %1091 = vrot.lane.b32.xlu1 %v1045_v44, %s2692_s8  ;;  %v1237_v44 = vor.u32 %v1236_v33, %v1233_v32  ;;  %v1228_v54 = vrot.slane %v1226_v43, 5  ;;  %v1829_v29 = vshrl.u32 %v1748_v25, 16  ;;  %v1832_v30 = vshll.u32 %v1748_v25, 16  ;;  %v1647_v43 = vld [vmem:[#allocation2 + $0x30] sm:$0xf] }
  0xad   :  { %v1779_v33 = vor.u32 %v1778_v24, %v1775_v23  ;;  %v2064_v45 = vld [vmem:[#allocation2 + $0x1c] sm:$0x1]  ;;  %v2563_v59 = vrot.slane %v1457_v8, 9  ;;  %v1147_v24 = vld [vmem:[#allocation2 + $0x64] sm:$0x1] }
  0xae   :  { %v1229_v7 = vsel %vm2793_vm8, %v1224_v53, %v1228_v54  ;;  %v1831_v36 = vrot.slane %v1829_v29, 4  ;;  %v1834_v37 = vrot.slane %v1832_v30, 5  ;;  %v2131_v54 = vrot.slane %v2064_v45, 5  ;;  %v1757_v25 = vld [vmem:[#allocation2 + $0x64] sm:$0x1] }
  0xaf   :  { %v789_v55 = vpop.permute.xlu0 %788  ;;  %v1780_v39 = vrot.slane %v1779_v33, 4  ;;  %v1296_v29 = vshll.u32 %v1147_v24, 16  ;;  %v2071_v30 = vld [vmem:[#allocation2 + $0x38] sm:$0xe]  ;;  %v1894_v33 = vshll.u32 %v1757_v25, 16 }
  0xb0   :  { %828 = vst.msk [vmem:[#allocation3 + $0x24] sm:$0xf] %vm818_vm13, %v789_v55  ;;  %v1238_v55 = vrot.slane %v1237_v44, 4  ;;  %v2063_v44 = vld [vmem:[#allocation2 + $0x18] sm:$0xe] }
  0xb1   :  { %v2576_v53 = vrot.slane %v2063_v44, 9  ;;  %v2077_v45 = vld [vmem:[#allocation2 + $0x60] sm:$0xe] }
  0xb2   :  { %1075 = vrot.lane.b32.xlu2 %v1037_v62, %s2692_s8  ;;  %v1243_v5 = vsel %vm2793_vm8, %v1238_v55, %v1242_v57  ;;  %v2568_v55 = vrot.slane %v1467_v51, 9  ;;  %v1551_v57 = vrot.slane %v1468_v52, 5 }
  0xb3   :  { %1386 = vrot.lane.b32.xlu0 %v1187_v61, %s2693_s9 }
  0xb4   :  { %1577 = vrot.lane.b32.xlu1 %v1516_v63, %s2694_s10  ;;  %v1145_v63 = vld [vmem:[#allocation2 + $0x5c] sm:$0x1] }
  0xb7   :  { %v791_v11 = vpop.permute.xlu1 %790 }
  0xb8   :  { %829 = vst.msk [vmem:[#allocation3 + $0x28] sm:$0xf] %vm818_vm13, %v791_v11  ;;  %v1282_v11 = vshll.u32 %v1145_v63, 16 }
  0xba   :  { %1081 = vrot.lane.b32.xlu2 %v1040_v19, %s2692_s8  ;;  %v1284_v22 = vrot.slane %v1282_v11, 5  ;;  %v1885_v11 = vshrl.u32 %v1756_v2, 16  ;;  %v1751_v2 = vld [vmem:[#allocation2 + $0x3c] sm:$0x1] }
  0xbb   :  { %1675 = vrot.lane.b32.xlu0 %v1643_v9, %s2695_s11  ;;  %v1459_v9 = vld [vmem:[#allocation2 + $0x30] sm:$0xe] }
  0xbc   :  { %v781_v28 = vpop.permute.xlu2 %780  ;;  %1677 = vrot.lane.b32.xlu1 %v1644_v21, %s2695_s11  ;;  %v2564_v17 = vrot.slane %v1459_v9, 9  ;;  %v1280_v21 = vrot.slane %v1279_v10, 4  ;;  %v1458_v9 = vld [vmem:[#allocation2 + $0x2c] sm:$0x1]  ;;  %v1290_v10 = vshll.u32 %v1146_v14, 16 }
  0xbd   :  { %824 = vst.msk [vmem:[#allocation3 + $0x14] sm:$0xf] %vm818_vm13, %v781_v28  ;;  %v795_v34 = vpop.permute.xlu0 %794  ;;  %v1531_v15 = vrot.slane %v1458_v9, 5 }
  0xbe   :  { %831 = vst.msk [vmem:[#allocation3 + $0x30] sm:$0xf] %vm818_vm13, %v795_v34  ;;  %v1536_v28 = vsel %vm2996_vm12, %v2564_v17, %v1535_v18  ;;  %v1285_v32 = vsel %vm2793_vm8, %v1280_v21, %v1284_v22  ;;  %v1782_v34 = vshll.u32 %v1741_v6, 16  ;;  %v1289_v17 = vrot.slane %v1287_v0, 4  ;;  %v1652_v6 = vld [vmem:[#allocation2 + $0x68] sm:$0xf] }
  0xbf   :  { %v1292_v18 = vrot.slane %v1290_v10, 5  ;;  %v1890_v21 = vrot.slane %v1888_v12, 5  ;;  %v1135_v12 = vld [vmem:[#allocation2 + $0x24] sm:$0x1] }
  0xc0   :  { %v1212_v24 = vshll.u32 %v1135_v12, 16  ;;  %v1746_v12 = vld [vmem:[#allocation2 + $0x28] sm:$0xf] }
  0xc2   :  { %1087 = vrot.lane.b32.xlu2 %v1043_v47, %s2692_s8  ;;  %v1835_v47 = vor.u32 %v1834_v37, %v1831_v36  ;;  %v1750_v37 = vld [vmem:[#allocation2 + $0x38] sm:$0xf] }
  0xc3   :  { %1998 = vrot.lane.b32.xlu0 %v1799_v13, %s2696_s12  ;;  %v1784_v13 = vrot.slane %v1782_v34, 5  ;;  %v2580_v34 = vrot.slane %v2071_v30, 9 }
  0xc4   :  { %2189 = vrot.lane.b32.xlu1 %v2128_v48, %s2697_s13  ;;  %v793_v61 = vpop.permute.xlu2 %792  ;;  %v1838_v48 = vshll.u32 %v1749_v40, 16  ;;  %v1836_v58 = vrot.slane %v1835_v47, 4  ;;  %v1843_v47 = vshrl.u32 %v1750_v37, 16 }
  0xc5   :  { %830 = vst.msk [vmem:[#allocation3 + $0x2c] sm:$0xf] %vm818_vm13, %v793_v61  ;;  %v1785_v49 = vsel %vm2793_vm8, %v1780_v39, %v1784_v13  ;;  %v1298_v13 = vrot.slane %v1296_v29, 5  ;;  %v1454_v29 = vld [vmem:[#allocation2 + $0x1c] sm:$0x1] }
  0xc6   :  { %v797_v62 = vpop.permute.xlu1 %796  ;;  %v1840_v60 = vrot.slane %v1838_v48, 5  ;;  %v1846_v48 = vshll.u32 %v1750_v37, 16  ;;  %v1153_v37 = vld [vmem:[#allocation2 + $0x7c] sm:$0x1] }
  0xc7   :  { %832 = vst.msk [vmem:[#allocation3 + $0x34] sm:$0xf] %vm818_vm13, %v797_v62 }
  0xc8   :  { %v1848_v14 = vrot.slane %v1846_v48, 5  ;;  %v1338_v48 = vshll.u32 %v1153_v37, 16 }
  0xca   :  { %1384 = vrot.lane.b32.xlu2 %v1173_v3, %s2693_s9  ;;  %v2132_v3 = vsel %vm2996_vm12, %v2576_v53, %v2131_v54 }
  0xcb   :  { %1392 = vrot.lane.b32.xlu0 %v1229_v7, %s2693_s9  ;;  %v1552_v7 = vsel %vm2996_vm12, %v2568_v55, %v1551_v57  ;;  %v1465_v55 = vld [vmem:[#allocation2 + $0x58] sm:$0xe]  ;;  %v1466_v57 = vld [vmem:[#allocation2 + $0x5c] sm:$0x1] }
  0xcc   :  { %1394 = vrot.lane.b32.xlu1 %v1243_v5, %s2693_s9  ;;  %v799_v26 = vpop.permute.xlu2 %798  ;;  %v1841_v5 = vsel %vm2793_vm8, %v1836_v58, %v1840_v60  ;;  %v2079_v58 = vld [vmem:[#allocation2 + $0x68] sm:$0xe]  ;;  %v2080_v60 = vld [vmem:[#allocation2 + $0x6c] sm:$0x1]  ;;  %v2567_v9 = vrot.slane %v1465_v55, 9  ;;  %v1547_v0 = vrot.slane %v1466_v57, 5 }
  0xcd   :  { %v801_v19 = vpop.permute.xlu0 %800  ;;  %833 = vst.msk [vmem:[#allocation3 + $0x38] sm:$0xf] %vm818_vm13, %v799_v26  ;;  %v1532_v26 = vsel %vm2996_vm12, %v2563_v59, %v1531_v15  ;;  %v2584_v10 = vrot.slane %v2079_v58, 9  ;;  %v2070_v55 = vld [vmem:[#allocation2 + $0x34] sm:$0x1] }
  0xce   :  { %834 = vst.msk [vmem:[#allocation3 + $0x3c] sm:$0xf] %vm818_vm13, %v801_v19  ;;  %v967_v27 = vpop.permute.xlu1 %966  ;;  %v1887_v19 = vrot.slane %v1885_v11, 4  ;;  %v2163_v11 = vrot.slane %v2080_v60, 5  ;;  %v1548_v25 = vsel %vm2996_vm12, %v2567_v9, %v1547_v0  ;;  %v1132_v9 = vld [vmem:[#allocation2 + $0x18] sm:$0xf] }
  0xcf   :  { %1015 = vst.msk [vmem:[#allocation3] sm:$0xf] %vm1014_vm14, %v967_v27  ;;  %v1651_v27 = vld [vmem:[#allocation2 + $0x60] sm:$0xf] }
  0xd0   :  { %v1744_v0 = vld [vmem:[#allocation2 + $0x20] sm:$0xf] }
  0xd2   :  { %1579 = vrot.lane.b32.xlu2 %v1520_v31, %s2694_s10  ;;  %v2072_v31 = vld [vmem:[#allocation2 + $0x3c] sm:$0x1] }
  0xd3   :  { %1587 = vrot.lane.b32.xlu0 %v1536_v28, %s2694_s10  ;;  %v1293_v28 = vor.u32 %v1292_v18, %v1289_v17  ;;  %v2147_v36 = vrot.slane %v2072_v31, 5  ;;  %v1852_v18 = vshll.u32 %v1751_v2, 16  ;;  %v2143_v2 = vrot.slane %v2070_v55, 5  ;;  %v2278_v55 = vld [vmem:[%s3607_s3 + $0x20] sm:$0xf] }
  0xd4   :  { %1400 = vrot.lane.b32.xlu1 %v1285_v32, %s2693_s9  ;;  %v969_v41 = vpop.permute.xlu2 %968  ;;  %v1891_v32 = vor.u32 %v1890_v21, %v1887_v19 }
  0xd5   :  { %v971_v38 = vpop.permute.xlu0 %970  ;;  %1016 = vst.msk [vmem:[#allocation3 + $0x4] sm:$0xf] %vm1014_vm14, %v969_v41  ;;  %v1294_v39 = vrot.slane %v1293_v28, 4  ;;  %v1896_v41 = vrot.slane %v1894_v33, 5  ;;  %v1453_v28 = vld [vmem:[#allocation2 + $0x18] sm:$0xe] }
  0xd6   :  { %1017 = vst.msk [vmem:[#allocation3 + $0x8] sm:$0xf] %vm1014_vm14, %v971_v38  ;;  %v973_v42 = vpop.permute.xlu1 %972  ;;  %v1892_v40 = vrot.slane %v1891_v32, 4  ;;  %v1854_v31 = vrot.slane %v1852_v18, 5  ;;  %v1192_v18 = vshll.u32 %v1132_v9, 16 }
  0xd7   :  { %1018 = vst.msk [vmem:[#allocation3 + $0xc] sm:$0xf] %vm1014_vm14, %v973_v42  ;;  %v1134_v42 = vld [vmem:[#allocation2 + $0x20] sm:$0xf]  ;;  %v1299_v53 = vsel %vm2793_vm8, %v1294_v39, %v1298_v13  ;;  %v2561_v13 = vrot.slane %v1453_v28, 9 }
  0xd8   :  { %v1203_v51 = vshrl.u32 %v1134_v42, 16  ;;  %v1206_v52 = vshll.u32 %v1134_v42, 16  ;;  %v1897_v54 = vsel %vm2793_vm8, %v1892_v40, %v1896_v41  ;;  %v1523_v40 = vrot.slane %v1454_v29, 5  ;;  %v1133_v29 = vld [vmem:[#allocation2 + $0x1c] sm:$0x1] }
  0xda   :  { %1996 = vrot.lane.b32.xlu2 %v1785_v49, %s2696_s12  ;;  %v2148_v49 = vsel %vm2996_vm12, %v2580_v34, %v2147_v36  ;;  %v1214_v36 = vrot.slane %v1212_v24, 5  ;;  %v1815_v24 = vshrl.u32 %v1746_v12, 16 }
  0xdb   :  { %1683 = vrot.lane.b32.xlu0 %v1647_v43, %s2695_s11 }
  0xdc   :  { %1685 = vrot.lane.b32.xlu1 %v1648_v50, %s2695_s11  ;;  %v975_v62 = vpop.permute.xlu2 %974  ;;  %v2078_v50 = vld [vmem:[#allocation2 + $0x64] sm:$0x1] }
  0xdd   :  { %v977_v61 = vpop.permute.xlu0 %976  ;;  %1019 = vst.msk [vmem:[#allocation3 + $0x10] sm:$0xf] %vm1014_vm14, %v975_v62  ;;  %v2159_v62 = vrot.slane %v2078_v50, 5 }
  0xde   :  { %1020 = vst.msk [vmem:[#allocation3 + $0x14] sm:$0xf] %vm1014_vm14, %v977_v61  ;;  %v979_v63 = vpop.permute.xlu1 %978  ;;  %v2583_v61 = vrot.slane %v2077_v45, 9  ;;  %v1155_v45 = vld [vmem:[#allocation2 + $0x84] sm:$0x1] }
  0xdf   :  { %1021 = vst.msk [vmem:[#allocation3 + $0x18] sm:$0xf] %vm1014_vm14, %v979_v63  ;;  %v1845_v63 = vrot.slane %v1843_v47, 4  ;;  %v1352_v58 = vshll.u32 %v1155_v45, 16  ;;  %v1646_v45 = vld [vmem:[#allocation2 + $0x28] sm:$0xf] }
  0xe1   :  { %v1849_v17 = vor.u32 %v1848_v14, %v1845_v63 }
  0xe2   :  { %2191 = vrot.lane.b32.xlu2 %v2132_v3, %s2697_s13  ;;  %v1205_v3 = vrot.slane %v1203_v51, 4 }
  0xe3   :  { %1595 = vrot.lane.b32.xlu0 %v1552_v7, %s2694_s10  ;;  %v1208_v7 = vrot.slane %v1206_v52, 5  ;;  %v1850_v30 = vrot.slane %v1849_v17, 4  ;;  %v1189_v17 = vshrl.u32 %v1132_v9, 16  ;;  %v1455_v9 = vld [vmem:[#allocation2 + $0x20] sm:$0xe] }
  0xe4   :  { %2004 = vrot.lane.b32.xlu1 %v1841_v5, %s2696_s12  ;;  %v981_v22 = vpop.permute.xlu2 %980  ;;  %v1152_v5 = vld [vmem:[#allocation2 + $0x78] sm:$0xf] }
  0xe5   :  { %v983_v16 = vpop.permute.xlu0 %982  ;;  %1022 = vst.msk [vmem:[#allocation3 + $0x1c] sm:$0xf] %vm1014_vm14, %v981_v22  ;;  %v1329_v19 = vshrl.u32 %v1152_v5, 16  ;;  %v1332_v21 = vshll.u32 %v1152_v5, 16  ;;  %v2160_v22 = vsel %vm2996_vm12, %v2583_v61, %v2159_v62  ;;  %v1855_v52 = vsel %vm2793_vm8, %v1850_v30, %v1854_v31 }
  0xe6   :  { %1023 = vst.msk [vmem:[#allocation3 + $0x20] sm:$0xf] %vm1014_vm14, %v983_v16  ;;  %v985_v23 = vpop.permute.xlu1 %984  ;;  %v1154_v16 = vld [vmem:[#allocation2 + $0x80] sm:$0xf]  ;;  %v1340_v61 = vrot.slane %v1338_v48, 5  ;;  %v1191_v30 = vrot.slane %v1189_v17, 4 }
  0xe7   :  { %1024 = vst.msk [vmem:[#allocation3 + $0x24] sm:$0xf] %vm1014_vm14, %v985_v23  ;;  %v1209_v23 = vor.u32 %v1208_v7, %v1205_v3  ;;  %v1331_v32 = vrot.slane %v1329_v19, 4  ;;  %v1334_v33 = vrot.slane %v1332_v21, 5  ;;  %v1759_v3 = vld [vmem:[#allocation2 + $0x6c] sm:$0x1] }
  0xe8   :  { %v1801_v19 = vshrl.u32 %v1744_v0, 16  ;;  %v1804_v21 = vshll.u32 %v1744_v0, 16  ;;  %v1194_v31 = vrot.slane %v1192_v18, 5  ;;  %v1766_v0 = vld [vmem:[#allocation2 + $0x88] sm:$0xf] }
  0xe9   :  { %v1210_v34 = vrot.slane %v1209_v23, 4  ;;  %v1335_v47 = vor.u32 %v1334_v33, %v1331_v32 }
  0xea   :  { %1585 = vrot.lane.b32.xlu2 %v1532_v26, %s2694_s10  ;;  %v2164_v26 = vsel %vm2996_vm12, %v2584_v10, %v2163_v11  ;;  %v1803_v32 = vrot.slane %v1801_v19, 4  ;;  %v1806_v33 = vrot.slane %v1804_v21, 5  ;;  %v2066_v19 = vld [vmem:[#allocation2 + $0x24] sm:$0x1]  ;;  %v1955_v21 = vshrl.u32 %v1766_v0, 16 }
  0xeb   :  { %1691 = vrot.lane.b32.xlu0 %v1651_v27, %s2695_s11  ;;  %v1343_v27 = vshrl.u32 %v1154_v16, 16  ;;  %v1215_v51 = vsel %vm2793_vm8, %v1210_v34, %v1214_v36  ;;  %v1336_v60 = vrot.slane %v1335_v47, 4  ;;  %v1195_v47 = vor.u32 %v1194_v31, %v1191_v30 }
  0xec   :  { %1693 = vrot.lane.b32.xlu1 %v1652_v6, %s2695_s11  ;;  %v987_v43 = vpop.permute.xlu2 %986  ;;  %v1346_v6 = vshll.u32 %v1154_v16, 16  ;;  %v1908_v16 = vshll.u32 %v1759_v3, 16  ;;  %v1807_v48 = vor.u32 %v1806_v33, %v1803_v32  ;;  %v1764_v3 = vld [vmem:[#allocation2 + $0x80] sm:$0xf]  ;;  %v1765_v32 = vld [vmem:[#allocation2 + $0x84] sm:$0x1] }
  0xed   :  { %v989_v38 = vpop.permute.xlu0 %988  ;;  %1025 = vst.msk [vmem:[#allocation3 + $0x28] sm:$0xf] %vm1014_vm14, %v987_v43  ;;  %v1345_v41 = vrot.slane %v1343_v27, 4  ;;  %v1474_v27 = vld [vmem:[#allocation2 + $0x7c] sm:$0x1]  ;;  %v1944_v17 = vshll.u32 %v1764_v3, 16 }
  0xee   :  { %1026 = vst.msk [vmem:[#allocation3 + $0x2c] sm:$0xf] %vm1014_vm14, %v989_v38  ;;  %v991_v44 = vpop.permute.xlu1 %990  ;;  %v1758_v38 = vld [vmem:[#allocation2 + $0x68] sm:$0xf]  ;;  %v1348_v42 = vrot.slane %v1346_v6, 5  ;;  %v1910_v28 = vrot.slane %v1908_v16, 5 }
  0xef   :  { %1027 = vst.msk [vmem:[#allocation3 + $0x30] sm:$0xf] %vm1014_vm14, %v991_v44  ;;  %v1902_v50 = vshll.u32 %v1758_v38, 16  ;;  %v1563_v37 = vrot.slane %v1474_v27, 5  ;;  %v1941_v16 = vshrl.u32 %v1764_v3, 16  ;;  %v1946_v30 = vrot.slane %v1944_v17, 5 }
  0xf0   :  { %v1349_v57 = vor.u32 %v1348_v42, %v1345_v41  ;;  %v1747_v42 = vld [vmem:[#allocation2 + $0x2c] sm:$0x1]  ;;  %v1957_v33 = vrot.slane %v1955_v21, 4 }
  0xf1   :  { %v1904_v63 = vrot.slane %v1902_v50, 5 }
  0xf2   :  { %1402 = vrot.lane.b32.xlu2 %v1299_v53, %s2693_s9  ;;  %v1524_v53 = vsel %vm2996_vm12, %v2561_v13, %v1523_v40  ;;  %v1350_v5 = vrot.slane %v1349_v57, 4  ;;  %v2336_v57 = vunpack.c.l.b16 %v2278_v55 }
  0xf3   :  { %2199 = vrot.lane.b32.xlu0 %v2148_v49, %s2697_s13  ;;  %v1899_v49 = vshrl.u32 %v1758_v38, 16  ;;  %v1745_v38 = vld [vmem:[#allocation2 + $0x24] sm:$0x1] }
  0xf4   :  { %2012 = vrot.lane.b32.xlu1 %v1897_v54, %s2696_s12  ;;  %v993_v59 = vpop.permute.xlu2 %992  ;;  %v2069_v54 = vld [vmem:[#allocation2 + $0x30] sm:$0xe] }
  0xf5   :  { %v995_v8 = vpop.permute.xlu0 %994  ;;  %1028 = vst.msk [vmem:[#allocation3 + $0x34] sm:$0xf] %vm1014_vm14, %v993_v59  ;;  %v1901_v62 = vrot.slane %v1899_v49, 4  ;;  %v2579_v14 = vrot.slane %v2069_v54, 9  ;;  %v1341_v59 = vsel %vm2793_vm8, %v1336_v60, %v1340_v61  ;;  %v1810_v49 = vshll.u32 %v1745_v38, 16 }
  0xf6   :  { %1029 = vst.msk [vmem:[#allocation3 + $0x38] sm:$0xf] %vm1014_vm14, %v995_v8  ;;  %v997_v15 = vpop.permute.xlu1 %996  ;;  %v1354_v8 = vrot.slane %v1352_v58, 5  ;;  %v1824_v54 = vshll.u32 %v1747_v42, 16  ;;  %v1196_v58 = vrot.slane %v1195_v47, 4  ;;  %v1808_v60 = vrot.slane %v1807_v48, 4 }
  0xf7   :  { %1030 = vst.msk [vmem:[#allocation3 + $0x3c] sm:$0xf] %vm1014_vm14, %v997_v15  ;;  %v1905_v15 = vor.u32 %v1904_v63, %v1901_v62  ;;  %v1812_v61 = vrot.slane %v1810_v49, 5 }
  0xf8   :  { %v1355_v23 = vsel %vm2793_vm8, %v1350_v5, %v1354_v8 }
  0xf9   :  { %v1906_v6 = vrot.slane %v1905_v15, 4  ;;  %v2065_v15 = vld [vmem:[#allocation2 + $0x20] sm:$0xe] }
  0xfa   :  { %1593 = vrot.lane.b32.xlu2 %v1548_v25, %s2694_s10  ;;  %v1818_v25 = vshll.u32 %v1746_v12, 16 }
  0xfb   :  { %2205 = vrot.lane.b32.xlu0 %v2160_v22, %s2697_s13  ;;  %v2144_v22 = vsel %vm2996_vm12, %v2579_v14, %v2143_v2  ;;  %v1826_v2 = vrot.slane %v1824_v54, 5 }
  0xfc   :  { %2207 = vrot.lane.b32.xlu1 %v2164_v26, %s2697_s13  ;;  %v1064_v43 = vpop.permute.xlu2 %1063  ;;  %v1473_v26 = vld [vmem:[#allocation2 + $0x78] sm:$0xe]  ;;  %v1820_v13 = vrot.slane %v1818_v25, 5  ;;  %v2562_v25 = vrot.slane %v1455_v9, 9 }
  0xfd   :  { %v1066_v39 = vpop.permute.xlu0 %1065  ;;  %1112 = vst.msk [vmem:[#allocation3] sm:$0xf] %vm1111_vm15, %v1064_v43  ;;  %v2571_v36 = vrot.slane %v1473_v26, 9  ;;  %v178_v43 = vld [vmem:[#allocation2 + $0x44] sm:$0x1] }
  0xfe   :  { %1113 = vst.msk [vmem:[#allocation3 + $0x4] sm:$0xf] %vm1111_vm15, %v1066_v39  ;;  %v1068_v44 = vpop.permute.xlu1 %1067  ;;  %v1817_v39 = vrot.slane %v1815_v24, 4  ;;  %v179_v50 = vsel %vm2743_vm5, 0, %v178_v43 }
  0xff   :  { %1114 = vst.msk [vmem:[#allocation3 + $0x8] sm:$0xf] %vm1111_vm15, %v1068_v44  ;;  %v1911_v44 = vsel %vm2793_vm8, %v1906_v6, %v1910_v28  ;;  %v2577_v6 = vrot.slane %v2065_v15, 9  ;;  %v2135_v28 = vrot.slane %v2066_v19, 5 }
 0x100   :  { %180 = vst [vmem:[#allocation2 + $0x44] sm:$0x1] %v179_v50  ;;  %v2656_v50 = vld [vmem:[%s3607_s3 + $0x8] sm:$0xff] }
 0x101   :  { %v2136_v42 = vsel %vm2996_vm12, %v2577_v6, %v2135_v28  ;;  %v1462_v6 = vld [vmem:[#allocation2 + $0x3c] sm:$0x1]  ;;  %v1463_v28 = vld [vmem:[#allocation2 + $0x40] sm:$0xe] }
 0x102   :  { %2006 = vrot.lane.b32.xlu2 %v1855_v52, %s2696_s12  ;;  %v1198_v52 = vshll.u32 %v1133_v29, 16  ;;  %v1943_v29 = vrot.slane %v1941_v16, 4 }
 0x103   :  { %1390 = vrot.lane.b32.xlu0 %v1215_v51, %s2693_s9  ;;  %v1564_v51 = vsel %vm2996_vm12, %v2571_v36, %v1563_v37  ;;  %v2657_v36 = vld [vmem:[%s3607_s3 + $0x10] sm:$0xff] }
 0x104   :  { %1581 = vrot.lane.b32.xlu1 %v1524_v53, %s2694_s10  ;;  %v1070_v10 = vpop.permute.xlu2 %1069  ;;  %v1821_v53 = vor.u32 %v1820_v13, %v1817_v39  ;;  %v1200_v63 = vrot.slane %v1198_v52, 5  ;;  %v1767_v39 = vld [vmem:[#allocation2 + $0x8c] sm:$0x1]  ;;  %v1140_v13 = vld [vmem:[#allocation2 + $0x38] sm:$0xf]  ;;  %v1947_v43 = vor.u32 %v1946_v30, %v1943_v29 }
 0x105   :  { %v1072_v7 = vpop.permute.xlu0 %1071  ;;  %1115 = vst.msk [vmem:[#allocation3 + $0xc] sm:$0xf] %vm1111_vm15, %v1070_v10  ;;  %v284_v10 = vrot.slane %v3052_v20, 4  ;;  %v1964_v47 = vshll.u32 %v1767_v39, 16  ;;  %v1245_v48 = vshrl.u32 %v1140_v13, 16  ;;  %v1248_v49 = vshll.u32 %v1140_v13, 16 }
 0x106   :  { %1116 = vst.msk [vmem:[#allocation3 + $0x10] sm:$0xf] %vm1111_vm15, %v1072_v7  ;;  %v1074_v11 = vpop.permute.xlu1 %1073  ;;  %v1822_v14 = vrot.slane %v1821_v53, 4  ;;  %v2341_v7 = vpack.c.b16 %v2336_v57, %v2336_v57  ;;  %v1201_v18 = vsel %vm2793_vm8, %v1196_v58, %v1200_v63  ;;  %v1141_v63 = vld [vmem:[#allocation2 + $0x3c] sm:$0x1] }
 0x107   :  { %1117 = vst.msk [vmem:[#allocation3 + $0x14] sm:$0xf] %vm1111_vm15, %v1074_v11  ;;  %v1456_v11 = vld [vmem:[#allocation2 + $0x24] sm:$0x1]  ;;  %v1966_v55 = vrot.slane %v1964_v47, 5  ;;  %v1247_v57 = vrot.slane %v1245_v48, 4 }
 0x108   :  { %v2373_v12 = vsel %vm2371_vm0, %v2341_v7, 0  ;;  %v1827_v20 = vsel %vm2793_vm8, %v1822_v14, %v1826_v2  ;;  %v428_v24 = vld [vmem:[#allocation2 + $0x44] sm:$0x1]  ;;  %v1527_v26 = vrot.slane %v1456_v11, 5  ;;  %v1250_v58 = vrot.slane %v1248_v49, 5 }
 0x109   :  { %2378 = vmatpush.bf16.msra.mxu0 %v2373_v12  ;;  %2659 = vmatpush.bf16.msra.mxu1 %v2373_v12  ;;  %v429_v27 = vsel %vm2731_vm4, %v284_v10, %v428_v24  ;;  %v1645_v14 = vld [vmem:[#allocation2 + $0x20] sm:$0xf]  ;;  %v2087_v7 = vld [vmem:[#allocation2 + $0x88] sm:$0xe]  ;;  %v1254_v9 = vshll.u32 %v1141_v63, 16 }
 0x10a   :  { %2197 = vrot.lane.b32.xlu2 %v2144_v22, %s2697_s13  ;;  %v1958_v22 = vshll.u32 %v1766_v0, 16  ;;  %2660 = vmatpush.bf16.msra.mxu2 %v2373_v12  ;;  %430 = vst [vmem:[#allocation2 + $0x44] sm:$0x1] %v429_v27  ;;  %v1475_v0 = vld [vmem:[#allocation2 + $0x80] sm:$0xe]  ;;  %v2588_v11 = vrot.slane %v2087_v7, 9 }
 0x10b   :  { %1408 = vrot.lane.b32.xlu0 %v1341_v59, %s2693_s9  ;;  %v1813_v59 = vsel %vm2793_vm8, %v1808_v60, %v1812_v61  ;;  %2661 = vmatpush.bf16.msra.mxu3 %v2373_v12  ;;  %v2655_v60 = vld [vmem:[%s3607_s3] sm:$0xff]  ;;  %v2572_v15 = vrot.slane %v1475_v0, 9  ;;  %v1461_v27 = vld [vmem:[#allocation2 + $0x38] sm:$0xe]  ;;  %v2068_v47 = vld [vmem:[#allocation2 + $0x2c] sm:$0x1] }
 0x10c   :  { %1410 = vrot.lane.b32.xlu1 %v1355_v23, %s2693_s9  ;;  %v1076_v40 = vpop.permute.xlu2 %1075  ;;  %v2658_v23 = vld [vmem:[%s3607_s3 + $0x18] sm:$0xff]  ;;  %v1476_v10 = vld [vmem:[#allocation2 + $0x84] sm:$0x1]  ;;  %v2565_v30 = vrot.slane %v1461_v27, 9  ;;  %v2085_v63 = vld [vmem:[#allocation2 + $0x80] sm:$0xe] }
 0x10d   :  { %v1078_v34 = vpop.permute.xlu0 %1077  ;;  %1118 = vst.msk [vmem:[#allocation3 + $0x18] sm:$0xf] %vm1111_vm15, %v1076_v40  ;;  %2379 = vmatpush.bf16.msra.mxu0 %v2658_v23  ;;  %2662 = vmatpush.bf16.msra.mxu1 %v2658_v23  ;;  %v1528_v40 = vsel %vm2996_vm12, %v2562_v25, %v1527_v26  ;;  %v1567_v16 = vrot.slane %v1476_v10, 5 }
 0x10e   :  { %1119 = vst.msk [vmem:[#allocation3 + $0x1c] sm:$0xf] %vm1111_vm15, %v1078_v34  ;;  %v1080_v41 = vpop.permute.xlu1 %1079  ;;  %v1960_v34 = vrot.slane %v1958_v22, 5  ;;  %2663 = vmatpush.bf16.msra.mxu2 %v2658_v23 }
 0x10f   :  { %1120 = vst.msk [vmem:[#allocation3 + $0x20] sm:$0xf] %vm1111_vm15, %v1080_v41  ;;  %2664 = vmatpush.bf16.msra.mxu3 %v2658_v23  ;;  %v1656_v41 = vld [vmem:[#allocation2 + $0x88] sm:$0xf]  ;;  %v1568_v25 = vsel %vm2996_vm12, %v2572_v15, %v1567_v16  ;;  %v1471_v15 = vld [vmem:[#allocation2 + $0x70] sm:$0xe] }
 0x110   :  { %v1472_v16 = vld [vmem:[#allocation2 + $0x74] sm:$0x1] }
 0x111   :  { %2380 = vmatpush.bf16.msra.mxu0 %v2657_v36  ;;  %2665 = vmatpush.bf16.msra.mxu1 %v2657_v36  ;;  %v1464_v29 = vld [vmem:[#allocation2 + $0x44] sm:$0x1] }
 0x112   :  { %2014 = vrot.lane.b32.xlu2 %v1911_v44, %s2696_s12  ;;  %v1950_v44 = vshll.u32 %v1765_v32, 16  ;;  %2666 = vmatpush.bf16.msra.mxu2 %v2657_v36 }
 0x113   :  { %1681 = vrot.lane.b32.xlu0 %v1646_v45, %s2695_s11  ;;  %v1961_v45 = vor.u32 %v1960_v34, %v1957_v33  ;;  %2667 = vmatpush.bf16.msra.mxu3 %v2657_v36  ;;  %v2566_v36 = vrot.slane %v1463_v28, 9  ;;  %v1559_v28 = vrot.slane %v1472_v16, 5 }
 0x114   :  { %1601 = vrot.lane.b32.xlu1 %v1564_v51, %s2694_s10  ;;  %v1082_v5 = vpop.permute.xlu2 %1081  ;;  %v1948_v51 = vrot.slane %v1947_v43, 4  ;;  %v1952_v52 = vrot.slane %v1950_v44, 5  ;;  %v1655_v43 = vld [vmem:[#allocation2 + $0x80] sm:$0xf] }
 0x115   :  { %v1084_v62 = vpop.permute.xlu0 %1083  ;;  %1121 = vst.msk [vmem:[#allocation3 + $0x24] sm:$0xf] %vm1111_vm15, %v1082_v5  ;;  %v1962_v54 = vrot.slane %v1961_v45, 4  ;;  %2381 = vmatpush.bf16.msra.mxu0 %v2656_v50  ;;  %2668 = vmatpush.bf16.msra.mxu1 %v2656_v50  ;;  %v2088_v5 = vld [vmem:[#allocation2 + $0x8c] sm:$0x1] }
 0x116   :  { %1122 = vst.msk [vmem:[#allocation3 + $0x28] sm:$0xf] %vm1111_vm15, %v1084_v62  ;;  %v1086_v8 = vpop.permute.xlu1 %1085  ;;  %2669 = vmatpush.bf16.msra.mxu2 %v2656_v50  ;;  %v1953_v2 = vsel %vm2793_vm8, %v1948_v51, %v1952_v52  ;;  %v2179_v12 = vrot.slane %v2088_v5, 5  ;;  %v2067_v45 = vld [vmem:[#allocation2 + $0x28] sm:$0xe]  ;;  %v35_v51 = vld [vmem:[%s3604_s0 + $0x78] sm:$0xff] }
 0x117   :  { %1123 = vst.msk [vmem:[#allocation3 + $0x2c] sm:$0xf] %vm1111_vm15, %v1086_v8  ;;  %2670 = vmatpush.bf16.msra.mxu3 %v2656_v50  ;;  %v1967_v3 = vsel %vm2793_vm8, %v1962_v54, %v1966_v55  ;;  %v1251_v8 = vor.u32 %v1250_v58, %v1247_v57  ;;  %v1142_v50 = vld [vmem:[#allocation2 + $0x40] sm:$0xf]  ;;  %v2139_v54 = vrot.slane %v2068_v47, 5 }
 0x118   :  { %v2180_v22 = vsel %vm2996_vm12, %v2588_v11, %v2179_v12  ;;  %v1754_v55 = vld [vmem:[#allocation2 + $0x48] sm:$0xf]  ;;  %v2687_v57 = vld [vmem:[%s3605_s1] ss:$0 sm:$0xff]  ;;  %v1470_v12 = vld [vmem:[#allocation2 + $0x6c] sm:$0x1] }
 0x119   :  { %2382 = vmatpush.bf16.msra.mxu0 %v2655_v60  ;;  %2671 = vmatpush.bf16.msra.mxu1 %v2655_v60  ;;  %v1252_v17 = vrot.slane %v1251_v8, 4  ;;  %v55_v58 = vmul.f32 %v2687_v57, %v35_v51  ;;  %v2086_v8 = vld [vmem:[#allocation2 + $0x84] sm:$0x1]  ;;  %v1874_v0 = vshll.u32 %v1754_v55, 16  ;;  %v1469_v11 = vld [vmem:[#allocation2 + $0x68] sm:$0xe] }
 0x11a   :  { %1388 = vrot.lane.b32.xlu2 %v1201_v18, %s2693_s9  ;;  %2672 = vmatpush.bf16.msra.mxu2 %v2655_v60  ;;  %v1256_v18 = vrot.slane %v1254_v9, 5  ;;  %v1871_v9 = vshrl.u32 %v1754_v55, 16 }
 0x11b   :  { %2000 = vrot.lane.b32.xlu0 %v1813_v59, %s2696_s12  ;;  %2673 = vmatpush.bf16.msra.mxu3 %v2655_v60 }
 0x11c   :  { %2002 = vrot.lane.b32.xlu1 %v1827_v20, %s2696_s12  ;;  %v1088_v37 = vpop.permute.xlu2 %1087  ;;  %v1150_v20 = vld [vmem:[#allocation2 + $0x70] sm:$0xf]  ;;  %v1257_v26 = vsel %vm2793_vm8, %v1252_v17, %v1256_v18  ;;  %v2587_v17 = vrot.slane %v2085_v63, 9  ;;  %v2175_v18 = vrot.slane %v2086_v8, 5 }
 0x11d   :  { %v1090_v31 = vpop.permute.xlu0 %1089  ;;  %1124 = vst.msk [vmem:[#allocation3 + $0x30] sm:$0xf] %vm1111_vm15, %v1088_v37  ;;  %v1315_v23 = vshrl.u32 %v1150_v20, 16  ;;  %v1318_v24 = vshll.u32 %v1150_v20, 16  ;;  %v1543_v37 = vrot.slane %v1464_v29, 5 }
 0x11e   :  { %1125 = vst.msk [vmem:[#allocation3 + $0x34] sm:$0xf] %vm1111_vm15, %v1090_v31  ;;  %v1092_v38 = vpop.permute.xlu1 %1091  ;;  %v1539_v31 = vrot.slane %v1462_v6, 5  ;;  %v2570_v6 = vrot.slane %v1471_v15, 9  ;;  %v1755_v29 = vld [vmem:[#allocation2 + $0x4c] sm:$0x1] }
 0x11f   :  { %1126 = vst.msk [vmem:[#allocation3 + $0x38] sm:$0xf] %vm1111_vm15, %v1092_v38  ;;  %v1317_v32 = vrot.slane %v1315_v23, 4  ;;  %v1320_v33 = vrot.slane %v1318_v24, 5  ;;  %v1151_v38 = vld [vmem:[#allocation2 + $0x74] sm:$0x1]  ;;  %v1544_v44 = vsel %vm2996_vm12, %v2566_v36, %v1543_v37  ;;  %v2176_v37 = vsel %vm2996_vm12, %v2587_v17, %v2175_v18 }
 0x120   :  { %v1555_v23 = vrot.slane %v1470_v12, 5  ;;  %v1873_v24 = vrot.slane %v1871_v9, 4  ;;  %v2075_v12 = vld [vmem:[#allocation2 + $0x48] sm:$0xe]  ;;  %v2076_v15 = vld [vmem:[#allocation2 + $0x4c] sm:$0x1] }
 0x121   :  { %v2155_v56 = vrot.slane %v2076_v15, 5 }
 0x122   :  { %1583 = vrot.lane.b32.xlu2 %v1528_v40, %s2694_s10  ;;  %v1540_v40 = vsel %vm2996_vm12, %v2565_v30, %v1539_v31 }
 0x123   :  { %1701 = vrot.lane.b32.xlu0 %v1656_v41, %s2695_s11  ;;  %v1321_v41 = vor.u32 %v1320_v33, %v1317_v32 }
 0x124   :  { %2193 = vrot.lane.b32.xlu1 %v2136_v42, %s2697_s13  ;;  %v1385_v61 = vpop.permute.xlu2 %1384  ;;  %v1324_v42 = vshll.u32 %v1151_v38, 16 }
 0x125   :  { %v1387_v53 = vpop.permute.xlu0 %1386  ;;  %1433 = vst.msk [vmem:[#allocation3] sm:$0xf] %vm1432_vm1, %v1385_v61  ;;  %v1322_v48 = vrot.slane %v1321_v41, 4  ;;  %v1880_v41 = vshll.u32 %v1755_v29, 16  ;;  %v1156_v29 = vld [vmem:[#allocation2 + $0x88] sm:$0xf] }
 0x126   :  { %1434 = vst.msk [vmem:[#allocation3 + $0x4] sm:$0xf] %vm1432_vm1, %v1387_v53  ;;  %v1578_v62 = vpop.permute.xlu1 %1577  ;;  %v1326_v49 = vrot.slane %v1324_v42, 5  ;;  %v2578_v53 = vrot.slane %v2067_v45, 9  ;;  %v1360_v1 = vshll.u32 %v1156_v29, 16 }
 0x127   :  { %1626 = vst.msk [vmem:[#allocation3] sm:$0xf] %vm1625_vm2, %v1578_v62  ;;  %v1649_v62 = vld [vmem:[#allocation2 + $0x40] sm:$0xf] }
 0x128   :  { %v1327_v5 = vsel %vm2793_vm8, %v1322_v48, %v1326_v49  ;;  %v2140_v10 = vsel %vm2996_vm12, %v2578_v53, %v2139_v54  ;;  %v202_v48 = vld [vmem:[#allocation2 + $0x94] sm:$0x1]  ;;  %v1149_v49 = vld [vmem:[#allocation2 + $0x6c] sm:$0x1]  ;;  %v1882_v53 = vrot.slane %v1880_v41, 5 }
 0x129   :  { %v203_v55 = vsel %vm2743_vm5, 0, %v202_v48  ;;  %vm2531_vm5 = vcmask 1040384  }
 0x12a   :  { %1679 = vrot.lane.b32.xlu2 %v1645_v14, %s2695_s11  ;;  %v1259_v14 = vshrl.u32 %v1142_v50, 16  ;;  %204 = vst [vmem:[#allocation2 + $0x94] sm:$0x1] %v203_v55 }
 0x12b   :  { %2020 = vrot.lane.b32.xlu0 %v1953_v2, %s2696_s12  ;;  %v1262_v2 = vshll.u32 %v1142_v50, 16 }
 0x12c   :  { %2022 = vrot.lane.b32.xlu1 %v1967_v3, %s2696_s12  ;;  %v1580_v19 = vpop.permute.xlu2 %1579  ;;  %v2688_v3 = vld [vmem:[%s3606_s2] ss:$0 sm:$0xff]  ;;  %v1261_v20 = vrot.slane %v1259_v14, 4 }
 0x12d   :  { %v1676_v59 = vpop.permute.xlu0 %1675  ;;  %1627 = vst.msk [vmem:[#allocation3 + $0x4] sm:$0xf] %vm1625_vm2, %v1580_v19  ;;  %v75_v7 = vadd.f32 %v2688_v3, %v55_v58  ;;  %v1264_v19 = vrot.slane %v1262_v2, 5  ;;  %v1310_v2 = vshll.u32 %v1149_v49, 16  ;;  %v2073_v3 = vld [vmem:[#allocation2 + $0x40] sm:$0xe] }
 0x12e   :  { %1724 = vst.msk [vmem:[#allocation3] sm:$0xf] %vm1723_vm3, %v1676_v59  ;;  %v1678_v21 = vpop.permute.xlu1 %1677  ;;  %v2581_v17 = vrot.slane %v2073_v3, 9 }
 0x12f   :  { %1725 = vst.msk [vmem:[#allocation3 + $0x4] sm:$0xf] %vm1723_vm3, %v1678_v21  ;;  %v91_v59 = vmax.f32 %v75_v7, 0.0  ;;  %v152_v21 = vld [vmem:[#allocation2 + $0x90] sm:$0x1]  ;;  %v1265_v38 = vor.u32 %v1264_v19, %v1261_v20  ;;  %v1312_v19 = vrot.slane %v1310_v2, 5 }
 0x130   :  { %v153_v36 = vsel %vm2731_vm4, 0, %v152_v21  ;;  %v2074_v7 = vld [vmem:[#allocation2 + $0x44] sm:$0x1] }
 0x131   :  { %v220_v30 = vpack.c.bf16 %v91_v59, %v91_v59  ;;  %154 = vst [vmem:[#allocation2 + $0x90] sm:$0x1] %v153_v36  ;;  %v1266_v58 = vrot.slane %v1265_v38, 4  ;;  %v2151_v18 = vrot.slane %v2074_v7, 5 }
 0x132   :  { %1603 = vrot.lane.b32.xlu2 %v1568_v25, %s2694_s10  ;;  %v1876_v25 = vrot.slane %v1874_v0, 5 }
 0x133   :  { %2215 = vrot.lane.b32.xlu0 %v2180_v22, %s2697_s13  ;;  %v2569_v22 = vrot.slane %v1469_v11, 9  ;;  %v342_v45 = vshrl.u32 %v220_v30, 16  ;;  %v345_v47 = vshll.u32 %v220_v30, 16  ;;  %v1653_v11 = vld [vmem:[#allocation2 + $0x70] sm:$0xf] }
 0x134   :  { %1396 = vrot.lane.b32.xlu1 %v1257_v26, %s2693_s9  ;;  %v1997_v39 = vpop.permute.xlu2 %1996  ;;  %v1148_v26 = vld [vmem:[#allocation2 + $0x68] sm:$0xf] }
 0x135   :  { %v1999_v34 = vpop.permute.xlu0 %1998  ;;  %2045 = vst.msk [vmem:[#allocation3] sm:$0xf] %vm2044_vm6, %v1997_v39  ;;  %v1301_v39 = vshrl.u32 %v1148_v26, 16  ;;  %v1304_v42 = vshll.u32 %v1148_v26, 16  ;;  %v344_v51 = vrot.slane %v342_v45, 7 }
 0x136   :  { %2046 = vst.msk [vmem:[#allocation3 + $0x4] sm:$0xf] %vm2044_vm6, %v1999_v34  ;;  %v2190_v13 = vpop.permute.xlu1 %2189  ;;  %v1143_v34 = vld [vmem:[#allocation2 + $0x44] sm:$0x1]  ;;  %v1763_v26 = vld [vmem:[#allocation2 + $0x7c] sm:$0x1] }
 0x137   :  { %2238 = vst.msk [vmem:[#allocation3] sm:$0xf] %vm2237_vm7, %v2190_v13  ;;  %v1556_v13 = vsel %vm2996_vm12, %v2569_v22, %v1555_v23  ;;  %v1303_v50 = vrot.slane %v1301_v39, 4  ;;  %v1306_v54 = vrot.slane %v1304_v42, 5  ;;  %v348_v16 = vrot.slane %v344_v51, 4 }
 0x138   :  { %v473_v0 = vld [vmem:[#allocation2 + $0x90] sm:$0xf]  ;;  %v476_v23 = vld [vmem:[#allocation2 + $0x94] sm:$0x1]  ;;  %v1357_v39 = vshrl.u32 %v1156_v29, 16 }
 0x139   :  { %v477_v30 = vsel %vm2731_vm4, %v348_v16, %v476_v23  ;;  %v1477_v16 = vld [vmem:[#allocation2 + $0x88] sm:$0xe]  ;;  %vm2424_vm4 = vcmask 64512  }
 0x13a   :  { %1699 = vrot.lane.b32.xlu2 %v1655_v43, %s2695_s11  ;;  %v1560_v43 = vsel %vm2996_vm12, %v2570_v6, %v1559_v28  ;;  %478 = vst [vmem:[#allocation2 + $0x94] sm:$0x1] %v477_v30  ;;  %v1359_v49 = vrot.slane %v1357_v39, 4 }
 0x13b   :  { %1589 = vrot.lane.b32.xlu0 %v1540_v40, %s2694_s10  ;;  %v1877_v40 = vor.u32 %v1876_v25, %v1873_v24  ;;  %v2582_v25 = vrot.slane %v2075_v12, 9 }
 0x13c   :  { %1591 = vrot.lane.b32.xlu1 %v1544_v44, %s2694_s10  ;;  %v2192_v60 = vpop.permute.xlu2 %2191  ;;  %v1268_v44 = vshll.u32 %v1143_v34, 16 }
 0x13d   :  { %v1393_v52 = vpop.permute.xlu0 %1392  ;;  %2239 = vst.msk [vmem:[#allocation3 + $0x4] sm:$0xf] %vm2237_vm7, %v2192_v60  ;;  %v2156_v38 = vsel %vm2996_vm12, %v2582_v25, %v2155_v56 }
 0x13e   :  { %1437 = vst.msk [vmem:[#allocation3 + $0x10] sm:$0xf] %vm1432_vm1, %v1393_v52  ;;  %v1395_v61 = vpop.permute.xlu1 %1394  ;;  %v1878_v52 = vrot.slane %v1877_v40, 4  ;;  %v1270_v60 = vrot.slane %v1268_v44, 5  ;;  %v2082_v40 = vld [vmem:[#allocation2 + $0x74] sm:$0x1] }
 0x13f   :  { %1438 = vst.msk [vmem:[#allocation3 + $0x14] sm:$0xf] %vm1432_vm1, %v1395_v61  ;;  %v1762_v61 = vld [vmem:[#allocation2 + $0x78] sm:$0xf]  ;;  %v2167_v48 = vrot.slane %v2082_v40, 5 }
 0x140   :  { %v1883_v4 = vsel %vm2793_vm8, %v1878_v52, %v1882_v53  ;;  %v1927_v8 = vshrl.u32 %v1762_v61, 16  ;;  %v1930_v9 = vshll.u32 %v1762_v61, 16  ;;  %v1753_v53 = vld [vmem:[#allocation2 + $0x44] sm:$0x1] }
 0x141   :  { %v1866_v61 = vshll.u32 %v1753_v53, 16 }
 0x142   :  { %2195 = vrot.lane.b32.xlu2 %v2140_v10, %s2697_s13  ;;  %v1271_v10 = vsel %vm2793_vm8, %v1266_v58, %v1270_v60  ;;  %v1929_v21 = vrot.slane %v1927_v8, 4  ;;  %v1932_v22 = vrot.slane %v1930_v9, 5  ;;  %v1650_v58 = vld [vmem:[#allocation2 + $0x48] sm:$0xf] }
 0x143   :  { %1406 = vrot.lane.b32.xlu0 %v1327_v5, %s2693_s9  ;;  %v1307_v5 = vor.u32 %v1306_v54, %v1303_v50  ;;  %v1362_v50 = vrot.slane %v1360_v1, 5  ;;  %v1157_v54 = vld [vmem:[#allocation2 + $0x8c] sm:$0x1]  ;;  %v1868_v3 = vrot.slane %v1866_v61, 5  ;;  %v2091_v61 = vld [vmem:[#allocation2 + $0x98] sm:$0xe] }
 0x144   :  { %1687 = vrot.lane.b32.xlu1 %v1649_v62, %s2695_s11  ;;  %v1586_v31 = vpop.permute.xlu2 %1585  ;;  %v2647_v32 = vld [vmem:[#allocation3] sm:$0xff]  ;;  %v347_v62 = vor.u32 %v345_v47, %v344_v51 }
 0x145   :  { %v1588_v27 = vpop.permute.xlu0 %1587  ;;  %1630 = vst.msk [vmem:[#allocation3 + $0x10] sm:$0xf] %vm1625_vm2, %v1586_v31  ;;  %2639 = vmatmul.msk.bf16.vlgmr.msra.gmra.mxu0 %vm2346_vm10, %v2647_v32  ;;  %v1308_v20 = vrot.slane %v1307_v5, 4  ;;  %v2152_v31 = vsel %vm2996_vm12, %v2581_v17, %v2151_v18  ;;  %v1933_v32 = vor.u32 %v1932_v22, %v1929_v21  ;;  %v1760_v5 = vld [vmem:[#allocation2 + $0x70] sm:$0xf] }
 0x146   :  { %1631 = vst.msk [vmem:[#allocation3 + $0x14] sm:$0xf] %vm1625_vm2, %v1588_v27  ;;  %v1401_v33 = vpop.permute.xlu1 %1400  ;;  %v474_v59 = vsel %vm2803_vm9, %v347_v62, %v473_v0  ;;  %v1752_v27 = vld [vmem:[#allocation2 + $0x40] sm:$0xf]  ;;  %v1363_v62 = vor.u32 %v1362_v50, %v1359_v49  ;;  %v1916_v12 = vshll.u32 %v1760_v5, 16 }
 0x147   :  { %1441 = vst.msk [vmem:[#allocation3 + $0x20] sm:$0xf] %vm1432_vm1, %v1401_v33  ;;  %v1936_v33 = vshll.u32 %v1763_v26, 16  ;;  %v1857_v34 = vshrl.u32 %v1752_v27, 16  ;;  %v1860_v36 = vshll.u32 %v1752_v27, 16  ;;  %v1934_v41 = vrot.slane %v1933_v32, 4 }
 0x148   :  { %475 = vst [vmem:[#allocation2 + $0x90] sm:$0xf] %v474_v59  ;;  %v1364_v7 = vrot.slane %v1363_v62, 4  ;;  %v1478_v17 = vld [vmem:[#allocation2 + $0x8c] sm:$0x1]  ;;  %v1918_v23 = vrot.slane %v1916_v12, 5 }
 0x149   :  { %v1938_v42 = vrot.slane %v1936_v33, 5  ;;  %v1862_v44 = vrot.slane %v1860_v36, 5  ;;  %v1480_v21 = vld [vmem:[#allocation2 + $0x94] sm:$0x1]  ;;  %v1571_v25 = vrot.slane %v1478_v17, 5 }
 0x14a   :  { %2213 = vrot.lane.b32.xlu2 %v2176_v37, %s2697_s13  ;;  %v1313_v37 = vsel %vm2793_vm8, %v1308_v20, %v1312_v19  ;;  %v1575_v27 = vrot.slane %v1480_v21, 5  ;;  %v1769_v33 = vld [vmem:[#allocation2 + $0x94] sm:$0x1]  ;;  %v2083_v50 = vld [vmem:[#allocation2 + $0x78] sm:$0xe] }
 0x14b   :  { %1597 = vrot.lane.b32.xlu0 %v1556_v13, %s2694_s10  ;;  %v2081_v13 = vld [vmem:[#allocation2 + $0x70] sm:$0xe]  ;;  %v1939_v55 = vsel %vm2793_vm8, %v1934_v41, %v1938_v42  ;;  %v2092_v62 = vld [vmem:[#allocation2 + $0x9c] sm:$0x1] }
 0x14c   :  { %1599 = vrot.lane.b32.xlu1 %v1560_v43, %s2694_s10  ;;  %v1403_v63 = vpop.permute.xlu2 %1402  ;;  %v1859_v43 = vrot.slane %v1857_v34, 4  ;;  %v2585_v47 = vrot.slane %v2081_v13, 9  ;;  %v1978_v13 = vshll.u32 %v1769_v33, 16 }
 0x14d   :  { %v1684_v57 = vpop.permute.xlu0 %1683  ;;  %1442 = vst.msk [vmem:[#allocation3 + $0x24] sm:$0xf] %vm1432_vm1, %v1403_v63  ;;  %v1366_v63 = vshll.u32 %v1157_v54, 16 }
 0x14e   :  { %1728 = vst.msk [vmem:[#allocation3 + $0x10] sm:$0xf] %vm1723_vm3, %v1684_v57  ;;  %v1686_v14 = vpop.permute.xlu1 %1685  ;;  %v1863_v57 = vor.u32 %v1862_v44, %v1859_v43  ;;  %v2168_v60 = vsel %vm2996_vm12, %v2585_v47, %v2167_v48  ;;  %v1980_v44 = vrot.slane %v1978_v13, 5 }
 0x14f   :  { %1729 = vst.msk [vmem:[#allocation3 + $0x14] sm:$0xf] %vm1723_vm3, %v1686_v14  ;;  %v1768_v0 = vld [vmem:[#allocation2 + $0x90] sm:$0xf] }
 0x150   :  { %v1864_v2 = vrot.slane %v1863_v57, 4  ;;  %v1969_v18 = vshrl.u32 %v1768_v0, 16  ;;  %v1972_v20 = vshll.u32 %v1768_v0, 16  ;;  %v1479_v19 = vld [vmem:[#allocation2 + $0x90] sm:$0xe] }
 0x151   :  { %v2574_v26 = vrot.slane %v1479_v19, 9  ;;  %v1158_v48 = vld [vmem:[#allocation2 + $0x90] sm:$0xf]  ;;  %v2090_v57 = vld [vmem:[#allocation2 + $0x94] sm:$0x1] }
 0x152   :  { %1398 = vrot.lane.b32.xlu2 %v1271_v10, %s2693_s9  ;;  %v1046_v10 = vld [vmem:[#allocation2 + $0x90] sm:$0xf]  ;;  %v1869_v59 = vsel %vm2793_vm8, %v1864_v2, %v1868_v3  ;;  %v1974_v29 = vrot.slane %v1972_v20, 5  ;;  %v2183_v3 = vrot.slane %v2090_v57, 5 }
 0x153   :  { %2010 = vrot.lane.b32.xlu0 %v1883_v4, %s2696_s12  ;;  %v1368_v4 = vrot.slane %v1366_v63, 5  ;;  %v2586_v63 = vrot.slane %v2083_v50, 9 }
 0x154   :  { %1695 = vrot.lane.b32.xlu1 %v1653_v11, %s2695_s11  ;;  %v1594_v6 = vpop.permute.xlu2 %1593  ;;  %v1913_v11 = vshrl.u32 %v1760_v5, 16  ;;  %v2187_v5 = vrot.slane %v2092_v62, 5 }
 0x155   :  { %v1596_v24 = vpop.permute.xlu0 %1595  ;;  %1634 = vst.msk [vmem:[#allocation3 + $0x20] sm:$0xf] %vm1625_vm2, %v1594_v6  ;;  %v1369_v15 = vsel %vm2793_vm8, %v1364_v7, %v1368_v4  ;;  %v1761_v6 = vld [vmem:[#allocation2 + $0x74] sm:$0x1]  ;;  %v2590_v4 = vrot.slane %v2091_v61, 9 }
 0x156   :  { %1635 = vst.msk [vmem:[#allocation3 + $0x24] sm:$0xf] %vm1625_vm2, %v1596_v24  ;;  %v2005_v28 = vpop.permute.xlu1 %2004  ;;  %v1915_v22 = vrot.slane %v1913_v11, 4  ;;  %v2573_v24 = vrot.slane %v1477_v16, 9  ;;  %v1922_v39 = vshll.u32 %v1761_v6, 16 }
 0x157   :  { %2049 = vst.msk [vmem:[#allocation3 + $0x10] sm:$0xf] %vm2044_vm6, %v2005_v28  ;;  %v1971_v28 = vrot.slane %v1969_v18, 4  ;;  %v1159_v11 = vld [vmem:[#allocation2 + $0x94] sm:$0x1] }
 0x158   :  { %v1919_v34 = vor.u32 %v1918_v23, %v1915_v22  ;;  %v1572_v36 = vsel %vm2996_vm12, %v2573_v24, %v1571_v25  ;;  %v1924_v42 = vrot.slane %v1922_v39, 5  ;;  %v1380_v17 = vshll.u32 %v1159_v11, 16  ;;  %v1770_v23 = vld [vmem:[#allocation2 + $0x98] sm:$0xf] }
 0x159   :  { %v1975_v1 = vor.u32 %v1974_v29, %v1971_v28  ;;  %v1983_v24 = vshrl.u32 %v1770_v23, 16  ;;  %v1986_v25 = vshll.u32 %v1770_v23, 16  ;;  %v1771_v29 = vld [vmem:[#allocation2 + $0x9c] sm:$0x1] }
 0x15a   :  { %1404 = vrot.lane.b32.xlu2 %v1313_v37, %s2693_s9  ;;  %v1654_v37 = vld [vmem:[#allocation2 + $0x78] sm:$0xf]  ;;  %v1920_v41 = vrot.slane %v1919_v34, 4  ;;  %v1382_v19 = vrot.slane %v1380_v17, 5 }
 0x15b   :  { %2201 = vrot.lane.b32.xlu0 %v2152_v31, %s2697_s13  ;;  %v1976_v43 = vrot.slane %v1975_v1, 4 }
 0x15c   :  { %2203 = vrot.lane.b32.xlu1 %v2156_v38, %s2697_s13  ;;  %v2007_v51 = vpop.permute.xlu2 %2006  ;;  %v1576_v38 = vsel %vm2996_vm12, %v2574_v26, %v1575_v27  ;;  %v1925_v53 = vsel %vm2793_vm8, %v1920_v41, %v1924_v42  ;;  %v1985_v26 = vrot.slane %v1983_v24, 4  ;;  %v1988_v27 = vrot.slane %v1986_v25, 5 }
 0x15d   :  { %v1692_v45 = vpop.permute.xlu0 %1691  ;;  %2050 = vst.msk [vmem:[#allocation3 + $0x14] sm:$0xf] %vm2044_vm6, %v2007_v51  ;;  %v2084_v51 = vld [vmem:[#allocation2 + $0x7c] sm:$0x1]  ;;  %v1981_v54 = vsel %vm2793_vm8, %v1976_v43, %v1980_v44 }
 0x15e   :  { %1732 = vst.msk [vmem:[#allocation3 + $0x20] sm:$0xf] %vm1723_vm3, %v1692_v45  ;;  %v1694_v52 = vpop.permute.xlu1 %1693 }
 0x15f   :  { %1733 = vst.msk [vmem:[#allocation3 + $0x24] sm:$0xf] %vm1723_vm3, %v1694_v52  ;;  %v1658_v52 = vld [vmem:[#allocation2 + $0x98] sm:$0xf] }
 0x162   :  { %1689 = vrot.lane.b32.xlu2 %v1650_v58, %s2695_s11  ;;  %v1371_v58 = vshrl.u32 %v1158_v48, 16 }
 0x163   :  { %2018 = vrot.lane.b32.xlu0 %v1939_v55, %s2696_s12  ;;  %v2089_v55 = vld [vmem:[#allocation2 + $0x90] sm:$0xe] }
 0x164   :  { %2209 = vrot.lane.b32.xlu1 %v2168_v60, %s2697_s13  ;;  %v2198_v8 = vpop.permute.xlu2 %2197  ;;  %v1374_v60 = vshll.u32 %v1158_v48, 16  ;;  %v2589_v2 = vrot.slane %v2089_v55, 9 }
 0x165   :  { %v2200_v14 = vpop.permute.xlu0 %2199  ;;  %2242 = vst.msk [vmem:[#allocation3 + $0x10] sm:$0xf] %vm2237_vm7, %v2198_v8  ;;  %v1373_v8 = vrot.slane %v1371_v58, 4 }
 0x166   :  { %2243 = vst.msk [vmem:[#allocation3 + $0x14] sm:$0xf] %vm2237_vm7, %v2200_v14  ;;  %v2013_v9 = vpop.permute.xlu1 %2012  ;;  %v2171_v14 = vrot.slane %v2084_v51, 5  ;;  %v2184_v12 = vsel %vm2996_vm12, %v2589_v2, %v2183_v3 }
 0x167   :  { %2053 = vst.msk [vmem:[#allocation3 + $0x20] sm:$0xf] %vm2044_vm6, %v2013_v9  ;;  %v1376_v9 = vrot.slane %v1374_v60, 5 }
 0x169   :  { %v1377_v16 = vor.u32 %v1376_v9, %v1373_v8 }
 0x16a   :  { %2008 = vrot.lane.b32.xlu2 %v1869_v59, %s2696_s12  ;;  %v2172_v59 = vsel %vm2996_vm12, %v2586_v63, %v2171_v14 }
 0x16b   :  { %1093 = vrot.lane.b32.xlu0 %v1046_v10, %s2692_s8  ;;  %v1378_v20 = vrot.slane %v1377_v16, 4 }
 0x16c   :  { %1412 = vrot.lane.b32.xlu1 %v1369_v15, %s2693_s9  ;;  %v2015_v30 = vpop.permute.xlu2 %2014  ;;  %v2188_v15 = vsel %vm2996_vm12, %v2590_v4, %v2187_v5 }
 0x16d   :  { %v2206_v56 = vpop.permute.xlu0 %2205  ;;  %v2649_v31 = vld [vmem:[#allocation3 + $0x10] sm:$0xff]  ;;  %2054 = vst.msk [vmem:[#allocation3 + $0x24] sm:$0xf] %vm2044_vm6, %v2015_v30  ;;  %v1383_v35 = vsel %vm2793_vm8, %v1378_v20, %v1382_v19 }
 0x16e   :  { %2246 = vst.msk [vmem:[#allocation3 + $0x20] sm:$0xf] %vm2237_vm7, %v2206_v56  ;;  %v2208_v32 = vpop.permute.xlu1 %2207  ;;  %2641 = vmatmul.msk.bf16.vlgmr.msra.gmra.mxu1 %vm2346_vm10, %v2649_v31  ;;  %v1657_v30 = vld [vmem:[#allocation2 + $0x90] sm:$0xf]  ;;  %v1989_v31 = vor.u32 %v1988_v27, %v1985_v26 }
 0x16f   :  { %2247 = vst.msk [vmem:[#allocation3 + $0x24] sm:$0xf] %vm2237_vm7, %v2208_v32  ;;  %v1992_v32 = vshll.u32 %v1771_v29, 16 }
 0x170   :  { %v1990_v34 = vrot.slane %v1989_v31, 4 }
 0x172   :  { %1697 = vrot.lane.b32.xlu2 %v1654_v37, %s2695_s11 }
 0x173   :  { %1605 = vrot.lane.b32.xlu0 %v1572_v36, %s2694_s10  ;;  %v1994_v36 = vrot.slane %v1992_v32, 5 }
 0x174   :  { %1607 = vrot.lane.b32.xlu1 %v1576_v38, %s2694_s10  ;;  %v1389_v45 = vpop.permute.xlu2 %1388 }
 0x175   :  { %v1391_v40 = vpop.permute.xlu0 %1390  ;;  %1435 = vst.msk [vmem:[#allocation3 + $0x8] sm:$0xf] %vm1432_vm1, %v1389_v45  ;;  %v1995_v39 = vsel %vm2793_vm8, %v1990_v34, %v1994_v36  ;;  %vm2533_vm8 = vcmask 58368  }
 0x176   :  { %1436 = vst.msk [vmem:[#allocation3 + $0xc] sm:$0xf] %vm1432_vm1, %v1391_v40  ;;  %v1582_v47 = vpop.permute.xlu1 %1581  ;;  %v2651_v49 = vld [vmem:[#allocation3 + $0x20] sm:$0xff] }
 0x177   :  { %1628 = vst.msk [vmem:[#allocation3 + $0x8] sm:$0xf] %vm1625_vm2, %v1582_v47  ;;  %2643 = vmatmul.msk.bf16.vlgmr.msra.gmra.mxu2 %vm2346_vm10, %v2651_v49 }
 0x17a   :  { %2016 = vrot.lane.b32.xlu2 %v1925_v53, %s2696_s12 }
 0x17b   :  { %1705 = vrot.lane.b32.xlu0 %v1658_v52, %s2695_s11 }
 0x17c   :  { %2024 = vrot.lane.b32.xlu1 %v1981_v54, %s2696_s12  ;;  %v1584_v0 = vpop.permute.xlu2 %1583 }
 0x17d   :  { %v1409_v7 = vpop.permute.xlu0 %1408  ;;  %1629 = vst.msk [vmem:[#allocation3 + $0xc] sm:$0xf] %vm1625_vm2, %v1584_v0 }
 0x17e   :  { %1445 = vst.msk [vmem:[#allocation3 + $0x30] sm:$0xf] %vm1432_vm1, %v1409_v7  ;;  %v1411_v10 = vpop.permute.xlu1 %1410 }
 0x17f   :  { %1446 = vst.msk [vmem:[#allocation3 + $0x34] sm:$0xf] %vm1432_vm1, %v1411_v10 }
 0x182   :  { %2211 = vrot.lane.b32.xlu2 %v2172_v59, %s2697_s13 }
 0x183   :  { %2217 = vrot.lane.b32.xlu0 %v2184_v12, %s2697_s13 }
 0x184   :  { %2219 = vrot.lane.b32.xlu1 %v2188_v15, %s2697_s13  ;;  %v1680_v21 = vpop.permute.xlu2 %1679 }
 0x185   :  { %v1682_v18 = vpop.permute.xlu0 %1681  ;;  %1726 = vst.msk [vmem:[#allocation3 + $0x8] sm:$0xf] %vm1723_vm3, %v1680_v21 }
 0x186   :  { %1727 = vst.msk [vmem:[#allocation3 + $0xc] sm:$0xf] %vm1723_vm3, %v1682_v18  ;;  %v1602_v22 = vpop.permute.xlu1 %1601 }
 0x187   :  { %1638 = vst.msk [vmem:[#allocation3 + $0x30] sm:$0xf] %vm1625_vm2, %v1602_v22 }
 0x18a   :  { %1414 = vrot.lane.b32.xlu2 %v1383_v35, %s2693_s9 }
 0x18c   :  { %v1604_v6 = vpop.permute.xlu2 %1603 }
 0x18d   :  { %v2001_v56 = vpop.permute.xlu0 %2000  ;;  %1639 = vst.msk [vmem:[#allocation3 + $0x34] sm:$0xf] %vm1625_vm2, %v1604_v6 }
 0x18e   :  { %2047 = vst.msk [vmem:[#allocation3 + $0x8] sm:$0xf] %vm2044_vm6, %v2001_v56  ;;  %v2003_v28 = vpop.permute.xlu1 %2002 }
 0x18f   :  { %2048 = vst.msk [vmem:[#allocation3 + $0xc] sm:$0xf] %vm2044_vm6, %v2003_v28 }
 0x192   :  { %1703 = vrot.lane.b32.xlu2 %v1657_v30, %s2695_s11 }
 0x194   :  { %v1700_v37 = vpop.permute.xlu2 %1699 }
 0x195   :  { %v1702_v33 = vpop.permute.xlu0 %1701  ;;  %1736 = vst.msk [vmem:[#allocation3 + $0x30] sm:$0xf] %vm1723_vm3, %v1700_v37 }
 0x196   :  { %1737 = vst.msk [vmem:[#allocation3 + $0x34] sm:$0xf] %vm1723_vm3, %v1702_v33  ;;  %v2194_v38 = vpop.permute.xlu1 %2193 }
 0x197   :  { %2240 = vst.msk [vmem:[#allocation3 + $0x8] sm:$0xf] %vm2237_vm7, %v2194_v38 }
 0x19a   :  { %2026 = vrot.lane.b32.xlu2 %v1995_v39, %s2696_s12 }
 0x19c   :  { %v2196_v13 = vpop.permute.xlu2 %2195 }
 0x19d   :  { %v2021_v1 = vpop.permute.xlu0 %2020  ;;  %2241 = vst.msk [vmem:[#allocation3 + $0xc] sm:$0xf] %vm2237_vm7, %v2196_v13 }
 0x19e   :  { %2057 = vst.msk [vmem:[#allocation3 + $0x30] sm:$0xf] %vm2044_vm6, %v2021_v1  ;;  %v2023_v40 = vpop.permute.xlu1 %2022 }
 0x19f   :  { %2058 = vst.msk [vmem:[#allocation3 + $0x34] sm:$0xf] %vm2044_vm6, %v2023_v40 }
 0x1a4   :  { %v2214_v42 = vpop.permute.xlu2 %2213  ;;  %v2648_v43 = vld [vmem:[#allocation3 + $0x8] sm:$0xff] }
 0x1a5   :  { %v2216_v41 = vpop.permute.xlu0 %2215  ;;  %2250 = vst.msk [vmem:[#allocation3 + $0x30] sm:$0xf] %vm2237_vm7, %v2214_v42  ;;  %2640 = vmatmul.msk.bf16.gmra.mxu0 %vm2346_vm10, %v2648_v43 }
 0x1a6   :  { %2251 = vst.msk [vmem:[#allocation3 + $0x34] sm:$0xf] %vm2237_vm7, %v2216_v41  ;;  %v1397_v44 = vpop.permute.xlu1 %1396 }
 0x1a7   :  { %1439 = vst.msk [vmem:[#allocation3 + $0x18] sm:$0xf] %vm1432_vm1, %v1397_v44 }
 0x1ac   :  { %v1399_v45 = vpop.permute.xlu2 %1398 }
 0x1ad   :  { %v1590_v46 = vpop.permute.xlu0 %1589  ;;  %v2653_v47 = vld [vmem:[#allocation3 + $0x30] sm:$0xff]  ;;  %1440 = vst.msk [vmem:[#allocation3 + $0x1c] sm:$0xf] %vm1432_vm1, %v1399_v45 }
 0x1ae   :  { %1632 = vst.msk [vmem:[#allocation3 + $0x18] sm:$0xf] %vm1625_vm2, %v1590_v46  ;;  %v1592_v48 = vpop.permute.xlu1 %1591  ;;  %2645 = vmatmul.msk.bf16.vlgmr.msra.gmra.mxu3 %vm2346_vm10, %v2653_v47 }
 0x1af   :  { %1633 = vst.msk [vmem:[#allocation3 + $0x1c] sm:$0xf] %vm1625_vm2, %v1592_v48 }
 0x1b4   :  { %v1405_v50 = vpop.permute.xlu2 %1404 }
 0x1b5   :  { %v1407_v49 = vpop.permute.xlu0 %1406  ;;  %1443 = vst.msk [vmem:[#allocation3 + $0x28] sm:$0xf] %vm1432_vm1, %v1405_v50 }
 0x1b6   :  { %1444 = vst.msk [vmem:[#allocation3 + $0x2c] sm:$0xf] %vm1432_vm1, %v1407_v49  ;;  %v1688_v51 = vpop.permute.xlu1 %1687 }
 0x1b7   :  { %1730 = vst.msk [vmem:[#allocation3 + $0x18] sm:$0xf] %vm1723_vm3, %v1688_v51 }
 0x1bc   :  { %v1690_v53 = vpop.permute.xlu2 %1689 }
 0x1bd   :  { %v1598_v52 = vpop.permute.xlu0 %1597  ;;  %1731 = vst.msk [vmem:[#allocation3 + $0x1c] sm:$0xf] %vm1723_vm3, %v1690_v53 }
 0x1be   :  { %1636 = vst.msk [vmem:[#allocation3 + $0x28] sm:$0xf] %vm1625_vm2, %v1598_v52  ;;  %v1600_v54 = vpop.permute.xlu1 %1599 }
 0x1bf   :  { %1637 = vst.msk [vmem:[#allocation3 + $0x2c] sm:$0xf] %vm1625_vm2, %v1600_v54 }
 0x1c2   :  { %v3475_v55 = vpop.f32.mrf.mxu0 }
 0x1c3   :  { %2425 = vst.msk [vmem:[%s3608_s4] sm:$0xff] %vm2424_vm4, %v3475_v55  ;;  %v2478_v25 = vmul.f32 %v3475_v55, %v3475_v55  ;;  %v2441_v26 = vsel %vm2424_vm4, %v3475_v55, 0.0 }
 0x1c4   :  { %v2009_v58 = vpop.permute.xlu2 %2008 }
 0x1c5   :  { %v2011_v57 = vpop.permute.xlu0 %2010  ;;  %2051 = vst.msk [vmem:[#allocation3 + $0x18] sm:$0xf] %vm2044_vm6, %v2009_v58  ;;  %v2494_v29 = vsel %vm2424_vm4, %v2478_v25, 0.0 }
 0x1c6   :  { %v1696_v60 = vpop.permute.xlu1 %1695  ;;  %2052 = vst.msk [vmem:[#allocation3 + $0x1c] sm:$0xf] %vm2044_vm6, %v2011_v57 }
 0x1c7   :  { %1734 = vst.msk [vmem:[#allocation3 + $0x28] sm:$0xf] %vm1723_vm3, %v1696_v60 }
 0x1ca   :  { %v2386_v61 = vpop.f32.mrf.mxu0 }
 0x1cb   :  { %2426 = vst.msk [vmem:[%s3608_s4 + $0x8] sm:$0xff] %vm2424_vm4, %v2386_v61  ;;  %v2479_v24 = vmul.f32 %v2386_v61, %v2386_v61  ;;  %v2442_v56 = vsel %vm2424_vm4, %v2386_v61, 0.0 }
 0x1cc   :  { %v1698_v63 = vpop.permute.xlu2 %1697  ;;  %v2443_v6 = vadd.f32 %v2442_v56, %v2441_v26 }
 0x1cd   :  { %v2202_v62 = vpop.permute.xlu0 %2201  ;;  %1735 = vst.msk [vmem:[#allocation3 + $0x2c] sm:$0xf] %vm1723_vm3, %v1698_v63  ;;  %v2495_v27 = vsel %vm2424_vm4, %v2479_v24, 0.0 }
 0x1ce   :  { %v2204_v14 = vpop.permute.xlu1 %2203  ;;  %2244 = vst.msk [vmem:[#allocation3 + $0x18] sm:$0xf] %vm2237_vm7, %v2202_v62  ;;  %v2496_v32 = vadd.f32 %v2495_v27, %v2494_v29 }
 0x1cf   :  { %2245 = vst.msk [vmem:[#allocation3 + $0x1c] sm:$0xf] %vm2237_vm7, %v2204_v14 }
 0x1d4   :  { %v2017_v3 = vpop.permute.xlu2 %2016 }
 0x1d5   :  { %v2019_v2 = vpop.permute.xlu0 %2018  ;;  %2055 = vst.msk [vmem:[#allocation3 + $0x28] sm:$0xf] %vm2044_vm6, %v2017_v3 }
 0x1d6   :  { %2056 = vst.msk [vmem:[#allocation3 + $0x2c] sm:$0xf] %vm2044_vm6, %v2019_v2  ;;  %v2210_v7 = vpop.permute.xlu1 %2209  ;;  %v2650_v4 = vld [vmem:[#allocation3 + $0x18] sm:$0xff] }
 0x1d7   :  { %2248 = vst.msk [vmem:[#allocation3 + $0x28] sm:$0xf] %vm2237_vm7, %v2210_v7  ;;  %2642 = vmatmul.msk.bf16.gmra.mxu1 %vm2346_vm10, %v2650_v4 }
 0x1dc   :  { %v2212_v8 = vpop.permute.xlu2 %2211 }
 0x1dd   :  { %v1094_v5 = vpop.permute.xlu0 %1093  ;;  %2249 = vst.msk [vmem:[#allocation3 + $0x2c] sm:$0xf] %vm2237_vm7, %v2212_v8 }
 0x1de   :  { %v1413_v9 = vpop.permute.xlu1 %1412  ;;  %1127 = vst.msk [vmem:[#allocation3 + $0x3c] sm:$0xf] %vm1111_vm15, %v1094_v5 }
 0x1df   :  { %1447 = vst.msk [vmem:[#allocation3 + $0x38] sm:$0xf] %vm1432_vm1, %v1413_v9 }
 0x1e4   :  { %v2652_v10 = vld [vmem:[#allocation3 + $0x28] sm:$0xff]  ;;  %v1415_v11 = vpop.permute.xlu2 %1414 }
 0x1e5   :  { %v1606_v0 = vpop.permute.xlu0 %1605  ;;  %1448 = vst.msk [vmem:[#allocation3 + $0x3c] sm:$0xf] %vm1432_vm1, %v1415_v11  ;;  %2644 = vmatmul.msk.bf16.gmra.mxu2 %vm2346_vm10, %v2652_v10 }
 0x1e6   :  { %v1608_v12 = vpop.permute.xlu1 %1607  ;;  %1640 = vst.msk [vmem:[#allocation3 + $0x38] sm:$0xf] %vm1625_vm2, %v1606_v0 }
 0x1e7   :  { %1641 = vst.msk [vmem:[#allocation3 + $0x3c] sm:$0xf] %vm1625_vm2, %v1608_v12 }
 0x1eb   :  { %v2394_v59 = vpop.f32.mrf.mxu1 }
 0x1ec   :  { %2429 = vst.msk [vmem:[%s3608_s4 + $0x20] sm:$0xff] %vm2424_vm4, %v2394_v59  ;;  %v1704_v16 = vpop.permute.xlu2 %1703  ;;  %v2482_v38 = vmul.f32 %v2394_v59, %v2394_v59  ;;  %v2448_v40 = vsel %vm2424_vm4, %v2394_v59, 0.0 }
 0x1ed   :  { %v1706_v15 = vpop.permute.xlu0 %1705  ;;  %1738 = vst.msk [vmem:[#allocation3 + $0x38] sm:$0xf] %vm1723_vm3, %v1704_v16 }
 0x1ee   :  { %v2025_v17 = vpop.permute.xlu1 %2024  ;;  %1739 = vst.msk [vmem:[#allocation3 + $0x3c] sm:$0xf] %vm1723_vm3, %v1706_v15  ;;  %v2501_v44 = vsel %vm2424_vm4, %v2482_v38, 0.0 }
 0x1ef   :  { %2059 = vst.msk [vmem:[#allocation3 + $0x38] sm:$0xf] %vm2044_vm6, %v2025_v17 }
 0x1f3   :  { %v2396_v18 = vpop.f32.mrf.mxu1 }
 0x1f4   :  { %2430 = vst.msk [vmem:[%s3608_s4 + $0x28] sm:$0xff] %vm2424_vm4, %v2396_v18  ;;  %v2027_v19 = vpop.permute.xlu2 %2026  ;;  %v2483_v49 = vmul.f32 %v2396_v18, %v2396_v18  ;;  %v2450_v51 = vsel %vm2424_vm4, %v2396_v18, 0.0 }
 0x1f5   :  { %v2218_v20 = vpop.permute.xlu0 %2217  ;;  %2060 = vst.msk [vmem:[#allocation3 + $0x3c] sm:$0xf] %vm2044_vm6, %v2027_v19 }
 0x1f6   :  { %v2220_v21 = vpop.permute.xlu1 %2219  ;;  %2252 = vst.msk [vmem:[#allocation3 + $0x38] sm:$0xf] %vm2237_vm7, %v2218_v20  ;;  %v2503_v54 = vsel %vm2424_vm4, %v2483_v49, 0.0 }
 0x1f7   :  { %2253 = vst.msk [vmem:[#allocation3 + $0x3c] sm:$0xf] %vm2237_vm7, %v2220_v21 }
 0x1fa   :  { %v2404_v22 = vpop.f32.mrf.mxu2 }
 0x1fb   :  { %2433 = vst.msk [vmem:[%s3608_s4 + $0x40] sm:$0xff] %vm2424_vm4, %v2404_v22  ;;  %v2486_v61 = vmul.f32 %v2404_v22, %v2404_v22  ;;  %v2456_v3 = vsel %vm2424_vm4, %v2404_v22, 0.0 }
 0x1fd   :  { %v2509_v8 = vsel %vm2424_vm4, %v2486_v61, 0.0 }
 0x1fe   :  { %v2654_v23 = vld [vmem:[#allocation3 + $0x38] sm:$0xff] }
 0x1ff   :  { %2646 = vmatmul.msk.bf16.gmra.mxu3 %vm2346_vm10, %v2654_v23 }
 0x202   :  { %v2406_v35 = vpop.f32.mrf.mxu2 }
 0x203   :  { %2434 = vst.msk [vmem:[%s3608_s4 + $0x48] sm:$0xff] %vm2424_vm4, %v2406_v35  ;;  %v2487_v10 = vmul.f32 %v2406_v35, %v2406_v35  ;;  %v2458_v11 = vsel %vm2424_vm4, %v2406_v35, 0.0 }
 0x205   :  { %v2511_v15 = vsel %vm2424_vm4, %v2487_v10, 0.0 }
 0x222   :  { %v2389_v28 = vpop.f32.mrf.mxu0 }
 0x223   :  { %2427 = vst.msk [vmem:[%s3608_s4 + $0x10] sm:$0xff] %vm2424_vm4, %v2389_v28  ;;  %v2444_v30 = vsel %vm2424_vm4, %v2389_v28, 0.0  ;;  %v2480_v31 = vmul.f32 %v2389_v28, %v2389_v28 }
 0x224   :  { %v2445_v33 = vadd.f32 %v2444_v30, %v2443_v6 }
 0x225   :  { %v2497_v34 = vsel %vm2424_vm4, %v2480_v31, 0.0 }
 0x226   :  { %v2498_v36 = vadd.f32 %v2497_v34, %v2496_v32 }
 0x22a   :  { %v2391_v37 = vpop.f32.mrf.mxu0 }
 0x22b   :  { %2428 = vst.msk [vmem:[%s3608_s4 + $0x18] sm:$0xff] %vm2424_vm4, %v2391_v37  ;;  %v2446_v39 = vsel %vm2424_vm4, %v2391_v37, 0.0  ;;  %v2481_v1 = vmul.f32 %v2391_v37, %v2391_v37 }
 0x22c   :  { %v2447_v13 = vadd.f32 %v2446_v39, %v2445_v33 }
 0x22d   :  { %v2499_v41 = vsel %vm2424_vm4, %v2481_v1, 0.0 }
 0x22e   :  { %v2449_v42 = vadd.f32 %v2448_v40, %v2447_v13  ;;  %v2500_v43 = vadd.f32 %v2499_v41, %v2498_v36 }
 0x230   :  { %v2502_v46 = vadd.f32 %v2501_v44, %v2500_v43  ;;  %v2451_v53 = vadd.f32 %v2450_v51, %v2449_v42 }
 0x231   :  { %v2414_v45 = vpop.f32.mrf.mxu3 }
 0x232   :  { %2437 = vst.msk [vmem:[%s3608_s4 + $0x60] sm:$0xff] %vm2424_vm4, %v2414_v45  ;;  %v2504_v58 = vadd.f32 %v2503_v54, %v2502_v46  ;;  %v2490_v21 = vmul.f32 %v2414_v45, %v2414_v45  ;;  %v2464_v25 = vsel %vm2424_vm4, %v2414_v45, 0.0 }
 0x234   :  { %v2517_v6 = vsel %vm2424_vm4, %v2490_v21, 0.0 }
 0x239   :  { %v2416_v47 = vpop.f32.mrf.mxu3 }
 0x23a   :  { %2438 = vst.msk [vmem:[%s3608_s4 + $0x68] sm:$0xff] %vm2424_vm4, %v2416_v47  ;;  %v2491_v30 = vmul.f32 %v2416_v47, %v2416_v47  ;;  %v2466_v32 = vsel %vm2424_vm4, %v2416_v47, 0.0 }
 0x23c   :  { %v2519_v36 = vsel %vm2424_vm4, %v2491_v30, 0.0 }
 0x254   :  { %v2399_v48 = vpop.f32.mrf.mxu1 }
 0x255   :  { %2431 = vst.msk [vmem:[%s3608_s4 + $0x30] sm:$0xff] %vm2424_vm4, %v2399_v48  ;;  %v2484_v50 = vmul.f32 %v2399_v48, %v2399_v48  ;;  %v2452_v52 = vsel %vm2424_vm4, %v2399_v48, 0.0 }
 0x256   :  { %v2453_v57 = vadd.f32 %v2452_v52, %v2451_v53 }
 0x257   :  { %v2505_v55 = vsel %vm2424_vm4, %v2484_v50, 0.0 }
 0x258   :  { %v2506_v14 = vadd.f32 %v2505_v55, %v2504_v58 }
 0x25c   :  { %v2401_v60 = vpop.f32.mrf.mxu1 }
 0x25d   :  { %2432 = vst.msk [vmem:[%s3608_s4 + $0x38] sm:$0xff] %vm2424_vm4, %v2401_v60  ;;  %v2454_v62 = vsel %vm2424_vm4, %v2401_v60, 0.0  ;;  %v2485_v63 = vmul.f32 %v2401_v60, %v2401_v60 }
 0x25e   :  { %v2455_v2 = vadd.f32 %v2454_v62, %v2453_v57 }
 0x25f   :  { %v2507_v7 = vsel %vm2424_vm4, %v2485_v63, 0.0 }
 0x260   :  { %v2457_v4 = vadd.f32 %v2456_v3, %v2455_v2  ;;  %v2508_v5 = vadd.f32 %v2507_v7, %v2506_v14 }
 0x262   :  { %v2510_v9 = vadd.f32 %v2509_v8, %v2508_v5  ;;  %v2459_v59 = vadd.f32 %v2458_v11, %v2457_v4 }
 0x264   :  { %v2512_v17 = vadd.f32 %v2511_v15, %v2510_v9 }
 0x268   :  { %v2409_v0 = vpop.f32.mrf.mxu2 }
 0x269   :  { %2435 = vst.msk [vmem:[%s3608_s4 + $0x50] sm:$0xff] %vm2424_vm4, %v2409_v0  ;;  %v2488_v12 = vmul.f32 %v2409_v0, %v2409_v0  ;;  %v2460_v16 = vsel %vm2424_vm4, %v2409_v0, 0.0 }
 0x26a   :  { %v2461_v20 = vadd.f32 %v2460_v16, %v2459_v59 }
 0x26b   :  { %v2513_v18 = vsel %vm2424_vm4, %v2488_v12, 0.0 }
 0x26c   :  { %v2514_v35 = vadd.f32 %v2513_v18, %v2512_v17 }
 0x270   :  { %v2411_v19 = vpop.f32.mrf.mxu2 }
 0x271   :  { %2436 = vst.msk [vmem:[%s3608_s4 + $0x58] sm:$0xff] %vm2424_vm4, %v2411_v19  ;;  %v2462_v22 = vsel %vm2424_vm4, %v2411_v19, 0.0  ;;  %v2489_v23 = vmul.f32 %v2411_v19, %v2411_v19 }
 0x272   :  { %v2463_v24 = vadd.f32 %v2462_v22, %v2461_v20 }
 0x273   :  { %v2515_v56 = vsel %vm2424_vm4, %v2489_v23, 0.0 }
 0x274   :  { %v2465_v26 = vadd.f32 %v2464_v25, %v2463_v24  ;;  %v2516_v27 = vadd.f32 %v2515_v56, %v2514_v35 }
 0x276   :  { %v2518_v28 = vadd.f32 %v2517_v6, %v2516_v27  ;;  %v2467_v34 = vadd.f32 %v2466_v32, %v2465_v26 }
 0x278   :  { %v2520_v39 = vadd.f32 %v2519_v36, %v2518_v28 }
 0x282   :  { %v2419_v29 = vpop.f32.mrf.mxu3 }
 0x283   :  { %2439 = vst.msk [vmem:[%s3608_s4 + $0x70] sm:$0xff] %vm2424_vm4, %v2419_v29  ;;  %v2492_v31 = vmul.f32 %v2419_v29, %v2419_v29  ;;  %v2468_v33 = vsel %vm2424_vm4, %v2419_v29, 0.0 }
 0x284   :  { %v2469_v38 = vadd.f32 %v2468_v33, %v2467_v34 }
 0x285   :  { %v2521_v37 = vsel %vm2424_vm4, %v2492_v31, 0.0 }
 0x286   :  { %v2522_v41 = vadd.f32 %v2521_v37, %v2520_v39 }
 0x28a   :  { %v2421_v1 = vpop.f32.mrf.mxu3 }
 0x28b   :  { %2440 = vst.msk [vmem:[%s3608_s4 + $0x78] sm:$0xff] %vm2424_vm4, %v2421_v1  ;;  %v2470_v13 = vsel %vm2424_vm4, %v2421_v1, 0.0  ;;  %v2493_v40 = vmul.f32 %v2421_v1, %v2421_v1 }
 0x28c   :  { %v2471_v42 = vadd.f32 %v2470_v13, %v2469_v38 }
 0x28d   :  { %v2523_v43 = vsel %vm2424_vm4, %v2493_v40, 0.0 }
 0x28e   :  { %v2472_v44 = vrot.slane %v2471_v42, 4  ;;  %v2524_v46 = vadd.f32 %v2523_v43, %v2522_v41 }
 0x290   :  { %v2473_v45 = vadd.f32 %v2472_v44, %v2471_v42  ;;  %v2525_v47 = vrot.slane %v2524_v46, 4 }
 0x292   :  { %v2474_v48 = vrot.slane %v2473_v45, 2  ;;  %v2526_v49 = vadd.f32 %v2525_v47, %v2524_v46 }
 0x294   :  { %v2475_v50 = vadd.f32 %v2474_v48, %v2473_v45  ;;  %v2527_v51 = vrot.slane %v2526_v49, 2 }
 0x296   :  { %v2476_v52 = vrot.slane %v2475_v50, 1  ;;  %v2528_v53 = vadd.f32 %v2527_v51, %v2526_v49 }
 0x298   :  { %v2529_v54 = vrot.slane %v2528_v53, 1  ;;  %v2477_v55 = vadd.f32 %v2476_v52, %v2475_v50 }
 0x29a   :  { %v2530_v57 = vadd.f32 %v2529_v54, %v2528_v53 }
 0x29c   :  { %v2532_v58 = vsel %vm2531_vm5, %v2477_v55, %v2530_v57 }
 0x29d   :  { %2534 = vst.msk [vmem:[%s3609_s5] sm:$0x3] %vm2533_vm8, %v2532_v58 }

</bundles_post_ra>
